<compile_context>
chip_gen: v5e
topology: v5e:2x2
jax: 0.10.0
libtpu: 0.0.40
codegen_flags: <defaults>
</compile_context>

<pallas_src>
import functools
import math

import jax
import jax.numpy as jnp
from jax import lax
from jax.experimental import pallas as pl
from jax.experimental.pallas import tpu as pltpu

# Model dims (SimpleTransformer(input_dim=1, num_classes=10))
IN_DIM = 1
D_MODEL = 128
N_HEADS = 4
HEAD_DIM = D_MODEL // N_HEADS
D_FF = 256
N_LAYERS = 2
N_CLASSES = 10
N_CLASSES_PAD = 128          # lane-dense classifier output (sliced to 10 outside)
LN_EPS = 1e-5
NEG_INF = -1e30              # additive mask fill (finite -> no inf/nan hazards)

KERNEL_PARAM_ORDER = (
    "emb_w", "emb_b",
    "qkv_w", "qkv_b", "out_w", "out_b",
    "n1_w", "n1_b",
    "ff1_w", "ff1_b", "ff2_w", "ff2_b",
    "n2_w", "n2_b",
    "cls_w", "cls_b",
)


def _layernorm(x, w, b):
    mu = jnp.mean(x, axis=-1, keepdims=True)
    var = jnp.mean(jnp.square(x - mu), axis=-1, keepdims=True)
    return (x - mu) * lax.rsqrt(var + LN_EPS) * w + b


def transformer_kernel(
    bt, seq, grp,                 # static: examples/block, seq len, examples/attention-group
    x_ref,                        # (bt*seq, 1)            f32
    bias_ref,                     # (grp*seq, grp*seq)     f32 additive block-diag mask
    emb_w_ref, emb_b_ref,         # (1, 128), (1, 128)     f32
    qkv_w_ref, qkv_b_ref,         # (L, 128, 384) bf16, (L, 1, 384) f32 (Q pre-scaled)
    out_w_ref, out_b_ref,         # (L, 128, 128) bf16, (L, 1, 128) f32
    n1_w_ref, n1_b_ref,           # (L, 1, 128) f32
    ff1_w_ref, ff1_b_ref,         # (L, 128, 256) bf16, (L, 1, 256) f32
    ff2_w_ref, ff2_b_ref,         # (L, 256, 128) bf16, (L, 1, 128) f32
    n2_w_ref, n2_b_ref,           # (L, 1, 128) f32
    cls_w_ref, cls_b_ref,         # (128, 128) bf16, (1, 128) f32 (zero-padded cols)
    o_ref,                        # (bt, 128) f32 — distinct tile per grid step
):
    rows = bt * seq
    grows = grp * seq
    n_grp = bt // grp
    bf16 = jnp.bfloat16
    f32 = jnp.float32

    # Per-head 0/1 lane masks over the 128 model columns (built once; reused for
    # every group / head / layer). Selecting a head by masking keeps the score
    # contraction at K=128 (same MXU push count as K=32) and avoids all 32-lane
    # slices / relayouts.
    lane = lax.broadcasted_iota(jnp.int32, (1, D_MODEL), 1)
    head_mask = [
        jnp.where((lane >= h * HEAD_DIM) & (lane < (h + 1) * HEAD_DIM),
                  1.0, 0.0).astype(bf16)
        for h in range(N_HEADS)
    ]

    attn_bias = bias_ref[...]     # (grows, grows) additive block-diagonal mask

    # Embedding Linear(1 -> 128): per-row broadcast multiply-add on the VPU.
    h = x_ref[...] * emb_w_ref[...] + emb_b_ref[...]              # (rows, 128) f32

    for l in range(N_LAYERS):
        # ---------------- self-attention block (post-norm) ----------------
        qkv = jnp.dot(h.astype(bf16), qkv_w_ref[l],
                      preferred_element_type=f32) + qkv_b_ref[l]   # (rows, 384)
        qkv_bf = qkv.astype(bf16)                                  # single cast
        q_bf = qkv_bf[:, :D_MODEL]                 # 128-aligned lane slices (free)
        k_bf = qkv_bf[:, D_MODEL:2 * D_MODEL]
        v_bf = qkv_bf[:, 2 * D_MODEL:]

        parts = []
        for g in range(n_grp):
            r0 = g * grows                          # sublane-tile aligned
            qg = q_bf[r0:r0 + grows, :]
            kg = k_bf[r0:r0 + grows, :]
            vg = v_bf[r0:r0 + grows, :]
            acc = jnp.zeros((grows, D_MODEL), f32)
            for hh in range(N_HEADS):
                # Dense scores over the whole group (full-rate MXU matmul);
                # cross-example pairs are killed by the block-diagonal bias.
                s = lax.dot_general(qg * head_mask[hh], kg,
                                    (((1,), (1,)), ((), ())),
                                    preferred_element_type=f32)    # (grows, grows)
                s = s + attn_bias
                s = s - jnp.max(s, axis=-1, keepdims=True)         # lane-dense
                p = jnp.exp(s)
                p = p * pl.reciprocal(jnp.sum(p, axis=-1, keepdims=True),
                                      approx=True)
                # Per-head ctx lands in this head's (disjoint) 32 columns.
                acc = acc + jnp.dot(p.astype(bf16), vg * head_mask[hh],
                                    preferred_element_type=f32)    # (grows, 128)
            parts.append(acc)
        attn_pre = parts[0] if n_grp == 1 else jnp.concatenate(parts, axis=0)
        # Merged-head output projection: one K=128 matmul.
        attn = jnp.dot(attn_pre.astype(bf16), out_w_ref[l],
                       preferred_element_type=f32) + out_b_ref[l]
        h = _layernorm(h + attn, n1_w_ref[l], n1_b_ref[l])

        # ---------------- feed-forward block (relu) ----------------
        f = jnp.dot(h.astype(bf16), ff1_w_ref[l],
                    preferred_element_type=f32) + ff1_b_ref[l]
        f = jnp.maximum(f, 0.0)
        f = jnp.dot(f.astype(bf16), ff2_w_ref[l],
                    preferred_element_type=f32) + ff2_b_ref[l]
        h = _layernorm(h + f, n2_w_ref[l], n2_b_ref[l])

    # Mean over the sequence, then classifier into a lane-dense 128-wide tile.
    pooled = jnp.mean(h.reshape(bt, seq, D_MODEL), axis=1)         # (bt, 128)
    logits = jnp.dot(pooled.astype(bf16), cls_w_ref[...],
                     preferred_element_type=f32) + cls_b_ref[...]
    o_ref[...] = logits                                            # whole-block store


def pack_params(p):
    """Offline weight transforms: fold attention scale into Q, pad the
    classifier to 128 lanes, cast matmul weights to bf16 (biases / LayerNorm
    params stay f32)."""
    scale = 1.0 / math.sqrt(HEAD_DIM)
    qkv_w = p["qkv_wT"].at[:, :, :D_MODEL].multiply(scale)
    qkv_b = p["qkv_b"].at[:, :, :D_MODEL].multiply(scale)
    cls_w = jnp.zeros((D_MODEL, N_CLASSES_PAD), jnp.float32).at[:, :N_CLASSES].set(p["cls_wT"])
    cls_b = jnp.zeros((1, N_CLASSES_PAD), jnp.float32).at[:, :N_CLASSES].set(p["cls_b"])
    bf = lambda a: a.astype(jnp.bfloat16)
    return {
        "emb_w": p["emb_wT"], "emb_b": p["emb_b"],      # used on the VPU, keep f32
        "qkv_w": bf(qkv_w), "qkv_b": qkv_b,
        "out_w": bf(p["out_wT"]), "out_b": p["out_b"],
        "n1_w": p["n1_w"], "n1_b": p["n1_b"],
        "ff1_w": bf(p["ff1_wT"]), "ff1_b": p["ff1_b"],
        "ff2_w": bf(p["ff2_wT"]), "ff2_b": p["ff2_b"],
        "n2_w": p["n2_w"], "n2_b": p["n2_b"],
        "cls_w": bf(cls_w), "cls_b": cls_b,
    }


def _const_index_map(ndim, i):
    return (0,) * ndim


def _pick_bt(batch):
    """Largest block in {64, 32, 16} with small padding waste and >= 2 grid
    steps when possible (feeds both TensorCores on v7x)."""
    for bt in (64, 32):
        n_blocks = -(-batch // bt)
        waste = n_blocks * bt - batch
        if batch >= 2 * bt and (waste <= bt // 4 or waste * 8 <= batch):
            return bt
    return 16


def _pick_group(bt, seq):
    """Examples per dense-attention group: ~128 rows so the score matrix is
    lane-dense while the masked (wasted) area stays bounded as bt grows."""
    grp = max(1, 128 // max(seq, 1))
    grp = 1 << (grp.bit_length() - 1)        # power of two -> divides bt
    return min(grp, bt)


def _block_diag_bias(grp, seq):
    rows = grp * seq
    r = jnp.arange(rows) // seq
    return jnp.where(r[:, None] == r[None, :], 0.0, NEG_INF).astype(jnp.float32)


@jax.jit
def simple_transformer_pallas(x, params):
    B, S, in_dim = x.shape
    assert in_dim == IN_DIM
    kp = pack_params(params)
    weights = [kp[k] for k in KERNEL_PARAM_ORDER]

    bt = _pick_bt(B)
    grp = _pick_group(bt, S)
    b_pad = ((B + bt - 1) // bt) * bt
    if b_pad != B:
        x = jnp.pad(x, ((0, b_pad - B), (0, 0), (0, 0)))
    x_flat = x.reshape(b_pad * S, IN_DIM).astype(jnp.float32)
    bias = _block_diag_bias(grp, S)

    rows = bt * S
    grows = grp * S
    in_specs = [
        pl.BlockSpec((rows, IN_DIM), lambda i: (i, 0)),
        pl.BlockSpec((grows, grows), functools.partial(_const_index_map, 2)),
    ]
    in_specs += [
        pl.BlockSpec(w.shape, functools.partial(_const_index_map, w.ndim))
        for w in weights
    ]
    # Per-block output tile -> batch grid axis can be "parallel" (megacore on v7x).
    out_specs = pl.BlockSpec((bt, N_CLASSES_PAD), lambda i: (i, 0))

    out = pl.pallas_call(
        functools.partial(transformer_kernel, bt, S, grp),
        out_shape=jax.ShapeDtypeStruct((b_pad, N_CLASSES_PAD), jnp.float32),
        grid=(b_pad // bt,),
        in_specs=in_specs,
        out_specs=out_specs,
        compiler_params=pltpu.CompilerParams(
            dimension_semantics=("parallel",)),
    )(x_flat, bias, *weights)
    return out[:B, :N_CLASSES]


def init_params(seed=0):
    """Deterministic synthetic parameters (shapes match the PyTorch module,
    stored pre-transposed for `act @ W`)."""
    kit = iter(jax.random.split(jax.random.PRNGKey(seed), 64))

    def w(shape, scale=0.02):
        return (scale * jax.random.normal(next(kit), shape)).astype(jnp.float32)

    p = {}
    p["emb_wT"] = w((IN_DIM, D_MODEL))                   # embedding.weight.T
    p["emb_b"] = w((1, D_MODEL))
    p["qkv_wT"] = w((N_LAYERS, D_MODEL, 3 * D_MODEL))    # in_proj_weight.T
    p["qkv_b"] = w((N_LAYERS, 1, 3 * D_MODEL))
    p["out_wT"] = w((N_LAYERS, D_MODEL, D_MODEL))        # out_proj.weight.T
    p["out_b"] = w((N_LAYERS, 1, D_MODEL))
    p["n1_w"] = jnp.ones((N_LAYERS, 1, D_MODEL), jnp.float32)
    p["n1_b"] = jnp.zeros((N_LAYERS, 1, D_MODEL), jnp.float32)
    p["ff1_wT"] = w((N_LAYERS, D_MODEL, D_FF))           # linear1.weight.T
    p["ff1_b"] = w((N_LAYERS, 1, D_FF))
    p["ff2_wT"] = w((N_LAYERS, D_FF, D_MODEL))           # linear2.weight.T
    p["ff2_b"] = w((N_LAYERS, 1, D_MODEL))
    p["n2_w"] = jnp.ones((N_LAYERS, 1, D_MODEL), jnp.float32)
    p["n2_b"] = jnp.zeros((N_LAYERS, 1, D_MODEL), jnp.float32)
    p["cls_wT"] = w((D_MODEL, N_CLASSES))                # classifier.weight.T
    p["cls_b"] = w((1, N_CLASSES))
    return p


def reference_forward(x, p):
    """Pure-JAX f32 reference for one example x: (S, IN_DIM) -> (NC,)."""
    h = x @ p["emb_wT"] + p["emb_b"]
    for l in range(N_LAYERS):
        qkv = h @ p["qkv_wT"][l] + p["qkv_b"][l]
        q, k, v = qkv[:, :D_MODEL], qkv[:, D_MODEL:2 * D_MODEL], qkv[:, 2 * D_MODEL:]
        heads = []
        for hh in range(N_HEADS):
            sl = slice(hh * HEAD_DIM, (hh + 1) * HEAD_DIM)
            s = (q[:, sl] @ k[:, sl].T) / math.sqrt(HEAD_DIM)
            heads.append(jax.nn.softmax(s, axis=-1) @ v[:, sl])
        attn = jnp.concatenate(heads, axis=-1) @ p["out_wT"][l] + p["out_b"][l]
        h = _layernorm(h + attn, p["n1_w"][l], p["n1_b"][l])
        f = jnp.maximum(h @ p["ff1_wT"][l] + p["ff1_b"][l], 0.0)
        f = f @ p["ff2_wT"][l] + p["ff2_b"][l]
        h = _layernorm(h + f, p["n2_w"][l], p["n2_b"][l])
    pooled = jnp.mean(h, axis=0)
    return pooled @ p["cls_wT"] + p["cls_b"][0]


if __name__ == "__main__":
    params = init_params(0)
    ref_fn = jax.jit(jax.vmap(lambda xe: reference_forward(xe, params)))

    S = 8
    # B=2: tiny module-consistent shape (padding within one block).
    # B=20: non-multiple batch -> padding + multi-step "parallel" grid.
    # B=64: bt=32 path with two dense-attention groups per block.
    for key, B in ((0, 2), (1, 20), (2, 64)):
        x = jax.random.normal(jax.random.PRNGKey(key), (B, S, IN_DIM), dtype=jnp.float32)
        out = jax.block_until_ready(simple_transformer_pallas(x, params))
        assert out.shape == (B, N_CLASSES) and out.dtype == jnp.float32
        ref = jax.block_until_ready(ref_fn(x))
        if not jnp.allclose(out, ref, atol=2e-2, rtol=2e-2):
            raise AssertionError(
                f"Pallas output mismatch vs JAX reference (B={B}):\n{out}\nvs\n{ref}")

    print("KERNEL_OK")
</pallas_src>

<mosaic_0001>
module attributes {stable_mosaic.version = 11 : i64} {
  func.func @transformer_kernel(%arg0: i32, %arg1: memref<128x1xf32, #tpu.memory_space<vmem>>, %arg2: memref<128x128xf32, #tpu.memory_space<vmem>>, %arg3: memref<1x128xf32, #tpu.memory_space<vmem>>, %arg4: memref<1x128xf32, #tpu.memory_space<vmem>>, %arg5: memref<2x128x384xbf16, #tpu.memory_space<vmem>>, %arg6: memref<2x1x384xf32, #tpu.memory_space<vmem>>, %arg7: memref<2x128x128xbf16, #tpu.memory_space<vmem>>, %arg8: memref<2x1x128xf32, #tpu.memory_space<vmem>>, %arg9: memref<2x1x128xf32, #tpu.memory_space<vmem>>, %arg10: memref<2x1x128xf32, #tpu.memory_space<vmem>>, %arg11: memref<2x128x256xbf16, #tpu.memory_space<vmem>>, %arg12: memref<2x1x256xf32, #tpu.memory_space<vmem>>, %arg13: memref<2x256x128xbf16, #tpu.memory_space<vmem>>, %arg14: memref<2x1x128xf32, #tpu.memory_space<vmem>>, %arg15: memref<2x1x128xf32, #tpu.memory_space<vmem>>, %arg16: memref<2x1x128xf32, #tpu.memory_space<vmem>>, %arg17: memref<128x128xbf16, #tpu.memory_space<vmem>>, %arg18: memref<1x128xf32, #tpu.memory_space<vmem>>, %arg19: memref<16x128xf32, #tpu.memory_space<vmem>>) attributes {dimension_semantics = [#tpu.dimension_semantics<parallel>], iteration_bounds = array<i64: 1>, scalar_prefetch = 0 : i64, scratch_operands = 0 : i64, tpu.core_type = #tpu.core_type<tc>, window_params = [{transform_indices = @transform_0, window_bounds = array<i64: 128, 1>}, {pipeline_mode = #tpu.pipeline_mode<synchronous>, transform_indices = @transform_1, window_bounds = array<i64: 128, 128>}, {pipeline_mode = #tpu.pipeline_mode<synchronous>, transform_indices = @transform_2, window_bounds = array<i64: 1, 128>}, {pipeline_mode = #tpu.pipeline_mode<synchronous>, transform_indices = @transform_3, window_bounds = array<i64: 1, 128>}, {pipeline_mode = #tpu.pipeline_mode<synchronous>, transform_indices = @transform_4, window_bounds = array<i64: 2, 128, 384>}, {pipeline_mode = #tpu.pipeline_mode<synchronous>, transform_indices = @transform_5, window_bounds = array<i64: 2, 1, 384>}, {pipeline_mode = #tpu.pipeline_mode<synchronous>, transform_indices = @transform_6, window_bounds = array<i64: 2, 128, 128>}, {pipeline_mode = #tpu.pipeline_mode<synchronous>, transform_indices = @transform_7, window_bounds = array<i64: 2, 1, 128>}, {pipeline_mode = #tpu.pipeline_mode<synchronous>, transform_indices = @transform_8, window_bounds = array<i64: 2, 1, 128>}, {pipeline_mode = #tpu.pipeline_mode<synchronous>, transform_indices = @transform_9, window_bounds = array<i64: 2, 1, 128>}, {pipeline_mode = #tpu.pipeline_mode<synchronous>, transform_indices = @transform_10, window_bounds = array<i64: 2, 128, 256>}, {pipeline_mode = #tpu.pipeline_mode<synchronous>, transform_indices = @transform_11, window_bounds = array<i64: 2, 1, 256>}, {pipeline_mode = #tpu.pipeline_mode<synchronous>, transform_indices = @transform_12, window_bounds = array<i64: 2, 256, 128>}, {pipeline_mode = #tpu.pipeline_mode<synchronous>, transform_indices = @transform_13, window_bounds = array<i64: 2, 1, 128>}, {pipeline_mode = #tpu.pipeline_mode<synchronous>, transform_indices = @transform_14, window_bounds = array<i64: 2, 1, 128>}, {pipeline_mode = #tpu.pipeline_mode<synchronous>, transform_indices = @transform_15, window_bounds = array<i64: 2, 1, 128>}, {pipeline_mode = #tpu.pipeline_mode<synchronous>, transform_indices = @transform_16, window_bounds = array<i64: 128, 128>}, {pipeline_mode = #tpu.pipeline_mode<synchronous>, transform_indices = @transform_17, window_bounds = array<i64: 1, 128>}, {transform_indices = @transform_18, window_bounds = array<i64: 16, 128>}]} {
    %0 = tpu.iota {dimensions = array<i32: 1>} : vector<1x128xi32>
    %c0_i32 = arith.constant 0 : i32
    %1 = vector.broadcast %c0_i32 : i32 to vector<1x128xi32>
    %2 = arith.cmpi sge, %0, %1 : vector<1x128xi32>
    %c32_i32 = arith.constant 32 : i32
    %3 = vector.broadcast %c32_i32 : i32 to vector<1x128xi32>
    %4 = arith.cmpi slt, %0, %3 : vector<1x128xi32>
    %5 = arith.andi %2, %4 : vector<1x128xi1>
    %cst = arith.constant 1.000000e+00 : f32
    %cst_0 = arith.constant 0.000000e+00 : f32
    %6 = vector.broadcast %cst : f32 to vector<1x128xf32>
    %7 = vector.broadcast %cst_0 : f32 to vector<1x128xf32>
    %8 = arith.select %5, %6, %7 : vector<1x128xi1>, vector<1x128xf32>
    %9 = arith.truncf %8 : vector<1x128xf32> to vector<1x128xbf16>
    %c32_i32_1 = arith.constant 32 : i32
    %10 = vector.broadcast %c32_i32_1 : i32 to vector<1x128xi32>
    %11 = arith.cmpi sge, %0, %10 : vector<1x128xi32>
    %c64_i32 = arith.constant 64 : i32
    %12 = vector.broadcast %c64_i32 : i32 to vector<1x128xi32>
    %13 = arith.cmpi slt, %0, %12 : vector<1x128xi32>
    %14 = arith.andi %11, %13 : vector<1x128xi1>
    %cst_2 = arith.constant 1.000000e+00 : f32
    %cst_3 = arith.constant 0.000000e+00 : f32
    %15 = vector.broadcast %cst_2 : f32 to vector<1x128xf32>
    %16 = vector.broadcast %cst_3 : f32 to vector<1x128xf32>
    %17 = arith.select %14, %15, %16 : vector<1x128xi1>, vector<1x128xf32>
    %18 = arith.truncf %17 : vector<1x128xf32> to vector<1x128xbf16>
    %c64_i32_4 = arith.constant 64 : i32
    %19 = vector.broadcast %c64_i32_4 : i32 to vector<1x128xi32>
    %20 = arith.cmpi sge, %0, %19 : vector<1x128xi32>
    %c96_i32 = arith.constant 96 : i32
    %21 = vector.broadcast %c96_i32 : i32 to vector<1x128xi32>
    %22 = arith.cmpi slt, %0, %21 : vector<1x128xi32>
    %23 = arith.andi %20, %22 : vector<1x128xi1>
    %cst_5 = arith.constant 1.000000e+00 : f32
    %cst_6 = arith.constant 0.000000e+00 : f32
    %24 = vector.broadcast %cst_5 : f32 to vector<1x128xf32>
    %25 = vector.broadcast %cst_6 : f32 to vector<1x128xf32>
    %26 = arith.select %23, %24, %25 : vector<1x128xi1>, vector<1x128xf32>
    %27 = arith.truncf %26 : vector<1x128xf32> to vector<1x128xbf16>
    %c96_i32_7 = arith.constant 96 : i32
    %28 = vector.broadcast %c96_i32_7 : i32 to vector<1x128xi32>
    %29 = arith.cmpi sge, %0, %28 : vector<1x128xi32>
    %c128_i32 = arith.constant 128 : i32
    %30 = vector.broadcast %c128_i32 : i32 to vector<1x128xi32>
    %31 = arith.cmpi slt, %0, %30 : vector<1x128xi32>
    %32 = arith.andi %29, %31 : vector<1x128xi1>
    %cst_8 = arith.constant 1.000000e+00 : f32
    %cst_9 = arith.constant 0.000000e+00 : f32
    %33 = vector.broadcast %cst_8 : f32 to vector<1x128xf32>
    %34 = vector.broadcast %cst_9 : f32 to vector<1x128xf32>
    %35 = arith.select %32, %33, %34 : vector<1x128xi1>, vector<1x128xf32>
    %36 = arith.truncf %35 : vector<1x128xf32> to vector<1x128xbf16>
    %c0 = arith.constant 0 : index
    %c0_10 = arith.constant 0 : index
    %37 = vector.load %arg2[%c0, %c0_10] : memref<128x128xf32, #tpu.memory_space<vmem>>, vector<128x128xf32>
    %c0_11 = arith.constant 0 : index
    %c0_12 = arith.constant 0 : index
    %38 = vector.load %arg1[%c0_11, %c0_12] : memref<128x1xf32, #tpu.memory_space<vmem>>, vector<128x1xf32>
    %c0_13 = arith.constant 0 : index
    %c0_14 = arith.constant 0 : index
    %39 = vector.load %arg3[%c0_13, %c0_14] : memref<1x128xf32, #tpu.memory_space<vmem>>, vector<1x128xf32>
    %40 = vector.broadcast %38 : vector<128x1xf32> to vector<128x128xf32>
    %41 = vector.broadcast %39 : vector<1x128xf32> to vector<128x128xf32>
    %42 = arith.mulf %40, %41 : vector<128x128xf32>
    %c0_15 = arith.constant 0 : index
    %c0_16 = arith.constant 0 : index
    %43 = vector.load %arg4[%c0_15, %c0_16] : memref<1x128xf32, #tpu.memory_space<vmem>>, vector<1x128xf32>
    %44 = vector.broadcast %43 : vector<1x128xf32> to vector<128x128xf32>
    %45 = arith.addf %42, %44 : vector<128x128xf32>
    %46 = arith.truncf %45 : vector<128x128xf32> to vector<128x128xbf16>
    %c0_17 = arith.constant 0 : index
    %c0_18 = arith.constant 0 : index
    %c0_19 = arith.constant 0 : index
    %47 = vector.load %arg5[%c0_17, %c0_18, %c0_19] : memref<2x128x384xbf16, #tpu.memory_space<vmem>>, vector<1x128x384xbf16>
    %48 = vector.shape_cast %47 : vector<1x128x384xbf16> to vector<128x384xbf16>
    %cst_20 = arith.constant dense<0.000000e+00> : vector<128x384xf32>
    %49 = tpu.matmul %46, %48, %cst_20 {dimension_numbers = #tpu.dot_dimension_numbers<[1], [0], [0], [1], [0, 0, 1, 1], [], []>} : vector<128x128xbf16>, vector<128x384xbf16>, vector<128x384xf32> -> vector<128x384xf32>
    %c0_21 = arith.constant 0 : index
    %c0_22 = arith.constant 0 : index
    %c0_23 = arith.constant 0 : index
    %50 = vector.load %arg6[%c0_21, %c0_22, %c0_23] : memref<2x1x384xf32, #tpu.memory_space<vmem>>, vector<1x1x384xf32>
    %51 = vector.shape_cast %50 : vector<1x1x384xf32> to vector<1x384xf32>
    %52 = vector.broadcast %51 : vector<1x384xf32> to vector<128x384xf32>
    %53 = arith.addf %49, %52 : vector<128x384xf32>
    %54 = arith.truncf %53 : vector<128x384xf32> to vector<128x384xbf16>
    %55 = vector.extract_strided_slice %54 {offsets = [0, 0], sizes = [128, 128], strides = [1, 1]} : vector<128x384xbf16> to vector<128x128xbf16>
    %56 = vector.extract_strided_slice %54 {offsets = [0, 128], sizes = [128, 128], strides = [1, 1]} : vector<128x384xbf16> to vector<128x128xbf16>
    %57 = vector.extract_strided_slice %54 {offsets = [0, 256], sizes = [128, 128], strides = [1, 1]} : vector<128x384xbf16> to vector<128x128xbf16>
    %cst_24 = arith.constant 0.000000e+00 : f32
    %58 = vector.broadcast %cst_24 : f32 to vector<128x128xf32>
    %59 = vector.broadcast %9 : vector<1x128xbf16> to vector<128x128xbf16>
    %60 = arith.mulf %55, %59 : vector<128x128xbf16>
    %cst_25 = arith.constant dense<0.000000e+00> : vector<128x128xf32>
    %61 = tpu.matmul %60, %56, %cst_25 {dimension_numbers = #tpu.dot_dimension_numbers<[1], [1], [0], [0], [0, 0, 1, 0], [], []>} : vector<128x128xbf16>, vector<128x128xbf16>, vector<128x128xf32> -> vector<128x128xf32>
    %62 = arith.addf %61, %37 : vector<128x128xf32>
    %cst_26 = arith.constant dense<0xFF800000> : vector<128xf32>
    %63 = vector.multi_reduction <maximumf>, %62, %cst_26 [1] : vector<128x128xf32> to vector<128xf32>
    %64 = vector.shape_cast %63 : vector<128xf32> to vector<128x1xf32>
    %65 = vector.broadcast %64 : vector<128x1xf32> to vector<128x128xf32>
    %66 = arith.subf %62, %65 : vector<128x128xf32>
    %67 = math.exp %66 : vector<128x128xf32>
    %cst_27 = arith.constant dense<0.000000e+00> : vector<128xf32>
    %68 = vector.multi_reduction <add>, %67, %cst_27 [1] : vector<128x128xf32> to vector<128xf32>
    %69 = vector.shape_cast %68 : vector<128xf32> to vector<128x1xf32>
    %70 = tpu.reciprocal %69 {approx = true} : vector<128x1xf32> -> vector<128x1xf32>
    %71 = vector.broadcast %70 : vector<128x1xf32> to vector<128x128xf32>
    %72 = arith.mulf %67, %71 : vector<128x128xf32>
    %73 = arith.truncf %72 : vector<128x128xf32> to vector<128x128xbf16>
    %74 = vector.broadcast %9 : vector<1x128xbf16> to vector<128x128xbf16>
    %75 = arith.mulf %57, %74 : vector<128x128xbf16>
    %cst_28 = arith.constant dense<0.000000e+00> : vector<128x128xf32>
    %76 = tpu.matmul %73, %75, %cst_28 {dimension_numbers = #tpu.dot_dimension_numbers<[1], [0], [0], [1], [0, 0, 1, 1], [], []>} : vector<128x128xbf16>, vector<128x128xbf16>, vector<128x128xf32> -> vector<128x128xf32>
    %77 = arith.addf %58, %76 : vector<128x128xf32>
    %78 = vector.broadcast %18 : vector<1x128xbf16> to vector<128x128xbf16>
    %79 = arith.mulf %55, %78 : vector<128x128xbf16>
    %cst_29 = arith.constant dense<0.000000e+00> : vector<128x128xf32>
    %80 = tpu.matmul %79, %56, %cst_29 {dimension_numbers = #tpu.dot_dimension_numbers<[1], [1], [0], [0], [0, 0, 1, 0], [], []>} : vector<128x128xbf16>, vector<128x128xbf16>, vector<128x128xf32> -> vector<128x128xf32>
    %81 = arith.addf %80, %37 : vector<128x128xf32>
    %cst_30 = arith.constant dense<0xFF800000> : vector<128xf32>
    %82 = vector.multi_reduction <maximumf>, %81, %cst_30 [1] : vector<128x128xf32> to vector<128xf32>
    %83 = vector.shape_cast %82 : vector<128xf32> to vector<128x1xf32>
    %84 = vector.broadcast %83 : vector<128x1xf32> to vector<128x128xf32>
    %85 = arith.subf %81, %84 : vector<128x128xf32>
    %86 = math.exp %85 : vector<128x128xf32>
    %cst_31 = arith.constant dense<0.000000e+00> : vector<128xf32>
    %87 = vector.multi_reduction <add>, %86, %cst_31 [1] : vector<128x128xf32> to vector<128xf32>
    %88 = vector.shape_cast %87 : vector<128xf32> to vector<128x1xf32>
    %89 = tpu.reciprocal %88 {approx = true} : vector<128x1xf32> -> vector<128x1xf32>
    %90 = vector.broadcast %89 : vector<128x1xf32> to vector<128x128xf32>
    %91 = arith.mulf %86, %90 : vector<128x128xf32>
    %92 = arith.truncf %91 : vector<128x128xf32> to vector<128x128xbf16>
    %93 = vector.broadcast %18 : vector<1x128xbf16> to vector<128x128xbf16>
    %94 = arith.mulf %57, %93 : vector<128x128xbf16>
    %cst_32 = arith.constant dense<0.000000e+00> : vector<128x128xf32>
    %95 = tpu.matmul %92, %94, %cst_32 {dimension_numbers = #tpu.dot_dimension_numbers<[1], [0], [0], [1], [0, 0, 1, 1], [], []>} : vector<128x128xbf16>, vector<128x128xbf16>, vector<128x128xf32> -> vector<128x128xf32>
    %96 = arith.addf %77, %95 : vector<128x128xf32>
    %97 = vector.broadcast %27 : vector<1x128xbf16> to vector<128x128xbf16>
    %98 = arith.mulf %55, %97 : vector<128x128xbf16>
    %cst_33 = arith.constant dense<0.000000e+00> : vector<128x128xf32>
    %99 = tpu.matmul %98, %56, %cst_33 {dimension_numbers = #tpu.dot_dimension_numbers<[1], [1], [0], [0], [0, 0, 1, 0], [], []>} : vector<128x128xbf16>, vector<128x128xbf16>, vector<128x128xf32> -> vector<128x128xf32>
    %100 = arith.addf %99, %37 : vector<128x128xf32>
    %cst_34 = arith.constant dense<0xFF800000> : vector<128xf32>
    %101 = vector.multi_reduction <maximumf>, %100, %cst_34 [1] : vector<128x128xf32> to vector<128xf32>
    %102 = vector.shape_cast %101 : vector<128xf32> to vector<128x1xf32>
    %103 = vector.broadcast %102 : vector<128x1xf32> to vector<128x128xf32>
    %104 = arith.subf %100, %103 : vector<128x128xf32>
    %105 = math.exp %104 : vector<128x128xf32>
    %cst_35 = arith.constant dense<0.000000e+00> : vector<128xf32>
    %106 = vector.multi_reduction <add>, %105, %cst_35 [1] : vector<128x128xf32> to vector<128xf32>
    %107 = vector.shape_cast %106 : vector<128xf32> to vector<128x1xf32>
    %108 = tpu.reciprocal %107 {approx = true} : vector<128x1xf32> -> vector<128x1xf32>
    %109 = vector.broadcast %108 : vector<128x1xf32> to vector<128x128xf32>
    %110 = arith.mulf %105, %109 : vector<128x128xf32>
    %111 = arith.truncf %110 : vector<128x128xf32> to vector<128x128xbf16>
    %112 = vector.broadcast %27 : vector<1x128xbf16> to vector<128x128xbf16>
    %113 = arith.mulf %57, %112 : vector<128x128xbf16>
    %cst_36 = arith.constant dense<0.000000e+00> : vector<128x128xf32>
    %114 = tpu.matmul %111, %113, %cst_36 {dimension_numbers = #tpu.dot_dimension_numbers<[1], [0], [0], [1], [0, 0, 1, 1], [], []>} : vector<128x128xbf16>, vector<128x128xbf16>, vector<128x128xf32> -> vector<128x128xf32>
    %115 = arith.addf %96, %114 : vector<128x128xf32>
    %116 = vector.broadcast %36 : vector<1x128xbf16> to vector<128x128xbf16>
    %117 = arith.mulf %55, %116 : vector<128x128xbf16>
    %cst_37 = arith.constant dense<0.000000e+00> : vector<128x128xf32>
    %118 = tpu.matmul %117, %56, %cst_37 {dimension_numbers = #tpu.dot_dimension_numbers<[1], [1], [0], [0], [0, 0, 1, 0], [], []>} : vector<128x128xbf16>, vector<128x128xbf16>, vector<128x128xf32> -> vector<128x128xf32>
    %119 = arith.addf %118, %37 : vector<128x128xf32>
    %cst_38 = arith.constant dense<0xFF800000> : vector<128xf32>
    %120 = vector.multi_reduction <maximumf>, %119, %cst_38 [1] : vector<128x128xf32> to vector<128xf32>
    %121 = vector.shape_cast %120 : vector<128xf32> to vector<128x1xf32>
    %122 = vector.broadcast %121 : vector<128x1xf32> to vector<128x128xf32>
    %123 = arith.subf %119, %122 : vector<128x128xf32>
    %124 = math.exp %123 : vector<128x128xf32>
    %cst_39 = arith.constant dense<0.000000e+00> : vector<128xf32>
    %125 = vector.multi_reduction <add>, %124, %cst_39 [1] : vector<128x128xf32> to vector<128xf32>
    %126 = vector.shape_cast %125 : vector<128xf32> to vector<128x1xf32>
    %127 = tpu.reciprocal %126 {approx = true} : vector<128x1xf32> -> vector<128x1xf32>
    %128 = vector.broadcast %127 : vector<128x1xf32> to vector<128x128xf32>
    %129 = arith.mulf %124, %128 : vector<128x128xf32>
    %130 = arith.truncf %129 : vector<128x128xf32> to vector<128x128xbf16>
    %131 = vector.broadcast %36 : vector<1x128xbf16> to vector<128x128xbf16>
    %132 = arith.mulf %57, %131 : vector<128x128xbf16>
    %cst_40 = arith.constant dense<0.000000e+00> : vector<128x128xf32>
    %133 = tpu.matmul %130, %132, %cst_40 {dimension_numbers = #tpu.dot_dimension_numbers<[1], [0], [0], [1], [0, 0, 1, 1], [], []>} : vector<128x128xbf16>, vector<128x128xbf16>, vector<128x128xf32> -> vector<128x128xf32>
    %134 = arith.addf %115, %133 : vector<128x128xf32>
    %135 = arith.truncf %134 : vector<128x128xf32> to vector<128x128xbf16>
    %c0_41 = arith.constant 0 : index
    %c0_42 = arith.constant 0 : index
    %c0_43 = arith.constant 0 : index
    %136 = vector.load %arg7[%c0_41, %c0_42, %c0_43] : memref<2x128x128xbf16, #tpu.memory_space<vmem>>, vector<1x128x128xbf16>
    %137 = vector.shape_cast %136 : vector<1x128x128xbf16> to vector<128x128xbf16>
    %cst_44 = arith.constant dense<0.000000e+00> : vector<128x128xf32>
    %138 = tpu.matmul %135, %137, %cst_44 {dimension_numbers = #tpu.dot_dimension_numbers<[1], [0], [0], [1], [0, 0, 1, 1], [], []>} : vector<128x128xbf16>, vector<128x128xbf16>, vector<128x128xf32> -> vector<128x128xf32>
    %c0_45 = arith.constant 0 : index
    %c0_46 = arith.constant 0 : index
    %c0_47 = arith.constant 0 : index
    %139 = vector.load %arg8[%c0_45, %c0_46, %c0_47] : memref<2x1x128xf32, #tpu.memory_space<vmem>>, vector<1x1x128xf32>
    %140 = vector.shape_cast %139 : vector<1x1x128xf32> to vector<1x128xf32>
    %141 = vector.broadcast %140 : vector<1x128xf32> to vector<128x128xf32>
    %142 = arith.addf %138, %141 : vector<128x128xf32>
    %143 = arith.addf %45, %142 : vector<128x128xf32>
    %c0_48 = arith.constant 0 : index
    %c0_49 = arith.constant 0 : index
    %c0_50 = arith.constant 0 : index
    %144 = vector.load %arg9[%c0_48, %c0_49, %c0_50] : memref<2x1x128xf32, #tpu.memory_space<vmem>>, vector<1x1x128xf32>
    %145 = vector.shape_cast %144 : vector<1x1x128xf32> to vector<1x128xf32>
    %c0_51 = arith.constant 0 : index
    %c0_52 = arith.constant 0 : index
    %c0_53 = arith.constant 0 : index
    %146 = vector.load %arg10[%c0_51, %c0_52, %c0_53] : memref<2x1x128xf32, #tpu.memory_space<vmem>>, vector<1x1x128xf32>
    %147 = vector.shape_cast %146 : vector<1x1x128xf32> to vector<1x128xf32>
    %cst_54 = arith.constant dense<0.000000e+00> : vector<128xf32>
    %148 = vector.multi_reduction <add>, %143, %cst_54 [1] : vector<128x128xf32> to vector<128xf32>
    %149 = vector.shape_cast %148 : vector<128xf32> to vector<128x1xf32>
    %cst_55 = arith.constant 1.280000e+02 : f32
    %150 = vector.broadcast %cst_55 : f32 to vector<128x1xf32>
    %151 = arith.divf %149, %150 : vector<128x1xf32>
    %152 = vector.broadcast %151 : vector<128x1xf32> to vector<128x128xf32>
    %153 = arith.subf %143, %152 : vector<128x128xf32>
    %154 = arith.mulf %153, %153 : vector<128x128xf32>
    %cst_56 = arith.constant dense<0.000000e+00> : vector<128xf32>
    %155 = vector.multi_reduction <add>, %154, %cst_56 [1] : vector<128x128xf32> to vector<128xf32>
    %156 = vector.shape_cast %155 : vector<128xf32> to vector<128x1xf32>
    %cst_57 = arith.constant 1.280000e+02 : f32
    %157 = vector.broadcast %cst_57 : f32 to vector<128x1xf32>
    %158 = arith.divf %156, %157 : vector<128x1xf32>
    %159 = vector.broadcast %151 : vector<128x1xf32> to vector<128x128xf32>
    %160 = arith.subf %143, %159 : vector<128x128xf32>
    %cst_58 = arith.constant 9.99999974E-6 : f32
    %161 = vector.broadcast %cst_58 : f32 to vector<128x1xf32>
    %162 = arith.addf %158, %161 : vector<128x1xf32>
    %163 = math.rsqrt %162 : vector<128x1xf32>
    %164 = vector.broadcast %163 : vector<128x1xf32> to vector<128x128xf32>
    %165 = arith.mulf %160, %164 : vector<128x128xf32>
    %166 = vector.broadcast %145 : vector<1x128xf32> to vector<128x128xf32>
    %167 = arith.mulf %165, %166 : vector<128x128xf32>
    %168 = vector.broadcast %147 : vector<1x128xf32> to vector<128x128xf32>
    %169 = arith.addf %167, %168 : vector<128x128xf32>
    %170 = arith.truncf %169 : vector<128x128xf32> to vector<128x128xbf16>
    %c0_59 = arith.constant 0 : index
    %c0_60 = arith.constant 0 : index
    %c0_61 = arith.constant 0 : index
    %171 = vector.load %arg11[%c0_59, %c0_60, %c0_61] : memref<2x128x256xbf16, #tpu.memory_space<vmem>>, vector<1x128x256xbf16>
    %172 = vector.shape_cast %171 : vector<1x128x256xbf16> to vector<128x256xbf16>
    %cst_62 = arith.constant dense<0.000000e+00> : vector<128x256xf32>
    %173 = tpu.matmul %170, %172, %cst_62 {dimension_numbers = #tpu.dot_dimension_numbers<[1], [0], [0], [1], [0, 0, 1, 1], [], []>} : vector<128x128xbf16>, vector<128x256xbf16>, vector<128x256xf32> -> vector<128x256xf32>
    %c0_63 = arith.constant 0 : index
    %c0_64 = arith.constant 0 : index
    %c0_65 = arith.constant 0 : index
    %174 = vector.load %arg12[%c0_63, %c0_64, %c0_65] : memref<2x1x256xf32, #tpu.memory_space<vmem>>, vector<1x1x256xf32>
    %175 = vector.shape_cast %174 : vector<1x1x256xf32> to vector<1x256xf32>
    %176 = vector.broadcast %175 : vector<1x256xf32> to vector<128x256xf32>
    %177 = arith.addf %173, %176 : vector<128x256xf32>
    %cst_66 = arith.constant 0.000000e+00 : f32
    %178 = vector.broadcast %cst_66 : f32 to vector<128x256xf32>
    %179 = arith.maximumf %177, %178 : vector<128x256xf32>
    %180 = arith.truncf %179 : vector<128x256xf32> to vector<128x256xbf16>
    %c0_67 = arith.constant 0 : index
    %c0_68 = arith.constant 0 : index
    %c0_69 = arith.constant 0 : index
    %181 = vector.load %arg13[%c0_67, %c0_68, %c0_69] : memref<2x256x128xbf16, #tpu.memory_space<vmem>>, vector<1x256x128xbf16>
    %182 = vector.shape_cast %181 : vector<1x256x128xbf16> to vector<256x128xbf16>
    %cst_70 = arith.constant dense<0.000000e+00> : vector<128x128xf32>
    %183 = tpu.matmul %180, %182, %cst_70 {dimension_numbers = #tpu.dot_dimension_numbers<[1], [0], [0], [1], [0, 0, 1, 1], [], []>} : vector<128x256xbf16>, vector<256x128xbf16>, vector<128x128xf32> -> vector<128x128xf32>
    %c0_71 = arith.constant 0 : index
    %c0_72 = arith.constant 0 : index
    %c0_73 = arith.constant 0 : index
    %184 = vector.load %arg14[%c0_71, %c0_72, %c0_73] : memref<2x1x128xf32, #tpu.memory_space<vmem>>, vector<1x1x128xf32>
    %185 = vector.shape_cast %184 : vector<1x1x128xf32> to vector<1x128xf32>
    %186 = vector.broadcast %185 : vector<1x128xf32> to vector<128x128xf32>
    %187 = arith.addf %183, %186 : vector<128x128xf32>
    %188 = arith.addf %169, %187 : vector<128x128xf32>
    %c0_74 = arith.constant 0 : index
    %c0_75 = arith.constant 0 : index
    %c0_76 = arith.constant 0 : index
    %189 = vector.load %arg15[%c0_74, %c0_75, %c0_76] : memref<2x1x128xf32, #tpu.memory_space<vmem>>, vector<1x1x128xf32>
    %190 = vector.shape_cast %189 : vector<1x1x128xf32> to vector<1x128xf32>
    %c0_77 = arith.constant 0 : index
    %c0_78 = arith.constant 0 : index
    %c0_79 = arith.constant 0 : index
    %191 = vector.load %arg16[%c0_77, %c0_78, %c0_79] : memref<2x1x128xf32, #tpu.memory_space<vmem>>, vector<1x1x128xf32>
    %192 = vector.shape_cast %191 : vector<1x1x128xf32> to vector<1x128xf32>
    %cst_80 = arith.constant dense<0.000000e+00> : vector<128xf32>
    %193 = vector.multi_reduction <add>, %188, %cst_80 [1] : vector<128x128xf32> to vector<128xf32>
    %194 = vector.shape_cast %193 : vector<128xf32> to vector<128x1xf32>
    %cst_81 = arith.constant 1.280000e+02 : f32
    %195 = vector.broadcast %cst_81 : f32 to vector<128x1xf32>
    %196 = arith.divf %194, %195 : vector<128x1xf32>
    %197 = vector.broadcast %196 : vector<128x1xf32> to vector<128x128xf32>
    %198 = arith.subf %188, %197 : vector<128x128xf32>
    %199 = arith.mulf %198, %198 : vector<128x128xf32>
    %cst_82 = arith.constant dense<0.000000e+00> : vector<128xf32>
    %200 = vector.multi_reduction <add>, %199, %cst_82 [1] : vector<128x128xf32> to vector<128xf32>
    %201 = vector.shape_cast %200 : vector<128xf32> to vector<128x1xf32>
    %cst_83 = arith.constant 1.280000e+02 : f32
    %202 = vector.broadcast %cst_83 : f32 to vector<128x1xf32>
    %203 = arith.divf %201, %202 : vector<128x1xf32>
    %204 = vector.broadcast %196 : vector<128x1xf32> to vector<128x128xf32>
    %205 = arith.subf %188, %204 : vector<128x128xf32>
    %cst_84 = arith.constant 9.99999974E-6 : f32
    %206 = vector.broadcast %cst_84 : f32 to vector<128x1xf32>
    %207 = arith.addf %203, %206 : vector<128x1xf32>
    %208 = math.rsqrt %207 : vector<128x1xf32>
    %209 = vector.broadcast %208 : vector<128x1xf32> to vector<128x128xf32>
    %210 = arith.mulf %205, %209 : vector<128x128xf32>
    %211 = vector.broadcast %190 : vector<1x128xf32> to vector<128x128xf32>
    %212 = arith.mulf %210, %211 : vector<128x128xf32>
    %213 = vector.broadcast %192 : vector<1x128xf32> to vector<128x128xf32>
    %214 = arith.addf %212, %213 : vector<128x128xf32>
    %215 = arith.truncf %214 : vector<128x128xf32> to vector<128x128xbf16>
    %c1 = arith.constant 1 : index
    %c0_85 = arith.constant 0 : index
    %c0_86 = arith.constant 0 : index
    %216 = vector.load %arg5[%c1, %c0_85, %c0_86] : memref<2x128x384xbf16, #tpu.memory_space<vmem>>, vector<1x128x384xbf16>
    %217 = vector.shape_cast %216 : vector<1x128x384xbf16> to vector<128x384xbf16>
    %cst_87 = arith.constant dense<0.000000e+00> : vector<128x384xf32>
    %218 = tpu.matmul %215, %217, %cst_87 {dimension_numbers = #tpu.dot_dimension_numbers<[1], [0], [0], [1], [0, 0, 1, 1], [], []>} : vector<128x128xbf16>, vector<128x384xbf16>, vector<128x384xf32> -> vector<128x384xf32>
    %c1_88 = arith.constant 1 : index
    %c0_89 = arith.constant 0 : index
    %c0_90 = arith.constant 0 : index
    %219 = vector.load %arg6[%c1_88, %c0_89, %c0_90] : memref<2x1x384xf32, #tpu.memory_space<vmem>>, vector<1x1x384xf32>
    %220 = vector.shape_cast %219 : vector<1x1x384xf32> to vector<1x384xf32>
    %221 = vector.broadcast %220 : vector<1x384xf32> to vector<128x384xf32>
    %222 = arith.addf %218, %221 : vector<128x384xf32>
    %223 = arith.truncf %222 : vector<128x384xf32> to vector<128x384xbf16>
    %224 = vector.extract_strided_slice %223 {offsets = [0, 0], sizes = [128, 128], strides = [1, 1]} : vector<128x384xbf16> to vector<128x128xbf16>
    %225 = vector.extract_strided_slice %223 {offsets = [0, 128], sizes = [128, 128], strides = [1, 1]} : vector<128x384xbf16> to vector<128x128xbf16>
    %226 = vector.extract_strided_slice %223 {offsets = [0, 256], sizes = [128, 128], strides = [1, 1]} : vector<128x384xbf16> to vector<128x128xbf16>
    %cst_91 = arith.constant 0.000000e+00 : f32
    %227 = vector.broadcast %cst_91 : f32 to vector<128x128xf32>
    %228 = vector.broadcast %9 : vector<1x128xbf16> to vector<128x128xbf16>
    %229 = arith.mulf %224, %228 : vector<128x128xbf16>
    %cst_92 = arith.constant dense<0.000000e+00> : vector<128x128xf32>
    %230 = tpu.matmul %229, %225, %cst_92 {dimension_numbers = #tpu.dot_dimension_numbers<[1], [1], [0], [0], [0, 0, 1, 0], [], []>} : vector<128x128xbf16>, vector<128x128xbf16>, vector<128x128xf32> -> vector<128x128xf32>
    %231 = arith.addf %230, %37 : vector<128x128xf32>
    %cst_93 = arith.constant dense<0xFF800000> : vector<128xf32>
    %232 = vector.multi_reduction <maximumf>, %231, %cst_93 [1] : vector<128x128xf32> to vector<128xf32>
    %233 = vector.shape_cast %232 : vector<128xf32> to vector<128x1xf32>
    %234 = vector.broadcast %233 : vector<128x1xf32> to vector<128x128xf32>
    %235 = arith.subf %231, %234 : vector<128x128xf32>
    %236 = math.exp %235 : vector<128x128xf32>
    %cst_94 = arith.constant dense<0.000000e+00> : vector<128xf32>
    %237 = vector.multi_reduction <add>, %236, %cst_94 [1] : vector<128x128xf32> to vector<128xf32>
    %238 = vector.shape_cast %237 : vector<128xf32> to vector<128x1xf32>
    %239 = tpu.reciprocal %238 {approx = true} : vector<128x1xf32> -> vector<128x1xf32>
    %240 = vector.broadcast %239 : vector<128x1xf32> to vector<128x128xf32>
    %241 = arith.mulf %236, %240 : vector<128x128xf32>
    %242 = arith.truncf %241 : vector<128x128xf32> to vector<128x128xbf16>
    %243 = vector.broadcast %9 : vector<1x128xbf16> to vector<128x128xbf16>
    %244 = arith.mulf %226, %243 : vector<128x128xbf16>
    %cst_95 = arith.constant dense<0.000000e+00> : vector<128x128xf32>
    %245 = tpu.matmul %242, %244, %cst_95 {dimension_numbers = #tpu.dot_dimension_numbers<[1], [0], [0], [1], [0, 0, 1, 1], [], []>} : vector<128x128xbf16>, vector<128x128xbf16>, vector<128x128xf32> -> vector<128x128xf32>
    %246 = arith.addf %227, %245 : vector<128x128xf32>
    %247 = vector.broadcast %18 : vector<1x128xbf16> to vector<128x128xbf16>
    %248 = arith.mulf %224, %247 : vector<128x128xbf16>
    %cst_96 = arith.constant dense<0.000000e+00> : vector<128x128xf32>
    %249 = tpu.matmul %248, %225, %cst_96 {dimension_numbers = #tpu.dot_dimension_numbers<[1], [1], [0], [0], [0, 0, 1, 0], [], []>} : vector<128x128xbf16>, vector<128x128xbf16>, vector<128x128xf32> -> vector<128x128xf32>
    %250 = arith.addf %249, %37 : vector<128x128xf32>
    %cst_97 = arith.constant dense<0xFF800000> : vector<128xf32>
    %251 = vector.multi_reduction <maximumf>, %250, %cst_97 [1] : vector<128x128xf32> to vector<128xf32>
    %252 = vector.shape_cast %251 : vector<128xf32> to vector<128x1xf32>
    %253 = vector.broadcast %252 : vector<128x1xf32> to vector<128x128xf32>
    %254 = arith.subf %250, %253 : vector<128x128xf32>
    %255 = math.exp %254 : vector<128x128xf32>
    %cst_98 = arith.constant dense<0.000000e+00> : vector<128xf32>
    %256 = vector.multi_reduction <add>, %255, %cst_98 [1] : vector<128x128xf32> to vector<128xf32>
    %257 = vector.shape_cast %256 : vector<128xf32> to vector<128x1xf32>
    %258 = tpu.reciprocal %257 {approx = true} : vector<128x1xf32> -> vector<128x1xf32>
    %259 = vector.broadcast %258 : vector<128x1xf32> to vector<128x128xf32>
    %260 = arith.mulf %255, %259 : vector<128x128xf32>
    %261 = arith.truncf %260 : vector<128x128xf32> to vector<128x128xbf16>
    %262 = vector.broadcast %18 : vector<1x128xbf16> to vector<128x128xbf16>
    %263 = arith.mulf %226, %262 : vector<128x128xbf16>
    %cst_99 = arith.constant dense<0.000000e+00> : vector<128x128xf32>
    %264 = tpu.matmul %261, %263, %cst_99 {dimension_numbers = #tpu.dot_dimension_numbers<[1], [0], [0], [1], [0, 0, 1, 1], [], []>} : vector<128x128xbf16>, vector<128x128xbf16>, vector<128x128xf32> -> vector<128x128xf32>
    %265 = arith.addf %246, %264 : vector<128x128xf32>
    %266 = vector.broadcast %27 : vector<1x128xbf16> to vector<128x128xbf16>
    %267 = arith.mulf %224, %266 : vector<128x128xbf16>
    %cst_100 = arith.constant dense<0.000000e+00> : vector<128x128xf32>
    %268 = tpu.matmul %267, %225, %cst_100 {dimension_numbers = #tpu.dot_dimension_numbers<[1], [1], [0], [0], [0, 0, 1, 0], [], []>} : vector<128x128xbf16>, vector<128x128xbf16>, vector<128x128xf32> -> vector<128x128xf32>
    %269 = arith.addf %268, %37 : vector<128x128xf32>
    %cst_101 = arith.constant dense<0xFF800000> : vector<128xf32>
    %270 = vector.multi_reduction <maximumf>, %269, %cst_101 [1] : vector<128x128xf32> to vector<128xf32>
    %271 = vector.shape_cast %270 : vector<128xf32> to vector<128x1xf32>
    %272 = vector.broadcast %271 : vector<128x1xf32> to vector<128x128xf32>
    %273 = arith.subf %269, %272 : vector<128x128xf32>
    %274 = math.exp %273 : vector<128x128xf32>
    %cst_102 = arith.constant dense<0.000000e+00> : vector<128xf32>
    %275 = vector.multi_reduction <add>, %274, %cst_102 [1] : vector<128x128xf32> to vector<128xf32>
    %276 = vector.shape_cast %275 : vector<128xf32> to vector<128x1xf32>
    %277 = tpu.reciprocal %276 {approx = true} : vector<128x1xf32> -> vector<128x1xf32>
    %278 = vector.broadcast %277 : vector<128x1xf32> to vector<128x128xf32>
    %279 = arith.mulf %274, %278 : vector<128x128xf32>
    %280 = arith.truncf %279 : vector<128x128xf32> to vector<128x128xbf16>
    %281 = vector.broadcast %27 : vector<1x128xbf16> to vector<128x128xbf16>
    %282 = arith.mulf %226, %281 : vector<128x128xbf16>
    %cst_103 = arith.constant dense<0.000000e+00> : vector<128x128xf32>
    %283 = tpu.matmul %280, %282, %cst_103 {dimension_numbers = #tpu.dot_dimension_numbers<[1], [0], [0], [1], [0, 0, 1, 1], [], []>} : vector<128x128xbf16>, vector<128x128xbf16>, vector<128x128xf32> -> vector<128x128xf32>
    %284 = arith.addf %265, %283 : vector<128x128xf32>
    %285 = vector.broadcast %36 : vector<1x128xbf16> to vector<128x128xbf16>
    %286 = arith.mulf %224, %285 : vector<128x128xbf16>
    %cst_104 = arith.constant dense<0.000000e+00> : vector<128x128xf32>
    %287 = tpu.matmul %286, %225, %cst_104 {dimension_numbers = #tpu.dot_dimension_numbers<[1], [1], [0], [0], [0, 0, 1, 0], [], []>} : vector<128x128xbf16>, vector<128x128xbf16>, vector<128x128xf32> -> vector<128x128xf32>
    %288 = arith.addf %287, %37 : vector<128x128xf32>
    %cst_105 = arith.constant dense<0xFF800000> : vector<128xf32>
    %289 = vector.multi_reduction <maximumf>, %288, %cst_105 [1] : vector<128x128xf32> to vector<128xf32>
    %290 = vector.shape_cast %289 : vector<128xf32> to vector<128x1xf32>
    %291 = vector.broadcast %290 : vector<128x1xf32> to vector<128x128xf32>
    %292 = arith.subf %288, %291 : vector<128x128xf32>
    %293 = math.exp %292 : vector<128x128xf32>
    %cst_106 = arith.constant dense<0.000000e+00> : vector<128xf32>
    %294 = vector.multi_reduction <add>, %293, %cst_106 [1] : vector<128x128xf32> to vector<128xf32>
    %295 = vector.shape_cast %294 : vector<128xf32> to vector<128x1xf32>
    %296 = tpu.reciprocal %295 {approx = true} : vector<128x1xf32> -> vector<128x1xf32>
    %297 = vector.broadcast %296 : vector<128x1xf32> to vector<128x128xf32>
    %298 = arith.mulf %293, %297 : vector<128x128xf32>
    %299 = arith.truncf %298 : vector<128x128xf32> to vector<128x128xbf16>
    %300 = vector.broadcast %36 : vector<1x128xbf16> to vector<128x128xbf16>
    %301 = arith.mulf %226, %300 : vector<128x128xbf16>
    %cst_107 = arith.constant dense<0.000000e+00> : vector<128x128xf32>
    %302 = tpu.matmul %299, %301, %cst_107 {dimension_numbers = #tpu.dot_dimension_numbers<[1], [0], [0], [1], [0, 0, 1, 1], [], []>} : vector<128x128xbf16>, vector<128x128xbf16>, vector<128x128xf32> -> vector<128x128xf32>
    %303 = arith.addf %284, %302 : vector<128x128xf32>
    %304 = arith.truncf %303 : vector<128x128xf32> to vector<128x128xbf16>
    %c1_108 = arith.constant 1 : index
    %c0_109 = arith.constant 0 : index
    %c0_110 = arith.constant 0 : index
    %305 = vector.load %arg7[%c1_108, %c0_109, %c0_110] : memref<2x128x128xbf16, #tpu.memory_space<vmem>>, vector<1x128x128xbf16>
    %306 = vector.shape_cast %305 : vector<1x128x128xbf16> to vector<128x128xbf16>
    %cst_111 = arith.constant dense<0.000000e+00> : vector<128x128xf32>
    %307 = tpu.matmul %304, %306, %cst_111 {dimension_numbers = #tpu.dot_dimension_numbers<[1], [0], [0], [1], [0, 0, 1, 1], [], []>} : vector<128x128xbf16>, vector<128x128xbf16>, vector<128x128xf32> -> vector<128x128xf32>
    %c1_112 = arith.constant 1 : index
    %c0_113 = arith.constant 0 : index
    %c0_114 = arith.constant 0 : index
    %308 = vector.load %arg8[%c1_112, %c0_113, %c0_114] : memref<2x1x128xf32, #tpu.memory_space<vmem>>, vector<1x1x128xf32>
    %309 = vector.shape_cast %308 : vector<1x1x128xf32> to vector<1x128xf32>
    %310 = vector.broadcast %309 : vector<1x128xf32> to vector<128x128xf32>
    %311 = arith.addf %307, %310 : vector<128x128xf32>
    %312 = arith.addf %214, %311 : vector<128x128xf32>
    %c1_115 = arith.constant 1 : index
    %c0_116 = arith.constant 0 : index
    %c0_117 = arith.constant 0 : index
    %313 = vector.load %arg9[%c1_115, %c0_116, %c0_117] : memref<2x1x128xf32, #tpu.memory_space<vmem>>, vector<1x1x128xf32>
    %314 = vector.shape_cast %313 : vector<1x1x128xf32> to vector<1x128xf32>
    %c1_118 = arith.constant 1 : index
    %c0_119 = arith.constant 0 : index
    %c0_120 = arith.constant 0 : index
    %315 = vector.load %arg10[%c1_118, %c0_119, %c0_120] : memref<2x1x128xf32, #tpu.memory_space<vmem>>, vector<1x1x128xf32>
    %316 = vector.shape_cast %315 : vector<1x1x128xf32> to vector<1x128xf32>
    %cst_121 = arith.constant dense<0.000000e+00> : vector<128xf32>
    %317 = vector.multi_reduction <add>, %312, %cst_121 [1] : vector<128x128xf32> to vector<128xf32>
    %318 = vector.shape_cast %317 : vector<128xf32> to vector<128x1xf32>
    %cst_122 = arith.constant 1.280000e+02 : f32
    %319 = vector.broadcast %cst_122 : f32 to vector<128x1xf32>
    %320 = arith.divf %318, %319 : vector<128x1xf32>
    %321 = vector.broadcast %320 : vector<128x1xf32> to vector<128x128xf32>
    %322 = arith.subf %312, %321 : vector<128x128xf32>
    %323 = arith.mulf %322, %322 : vector<128x128xf32>
    %cst_123 = arith.constant dense<0.000000e+00> : vector<128xf32>
    %324 = vector.multi_reduction <add>, %323, %cst_123 [1] : vector<128x128xf32> to vector<128xf32>
    %325 = vector.shape_cast %324 : vector<128xf32> to vector<128x1xf32>
    %cst_124 = arith.constant 1.280000e+02 : f32
    %326 = vector.broadcast %cst_124 : f32 to vector<128x1xf32>
    %327 = arith.divf %325, %326 : vector<128x1xf32>
    %328 = vector.broadcast %320 : vector<128x1xf32> to vector<128x128xf32>
    %329 = arith.subf %312, %328 : vector<128x128xf32>
    %cst_125 = arith.constant 9.99999974E-6 : f32
    %330 = vector.broadcast %cst_125 : f32 to vector<128x1xf32>
    %331 = arith.addf %327, %330 : vector<128x1xf32>
    %332 = math.rsqrt %331 : vector<128x1xf32>
    %333 = vector.broadcast %332 : vector<128x1xf32> to vector<128x128xf32>
    %334 = arith.mulf %329, %333 : vector<128x128xf32>
    %335 = vector.broadcast %314 : vector<1x128xf32> to vector<128x128xf32>
    %336 = arith.mulf %334, %335 : vector<128x128xf32>
    %337 = vector.broadcast %316 : vector<1x128xf32> to vector<128x128xf32>
    %338 = arith.addf %336, %337 : vector<128x128xf32>
    %339 = arith.truncf %338 : vector<128x128xf32> to vector<128x128xbf16>
    %c1_126 = arith.constant 1 : index
    %c0_127 = arith.constant 0 : index
    %c0_128 = arith.constant 0 : index
    %340 = vector.load %arg11[%c1_126, %c0_127, %c0_128] : memref<2x128x256xbf16, #tpu.memory_space<vmem>>, vector<1x128x256xbf16>
    %341 = vector.shape_cast %340 : vector<1x128x256xbf16> to vector<128x256xbf16>
    %cst_129 = arith.constant dense<0.000000e+00> : vector<128x256xf32>
    %342 = tpu.matmul %339, %341, %cst_129 {dimension_numbers = #tpu.dot_dimension_numbers<[1], [0], [0], [1], [0, 0, 1, 1], [], []>} : vector<128x128xbf16>, vector<128x256xbf16>, vector<128x256xf32> -> vector<128x256xf32>
    %c1_130 = arith.constant 1 : index
    %c0_131 = arith.constant 0 : index
    %c0_132 = arith.constant 0 : index
    %343 = vector.load %arg12[%c1_130, %c0_131, %c0_132] : memref<2x1x256xf32, #tpu.memory_space<vmem>>, vector<1x1x256xf32>
    %344 = vector.shape_cast %343 : vector<1x1x256xf32> to vector<1x256xf32>
    %345 = vector.broadcast %344 : vector<1x256xf32> to vector<128x256xf32>
    %346 = arith.addf %342, %345 : vector<128x256xf32>
    %cst_133 = arith.constant 0.000000e+00 : f32
    %347 = vector.broadcast %cst_133 : f32 to vector<128x256xf32>
    %348 = arith.maximumf %346, %347 : vector<128x256xf32>
    %349 = arith.truncf %348 : vector<128x256xf32> to vector<128x256xbf16>
    %c1_134 = arith.constant 1 : index
    %c0_135 = arith.constant 0 : index
    %c0_136 = arith.constant 0 : index
    %350 = vector.load %arg13[%c1_134, %c0_135, %c0_136] : memref<2x256x128xbf16, #tpu.memory_space<vmem>>, vector<1x256x128xbf16>
    %351 = vector.shape_cast %350 : vector<1x256x128xbf16> to vector<256x128xbf16>
    %cst_137 = arith.constant dense<0.000000e+00> : vector<128x128xf32>
    %352 = tpu.matmul %349, %351, %cst_137 {dimension_numbers = #tpu.dot_dimension_numbers<[1], [0], [0], [1], [0, 0, 1, 1], [], []>} : vector<128x256xbf16>, vector<256x128xbf16>, vector<128x128xf32> -> vector<128x128xf32>
    %c1_138 = arith.constant 1 : index
    %c0_139 = arith.constant 0 : index
    %c0_140 = arith.constant 0 : index
    %353 = vector.load %arg14[%c1_138, %c0_139, %c0_140] : memref<2x1x128xf32, #tpu.memory_space<vmem>>, vector<1x1x128xf32>
    %354 = vector.shape_cast %353 : vector<1x1x128xf32> to vector<1x128xf32>
    %355 = vector.broadcast %354 : vector<1x128xf32> to vector<128x128xf32>
    %356 = arith.addf %352, %355 : vector<128x128xf32>
    %357 = arith.addf %338, %356 : vector<128x128xf32>
    %c1_141 = arith.constant 1 : index
    %c0_142 = arith.constant 0 : index
    %c0_143 = arith.constant 0 : index
    %358 = vector.load %arg15[%c1_141, %c0_142, %c0_143] : memref<2x1x128xf32, #tpu.memory_space<vmem>>, vector<1x1x128xf32>
    %359 = vector.shape_cast %358 : vector<1x1x128xf32> to vector<1x128xf32>
    %c1_144 = arith.constant 1 : index
    %c0_145 = arith.constant 0 : index
    %c0_146 = arith.constant 0 : index
    %360 = vector.load %arg16[%c1_144, %c0_145, %c0_146] : memref<2x1x128xf32, #tpu.memory_space<vmem>>, vector<1x1x128xf32>
    %361 = vector.shape_cast %360 : vector<1x1x128xf32> to vector<1x128xf32>
    %cst_147 = arith.constant dense<0.000000e+00> : vector<128xf32>
    %362 = vector.multi_reduction <add>, %357, %cst_147 [1] : vector<128x128xf32> to vector<128xf32>
    %363 = vector.shape_cast %362 : vector<128xf32> to vector<128x1xf32>
    %cst_148 = arith.constant 1.280000e+02 : f32
    %364 = vector.broadcast %cst_148 : f32 to vector<128x1xf32>
    %365 = arith.divf %363, %364 : vector<128x1xf32>
    %366 = vector.broadcast %365 : vector<128x1xf32> to vector<128x128xf32>
    %367 = arith.subf %357, %366 : vector<128x128xf32>
    %368 = arith.mulf %367, %367 : vector<128x128xf32>
    %cst_149 = arith.constant dense<0.000000e+00> : vector<128xf32>
    %369 = vector.multi_reduction <add>, %368, %cst_149 [1] : vector<128x128xf32> to vector<128xf32>
    %370 = vector.shape_cast %369 : vector<128xf32> to vector<128x1xf32>
    %cst_150 = arith.constant 1.280000e+02 : f32
    %371 = vector.broadcast %cst_150 : f32 to vector<128x1xf32>
    %372 = arith.divf %370, %371 : vector<128x1xf32>
    %373 = vector.broadcast %365 : vector<128x1xf32> to vector<128x128xf32>
    %374 = arith.subf %357, %373 : vector<128x128xf32>
    %cst_151 = arith.constant 9.99999974E-6 : f32
    %375 = vector.broadcast %cst_151 : f32 to vector<128x1xf32>
    %376 = arith.addf %372, %375 : vector<128x1xf32>
    %377 = math.rsqrt %376 : vector<128x1xf32>
    %378 = vector.broadcast %377 : vector<128x1xf32> to vector<128x128xf32>
    %379 = arith.mulf %374, %378 : vector<128x128xf32>
    %380 = vector.broadcast %359 : vector<1x128xf32> to vector<128x128xf32>
    %381 = arith.mulf %379, %380 : vector<128x128xf32>
    %382 = vector.broadcast %361 : vector<1x128xf32> to vector<128x128xf32>
    %383 = arith.addf %381, %382 : vector<128x128xf32>
    %384 = vector.shape_cast %383 : vector<128x128xf32> to vector<16x8x128xf32>
    %cst_152 = arith.constant dense<0.000000e+00> : vector<16x128xf32>
    %385 = vector.multi_reduction <add>, %384, %cst_152 [1] : vector<16x8x128xf32> to vector<16x128xf32>
    %cst_153 = arith.constant 8.000000e+00 : f32
    %386 = vector.broadcast %cst_153 : f32 to vector<16x128xf32>
    %387 = arith.divf %385, %386 : vector<16x128xf32>
    %388 = arith.truncf %387 : vector<16x128xf32> to vector<16x128xbf16>
    %c0_154 = arith.constant 0 : index
    %c0_155 = arith.constant 0 : index
    %389 = vector.load %arg17[%c0_154, %c0_155] : memref<128x128xbf16, #tpu.memory_space<vmem>>, vector<128x128xbf16>
    %cst_156 = arith.constant dense<0.000000e+00> : vector<16x128xf32>
    %390 = tpu.matmul %388, %389, %cst_156 {dimension_numbers = #tpu.dot_dimension_numbers<[1], [0], [0], [1], [0, 0, 1, 1], [], []>} : vector<16x128xbf16>, vector<128x128xbf16>, vector<16x128xf32> -> vector<16x128xf32>
    %c0_157 = arith.constant 0 : index
    %c0_158 = arith.constant 0 : index
    %391 = vector.load %arg18[%c0_157, %c0_158] : memref<1x128xf32, #tpu.memory_space<vmem>>, vector<1x128xf32>
    %392 = vector.broadcast %391 : vector<1x128xf32> to vector<16x128xf32>
    %393 = arith.addf %390, %392 : vector<16x128xf32>
    %c0_159 = arith.constant 0 : index
    %c0_160 = arith.constant 0 : index
    %394 = vector.load %arg19[%c0_159, %c0_160] : memref<16x128xf32, #tpu.memory_space<vmem>>, vector<16x128xf32>
    tpu.vector_store %arg19[%c0_159, %c0_160], %393 {strides = array<i32>} : memref<16x128xf32, #tpu.memory_space<vmem>>, vector<16x128xf32>,
    return
  }
  func.func @transform_0(%arg0: i32) -> (i32, i32) {
    %c0_i32 = arith.constant 0 : i32
    %c0_i32_0 = arith.constant 0 : i32
    return %arg0, %c0_i32 : i32, i32
  }
  func.func @transform_1(%arg0: i32) -> (i32, i32) {
    %c0_i32 = arith.constant 0 : i32
    %c0_i32_0 = arith.constant 0 : i32
    %c0_i32_1 = arith.constant 0 : i32
    return %c0_i32, %c0_i32_0 : i32, i32
  }
  func.func @transform_2(%arg0: i32) -> (i32, i32) {
    %c0_i32 = arith.constant 0 : i32
    %c0_i32_0 = arith.constant 0 : i32
    %c0_i32_1 = arith.constant 0 : i32
    return %c0_i32, %c0_i32_0 : i32, i32
  }
  func.func @transform_3(%arg0: i32) -> (i32, i32) {
    %c0_i32 = arith.constant 0 : i32
    %c0_i32_0 = arith.constant 0 : i32
    %c0_i32_1 = arith.constant 0 : i32
    return %c0_i32, %c0_i32_0 : i32, i32
  }
  func.func @transform_4(%arg0: i32) -> (i32, i32, i32) {
    %c0_i32 = arith.constant 0 : i32
    %c0_i32_0 = arith.constant 0 : i32
    %c0_i32_1 = arith.constant 0 : i32
    %c0_i32_2 = arith.constant 0 : i32
    return %c0_i32, %c0_i32_0, %c0_i32_1 : i32, i32, i32
  }
  func.func @transform_5(%arg0: i32) -> (i32, i32, i32) {
    %c0_i32 = arith.constant 0 : i32
    %c0_i32_0 = arith.constant 0 : i32
    %c0_i32_1 = arith.constant 0 : i32
    %c0_i32_2 = arith.constant 0 : i32
    return %c0_i32, %c0_i32_0, %c0_i32_1 : i32, i32, i32
  }
  func.func @transform_6(%arg0: i32) -> (i32, i32, i32) {
    %c0_i32 = arith.constant 0 : i32
    %c0_i32_0 = arith.constant 0 : i32
    %c0_i32_1 = arith.constant 0 : i32
    %c0_i32_2 = arith.constant 0 : i32
    return %c0_i32, %c0_i32_0, %c0_i32_1 : i32, i32, i32
  }
  func.func @transform_7(%arg0: i32) -> (i32, i32, i32) {
    %c0_i32 = arith.constant 0 : i32
    %c0_i32_0 = arith.constant 0 : i32
    %c0_i32_1 = arith.constant 0 : i32
    %c0_i32_2 = arith.constant 0 : i32
    return %c0_i32, %c0_i32_0, %c0_i32_1 : i32, i32, i32
  }
  func.func @transform_8(%arg0: i32) -> (i32, i32, i32) {
    %c0_i32 = arith.constant 0 : i32
    %c0_i32_0 = arith.constant 0 : i32
    %c0_i32_1 = arith.constant 0 : i32
    %c0_i32_2 = arith.constant 0 : i32
    return %c0_i32, %c0_i32_0, %c0_i32_1 : i32, i32, i32
  }
  func.func @transform_9(%arg0: i32) -> (i32, i32, i32) {
    %c0_i32 = arith.constant 0 : i32
    %c0_i32_0 = arith.constant 0 : i32
    %c0_i32_1 = arith.constant 0 : i32
    %c0_i32_2 = arith.constant 0 : i32
    return %c0_i32, %c0_i32_0, %c0_i32_1 : i32, i32, i32
  }
  func.func @transform_10(%arg0: i32) -> (i32, i32, i32) {
    %c0_i32 = arith.constant 0 : i32
    %c0_i32_0 = arith.constant 0 : i32
    %c0_i32_1 = arith.constant 0 : i32
    %c0_i32_2 = arith.constant 0 : i32
    return %c0_i32, %c0_i32_0, %c0_i32_1 : i32, i32, i32
  }
  func.func @transform_11(%arg0: i32) -> (i32, i32, i32) {
    %c0_i32 = arith.constant 0 : i32
    %c0_i32_0 = arith.constant 0 : i32
    %c0_i32_1 = arith.constant 0 : i32
    %c0_i32_2 = arith.constant 0 : i32
    return %c0_i32, %c0_i32_0, %c0_i32_1 : i32, i32, i32
  }
  func.func @transform_12(%arg0: i32) -> (i32, i32, i32) {
    %c0_i32 = arith.constant 0 : i32
    %c0_i32_0 = arith.constant 0 : i32
    %c0_i32_1 = arith.constant 0 : i32
    %c0_i32_2 = arith.constant 0 : i32
    return %c0_i32, %c0_i32_0, %c0_i32_1 : i32, i32, i32
  }
  func.func @transform_13(%arg0: i32) -> (i32, i32, i32) {
    %c0_i32 = arith.constant 0 : i32
    %c0_i32_0 = arith.constant 0 : i32
    %c0_i32_1 = arith.constant 0 : i32
    %c0_i32_2 = arith.constant 0 : i32
    return %c0_i32, %c0_i32_0, %c0_i32_1 : i32, i32, i32
  }
  func.func @transform_14(%arg0: i32) -> (i32, i32, i32) {
    %c0_i32 = arith.constant 0 : i32
    %c0_i32_0 = arith.constant 0 : i32
    %c0_i32_1 = arith.constant 0 : i32
    %c0_i32_2 = arith.constant 0 : i32
    return %c0_i32, %c0_i32_0, %c0_i32_1 : i32, i32, i32
  }
  func.func @transform_15(%arg0: i32) -> (i32, i32, i32) {
    %c0_i32 = arith.constant 0 : i32
    %c0_i32_0 = arith.constant 0 : i32
    %c0_i32_1 = arith.constant 0 : i32
    %c0_i32_2 = arith.constant 0 : i32
    return %c0_i32, %c0_i32_0, %c0_i32_1 : i32, i32, i32
  }
  func.func @transform_16(%arg0: i32) -> (i32, i32) {
    %c0_i32 = arith.constant 0 : i32
    %c0_i32_0 = arith.constant 0 : i32
    %c0_i32_1 = arith.constant 0 : i32
    return %c0_i32, %c0_i32_0 : i32, i32
  }
  func.func @transform_17(%arg0: i32) -> (i32, i32) {
    %c0_i32 = arith.constant 0 : i32
    %c0_i32_0 = arith.constant 0 : i32
    %c0_i32_1 = arith.constant 0 : i32
    return %c0_i32, %c0_i32_0 : i32, i32
  }
  func.func @transform_18(%arg0: i32) -> (i32, i32) {
    %c0_i32 = arith.constant 0 : i32
    %c0_i32_0 = arith.constant 0 : i32
    return %arg0, %c0_i32 : i32, i32
  }
}

</mosaic_0001>

<bundles_post_ra>
// kernel: simple_transformer_pallas.1
= control target key start
LH: loop header
LB: loop body
LE: loop exit
PB: predicated region body
PF: predicated region fallthrough
CT: control target
= control target key end

     0   :  { %v8068_v0 = vmov 0   ;;  %s13499_s0 = inlined_call_operand.vmem [shape: f32[128,1], index: 0, kind: input, shape index: {}]   ;;  %s13500_s2 = inlined_call_operand.vmem [shape: f32[1,128], index: 2, kind: input, shape index: {}]   ;;  %s13501_s3 = inlined_call_operand.vmem [shape: f32[1,128], index: 3, kind: input, shape index: {}]   ;;  %s13502_s4 = inlined_call_operand.vmem [shape: bf16[2,128,384], index: 4, kind: input, shape index: {}]   ;;  %s13503_s5 = inlined_call_operand.vmem [shape: f32[2,1,384], index: 5, kind: input, shape index: {}]   ;;  %s13504_s1 = inlined_call_operand.vmem [shape: f32[128,128], index: 1, kind: input, shape index: {}]   ;;  %s13505_s6 = inlined_call_operand.vmem [shape: bf16[2,128,128], index: 6, kind: input, shape index: {}]   ;;  %s13506_s7 = inlined_call_operand.vmem [shape: f32[2,1,128], index: 7, kind: input, shape index: {}]   ;;  %s13507_s8 = inlined_call_operand.vmem [shape: f32[2,1,128], index: 8, kind: input, shape index: {}]   ;;  %s13508_s9 = inlined_call_operand.vmem [shape: f32[2,1,128], index: 9, kind: input, shape index: {}]   ;;  %s13509_s10 = inlined_call_operand.vmem [shape: bf16[2,128,256], index: 10, kind: input, shape index: {}]   ;;  %s13510_s12 = inlined_call_operand.vmem [shape: bf16[2,256,128], index: 12, kind: input, shape index: {}]   ;;  %s13511_s11 = inlined_call_operand.vmem [shape: f32[2,1,256], index: 11, kind: input, shape index: {}]   ;;  %s13512_s13 = inlined_call_operand.vmem [shape: f32[2,1,128], index: 13, kind: input, shape index: {}]   ;;  %s13513_s14 = inlined_call_operand.vmem [shape: f32[2,1,128], index: 14, kind: input, shape index: {}]   ;;  %s13514_s15 = inlined_call_operand.vmem [shape: f32[2,1,128], index: 15, kind: input, shape index: {}]   ;;  %s13515_s17 = inlined_call_operand.vmem [shape: f32[1,128], index: 17, kind: input, shape index: {}]   ;;  %s13516_s16 = inlined_call_operand.vmem [shape: bf16[128,128], index: 16, kind: input, shape index: {}]   ;;  %s13517_s18 = inlined_call_operand.vmem [shape: f32[16,128], index: 18, kind: output, shape index: {}]  }
   0x1   :  { %13649 = sst [smem:[#allocation66_spill]] %s13499_s0  ;;  %7375 = vset.pattern.permute.xlu1 %v8068_v0  ;;  %7374 = vset.pattern.permute.xlu0 %v8068_v0  ;;  %v6664_v7 = vld [vmem:[%s13502_s4 + $0xa8] sm:$0xf]  ;;  %v7248_v8 = vld [vmem:[%s13502_s4 + $0xb0] sm:$0xf0] }
   0x2   :  { %13650 = sst [smem:[#allocation67_spill]] %s13500_s2  ;;  %7376 = vset.pattern.permute.xlu2 %v8068_v0  ;;  %v7247_v9 = vld [vmem:[%s13502_s4 + $0xac] sm:$0xf]  ;;  %v6666_v10 = vld [vmem:[%s13502_s4 + $0xb4] sm:$0xf0]  ;;  %v6665_v11 = vor.u32 %v7248_v8, %v6664_v7 }
   0x3   :  { %13651 = sst [smem:[#allocation68_spill]] %s13501_s3  ;;  %v6669_v12 = vor.u32 %v7247_v9, %v6666_v10  ;;  %v6672_v13 = vld [vmem:[%s13502_s4 + $0xb0] sm:$0xf]  ;;  %v7249_v14 = vld [vmem:[%s13502_s4 + $0xb8] sm:$0xf0] }
   0x4   :  { %s13652_s29 = sld [smem:[#allocation66_spill]]  ;;  %v6652_v15 = vld [vmem:[%s13502_s4 + $0x90] sm:$0xf]  ;;  %v6673_v16 = vor.u32 %v7249_v14, %v6672_v13  ;;  %v7245_v17 = vld [vmem:[%s13502_s4 + $0x98] sm:$0xf0]  ;;  %409 = vmatpush.bf16.msra.mxu0 %v6665_v11 }
   0x5   :  { %v7244_v18 = vld [vmem:[%s13502_s4 + $0x94] sm:$0xf]  ;;  %v6654_v19 = vld [vmem:[%s13502_s4 + $0x9c] sm:$0xf0]  ;;  %458 = vmatpush.bf16.msra.mxu1 %v6669_v12  ;;  %v6660_v20 = vld [vmem:[%s13502_s4 + $0x98] sm:$0xf]  ;;  %v6653_v24 = vor.u32 %v7245_v17, %v6652_v15 }
   0x6   :  { %v7246_v21 = vld [vmem:[%s13502_s4 + $0xa0] sm:$0xf0]  ;;  %507 = vmatpush.bf16.msra.mxu2 %v6673_v16  ;;  %v6657_v25 = vor.u32 %v7244_v18, %v6654_v19  ;;  %v6640_v26 = vld [vmem:[%s13502_s4 + $0x78] sm:$0xf]  ;;  %v7241_v29 = vld [vmem:[%s13502_s4 + $0x7c] sm:$0xf] }
   0x7   :  { %v6661_v27 = vor.u32 %v7246_v21, %v6660_v20  ;;  %v7242_v28 = vld [vmem:[%s13502_s4 + $0x80] sm:$0xf0]  ;;  %v6642_v30 = vld [vmem:[%s13502_s4 + $0x84] sm:$0xf0]  ;;  %v6648_v32 = vld [vmem:[%s13502_s4 + $0x80] sm:$0xf] }
   0x8   :  { %v7243_v33 = vld [vmem:[%s13502_s4 + $0x88] sm:$0xf0]  ;;  %410 = vmatpush.bf16.msra.mxu0 %v6653_v24  ;;  %v6641_v34 = vor.u32 %v7242_v28, %v6640_v26  ;;  %v6645_v35 = vor.u32 %v7241_v29, %v6642_v30  ;;  %v6628_v36 = vld [vmem:[%s13502_s4 + $0x60] sm:$0xf]  ;;  %v7238_v39 = vld [vmem:[%s13502_s4 + $0x64] sm:$0xf] }
   0x9   :  { %459 = vmatpush.bf16.msra.mxu1 %v6657_v25  ;;  %v6649_v37 = vor.u32 %v7243_v33, %v6648_v32  ;;  %v7239_v38 = vld [vmem:[%s13502_s4 + $0x68] sm:$0xf0]  ;;  %v6630_v40 = vld [vmem:[%s13502_s4 + $0x6c] sm:$0xf0]  ;;  %v6636_v41 = vld [vmem:[%s13502_s4 + $0x68] sm:$0xf] }
   0xa   :  { %v99_v1 = vld [vmem:[%s13652_s29 + $0x10] sm:$0xff]  ;;  %v97_v2 = vld [vmem:[%s13652_s29] sm:$0xff]  ;;  %v100_v4 = vld [vmem:[%s13652_s29 + $0x18] sm:$0xff]  ;;  %508 = vmatpush.bf16.msra.mxu2 %v6661_v27  ;;  %v6629_v45 = vor.u32 %v7239_v38, %v6628_v36  ;;  %v6633_v46 = vor.u32 %v7238_v39, %v6630_v40  ;;  %s13653_s19 = sld [smem:[#allocation67_spill]] }
   0xb   :  { %126 = vperm.xlu1 %7375, %v99_v1   ;;  %116 = vperm.xlu0 %7374, %v97_v2   ;;  %v101_v3 = vld [vmem:[%s13652_s29 + $0x20] sm:$0xff]  ;;  %v98_v5 = vld [vmem:[%s13652_s29 + $0x8] sm:$0xff]  ;;  %v104_v22 = vld [vmem:[%s13652_s29 + $0x38] sm:$0xff] }
   0xc   :  { %136 = vperm.xlu2 %7376, %v101_v3   ;;  %v102_v6 = vld [vmem:[%s13652_s29 + $0x28] sm:$0xff]  ;;  %v103_v23 = vld [vmem:[%s13652_s29 + $0x30] sm:$0xff]  ;;  %v105_v31 = vld [vmem:[%s13652_s29 + $0x40] sm:$0xff]  ;;  %411 = vmatpush.bf16.msra.mxu0 %v6641_v34 }
   0xd   :  { %v7240_v42 = vld [vmem:[%s13502_s4 + $0x70] sm:$0xf0]  ;;  %v106_v44 = vld [vmem:[%s13652_s29 + $0x48] sm:$0xff]  ;;  %460 = vmatpush.bf16.msra.mxu1 %v6645_v35  ;;  %v6618_v51 = vld [vmem:[%s13502_s4 + $0x54] sm:$0xf0] }
   0xe   :  { %v107_v43 = vld [vmem:[%s13652_s29 + $0x50] sm:$0xff]  ;;  %v6616_v47 = vld [vmem:[%s13502_s4 + $0x48] sm:$0xf]  ;;  %509 = vmatpush.bf16.msra.mxu2 %v6649_v37  ;;  %v6637_v48 = vor.u32 %v7240_v42, %v6636_v41  ;;  %v7235_v50 = vld [vmem:[%s13502_s4 + $0x4c] sm:$0xf] }
   0xf   :  { %v7236_v49 = vld [vmem:[%s13502_s4 + $0x50] sm:$0xf0]  ;;  %v108_v52 = vld [vmem:[%s13652_s29 + $0x58] sm:$0xff]  ;;  %v6624_v53 = vld [vmem:[%s13502_s4 + $0x50] sm:$0xf]  ;;  %v6621_v56 = vor.u32 %v7235_v50, %v6618_v51 }
  0x10   :  { %v7237_v54 = vld [vmem:[%s13502_s4 + $0x58] sm:$0xf0]  ;;  %412 = vmatpush.bf16.msra.mxu0 %v6629_v45  ;;  %v6617_v55 = vor.u32 %v7236_v49, %v6616_v47  ;;  %v110_v58 = vld [vmem:[%s13652_s29 + $0x68] sm:$0xff]  ;;  %v109_v59 = vld [vmem:[%s13652_s29 + $0x60] sm:$0xff] }
  0x11   :  { %461 = vmatpush.bf16.msra.mxu1 %v6633_v46  ;;  %v6625_v57 = vor.u32 %v7237_v54, %v6624_v53  ;;  %v111_v60 = vld [vmem:[%s13652_s29 + $0x70] sm:$0xff]  ;;  %v112_v61 = vld [vmem:[%s13652_s29 + $0x78] sm:$0xff]  ;;  %v6606_v2 = vld [vmem:[%s13502_s4 + $0x3c] sm:$0xf0] }
  0x12   :  { %510 = vmatpush.bf16.msra.mxu2 %v6637_v48  ;;  %v6604_v62 = vld [vmem:[%s13502_s4 + $0x30] sm:$0xf]  ;;  %v7233_v63 = vld [vmem:[%s13502_s4 + $0x38] sm:$0xf0]  ;;  %v7232_v0 = vld [vmem:[%s13502_s4 + $0x34] sm:$0xf] }
  0x13   :  { %131 = vperm.xlu1 %7375, %v100_v4   ;;  %121 = vperm.xlu0 %7374, %v98_v5   ;;  %v6605_v1 = vor.u32 %v7233_v63, %v6604_v62  ;;  %v6612_v3 = vld [vmem:[%s13502_s4 + $0x38] sm:$0xf]  ;;  %v7234_v4 = vld [vmem:[%s13502_s4 + $0x40] sm:$0xf0]  ;;  %v6609_v5 = vor.u32 %v7232_v0, %v6606_v2  ;;  %v7229_v9 = vld [vmem:[%s13502_s4 + $0x1c] sm:$0xf] }
  0x14   :  { %141 = vperm.xlu2 %7376, %v102_v6   ;;  %413 = vmatpush.bf16.msra.mxu0 %v6617_v55  ;;  %v6613_v6 = vor.u32 %v7234_v4, %v6612_v3  ;;  %v6592_v7 = vld [vmem:[%s13502_s4 + $0x18] sm:$0xf]  ;;  %v7230_v8 = vld [vmem:[%s13502_s4 + $0x20] sm:$0xf0]  ;;  %v6594_v11 = vld [vmem:[%s13502_s4 + $0x24] sm:$0xf0] }
  0x15   :  { %462 = vmatpush.bf16.msra.mxu1 %v6621_v56  ;;  %v6593_v10 = vor.u32 %v7230_v8, %v6592_v7  ;;  %v6600_v12 = vld [vmem:[%s13502_s4 + $0x20] sm:$0xf]  ;;  %v7231_v13 = vld [vmem:[%s13502_s4 + $0x28] sm:$0xf0]  ;;  %v6597_v14 = vor.u32 %v7229_v9, %v6594_v11  ;;  %v7226_v19 = vld [vmem:[%s13502_s4 + $0x4] sm:$0xf] }
  0x16   :  { %511 = vmatpush.bf16.msra.mxu2 %v6625_v57  ;;  %v6601_v15 = vor.u32 %v7231_v13, %v6600_v12  ;;  %v8344_v16 = vld [vmem:[%s13653_s19] ss:$0 sm:$0xff]  ;;  %v7227_v18 = vld [vmem:[%s13502_s4 + $0x8] sm:$0xf0]  ;;  %v7228_v24 = vld [vmem:[%s13502_s4 + $0x10] sm:$0xf0] }
  0x17   :  { %v6580_v17 = vld [vmem:[%s13502_s4] sm:$0xf]  ;;  %s13654_s19 = sld [smem:[#allocation68_spill]] }
  0x18   :  { %414 = vmatpush.bf16.msra.mxu0 %v6605_v1  ;;  %v6581_v21 = vor.u32 %v7227_v18, %v6580_v17 }
  0x19   :  { %463 = vmatpush.bf16.msra.mxu1 %v6609_v5 }
  0x1a   :  { %512 = vmatpush.bf16.msra.mxu2 %v6613_v6 }
  0x1b   :  { %151 = vperm.xlu1 %7375, %v104_v22   ;;  %146 = vperm.xlu0 %7374, %v103_v23   ;;  %v6582_v22 = vld [vmem:[%s13502_s4 + $0xc] sm:$0xf0]  ;;  %v6588_v23 = vld [vmem:[%s13502_s4 + $0x8] sm:$0xf] }
  0x1c   :  { %156 = vperm.xlu2 %7376, %v105_v31   ;;  %415 = vmatpush.bf16.msra.mxu0 %v6593_v10  ;;  %v6585_v27 = vor.u32 %v7226_v19, %v6582_v22  ;;  %v6589_v28 = vor.u32 %v7228_v24, %v6588_v23  ;;  %v8434_v19 = vld [vmem:[%s13503_s5] sm:$0x7]  ;;  %v59_v22 = vlaneseq }
  0x1d   :  { %464 = vmatpush.bf16.msra.mxu1 %v6597_v14  ;;  %v7378_v25 = vld [vmem:[%s13654_s19] ss:$0 sm:$0xff] }
  0x1e   :  { %513 = vmatpush.bf16.msra.mxu2 %v6601_v15 }
  0x20   :  { %416 = vmatpush.bf16.msra.mxu0 %v6581_v21  ;;  %v8440_v21 = vperm.slane %v8434_v19, 1 }
  0x21   :  { %465 = vmatpush.bf16.msra.mxu1 %v6585_v27  ;;  %v8444_v27 = vand.u32 127, %v59_v22 }
  0x22   :  { %514 = vmatpush.bf16.msra.mxu2 %v6589_v28 }
  0x23   :  { %166 = vperm.xlu1 %7375, %v107_v43   ;;  %161 = vperm.xlu0 %7374, %v106_v44   ;;  %vm71_vm0 = vcmp.ge.s32.totalorder %v8444_v27, 64  ;;  %vm72_vm1 = vcmp.lt.s32.totalorder %v8444_v27, 96  ;;  %vm76_vm2 = vcmp.ge.s32.totalorder %v8444_v27, 96  ;;  %vm66_vm4 = vcmp.ge.s32.totalorder %v8444_v27, 32 }
  0x24   :  { %171 = vperm.xlu2 %7376, %v108_v52   ;;  %vm73_vm3 = vmand %vm71_vm0, %vm72_vm1  ;;  %vm67_vm5 = vcmp.lt.s32.totalorder %v8444_v27, 64  ;;  %vm62_vm6 = vcmp.lt.s32.totalorder %v8444_v27, 32 }
  0x25   :  { %vm68_vm7 = vmand %vm66_vm4, %vm67_vm5 }
  0x2b   :  { %181 = vperm.xlu1 %7375, %v110_v58   ;;  %176 = vperm.xlu0 %7374, %v109_v59  }
  0x2c   :  { %186 = vperm.xlu2 %7376, %v111_v60  }
  0x33   :  { %191 = vperm.xlu0 %7374, %v112_v61  }
  0x66   :  { %v137_v20 = vpop.permute.xlu2 %136 }
  0x67   :  { %v201_v26 = vmul.f32 %v8344_v16, %v137_v20  ;;  %v8437_v20 = vperm.slane %v8434_v19, 0 }
  0x69   :  { %v8368_v29 = vadd.f32 %v7378_v25, %v201_v26 }
  0x6b   :  { %13655 = vst [vmem:[#allocation2_spill] sm:$0xff] %v8368_v29 }
  0x6e   :  { %v142_v30 = vpop.permute.xlu2 %141 }
  0x6f   :  { %v202_v31 = vmul.f32 %v8344_v16, %v142_v30 }
  0x71   :  { %v8371_v32 = vadd.f32 %v7378_v25, %v202_v31 }
  0x73   :  { %13656 = vst [vmem:[#allocation3_spill] sm:$0xff] %v8371_v32  ;;  %v235_v13 = vpack.c.bf16 %v8371_v32, %v8368_v29 }
  0x76   :  { %v157_v33 = vpop.permute.xlu2 %156 }
  0x77   :  { %v205_v34 = vmul.f32 %v8344_v16, %v157_v33 }
  0x79   :  { %v8374_v35 = vadd.f32 %v7378_v25, %v205_v34 }
  0x7b   :  { %13657 = vst [vmem:[#allocation4_spill] sm:$0xff] %v8374_v35 }
  0x7d   :  { %v127_v36 = vpop.permute.xlu1 %126  ;;  %v117_v37 = vpop.permute.xlu0 %116 }
  0x7e   :  { %v199_v38 = vmul.f32 %v8344_v16, %v127_v36  ;;  %v197_v39 = vmul.f32 %v8344_v16, %v117_v37  ;;  %v172_v40 = vpop.permute.xlu2 %171 }
  0x7f   :  { %v208_v43 = vmul.f32 %v8344_v16, %v172_v40 }
  0x80   :  { %v8378_v41 = vadd.f32 %v7378_v25, %v199_v38  ;;  %v8380_v42 = vadd.f32 %v7378_v25, %v197_v39  ;;  %v8069_v39 = vmov 0.0  }
  0x81   :  { %v8383_v44 = vadd.f32 %v7378_v25, %v208_v43  ;;  %v8461_v40 = vsel %vm76_vm2, 1.0, %v8069_v39 }
  0x82   :  { %13658 = vst [vmem:[#allocation5_spill] sm:$0xff] %v8378_v41 }
  0x83   :  { %13659 = vst [vmem:[#allocation6_spill] sm:$0xff] %v8380_v42 }
  0x84   :  { %13660 = vst [vmem:[#allocation7_spill] sm:$0xff] %v8383_v44 }
  0x85   :  { %v132_v45 = vpop.permute.xlu1 %131  ;;  %v122_v46 = vpop.permute.xlu0 %121  ;;  %13671 = vst [vmem:[#allocation18_spill] sm:$0xff] %v8461_v40 }
  0x86   :  { %v200_v47 = vmul.f32 %v8344_v16, %v132_v45  ;;  %v198_v48 = vmul.f32 %v8344_v16, %v122_v46  ;;  %v187_v49 = vpop.permute.xlu2 %186  ;;  %v8467_v45 = vsel %vm73_vm3, 1.0, %v8069_v39 }
  0x87   :  { %v211_v52 = vmul.f32 %v8344_v16, %v187_v49  ;;  %13672 = vst [vmem:[#allocation19_spill] sm:$0xff] %v8467_v45 }
  0x88   :  { %v8387_v50 = vadd.f32 %v7378_v25, %v200_v47  ;;  %v8389_v51 = vadd.f32 %v7378_v25, %v198_v48 }
  0x89   :  { %v8394_v54 = vadd.f32 %v7378_v25, %v211_v52 }
  0x8a   :  { %13661 = vst [vmem:[#allocation8_spill] sm:$0xff] %v8387_v50  ;;  %v233_v53 = vpack.c.bf16 %v8389_v51, %v8380_v42  ;;  %v234_v3 = vpack.c.bf16 %v8387_v50, %v8378_v41 }
  0x8b   :  { %13662 = vst [vmem:[#allocation9_spill] sm:$0xff] %v8389_v51 }
  0x8c   :  { %13663 = vst [vmem:[#allocation10_spill] sm:$0xff] %v8394_v54  ;;  %417 = vmatmul.bf16.vlgmr.msra.gmra.mxu0 %v233_v53  ;;  %466 = vmatmul.bf16.vlgmr.msra.gmra.mxu1 %v233_v53 }
  0x8d   :  { %515 = vmatmul.bf16.vlgmr.msra.gmra.mxu2 %v233_v53  ;;  %v152_v55 = vpop.permute.xlu1 %151  ;;  %v147_v56 = vpop.permute.xlu0 %146 }
  0x8e   :  { %v204_v57 = vmul.f32 %v8344_v16, %v152_v55  ;;  %v203_v58 = vmul.f32 %v8344_v16, %v147_v56 }
  0x90   :  { %v8398_v59 = vadd.f32 %v7378_v25, %v204_v57  ;;  %v8400_v60 = vadd.f32 %v7378_v25, %v203_v58 }
  0x92   :  { %13664 = vst [vmem:[#allocation11_spill] sm:$0xff] %v8398_v59  ;;  %v236_v14 = vpack.c.bf16 %v8398_v59, %v8400_v60 }
  0x93   :  { %13665 = vst [vmem:[#allocation12_spill] sm:$0xff] %v8400_v60 }
  0x95   :  { %v167_v61 = vpop.permute.xlu1 %166  ;;  %v162_v62 = vpop.permute.xlu0 %161 }
  0x96   :  { %v207_v63 = vmul.f32 %v8344_v16, %v167_v61  ;;  %v206_v0 = vmul.f32 %v8344_v16, %v162_v62 }
  0x98   :  { %v8404_v1 = vadd.f32 %v7378_v25, %v207_v63  ;;  %v8406_v2 = vadd.f32 %v7378_v25, %v206_v0 }
  0x9a   :  { %13666 = vst [vmem:[#allocation13_spill] sm:$0xff] %v8404_v1  ;;  %v237_v15 = vpack.c.bf16 %v8406_v2, %v8374_v35 }
  0x9b   :  { %13667 = vst [vmem:[#allocation14_spill] sm:$0xff] %v8406_v2 }
  0x9c   :  { %422 = vmatmul.bf16.gmra.mxu0 %v234_v3  ;;  %471 = vmatmul.bf16.gmra.mxu1 %v234_v3 }
  0x9d   :  { %520 = vmatmul.bf16.gmra.mxu2 %v234_v3  ;;  %v182_v4 = vpop.permute.xlu1 %181  ;;  %v177_v5 = vpop.permute.xlu0 %176 }
  0x9e   :  { %v210_v6 = vmul.f32 %v8344_v16, %v182_v4  ;;  %v209_v7 = vmul.f32 %v8344_v16, %v177_v5 }
  0xa0   :  { %v8412_v8 = vadd.f32 %v7378_v25, %v210_v6  ;;  %v8414_v9 = vadd.f32 %v7378_v25, %v209_v7 }
  0xa2   :  { %13668 = vst [vmem:[#allocation15_spill] sm:$0xff] %v8412_v8  ;;  %v239_v17 = vpack.c.bf16 %v8412_v8, %v8414_v9 }
  0xa3   :  { %13669 = vst [vmem:[#allocation16_spill] sm:$0xff] %v8414_v9 }
  0xa5   :  { %v192_v10 = vpop.permute.xlu0 %191 }
  0xa6   :  { %v212_v11 = vmul.f32 %v8344_v16, %v192_v10  ;;  %v238_v16 = vpack.c.bf16 %v8383_v44, %v8404_v1 }
  0xa8   :  { %v8417_v12 = vadd.f32 %v7378_v25, %v212_v11 }
  0xaa   :  { %13670 = vst [vmem:[#allocation17_spill] sm:$0xff] %v8417_v12  ;;  %v240_v18 = vpack.c.bf16 %v8417_v12, %v8394_v54 }
  0xac   :  { %427 = vmatmul.bf16.gmra.mxu0 %v235_v13  ;;  %476 = vmatmul.bf16.gmra.mxu1 %v235_v13 }
  0xad   :  { %525 = vmatmul.bf16.gmra.mxu2 %v235_v13 }
  0xbc   :  { %432 = vmatmul.bf16.gmra.mxu0 %v236_v14  ;;  %481 = vmatmul.bf16.gmra.mxu1 %v236_v14 }
  0xbd   :  { %530 = vmatmul.bf16.gmra.mxu2 %v236_v14 }
  0xcc   :  { %437 = vmatmul.bf16.gmra.mxu0 %v237_v15  ;;  %486 = vmatmul.bf16.gmra.mxu1 %v237_v15 }
  0xcd   :  { %535 = vmatmul.bf16.gmra.mxu2 %v237_v15 }
  0xdc   :  { %442 = vmatmul.bf16.gmra.mxu0 %v238_v16  ;;  %491 = vmatmul.bf16.gmra.mxu1 %v238_v16 }
  0xdd   :  { %540 = vmatmul.bf16.gmra.mxu2 %v238_v16 }
  0xec   :  { %447 = vmatmul.bf16.gmra.mxu0 %v239_v17  ;;  %496 = vmatmul.bf16.gmra.mxu1 %v239_v17 }
  0xed   :  { %545 = vmatmul.bf16.gmra.mxu2 %v239_v17 }
  0xfc   :  { %452 = vmatmul.bf16.gmra.mxu0 %v240_v18  ;;  %501 = vmatmul.bf16.gmra.mxu1 %v240_v18 }
  0xfd   :  { %550 = vmatmul.bf16.gmra.mxu2 %v240_v18 }
 0x109   :  { %v418_v23 = vpop.f32.mrf.mxu0  ;;  %v467_v24 = vpop.f32.mrf.mxu1 }
 0x10a   :  { %v419_v25 = vadd.f32 %v418_v23, %v8437_v20  ;;  %v468_v26 = vadd.f32 %v467_v24, %v8440_v21 }
 0x10c   :  { %v8446_v28 = vpack.c.bf16 %v468_v26, %v419_v25 }
 0x10e   :  { %v8458_v38 = vunpack.c.l.bf16 %v8446_v28 }
 0x110   :  { %v8448_v30 = vpop.f32.mrf.mxu2  ;;  %v8477_v48 = vmul.f32 %v8458_v38, %v8461_v40  ;;  %v8481_v53 = vmul.f32 %v8458_v38, %v8467_v45 }
 0x111   :  { %v420_v31 = vpop.f32.mrf.mxu0  ;;  %v469_v33 = vpop.f32.mrf.mxu1 }
 0x112   :  { %v421_v34 = vadd.f32 %v420_v31, %v8437_v20  ;;  %v470_v36 = vadd.f32 %v469_v33, %v8440_v21  ;;  %13674 = vst [vmem:[#allocation21_spill] sm:$0xff] %v8477_v48 }
 0x113   :  { %13675 = vst [vmem:[#allocation22_spill] sm:$0xff] %v8481_v53 }
 0x114   :  { %v8455_v37 = vpack.c.bf16 %v470_v36, %v421_v34 }
 0x116   :  { %v8464_v43 = vunpack.c.l.bf16 %v8455_v37 }
 0x118   :  { %v8471_v46 = vmul.f32 %v8464_v43, %v8461_v40  ;;  %v8473_v47 = vpop.f32.mrf.mxu2  ;;  %v8485_v55 = vmul.f32 %v8464_v43, %v8467_v45 }
 0x119   :  { %v423_v49 = vpop.f32.mrf.mxu0  ;;  %v472_v52 = vpop.f32.mrf.mxu1 }
 0x11a   :  { %13673 = vst [vmem:[#allocation20_spill] sm:$0xff] %v8471_v46  ;;  %v424_v56 = vadd.f32 %v423_v49, %v8437_v20  ;;  %v473_v57 = vadd.f32 %v472_v52, %v8440_v21 }
 0x11b   :  { %13676 = vst [vmem:[#allocation23_spill] sm:$0xff] %v8485_v55 }
 0x11c   :  { %v8493_v62 = vpack.c.bf16 %v473_v57, %v424_v56 }
 0x11e   :  { %v8502_v7 = vunpack.c.l.bf16 %v8493_v62 }
 0x120   :  { %v8495_v63 = vpop.f32.mrf.mxu2  ;;  %v8515_v16 = vmul.f32 %v8502_v7, %v8467_v45  ;;  %v8519_v17 = vmul.f32 %v8502_v7, %v8461_v40 }
 0x121   :  { %v425_v0 = vpop.f32.mrf.mxu0  ;;  %v474_v3 = vpop.f32.mrf.mxu1 }
 0x122   :  { %v426_v4 = vadd.f32 %v425_v0, %v8437_v20  ;;  %v475_v5 = vadd.f32 %v474_v3, %v8440_v21  ;;  %13678 = vst [vmem:[#allocation25_spill] sm:$0xff] %v8515_v16 }
 0x123   :  { %13679 = vst [vmem:[#allocation26_spill] sm:$0xff] %v8519_v17 }
 0x124   :  { %v8499_v6 = vpack.c.bf16 %v475_v5, %v426_v4 }
 0x126   :  { %v8505_v10 = vunpack.c.l.bf16 %v8499_v6 }
 0x128   :  { %v8507_v11 = vpop.f32.mrf.mxu2  ;;  %v8511_v13 = vmul.f32 %v8505_v10, %v8467_v45  ;;  %v8523_v18 = vmul.f32 %v8505_v10, %v8461_v40 }
 0x129   :  { %v428_v14 = vpop.f32.mrf.mxu0  ;;  %v477_v15 = vpop.f32.mrf.mxu1 }
 0x12a   :  { %13677 = vst [vmem:[#allocation24_spill] sm:$0xff] %v8511_v13  ;;  %v429_v22 = vadd.f32 %v428_v14, %v8437_v20  ;;  %v478_v23 = vadd.f32 %v477_v15, %v8440_v21 }
 0x12b   :  { %13680 = vst [vmem:[#allocation27_spill] sm:$0xff] %v8523_v18 }
 0x12c   :  { %v8531_v26 = vpack.c.bf16 %v478_v23, %v429_v22 }
 0x12e   :  { %v8540_v56 = vunpack.c.l.bf16 %v8531_v26 }
 0x130   :  { %v8533_v31 = vpop.f32.mrf.mxu2  ;;  %v8553_v14 = vmul.f32 %v8540_v56, %v8467_v45  ;;  %v8557_v15 = vmul.f32 %v8540_v56, %v8461_v40 }
 0x131   :  { %v430_v33 = vpop.f32.mrf.mxu0  ;;  %v479_v34 = vpop.f32.mrf.mxu1 }
 0x132   :  { %v431_v36 = vadd.f32 %v430_v33, %v8437_v20  ;;  %v480_v49 = vadd.f32 %v479_v34, %v8440_v21  ;;  %13682 = vst [vmem:[#allocation29_spill] sm:$0xff] %v8553_v14 }
 0x133   :  { %13683 = vst [vmem:[#allocation30_spill] sm:$0xff] %v8557_v15 }
 0x134   :  { %v8537_v52 = vpack.c.bf16 %v480_v49, %v431_v36  ;;  %v8586_v36 = vsel %vm68_vm7, 1.0, %v8069_v39 }
 0x135   :  { %13686 = vst [vmem:[#allocation33_spill] sm:$0xff] %v8586_v36 }
 0x136   :  { %v8543_v57 = vunpack.c.l.bf16 %v8537_v52 }
 0x138   :  { %v8545_v0 = vpop.f32.mrf.mxu2  ;;  %v8549_v3 = vmul.f32 %v8543_v57, %v8467_v45  ;;  %v8561_v22 = vmul.f32 %v8543_v57, %v8461_v40 }
 0x139   :  { %v433_v4 = vpop.f32.mrf.mxu0  ;;  %v482_v5 = vpop.f32.mrf.mxu1 }
 0x13a   :  { %13681 = vst [vmem:[#allocation28_spill] sm:$0xff] %v8549_v3  ;;  %v434_v23 = vadd.f32 %v433_v4, %v8437_v20  ;;  %v483_v33 = vadd.f32 %v482_v5, %v8440_v21 }
 0x13b   :  { %13684 = vst [vmem:[#allocation31_spill] sm:$0xff] %v8561_v22 }
 0x13c   :  { %v8569_v49 = vpack.c.bf16 %v483_v33, %v434_v23  ;;  %v8583_v33 = vsel %vm62_vm6, 1.0, %v8069_v39 }
 0x13d   :  { %13685 = vst [vmem:[#allocation32_spill] sm:$0xff] %v8583_v33 }
 0x13e   :  { %v594_v58 = vunpack.c.l.bf16 %v8569_v49 }
 0x140   :  { %v8571_v25 = vpop.f32.mrf.mxu2  ;;  %v8589_v12 = vmul.f32 %v594_v58, %v8583_v33  ;;  %v8597_v27 = vmul.f32 %v594_v58, %v8586_v36  ;;  %v8606_v8 = vmul.f32 %v594_v58, %v8467_v45  ;;  %v8609_v9 = vmul.f32 %v594_v58, %v8461_v40 }
 0x141   :  { %v435_v61 = vpop.f32.mrf.mxu0  ;;  %v484_v24 = vpop.f32.mrf.mxu1 }
 0x142   :  { %v436_v4 = vadd.f32 %v435_v61, %v8437_v20  ;;  %v485_v5 = vadd.f32 %v484_v24, %v8440_v21  ;;  %13687 = vst [vmem:[#allocation34_spill] sm:$0xff] %v8597_v27 }
 0x143   :  { %13689 = vst [vmem:[#allocation36_spill] sm:$0xff] %v8606_v8 }
 0x144   :  { %v8579_v34 = vpack.c.bf16 %v485_v5, %v436_v4  ;;  %13690 = vst [vmem:[#allocation37_spill] sm:$0xff] %v8609_v9 }
 0x146   :  { %v595_v23 = vunpack.c.l.bf16 %v8579_v34 }
 0x148   :  { %v8591_v61 = vpop.f32.mrf.mxu2  ;;  %v8594_v24 = vmul.f32 %v595_v23, %v8583_v33  ;;  %v8600_v4 = vmul.f32 %v595_v23, %v8586_v36  ;;  %v8603_v5 = vmul.f32 %v595_v23, %v8467_v45  ;;  %v8612_v44 = vmul.f32 %v595_v23, %v8461_v40 }
 0x149   :  { %v438_v54 = vpop.f32.mrf.mxu0  ;;  %v487_v39 = vpop.f32.mrf.mxu1 }
 0x14a   :  { %13688 = vst [vmem:[#allocation35_spill] sm:$0xff] %v8603_v5  ;;  %v439_v1 = vadd.f32 %v438_v54, %v8437_v20  ;;  %v488_v2 = vadd.f32 %v487_v39, %v8440_v21 }
 0x14b   :  { %13691 = vst [vmem:[#allocation38_spill] sm:$0xff] %v8612_v44 }
 0x14c   :  { %v8624_v32 = vpack.c.bf16 %v488_v2, %v439_v1 }
 0x14e   :  { %v596_v35 = vunpack.c.l.bf16 %v8624_v32 }
 0x150   :  { %v8626_v23 = vpop.f32.mrf.mxu2  ;;  %v8635_v60 = vmul.f32 %v596_v35, %v8583_v33  ;;  %v8643_v2 = vmul.f32 %v596_v35, %v8586_v36  ;;  %v8652_v51 = vmul.f32 %v596_v35, %v8467_v45  ;;  %v8655_v42 = vmul.f32 %v596_v35, %v8461_v40 }
 0x151   :  { %v440_v29 = vpop.f32.mrf.mxu0  ;;  %v489_v54 = vpop.f32.mrf.mxu1 }
 0x152   :  { %v441_v39 = vadd.f32 %v440_v29, %v8437_v20  ;;  %v490_v50 = vadd.f32 %v489_v54, %v8440_v21  ;;  %13692 = vst [vmem:[#allocation39_spill] sm:$0xff] %v8635_v60 }
 0x153   :  { %13694 = vst [vmem:[#allocation41_spill] sm:$0xff] %v8643_v2 }
 0x154   :  { %v8631_v41 = vpack.c.bf16 %v490_v50, %v441_v39  ;;  %13697 = vst [vmem:[#allocation44_spill] sm:$0xff] %v8652_v51 }
 0x155   :  { %13698 = vst [vmem:[#allocation45_spill] sm:$0xff] %v8655_v42 }
 0x156   :  { %v597_v59 = vunpack.c.l.bf16 %v8631_v41 }
 0x158   :  { %v8637_v58 = vpop.f32.mrf.mxu2  ;;  %v8640_v1 = vmul.f32 %v597_v59, %v8583_v33  ;;  %v8646_v29 = vmul.f32 %v597_v59, %v8586_v36  ;;  %v8649_v54 = vmul.f32 %v597_v59, %v8467_v45  ;;  %v8658_v9 = vmul.f32 %v597_v59, %v8461_v40 }
 0x159   :  { %v443_v50 = vpop.f32.mrf.mxu0  ;;  %v492_v39 = vpop.f32.mrf.mxu1 }
 0x15a   :  { %13693 = vst [vmem:[#allocation40_spill] sm:$0xff] %v8640_v1  ;;  %v444_v22 = vadd.f32 %v443_v50, %v8437_v20  ;;  %v493_v17 = vadd.f32 %v492_v39, %v8440_v21 }
 0x15b   :  { %13695 = vst [vmem:[#allocation42_spill] sm:$0xff] %v8646_v29 }
 0x15c   :  { %13696 = vst [vmem:[#allocation43_spill] sm:$0xff] %v8649_v54  ;;  %v8670_v48 = vpack.c.bf16 %v493_v17, %v444_v22 }
 0x15d   :  { %13699 = vst [vmem:[#allocation46_spill] sm:$0xff] %v8658_v9 }
 0x15e   :  { %v598_v15 = vunpack.c.l.bf16 %v8670_v48 }
 0x160   :  { %v541_v59 = vpop.f32.mrf.mxu2  ;;  %v8679_v18 = vmul.f32 %v598_v15, %v8583_v33  ;;  %v8685_v22 = vmul.f32 %v598_v15, %v8586_v36  ;;  %v8694_v35 = vmul.f32 %v598_v15, %v8467_v45  ;;  %v8697_v42 = vmul.f32 %v598_v15, %v8461_v40 }
 0x161   :  { %v445_v46 = vpop.f32.mrf.mxu0  ;;  %v494_v8 = vpop.f32.mrf.mxu1 }
 0x162   :  { %v446_v44 = vadd.f32 %v445_v46, %v8437_v20  ;;  %v495_v5 = vadd.f32 %v494_v8, %v8440_v21  ;;  %13700 = vst [vmem:[#allocation47_spill] sm:$0xff] %v8679_v18 }
 0x163   :  { %13702 = vst [vmem:[#allocation49_spill] sm:$0xff] %v8685_v22 }
 0x164   :  { %v8675_v50 = vpack.c.bf16 %v495_v5, %v446_v44  ;;  %13705 = vst [vmem:[#allocation52_spill] sm:$0xff] %v8694_v35 }
 0x165   :  { %13706 = vst [vmem:[#allocation53_spill] sm:$0xff] %v8697_v42 }
 0x166   :  { %v599_v39 = vunpack.c.l.bf16 %v8675_v50 }
 0x168   :  { %v543_v51 = vpop.f32.mrf.mxu2  ;;  %v8682_v17 = vmul.f32 %v599_v39, %v8583_v33  ;;  %v8688_v46 = vmul.f32 %v599_v39, %v8586_v36  ;;  %v8691_v8 = vmul.f32 %v599_v39, %v8467_v45  ;;  %v8700_v9 = vmul.f32 %v599_v39, %v8461_v40 }
 0x169   :  { %v448_v44 = vpop.f32.mrf.mxu0  ;;  %v497_v5 = vpop.f32.mrf.mxu1 }
 0x16a   :  { %13701 = vst [vmem:[#allocation48_spill] sm:$0xff] %v8682_v17  ;;  %v449_v3 = vadd.f32 %v448_v44, %v8437_v20  ;;  %v498_v16 = vadd.f32 %v497_v5, %v8440_v21 }
 0x16b   :  { %13703 = vst [vmem:[#allocation50_spill] sm:$0xff] %v8688_v46 }
 0x16c   :  { %13704 = vst [vmem:[#allocation51_spill] sm:$0xff] %v8691_v8  ;;  %v8712_v53 = vpack.c.bf16 %v498_v16, %v449_v3 }
 0x16d   :  { %13707 = vst [vmem:[#allocation54_spill] sm:$0xff] %v8700_v9 }
 0x16e   :  { %v600_v14 = vunpack.c.l.bf16 %v8712_v53 }
 0x170   :  { %v546_v39 = vpop.f32.mrf.mxu2  ;;  %v8721_v13 = vmul.f32 %v600_v14, %v8583_v33  ;;  %v8727_v3 = vmul.f32 %v600_v14, %v8586_v36  ;;  %v8736_v15 = vmul.f32 %v600_v14, %v8467_v45  ;;  %v8739_v42 = vmul.f32 %v600_v14, %v8461_v40 }
 0x171   :  { %v450_v55 = vpop.f32.mrf.mxu0  ;;  %v499_v2 = vpop.f32.mrf.mxu1 }
 0x172   :  { %v451_v54 = vadd.f32 %v450_v55, %v8437_v20  ;;  %v500_v18 = vadd.f32 %v499_v2, %v8440_v21  ;;  %13708 = vst [vmem:[#allocation55_spill] sm:$0xff] %v8721_v13 }
 0x173   :  { %13709 = vst [vmem:[#allocation56_spill] sm:$0xff] %v8727_v3 }
 0x174   :  { %v8717_v44 = vpack.c.bf16 %v500_v18, %v451_v54  ;;  %13712 = vst [vmem:[#allocation59_spill] sm:$0xff] %v8736_v15 }
 0x175   :  { %13713 = vst [vmem:[#allocation60_spill] sm:$0xff] %v8739_v42 }
 0x176   :  { %v601_v5 = vunpack.c.l.bf16 %v8717_v44 }
 0x178   :  { %v548_v35 = vpop.f32.mrf.mxu2  ;;  %v8724_v16 = vmul.f32 %v601_v5, %v8583_v33  ;;  %v8730_v55 = vmul.f32 %v601_v5, %v8586_v36  ;;  %v8733_v2 = vmul.f32 %v601_v5, %v8467_v45  ;;  %v8742_v9 = vmul.f32 %v601_v5, %v8461_v40 }
 0x179   :  { %v453_v18 = vpop.f32.mrf.mxu0  ;;  %v502_v54 = vpop.f32.mrf.mxu1  ;;  %v8755_v5 = vperm.slane %v8434_v19, 2 }
 0x17a   :  { %13710 = vst [vmem:[#allocation57_spill] sm:$0xff] %v8730_v55  ;;  %v454_v46 = vadd.f32 %v453_v18, %v8437_v20  ;;  %v503_v17 = vadd.f32 %v502_v54, %v8440_v21 }
 0x17b   :  { %13711 = vst [vmem:[#allocation58_spill] sm:$0xff] %v8733_v2  ;;  %v547_v13 = vadd.f32 %v546_v39, %v8755_v5  ;;  %v542_v15 = vadd.f32 %v541_v59, %v8755_v5  ;;  %v549_v19 = vadd.f32 %v548_v35, %v8755_v5 }
 0x17c   :  { %13714 = vst [vmem:[#allocation61_spill] sm:$0xff] %v8742_v9  ;;  %v584_v60 = vpack.c.bf16 %v503_v17, %v454_v46  ;;  %v544_v17 = vadd.f32 %v543_v51, %v8755_v5 }
 0x17d   :  { %v581_v46 = vpack.c.bf16 %v547_v13, %v547_v13 }
 0x17e   :  { %v602_v54 = vunpack.c.l.bf16 %v584_v60  ;;  %v659_v14 = vunpack.c.h.b16 %v584_v60 }
 0x180   :  { %v551_v1 = vpop.f32.mrf.mxu2  ;;  %v8765_v39 = vmul.f32 %v602_v54, %v8583_v33  ;;  %v8786_v59 = vmul.f32 %v602_v54, %v8461_v40 }
 0x181   :  { %v455_v27 = vpop.f32.mrf.mxu0  ;;  %v504_v8 = vpop.f32.mrf.mxu1  ;;  %v552_v3 = vadd.f32 %v551_v1, %v8755_v5 }
 0x182   :  { %v456_v22 = vadd.f32 %v455_v27, %v8437_v20  ;;  %v505_v18 = vadd.f32 %v504_v8, %v8440_v21  ;;  %v8768_v20 = vmul.f32 %v602_v54, %v8586_v36  ;;  %v8771_v21 = vmul.f32 %v602_v54, %v8467_v45  ;;  %13717 = vst [vmem:[#allocation64_spill] sm:$0xff] %v8786_v59 }
 0x183   :  { %v585_v2 = vpack.c.bf16 %v552_v3, %v552_v3  ;;  %v539_v54 = vadd.f32 %v8637_v58, %v8755_v5  ;;  %v537_v8 = vadd.f32 %v8626_v23, %v8755_v5  ;;  %v577_v3 = vpack.c.bf16 %v542_v15, %v542_v15 }
 0x184   :  { %v586_v29 = vpack.c.bf16 %v505_v18, %v456_v22  ;;  %13715 = vst [vmem:[#allocation62_spill] sm:$0xff] %v8771_v21  ;;  %v534_v23 = vadd.f32 %v8591_v61, %v8755_v5  ;;  %v532_v21 = vadd.f32 %v8571_v25, %v8755_v5 }
 0x185   :  { %v575_v15 = vpack.c.bf16 %v539_v54, %v539_v54  ;;  %v573_v61 = vpack.c.bf16 %v537_v8, %v537_v8  ;;  %v8837_v54 = vunpack.c.l.bf16 %v577_v3 }
 0x186   :  { %v603_v42 = vunpack.c.l.bf16 %v586_v29  ;;  %v660_v9 = vunpack.c.h.b16 %v586_v29  ;;  %v583_v29 = vpack.c.bf16 %v549_v19, %v549_v19  ;;  %v579_v19 = vpack.c.bf16 %v544_v17, %v544_v17 }
 0x187   :  { %v8845_v25 = vunpack.c.l.bf16 %v575_v15 }
 0x188   :  { %v553_v27 = vpop.f32.mrf.mxu2  ;;  %v8773_v1 = vpack.c.b16 %v660_v9, %v659_v14  ;;  %v8776_v51 = vmul.f32 %v603_v42, %v8583_v33  ;;  %v8779_v60 = vmul.f32 %v603_v42, %v8586_v36  ;;  %v8782_v13 = vmul.f32 %v603_v42, %v8467_v45 }
 0x189   :  { %v554_v35 = vadd.f32 %v553_v27, %v8755_v5  ;;  %v8789_v22 = vmul.f32 %v603_v42, %v8461_v40  ;;  %v8799_v14 = vunpack.c.l.bf16 %v585_v2  ;;  %v658_v27 = vunpack.c.h.b16 %v8717_v44 }
 0x18a   :  { %13716 = vst [vmem:[#allocation63_spill] sm:$0xff] %v8782_v13  ;;  %677 = vmatpush.bf16.xpose.msra.mxu3 %v8773_v1  ;;  %943 = vmatpush.bf16.xpose.msrb.mxu0 %v8773_v1  ;;  %v8806_v55 = vunpack.c.l.bf16 %v583_v29  ;;  %v657_v2 = vunpack.c.h.b16 %v8712_v53  ;;  %v8825_v29 = vunpack.c.l.bf16 %v579_v19  ;;  %v569_v13 = vpack.c.bf16 %v532_v21, %v532_v21 }
 0x18b   :  { %13718 = vst [vmem:[#allocation65_spill] sm:$0xff] %v8789_v22  ;;  %v587_v18 = vpack.c.bf16 %v554_v35, %v554_v35  ;;  %v8813_v35 = vunpack.c.l.bf16 %v581_v46  ;;  %v1158_v42 = vmul.f32 %v8799_v14, %v8586_v36  ;;  %v908_v44 = vmul.f32 %v8799_v14, %v8583_v33 }
 0x18c   :  { %v8827_v53 = vpack.c.b16 %v658_v27, %v657_v2  ;;  %v1157_v59 = vmul.f32 %v8806_v55, %v8586_v36  ;;  %v907_v22 = vmul.f32 %v8806_v55, %v8583_v33  ;;  %v529_v27 = vadd.f32 %v8545_v0, %v8755_v5 }
 0x18d   :  { %v8808_v9 = vunpack.c.l.bf16 %v587_v18  ;;  %v906_v19 = vmul.f32 %v8813_v35, %v8583_v33  ;;  %v571_v2 = vpack.c.bf16 %v534_v23, %v534_v23  ;;  %v1155_v3 = vmul.f32 %v8825_v29, %v8586_v36 }
 0x18e   :  { %v8855_v0 = vunpack.c.l.bf16 %v573_v61  ;;  %v567_v23 = vpack.c.bf16 %v529_v27, %v529_v27  ;;  %v1153_v61 = vmul.f32 %v8845_v25, %v8586_v36  ;;  %v8875_v27 = vunpack.c.l.bf16 %v569_v13 }
 0x18f   :  { %v1159_v58 = vmul.f32 %v8808_v9, %v8586_v36  ;;  %v909_v17 = vmul.f32 %v8808_v9, %v8583_v33  ;;  %v916_v8 = vpack.c.bf16 %v907_v22, %v906_v19  ;;  %v524_v22 = vadd.f32 %v8507_v11, %v8755_v5 }
 0x190   :  { %v8863_v15 = vunpack.c.l.bf16 %v571_v2  ;;  %v522_v19 = vadd.f32 %v8495_v63, %v8755_v5  ;;  %v1152_v2 = vmul.f32 %v8855_v0, %v8586_v36  ;;  %v8883_v63 = vunpack.c.l.bf16 %v567_v23 }
 0x191   :  { %v1167_v46 = vpack.c.bf16 %v1159_v58, %v1158_v42  ;;  %v917_v18 = vpack.c.bf16 %v909_v17, %v908_v44  ;;  %v1156_v42 = vmul.f32 %v8813_v35, %v8586_v36  ;;  %v656_v58 = vunpack.c.h.b16 %v8675_v50 }
 0x192   :  { %678 = vmatpush.bf16.xpose.msra.mxu3 %v8827_v53  ;;  %944 = vmatpush.bf16.xpose.msrb.mxu0 %v8827_v53  ;;  %v905_v17 = vmul.f32 %v8825_v29, %v8583_v33  ;;  %v1154_v50 = vmul.f32 %v8837_v54, %v8586_v36  ;;  %v1151_v13 = vmul.f32 %v8863_v15, %v8586_v36 }
 0x193   :  { %1168 = vmatpush.bf16.msrb.mxu1 %v1167_v46  ;;  %1217 = vmatpush.bf16.msrb.mxu2 %v917_v18  ;;  %v1166_v44 = vpack.c.bf16 %v1157_v59, %v1156_v42  ;;  %v527_v46 = vadd.f32 %v8533_v31, %v8755_v5  ;;  %v655_v18 = vunpack.c.h.b16 %v8670_v48  ;;  %v904_v59 = vmul.f32 %v8837_v54, %v8583_v33 }
 0x194   :  { %v1165_v48 = vpack.c.bf16 %v1155_v3, %v1154_v50  ;;  %v903_v42 = vmul.f32 %v8845_v25, %v8583_v33  ;;  %v654_v3 = vunpack.c.h.b16 %v8631_v41  ;;  %v517_v50 = vadd.f32 %v8448_v30, %v8755_v5 }
 0x195   :  { %v8865_v31 = vpack.c.b16 %v656_v58, %v655_v18  ;;  %v915_v21 = vpack.c.bf16 %v905_v17, %v904_v59  ;;  %v565_v11 = vpack.c.bf16 %v527_v46, %v527_v46  ;;  %v902_v58 = vmul.f32 %v8855_v0, %v8583_v33 }
 0x196   :  { %v1164_v17 = vpack.c.bf16 %v1153_v61, %v1152_v2  ;;  %v901_v18 = vmul.f32 %v8863_v15, %v8583_v33  ;;  %v653_v59 = vunpack.c.h.b16 %v8624_v32  ;;  %v1150_v41 = vmul.f32 %v8875_v27, %v8586_v36 }
 0x197   :  { %1169 = vmatpush.bf16.msrb.mxu1 %v1166_v44  ;;  %1218 = vmatpush.bf16.msrb.mxu2 %v916_v8  ;;  %v519_v44 = vadd.f32 %v8473_v47, %v8755_v5  ;;  %v563_v8 = vpack.c.bf16 %v524_v22, %v524_v22  ;;  %v914_v46 = vpack.c.bf16 %v903_v42, %v902_v58  ;;  %v8893_v47 = vunpack.c.l.bf16 %v565_v11 }
 0x198   :  { %v900_v22 = vmul.f32 %v8875_v27, %v8583_v33  ;;  %v8901_v61 = vpack.c.b16 %v654_v3, %v653_v59  ;;  %v1163_v42 = vpack.c.bf16 %v1151_v13, %v1150_v41  ;;  %v1149_v32 = vmul.f32 %v8883_v63, %v8586_v36 }
 0x199   :  { %v559_v23 = vpack.c.bf16 %v519_v44, %v519_v44  ;;  %v899_v5 = vmul.f32 %v8883_v63, %v8583_v33  ;;  %v1148_v2 = vmul.f32 %v8893_v47, %v8586_v36  ;;  %v898_v58 = vmul.f32 %v8893_v47, %v8583_v33 }
 0x19a   :  { %679 = vmatpush.bf16.xpose.msra.mxu3 %v8865_v31  ;;  %945 = vmatpush.bf16.xpose.msrb.mxu0 %v8865_v31  ;;  %v913_v30 = vpack.c.bf16 %v901_v18, %v900_v22  ;;  %v651_v18 = vunpack.c.h.b16 %v8569_v49 }
 0x19b   :  { %1170 = vmatpush.bf16.msrb.mxu1 %v1165_v48  ;;  %1219 = vmatpush.bf16.msrb.mxu2 %v915_v21  ;;  %v561_v48 = vpack.c.bf16 %v522_v19, %v522_v19  ;;  %v8899_v21 = vunpack.c.l.bf16 %v563_v8  ;;  %v557_v19 = vpack.c.bf16 %v517_v50, %v517_v50  ;;  %v8915_v44 = vunpack.c.l.bf16 %v559_v23 }
 0x19c   :  { %v652_v8 = vunpack.c.h.b16 %v8579_v34  ;;  %v1162_v3 = vpack.c.bf16 %v1149_v32, %v1148_v2 }
 0x19d   :  { %v8909_v11 = vunpack.c.l.bf16 %v561_v48  ;;  %v897_v13 = vmul.f32 %v8899_v21, %v8583_v33  ;;  %v8923_v50 = vunpack.c.l.bf16 %v557_v19  ;;  %v1145_v23 = vmul.f32 %v8915_v44, %v8586_v36 }
 0x19e   :  { %v8929_v48 = vpack.c.b16 %v652_v8, %v651_v18  ;;  %v895_v49 = vmul.f32 %v8915_v44, %v8583_v33  ;;  %v1821_v19 = vmul.f32 %v8799_v14, %v8461_v40  ;;  %v649_v8 = vunpack.c.h.b16 %v8531_v26 }
 0x19f   :  { %1171 = vmatpush.bf16.msrb.mxu1 %v1164_v17  ;;  %1220 = vmatpush.bf16.msrb.mxu2 %v914_v46  ;;  %v912_v17 = vpack.c.bf16 %v899_v5, %v898_v58  ;;  %v1147_v46 = vmul.f32 %v8899_v21, %v8586_v36  ;;  %v1146_v59 = vmul.f32 %v8909_v11, %v8586_v36  ;;  %v650_v5 = vunpack.c.h.b16 %v8537_v52 }
 0x1a0   :  { %v896_v34 = vmul.f32 %v8909_v11, %v8583_v33  ;;  %v894_v32 = vmul.f32 %v8923_v50, %v8583_v33  ;;  %v1819_v52 = vmul.f32 %v8813_v35, %v8461_v40  ;;  %v1818_v26 = vmul.f32 %v8825_v29, %v8461_v40 }
 0x1a1   :  { %v1161_v41 = vpack.c.bf16 %v1147_v46, %v1146_v59  ;;  %v8950_v46 = vpack.c.b16 %v650_v5, %v649_v8  ;;  %v648_v18 = vunpack.c.h.b16 %v8499_v6  ;;  %v1817_v59 = vmul.f32 %v8837_v54, %v8461_v40 }
 0x1a2   :  { %680 = vmatpush.bf16.xpose.msra.mxu3 %v8901_v61  ;;  %946 = vmatpush.bf16.xpose.msrb.mxu0 %v8901_v61  ;;  %v911_v22 = vpack.c.bf16 %v897_v13, %v896_v34  ;;  %v910_v58 = vpack.c.bf16 %v895_v49, %v894_v32  ;;  %v647_v34 = vunpack.c.h.b16 %v8493_v62  ;;  %v1815_v49 = vmul.f32 %v8855_v0, %v8461_v40 }
 0x1a3   :  { %1172 = vmatpush.bf16.msrb.mxu1 %v1163_v42  ;;  %1221 = vmatpush.bf16.msrb.mxu2 %v913_v30  ;;  %v1822_v42 = vmul.f32 %v8808_v9, %v8461_v40  ;;  %v1144_v30 = vmul.f32 %v8923_v50, %v8586_v36  ;;  %v1814_v62 = vmul.f32 %v8863_v15, %v8461_v40  ;;  %v645_v5 = vunpack.c.h.b16 %v8446_v28 }
 0x1a4   :  { %v1507_v32 = vmul.f32 %v8808_v9, %v8467_v45  ;;  %v1811_v8 = vmul.f32 %v8893_v47, %v8461_v40  ;;  %v1505_v9 = vmul.f32 %v8806_v55, %v8467_v45 }
 0x1a5   :  { %v1160_v2 = vpack.c.bf16 %v1145_v23, %v1144_v30  ;;  %v8965_v23 = vpack.c.b16 %v648_v18, %v647_v34  ;;  %v1813_v30 = vmul.f32 %v8875_v27, %v8461_v40  ;;  %v605_v18 = vmul.f32 %v8458_v38, %v8583_v33 }
 0x1a6   :  { %v1808_v34 = vmul.f32 %v8915_v44, %v8461_v40 }
 0x1a7   :  { %1173 = vmatpush.bf16.msrb.mxu1 %v1162_v3  ;;  %1222 = vmatpush.bf16.msrb.mxu2 %v912_v17  ;;  %v1830_v3 = vpack.c.bf16 %v1822_v42, %v1821_v19  ;;  %v1820_v17 = vmul.f32 %v8806_v55, %v8461_v40  ;;  %v646_v42 = vunpack.c.h.b16 %v8455_v37  ;;  %v1826_v19 = vpack.c.bf16 %v1814_v62, %v1813_v30 }
 0x1a8   :  { %v920_v55 = vmul.f32 %v8464_v43, %v8586_v36  ;;  %v1500_v62 = vmul.f32 %v8855_v0, %v8467_v45  ;;  %v1498_v30 = vmul.f32 %v8875_v27, %v8467_v45  ;;  %v608_v0 = vmul.f32 %v8505_v10, %v8583_v33 }
 0x1a9   :  { %v1829_v13 = vpack.c.bf16 %v1820_v17, %v1819_v52  ;;  %v8984_v37 = vpack.c.b16 %v646_v42, %v645_v5  ;;  %v1504_v17 = vmul.f32 %v8813_v35, %v8467_v45  ;;  %v606_v52 = vmul.f32 %v8464_v43, %v8583_v33 }
 0x1aa   :  { %681 = vmatpush.bf16.xpose.msra.mxu3 %v8929_v48  ;;  %947 = vmatpush.bf16.xpose.msrb.mxu0 %v8929_v48  ;;  %v1503_v35 = vmul.f32 %v8825_v29, %v8467_v45  ;;  %v1501_v29 = vmul.f32 %v8845_v25, %v8467_v45  ;;  %v1499_v42 = vmul.f32 %v8863_v15, %v8467_v45 }
 0x1ab   :  { %1174 = vmatpush.bf16.msrb.mxu1 %v1161_v41  ;;  %1223 = vmatpush.bf16.msrb.mxu2 %v911_v22  ;;  %v1828_v41 = vpack.c.bf16 %v1818_v26, %v1817_v59  ;;  %v1816_v22 = vmul.f32 %v8845_v25, %v8461_v40  ;;  %v1514_v26 = vpack.c.bf16 %v1505_v9, %v1504_v17  ;;  %v13725_v17 = vld [vmem:[#allocation42_spill] sm:$0xff] }
 0x1ac   :  { %v621_v43 = vpack.c.bf16 %v606_v52, %v605_v18  ;;  %v1497_v25 = vmul.f32 %v8883_v63, %v8467_v45  ;;  %v922_v15 = vmul.f32 %v8505_v10, %v8586_v36  ;;  %v607_v27 = vmul.f32 %v8502_v7, %v8583_v33  ;;  %v13726_v52 = vld [vmem:[#allocation41_spill] sm:$0xff] }
 0x1ad   :  { %v1827_v6 = vpack.c.bf16 %v1816_v22, %v1815_v49  ;;  %v1502_v22 = vmul.f32 %v8837_v54, %v8467_v45  ;;  %v1807_v49 = vmul.f32 %v8923_v50, %v8461_v40  ;;  %v1512_v54 = vpack.c.bf16 %v1501_v29, %v1500_v62  ;;  %v13744_v62 = vld [vmem:[#allocation24_spill] sm:$0xff] }
 0x1af   :  { %1175 = vmatpush.bf16.msrb.mxu1 %v1160_v2  ;;  %1224 = vmatpush.bf16.msrb.mxu2 %v910_v58  ;;  %v1812_v2 = vmul.f32 %v8883_v63, %v8461_v40  ;;  %v1506_v58 = vmul.f32 %v8799_v14, %v8467_v45  ;;  %v1810_v14 = vmul.f32 %v8899_v21, %v8461_v40 }
 0x1b0   :  { %v622_v63 = vpack.c.bf16 %v608_v0, %v607_v27  ;;  %v13748_v27 = vld [vmem:[#allocation29_spill] sm:$0xff] }
 0x1b1   :  { %v1825_v28 = vpack.c.bf16 %v1812_v2, %v1811_v8  ;;  %v924_v8 = vmul.f32 %v8543_v57, %v8586_v36 }
 0x1b2   :  { %682 = vmatpush.bf16.xpose.msra.mxu3 %v8950_v46  ;;  %948 = vmatpush.bf16.xpose.msrb.mxu0 %v8950_v46 }
 0x1b3   :  { %1606 = vmatpush.bf16.xpose.msra.mxu1 %v8773_v1  ;;  %1831 = vmatpush.bf16.msra.mxu2 %v1830_v3  ;;  %v1515_v3 = vpack.c.bf16 %v1507_v32, %v1506_v58  ;;  %v1511_v32 = vpack.c.bf16 %v1499_v42, %v1498_v30  ;;  %v1493_v58 = vmul.f32 %v8915_v44, %v8467_v45  ;;  %v9120_v30 = vld [vmem:[%s13504_s1 + $0x18] sm:$0xff] }
 0x1b4   :  { %v609_v44 = vmul.f32 %v8540_v56, %v8583_v33 }
 0x1b7   :  { %1832 = vmatpush.bf16.msra.mxu2 %v1829_v13  ;;  %v1809_v13 = vmul.f32 %v8909_v11, %v8461_v40 }
 0x1b9   :  { %v1824_v59 = vpack.c.bf16 %v1810_v14, %v1809_v13 }
 0x1ba   :  { %683 = vmatpush.bf16.xpose.msra.mxu3 %v8965_v23  ;;  %949 = vmatpush.bf16.xpose.msrb.mxu0 %v8965_v23 }
 0x1bb   :  { %1607 = vmatpush.bf16.xpose.msra.mxu1 %v8827_v53  ;;  %1833 = vmatpush.bf16.msra.mxu2 %v1828_v41 }
 0x1bf   :  { %1834 = vmatpush.bf16.msra.mxu2 %v1827_v6  ;;  %v1823_v6 = vpack.c.bf16 %v1808_v34, %v1807_v49  ;;  %v13740_v34 = vpack.c.bf16 %v8779_v60, %v8768_v20  ;;  %v13742_v49 = vld [vmem:[#allocation22_spill] sm:$0xff]  ;;  %v9111_v60 = vld [vmem:[%s13504_s1 + $0x10] sm:$0xff] }
 0x1c2   :  { %684 = vmatpush.bf16.xpose.msra.mxu3 %v8984_v37  ;;  %950 = vmatpush.bf16.xpose.msrb.mxu0 %v8984_v37 }
 0x1c3   :  { %1608 = vmatpush.bf16.xpose.msra.mxu1 %v8865_v31  ;;  %1835 = vmatpush.bf16.msra.mxu2 %v1826_v19  ;;  %v921_v19 = vmul.f32 %v8502_v7, %v8586_v36  ;;  %v1492_v7 = vmul.f32 %v8923_v50, %v8467_v45 }
 0x1c5   :  { %v936_v2 = vpack.c.bf16 %v922_v15, %v921_v19 }
 0x1c7   :  { %1836 = vmatpush.bf16.msra.mxu2 %v1825_v28  ;;  %v13723_v28 = vld [vmem:[#allocation39_spill] sm:$0xff] }
 0x1c9   :  { %685 = vmatmul.bf16.vlgmr.msra.gmra.mxu3 %v621_v43  ;;  %v9096_v43 = vld [vmem:[%s13504_s1] sm:$0xff] }
 0x1ca   :  { %1291 = vmatpush.bf16.xpose.msrb.mxu3 %v8773_v1  ;;  %1516 = vmatpush.bf16.msra.mxu0 %v1515_v3  ;;  %v919_v1 = vmul.f32 %v8458_v38, %v8586_v36  ;;  %v1513_v38 = vpack.c.bf16 %v1503_v35, %v1502_v22  ;;  %v13741_v22 = vld [vmem:[#allocation23_spill] sm:$0xff] }
 0x1cb   :  { %1609 = vmatpush.bf16.xpose.msra.mxu1 %v8901_v61  ;;  %1837 = vmatpush.bf16.msra.mxu2 %v1824_v59  ;;  %v13739_v59 = vpack.c.bf16 %v8776_v51, %v8765_v39  ;;  %v9105_v39 = vld [vmem:[%s13504_s1 + $0x8] sm:$0xff] }
 0x1cc   :  { %v935_v41 = vpack.c.bf16 %v920_v55, %v919_v1  ;;  %v13727_v55 = vpack.c.bf16 %v13725_v17, %v13726_v52  ;;  %v13737_v1 = vld [vmem:[#allocation56_spill] sm:$0xff] }
 0x1ce   :  { %1517 = vmatpush.bf16.msra.mxu0 %v1514_v26 }
 0x1cf   :  { %951 = vmatmul.bf16.vlgmr.msrb.gmra.mxu0 %v935_v41  ;;  %1838 = vmatpush.bf16.msra.mxu2 %v1823_v6 }
 0x1d2   :  { %1292 = vmatpush.bf16.xpose.msrb.mxu3 %v8827_v53  ;;  %1518 = vmatpush.bf16.msra.mxu0 %v1513_v38  ;;  %v1496_v53 = vmul.f32 %v8893_v47, %v8467_v45  ;;  %v1494_v47 = vmul.f32 %v8909_v11, %v8467_v45  ;;  %v610_v11 = vmul.f32 %v8543_v57, %v8583_v33  ;;  %v13720_v57 = vld [vmem:[#allocation34_spill] sm:$0xff] }
 0x1d3   :  { %1610 = vmatpush.bf16.xpose.msra.mxu1 %v8929_v48  ;;  %v13721_v9 = vpack.c.bf16 %v8600_v4, %v13720_v57  ;;  %v13734_v4 = vld [vmem:[#allocation55_spill] sm:$0xff]  ;;  %v13743_v38 = vpack.c.bf16 %v13741_v22, %v13742_v49 }
 0x1d4   :  { %v1510_v5 = vpack.c.bf16 %v1497_v25, %v1496_v53  ;;  %v623_v3 = vpack.c.bf16 %v610_v11, %v609_v44  ;;  %v13735_v18 = vpack.c.bf16 %v8724_v16, %v13734_v4  ;;  %v9129_v53 = vld [vmem:[%s13504_s1 + $0x20] sm:$0xff]  ;;  %v13751_v11 = vld [vmem:[#allocation36_spill] sm:$0xff]  ;;  %v9164_v44 = vld [vmem:[%s13504_s1 + $0x38] sm:$0xff] }
 0x1d6   :  { %1519 = vmatpush.bf16.msra.mxu0 %v1512_v54  ;;  %v13745_v54 = vld [vmem:[#allocation25_spill] sm:$0xff] }
 0x1d7   :  { %v13746_v42 = vpack.c.bf16 %v13744_v62, %v13745_v54 }
 0x1d9   :  { %690 = vmatmul.bf16.gmra.mxu3 %v622_v63 }
 0x1da   :  { %1293 = vmatpush.bf16.xpose.msrb.mxu3 %v8865_v31  ;;  %1520 = vmatpush.bf16.msra.mxu0 %v1511_v32  ;;  %v1495_v31 = vmul.f32 %v8899_v21, %v8467_v45  ;;  %v1508_v21 = vpack.c.bf16 %v1493_v58, %v1492_v7 }
 0x1db   :  { %1611 = vmatpush.bf16.xpose.msra.mxu1 %v8950_v46 }
 0x1dc   :  { %v1509_v10 = vpack.c.bf16 %v1495_v31, %v1494_v47  ;;  %v9141_v31 = vld [vmem:[%s13504_s1 + $0x28] sm:$0xff] }
 0x1de   :  { %1521 = vmatpush.bf16.msra.mxu0 %v1510_v5  ;;  %v13747_v5 = vld [vmem:[#allocation28_spill] sm:$0xff] }
 0x1df   :  { %956 = vmatmul.bf16.gmra.mxu0 %v936_v2  ;;  %v13749_v19 = vpack.c.bf16 %v13747_v5, %v13748_v27  ;;  %v9223_v27 = vld [vmem:[%s13504_s1 + $0x50] sm:$0xff] }
 0x1e2   :  { %1294 = vmatpush.bf16.xpose.msrb.mxu3 %v8901_v61  ;;  %1522 = vmatpush.bf16.msra.mxu0 %v1509_v10  ;;  %v923_v61 = vmul.f32 %v8540_v56, %v8586_v36  ;;  %v13722_v56 = vld [vmem:[#allocation40_spill] sm:$0xff] }
 0x1e3   :  { %1612 = vmatpush.bf16.xpose.msra.mxu1 %v8965_v23  ;;  %v13724_v14 = vpack.c.bf16 %v13722_v56, %v13723_v28  ;;  %v9152_v10 = vld [vmem:[%s13504_s1 + $0x30] sm:$0xff]  ;;  %v13753_v28 = vld [vmem:[#allocation43_spill] sm:$0xff] }
 0x1e4   :  { %v937_v50 = vpack.c.bf16 %v924_v8, %v923_v61 }
 0x1e6   :  { %1523 = vmatpush.bf16.msra.mxu0 %v1508_v21  ;;  %v13750_v21 = vld [vmem:[#allocation35_spill] sm:$0xff] }
 0x1e7   :  { %v13752_v8 = vpack.c.bf16 %v13750_v21, %v13751_v11 }
 0x1e9   :  { %695 = vmatmul.bf16.gmra.mxu3 %v623_v3 }
 0x1ea   :  { %1295 = vmatpush.bf16.xpose.msrb.mxu3 %v8929_v48  ;;  %v13719_v48 = vpack.c.bf16 %v8594_v24, %v8589_v12  ;;  %v13731_v12 = vld [vmem:[#allocation50_spill] sm:$0xff]  ;;  %v13732_v24 = vld [vmem:[#allocation49_spill] sm:$0xff] }
 0x1eb   :  { %1613 = vmatpush.bf16.xpose.msra.mxu1 %v8984_v37  ;;  %v13733_v26 = vpack.c.bf16 %v13731_v12, %v13732_v24  ;;  %v13759_v24 = vld [vmem:[#allocation58_spill] sm:$0xff] }
 0x1ef   :  { %961 = vmatmul.bf16.gmra.mxu0 %v937_v50 }
 0x1f2   :  { %1296 = vmatpush.bf16.xpose.msrb.mxu3 %v8950_v46  ;;  %v13728_v46 = vld [vmem:[#allocation48_spill] sm:$0xff] }
 0x1f9   :  { %700 = vmatmul.bf16.gmra.mxu3 %v13719_v48  ;;  %v9175_v48 = vld [vmem:[%s13504_s1 + $0x40] sm:$0xff] }
 0x1fa   :  { %1297 = vmatpush.bf16.xpose.msrb.mxu3 %v8965_v23  ;;  %v13729_v23 = vld [vmem:[#allocation47_spill] sm:$0xff] }
 0x1fb   :  { %v13730_v13 = vpack.c.bf16 %v13728_v46, %v13729_v23  ;;  %v13757_v46 = vld [vmem:[#allocation52_spill] sm:$0xff] }
 0x1ff   :  { %966 = vmatmul.bf16.gmra.mxu0 %v13721_v9 }
 0x202   :  { %1298 = vmatpush.bf16.xpose.msrb.mxu3 %v8984_v37  ;;  %v13736_v37 = vld [vmem:[#allocation57_spill] sm:$0xff] }
 0x203   :  { %v13738_v35 = vpack.c.bf16 %v13736_v37, %v13737_v1  ;;  %v13762_v1 = vld [vmem:[#allocation63_spill] sm:$0xff] }
 0x209   :  { %705 = vmatmul.bf16.gmra.mxu3 %v13724_v14  ;;  %v13754_v14 = vld [vmem:[#allocation44_spill] sm:$0xff] }
 0x20a   :  { %v13755_v17 = vpack.c.bf16 %v13753_v28, %v13754_v14 }
 0x20f   :  { %971 = vmatmul.bf16.gmra.mxu0 %v13727_v55  ;;  %v13756_v55 = vld [vmem:[#allocation51_spill] sm:$0xff] }
 0x210   :  { %v13758_v23 = vpack.c.bf16 %v13756_v55, %v13757_v46  ;;  %v9249_v55 = vld [vmem:[%s13504_s1 + $0x60] sm:$0xff] }
 0x219   :  { %710 = vmatmul.bf16.gmra.mxu3 %v13730_v13 }
 0x21f   :  { %976 = vmatmul.bf16.gmra.mxu0 %v13733_v26  ;;  %v13760_v26 = vld [vmem:[#allocation59_spill] sm:$0xff] }
 0x220   :  { %v13761_v4 = vpack.c.bf16 %v13759_v24, %v13760_v26 }
 0x229   :  { %715 = vmatmul.bf16.gmra.mxu3 %v13735_v18 }
 0x22f   :  { %981 = vmatmul.bf16.gmra.mxu0 %v13738_v35  ;;  %v13763_v35 = vld [vmem:[#allocation62_spill] sm:$0xff] }
 0x239   :  { %720 = vmatmul.bf16.gmra.mxu3 %v13739_v59  ;;  %v13764_v59 = vpack.c.bf16 %v13762_v1, %v13763_v35  ;;  %v9262_v1 = vld [vmem:[%s13504_s1 + $0x68] sm:$0xff] }
 0x23f   :  { %986 = vmatmul.bf16.gmra.mxu0 %v13740_v34 }
 0x249   :  { %1299 = vmatmul.bf16.vlgmr.msrb.gmra.mxu3 %v13743_v38 }
 0x24c   :  { %v952_v41 = vpop.f32.mrf.mxu0  ;;  %v9147_v47 = vpop.f32.mrf.mxu3 }
 0x24d   :  { %v953_v16 = vadd.f32 %v952_v41, %v9096_v43 }
 0x24f   :  { %992 = vmax.xlane.f32.xlu1 %v953_v16 }
 0x254   :  { %v954_v20 = vpop.f32.mrf.mxu0  ;;  %v9166_v61 = vpop.f32.mrf.mxu3 }
 0x255   :  { %v955_v51 = vadd.f32 %v954_v20, %v9105_v39 }
 0x257   :  { %994 = vmax.xlane.f32.xlu2 %v955_v51 }
 0x259   :  { %1304 = vmatmul.bf16.gmra.mxu3 %v13746_v42  ;;  %v9211_v42 = vld [vmem:[%s13504_s1 + $0x48] sm:$0xff] }
 0x25c   :  { %v957_v29 = vpop.f32.mrf.mxu0  ;;  %v9177_v9 = vpop.f32.mrf.mxu3 }
 0x25d   :  { %v958_v6 = vadd.f32 %v957_v29, %v9111_v60 }
 0x25f   :  { %996 = vmax.xlane.f32.xlu0 %v958_v6 }
 0x264   :  { %v959_v32 = vpop.f32.mrf.mxu0  ;;  %v9186_v52 = vpop.f32.mrf.mxu3 }
 0x265   :  { %v9123_v25 = vadd.f32 %v959_v32, %v9120_v30 }
 0x267   :  { %998 = vmax.xlane.f32.xlu2 %v9123_v25 }
 0x269   :  { %1309 = vmatmul.bf16.gmra.mxu3 %v13749_v19 }
 0x26c   :  { %v962_v0 = vpop.f32.mrf.mxu0  ;;  %v9191_v13 = vpop.f32.mrf.mxu3 }
 0x26d   :  { %v9132_v15 = vadd.f32 %v962_v0, %v9129_v53 }
 0x26f   :  { %1000 = vmax.xlane.f32.xlu1 %v9132_v15 }
 0x274   :  { %v964_v63 = vpop.f32.mrf.mxu0  ;;  %v9193_v12 = vpop.f32.mrf.mxu3 }
 0x275   :  { %v9144_v2 = vadd.f32 %v964_v63, %v9141_v31 }
 0x277   :  { %1002 = vmax.xlane.f32.xlu2 %v9144_v2 }
 0x279   :  { %1314 = vmatmul.bf16.gmra.mxu3 %v13752_v8  ;;  %v9236_v8 = vld [vmem:[%s13504_s1 + $0x58] sm:$0xff] }
 0x27c   :  { %v967_v58 = vpop.f32.mrf.mxu0  ;;  %v9198_v18 = vpop.f32.mrf.mxu3 }
 0x27d   :  { %v9155_v7 = vadd.f32 %v967_v58, %v9152_v10 }
 0x27f   :  { %1004 = vmax.xlane.f32.xlu0 %v9155_v7 }
 0x284   :  { %v969_v3 = vpop.f32.mrf.mxu0  ;;  %v9200_v37 = vpop.f32.mrf.mxu3 }
 0x285   :  { %v9169_v50 = vadd.f32 %v969_v3, %v9164_v44 }
 0x287   :  { %1006 = vmax.xlane.f32.xlu1 %v9169_v50 }
 0x289   :  { %1319 = vmatmul.bf16.gmra.mxu3 %v13755_v17 }
 0x28c   :  { %v972_v57 = vpop.f32.mrf.mxu0 }
 0x28d   :  { %v9180_v56 = vadd.f32 %v972_v57, %v9175_v48 }
 0x28f   :  { %1008 = vmax.xlane.f32.xlu1 %v9180_v56 }
 0x294   :  { %v974_v22 = vpop.f32.mrf.mxu0 }
 0x299   :  { %1324 = vmatmul.bf16.gmra.mxu3 %v13758_v23 }
 0x29c   :  { %v977_v54 = vpop.f32.mrf.mxu0 }
 0x29d   :  { %v9227_v58 = vadd.f32 %v977_v54, %v9223_v27 }
 0x2a4   :  { %v979_v19 = vpop.f32.mrf.mxu0 }
 0x2a5   :  { %v9240_v28 = vadd.f32 %v979_v19, %v9236_v8 }
 0x2a9   :  { %1329 = vmatmul.bf16.gmra.mxu3 %v13761_v4 }
 0x2ac   :  { %v982_v57 = vpop.f32.mrf.mxu0 }
 0x2b4   :  { %v984_v26 = vpop.f32.mrf.mxu0 }
 0x2b9   :  { %1334 = vmatmul.bf16.gmra.mxu3 %v13764_v59  ;;  %v9266_v59 = vadd.f32 %v984_v26, %v9262_v1 }
 0x2c2   :  { %v993_v34 = vpop.xlane.xlu1 %992 }
 0x2c3   :  { %v1024_v41 = vsub.f32 %v953_v16, %v993_v34  ;;  %v9214_v16 = vadd.f32 %v974_v22, %v9211_v42  ;;  %v987_v22 = vpop.f32.mrf.mxu0 }
 0x2c5   :  { %v1040_v49 = vmul.f32 1.442695, %v1024_v41 }
 0x2c7   :  { %7392 = vpow2.f32 %v1040_v49  ;;  %v9275_v49 = vld [vmem:[%s13504_s1 + $0x70] sm:$0xff] }
 0x2ca   :  { %v995_v38 = vpop.xlane.xlu2 %994 }
 0x2cb   :  { %v1025_v20 = vsub.f32 %v955_v51, %v995_v38 }
 0x2cd   :  { %v9205_v29 = vpop.eup %7392  ;;  %v1042_v62 = vmul.f32 1.442695, %v1025_v20  ;;  %v9279_v20 = vadd.f32 %v987_v22, %v9275_v49 }
 0x2ce   :  { %1072 = vadd.xlane.f32.xlu2 %v9205_v29 }
 0x2cf   :  { %7394 = vpow2.f32 %v1042_v62 }
 0x2d2   :  { %v997_v32 = vpop.xlane.xlu0 %996 }
 0x2d3   :  { %v1026_v0 = vsub.f32 %v958_v6, %v997_v32  ;;  %v989_v32 = vpop.f32.mrf.mxu0 }
 0x2d5   :  { %v9216_v5 = vpop.eup %7394  ;;  %v1044_v51 = vmul.f32 1.442695, %v1026_v0  ;;  %v9288_v0 = vld [vmem:[%s13504_s1 + $0x78] sm:$0xff] }
 0x2d6   :  { %1074 = vadd.xlane.f32.xlu0 %v9216_v5  ;;  %1010 = vmax.xlane.f32.xlu2 %v9214_v16  ;;  %v9292_v19 = vadd.f32 %v989_v32, %v9288_v0 }
 0x2d7   :  { %7396 = vpow2.f32 %v1044_v51 }
 0x2da   :  { %v999_v63 = vpop.xlane.xlu2 %998 }
 0x2db   :  { %v1027_v6 = vsub.f32 %v9123_v25, %v999_v63 }
 0x2dd   :  { %v9229_v21 = vpop.eup %7396  ;;  %v1046_v11 = vmul.f32 1.442695, %v1027_v6 }
 0x2de   :  { %1076 = vadd.xlane.f32.xlu0 %v9229_v21  ;;  %1012 = vmax.xlane.f32.xlu2 %v9227_v58 }
 0x2df   :  { %7398 = vpow2.f32 %v1046_v11 }
 0x2e2   :  { %v1001_v3 = vpop.xlane.xlu1 %1000 }
 0x2e3   :  { %v1028_v25 = vsub.f32 %v9132_v15, %v1001_v3  ;;  %v9253_v15 = vadd.f32 %v982_v57, %v9249_v55 }
 0x2e5   :  { %v9242_v14 = vpop.eup %7398  ;;  %v1048_v17 = vmul.f32 1.442695, %v1028_v25 }
 0x2e6   :  { %1014 = vmax.xlane.f32.xlu0 %v9240_v28  ;;  %1078 = vadd.xlane.f32.xlu1 %v9242_v14 }
 0x2e7   :  { %7400 = vpow2.f32 %v1048_v17 }
 0x2ea   :  { %v1003_v46 = vpop.xlane.xlu2 %1002 }
 0x2eb   :  { %v1029_v23 = vsub.f32 %v9144_v2, %v1003_v46 }
 0x2ed   :  { %v9255_v24 = vpop.eup %7400  ;;  %v1050_v4 = vmul.f32 1.442695, %v1029_v23 }
 0x2ee   :  { %1016 = vmax.xlane.f32.xlu0 %v9253_v15  ;;  %1080 = vadd.xlane.f32.xlu1 %v9255_v24 }
 0x2ef   :  { %7402 = vpow2.f32 %v1050_v4 }
 0x2f2   :  { %v1005_v35 = vpop.xlane.xlu0 %1004 }
 0x2f3   :  { %v1030_v2 = vsub.f32 %v9155_v7, %v1005_v35 }
 0x2f5   :  { %v9268_v34 = vpop.eup %7402  ;;  %v1052_v41 = vmul.f32 1.442695, %v1030_v2 }
 0x2f6   :  { %1082 = vadd.xlane.f32.xlu2 %v9268_v34  ;;  %1018 = vmax.xlane.f32.xlu1 %v9266_v59 }
 0x2f7   :  { %7404 = vpow2.f32 %v1052_v41 }
 0x2fa   :  { %v1007_v38 = vpop.xlane.xlu1 %1006 }
 0x2fb   :  { %v1031_v7 = vsub.f32 %v9169_v50, %v1007_v38 }
 0x2fd   :  { %v9281_v62 = vpop.eup %7404  ;;  %v1054_v54 = vmul.f32 1.442695, %v1031_v7 }
 0x2fe   :  { %1084 = vadd.xlane.f32.xlu2 %v9281_v62  ;;  %1020 = vmax.xlane.f32.xlu1 %v9279_v20 }
 0x2ff   :  { %7406 = vpow2.f32 %v1054_v54 }
 0x302   :  { %v1009_v51 = vpop.xlane.xlu1 %1008 }
 0x303   :  { %v1032_v50 = vsub.f32 %v9180_v56, %v1009_v51 }
 0x305   :  { %v9294_v63 = vpop.eup %7406  ;;  %v1056_v6 = vmul.f32 1.442695, %v1032_v50 }
 0x306   :  { %1086 = vadd.xlane.f32.xlu0 %v9294_v63  ;;  %1022 = vmax.xlane.f32.xlu2 %v9292_v19 }
 0x307   :  { %7408 = vpow2.f32 %v1056_v6 }
 0x30d   :  { %v9298_v11 = vpop.eup %7408 }
 0x30e   :  { %1088 = vadd.xlane.f32.xlu0 %v9298_v11 }
 0x341   :  { %v1073_v3 = vpop.xlane.xlu2 %1072 }
 0x342   :  { %7410 = vrcp.f32 %v1073_v3 }
 0x348   :  { %v7411_v46 = vpop.eup %7410 }
 0x349   :  { %v1075_v57 = vpop.xlane.xlu0 %1074  ;;  %v1011_v25 = vpop.xlane.xlu2 %1010  ;;  %v1120_v35 = vmul.f32 %v7411_v46, %v9205_v29 }
 0x34a   :  { %7412 = vrcp.f32 %v1075_v57  ;;  %v1033_v56 = vsub.f32 %v9214_v16, %v1011_v25 }
 0x34c   :  { %v1058_v17 = vmul.f32 1.442695, %v1033_v56 }
 0x34e   :  { %7414 = vpow2.f32 %v1058_v17 }
 0x350   :  { %v7413_v23 = vpop.eup %7412 }
 0x351   :  { %v1077_v26 = vpop.xlane.xlu0 %1076  ;;  %v1013_v4 = vpop.xlane.xlu2 %1012  ;;  %v1121_v2 = vmul.f32 %v7413_v23, %v9216_v5 }
 0x352   :  { %v1034_v41 = vsub.f32 %v9227_v58, %v1013_v4 }
 0x353   :  { %v1136_v22 = vpack.c.bf16 %v1121_v2, %v1120_v35 }
 0x354   :  { %v9305_v38 = vpop.eup %7414  ;;  %v1060_v7 = vmul.f32 1.442695, %v1034_v41 }
 0x355   :  { %1176 = vmatmul.bf16.vlgmr.msrb.gmra.mxu1 %v1136_v22  ;;  %1090 = vadd.xlane.f32.xlu1 %v9305_v38 }
 0x356   :  { %7416 = vpow2.f32 %v1060_v7 }
 0x357   :  { %7418 = vrcp.f32 %v1077_v26 }
 0x359   :  { %v1015_v16 = vpop.xlane.xlu0 %1014  ;;  %v1079_v54 = vpop.xlane.xlu1 %1078 }
 0x35a   :  { %v1035_v32 = vsub.f32 %v9240_v28, %v1015_v16  ;;  %7420 = vrcp.f32 %v1079_v54 }
 0x35c   :  { %v9309_v51 = vpop.eup %7416  ;;  %v1062_v29 = vmul.f32 1.442695, %v1035_v32 }
 0x35d   :  { %1092 = vadd.xlane.f32.xlu2 %v9309_v51  ;;  %v7419_v5 = vpop.eup %7418 }
 0x35e   :  { %7422 = vpow2.f32 %v1062_v29  ;;  %v1122_v3 = vmul.f32 %v7419_v5, %v9229_v21 }
 0x360   :  { %v7421_v58 = vpop.eup %7420 }
 0x361   :  { %v1017_v50 = vpop.xlane.xlu0 %1016  ;;  %v1081_v6 = vpop.xlane.xlu1 %1080  ;;  %v1123_v57 = vmul.f32 %v7421_v58, %v9242_v14 }
 0x362   :  { %v1036_v25 = vsub.f32 %v9253_v15, %v1017_v50 }
 0x363   :  { %v1137_v56 = vpack.c.bf16 %v1123_v57, %v1122_v3 }
 0x364   :  { %v9315_v17 = vpop.eup %7422  ;;  %v1064_v28 = vmul.f32 1.442695, %v1036_v25  ;;  %v9347_v25 = vadd.f32 %v9166_v61, %v9105_v39  ;;  %v9369_v61 = vadd.f32 %v9193_v12, %v9141_v31 }
 0x365   :  { %1094 = vadd.xlane.f32.xlu0 %v9315_v17  ;;  %1181 = vmatmul.bf16.gmra.mxu1 %v1137_v56 }
 0x366   :  { %7424 = vpow2.f32 %v1064_v28 }
 0x367   :  { %7426 = vrcp.f32 %v1081_v6 }
 0x369   :  { %v1083_v46 = vpop.xlane.xlu2 %1082  ;;  %v1019_v23 = vpop.xlane.xlu1 %1018 }
 0x36a   :  { %7428 = vrcp.f32 %v1083_v46  ;;  %v1037_v26 = vsub.f32 %v9266_v59, %v1019_v23 }
 0x36c   :  { %v9319_v4 = vpop.eup %7424  ;;  %v1066_v21 = vmul.f32 1.442695, %v1037_v26 }
 0x36d   :  { %1096 = vadd.xlane.f32.xlu1 %v9319_v4  ;;  %v7427_v14 = vpop.eup %7426 }
 0x36e   :  { %7430 = vpow2.f32 %v1066_v21  ;;  %v1124_v41 = vmul.f32 %v7427_v14, %v9255_v24  ;;  %v9331_v24 = vadd.f32 %v9147_v47, %v9096_v43 }
 0x370   :  { %v7429_v15 = vpop.eup %7428 }
 0x371   :  { %v1085_v35 = vpop.xlane.xlu2 %1084  ;;  %v1021_v2 = vpop.xlane.xlu1 %1020  ;;  %v1125_v22 = vmul.f32 %v7429_v15, %v9268_v34 }
 0x372   :  { %v1038_v7 = vsub.f32 %v9279_v20, %v1021_v2 }
 0x373   :  { %v1138_v16 = vpack.c.bf16 %v1125_v22, %v1124_v41 }
 0x374   :  { %v9325_v54 = vpop.eup %7430  ;;  %v1068_v59 = vmul.f32 1.442695, %v1038_v7 }
 0x375   :  { %1186 = vmatmul.bf16.gmra.mxu1 %v1138_v16  ;;  %1098 = vadd.xlane.f32.xlu2 %v9325_v54 }
 0x376   :  { %7432 = vpow2.f32 %v1068_v59 }
 0x377   :  { %7434 = vrcp.f32 %v1085_v35 }
 0x379   :  { %v1087_v32 = vpop.xlane.xlu0 %1086  ;;  %v1023_v29 = vpop.xlane.xlu2 %1022 }
 0x37a   :  { %7436 = vrcp.f32 %v1087_v32  ;;  %v1039_v5 = vsub.f32 %v9292_v19, %v1023_v29  ;;  %v9341_v19 = vadd.f32 %v9186_v52, %v9120_v30  ;;  %v9358_v52 = vadd.f32 %v9177_v9, %v9111_v60  ;;  %v706_v9 = vpop.f32.mrf.mxu3 }
 0x37c   :  { %v9333_v34 = vpop.eup %7432  ;;  %v1070_v20 = vmul.f32 1.442695, %v1039_v5 }
 0x37d   :  { %726 = vmax.xlane.f32.xlu2 %v9331_v24  ;;  %1100 = vadd.xlane.f32.xlu0 %v9333_v34  ;;  %v7435_v58 = vpop.eup %7434 }
 0x37e   :  { %7438 = vpow2.f32 %v1070_v20  ;;  %v1126_v6 = vmul.f32 %v7435_v58, %v9281_v62  ;;  %v9354_v62 = vadd.f32 %v9198_v18, %v9152_v10  ;;  %v9373_v18 = vadd.f32 %v9200_v37, %v9164_v44 }
 0x380   :  { %v7437_v50 = vpop.eup %7436 }
 0x381   :  { %v1127_v3 = vmul.f32 %v7437_v50, %v9294_v63  ;;  %v9362_v63 = vadd.f32 %v9191_v13, %v9129_v53  ;;  %v9378_v13 = vadd.f32 %v706_v9, %v9175_v48  ;;  %v1089_v56 = vpop.xlane.xlu0 %1088 }
 0x382   :  { %7440 = vrcp.f32 %v1089_v56  ;;  %v708_v21 = vpop.f32.mrf.mxu3 }
 0x383   :  { %v1139_v57 = vpack.c.bf16 %v1127_v3, %v1126_v6 }
 0x384   :  { %v9343_v47 = vpop.eup %7438 }
 0x385   :  { %1191 = vmatmul.bf16.gmra.mxu1 %v1139_v57  ;;  %732 = vmax.xlane.f32.xlu2 %v9341_v19 }
 0x386   :  { %1102 = vadd.xlane.f32.xlu1 %v9343_v47  ;;  %728 = vmax.xlane.f32.xlu0 %v9347_v25 }
 0x388   :  { %v7441_v12 = vpop.eup %7440 }
 0x389   :  { %v1128_v23 = vmul.f32 %v7441_v12, %v9298_v11 }
 0x38a   :  { %v711_v2 = vpop.f32.mrf.mxu3 }
 0x38d   :  { %738 = vmax.xlane.f32.xlu2 %v9354_v62 }
 0x38e   :  { %730 = vmax.xlane.f32.xlu1 %v9358_v52  ;;  %734 = vmax.xlane.f32.xlu0 %v9362_v63 }
 0x392   :  { %v9385_v11 = vpop.f32.mrf.mxu3 }
 0x396   :  { %736 = vmax.xlane.f32.xlu1 %v9369_v61  ;;  %740 = vmax.xlane.f32.xlu0 %v9373_v18 }
 0x39a   :  { %v9389_v6 = vpop.f32.mrf.mxu3 }
 0x39e   :  { %742 = vmax.xlane.f32.xlu0 %v9378_v13 }
 0x3c8   :  { %v1091_v28 = vpop.xlane.xlu1 %1090 }
 0x3c9   :  { %7442 = vrcp.f32 %v1091_v28 }
 0x3cf   :  { %v7443_v46 = vpop.eup %7442 }
 0x3d0   :  { %v1129_v37 = vmul.f32 %v7443_v46, %v9305_v38  ;;  %v1093_v14 = vpop.xlane.xlu2 %1092 }
 0x3d1   :  { %7444 = vrcp.f32 %v1093_v14 }
 0x3d2   :  { %v1140_v26 = vpack.c.bf16 %v1129_v37, %v1128_v23 }
 0x3d4   :  { %1196 = vmatmul.bf16.gmra.mxu1 %v1140_v26 }
 0x3d7   :  { %v7445_v35 = vpop.eup %7444 }
 0x3d8   :  { %v1095_v15 = vpop.xlane.xlu0 %1094  ;;  %v1130_v22 = vmul.f32 %v7445_v35, %v9309_v51 }
 0x3d9   :  { %7446 = vrcp.f32 %v1095_v15 }
 0x3df   :  { %v7447_v41 = vpop.eup %7446 }
 0x3e0   :  { %v1131_v7 = vmul.f32 %v7447_v41, %v9315_v17  ;;  %v1097_v59 = vpop.xlane.xlu1 %1096  ;;  %v9402_v41 = vadd.f32 %v708_v21, %v9211_v42 }
 0x3e1   :  { %7448 = vrcp.f32 %v1097_v59 }
 0x3e2   :  { %v1141_v16 = vpack.c.bf16 %v1131_v7, %v1130_v22  ;;  %v9406_v7 = vpop.f32.mrf.mxu1 }
 0x3e4   :  { %1201 = vmatmul.bf16.gmra.mxu1 %v1141_v16 }
 0x3e7   :  { %v7449_v32 = vpop.eup %7448 }
 0x3e8   :  { %v1099_v38 = vpop.xlane.xlu2 %1098  ;;  %v1132_v58 = vmul.f32 %v7449_v32, %v9319_v4 }
 0x3e9   :  { %7450 = vrcp.f32 %v1099_v38 }
 0x3ef   :  { %v7451_v29 = vpop.eup %7450 }
 0x3f0   :  { %v727_v5 = vpop.xlane.xlu2 %726  ;;  %v1101_v20 = vpop.xlane.xlu0 %1100  ;;  %v1133_v50 = vmul.f32 %v7451_v29, %v9325_v54 }
 0x3f1   :  { %v758_v51 = vsub.f32 %v9331_v24, %v727_v5  ;;  %v718_v54 = vpop.f32.mrf.mxu3 }
 0x3f2   :  { %v1142_v17 = vpack.c.bf16 %v1133_v50, %v1132_v58  ;;  %v9422_v58 = vpop.f32.mrf.mxu1 }
 0x3f3   :  { %v774_v3 = vmul.f32 1.442695, %v758_v51  ;;  %v9428_v51 = vadd.f32 %v718_v54, %v9262_v1  ;;  %v9450_v54 = vadd.f32 %v9389_v6, %v9249_v55 }
 0x3f4   :  { %1206 = vmatmul.bf16.gmra.mxu1 %v1142_v17  ;;  %v9432_v17 = vadd.f32 %v9385_v11, %v9236_v8 }
 0x3f5   :  { %7452 = vpow2.f32 %v774_v3 }
 0x3f6   :  { %7454 = vrcp.f32 %v1101_v20 }
 0x3f8   :  { %v733_v57 = vpop.xlane.xlu2 %732 }
 0x3f9   :  { %v761_v9 = vsub.f32 %v9341_v19, %v733_v57  ;;  %v729_v56 = vpop.xlane.xlu0 %728  ;;  %v1103_v28 = vpop.xlane.xlu1 %1102  ;;  %v13765_v57 = vld [vmem:[#allocation20_spill] sm:$0xff] }
 0x3fa   :  { %v759_v12 = vsub.f32 %v9347_v25, %v729_v56  ;;  %7456 = vrcp.f32 %v1103_v28 }
 0x3fb   :  { %v9394_v4 = vpop.eup %7452  ;;  %v780_v46 = vmul.f32 1.442695, %v761_v9  ;;  %v13766_v9 = vld [vmem:[#allocation21_spill] sm:$0xff] }
 0x3fc   :  { %v776_v23 = vmul.f32 1.442695, %v759_v12  ;;  %806 = vadd.xlane.f32.xlu1 %v9394_v4  ;;  %v7455_v24 = vpop.eup %7454  ;;  %v13767_v56 = vpack.c.bf16 %v13765_v57, %v13766_v9  ;;  %v13777_v9 = vld [vmem:[#allocation46_spill] sm:$0xff] }
 0x3fd   :  { %7458 = vpow2.f32 %v780_v46  ;;  %v1134_v19 = vmul.f32 %v7455_v24, %v9333_v34  ;;  %v721_v34 = vpop.f32.mrf.mxu3 }
 0x3fe   :  { %7460 = vpow2.f32 %v776_v23  ;;  %v9446_v11 = vadd.f32 %v721_v34, %v9275_v49 }
 0x400   :  { %v7457_v37 = vpop.eup %7456  ;;  %v739_v29 = vpop.xlane.xlu2 %738 }
 0x401   :  { %v735_v26 = vpop.xlane.xlu0 %734  ;;  %v731_v14 = vpop.xlane.xlu1 %730  ;;  %v1135_v15 = vmul.f32 %v7457_v37, %v9343_v47 }
 0x402   :  { %v762_v25 = vsub.f32 %v9362_v63, %v735_v26  ;;  %v760_v35 = vsub.f32 %v9358_v52, %v731_v14  ;;  %v9414_v52 = vadd.f32 %v711_v2, %v9223_v27  ;;  %v764_v27 = vsub.f32 %v9354_v62, %v739_v29  ;;  %v9442_v62 = vpop.f32.mrf.mxu1  ;;  %v13768_v26 = vld [vmem:[#allocation27_spill] sm:$0xff]  ;;  %v13769_v14 = vld [vmem:[#allocation26_spill] sm:$0xff] }
 0x403   :  { %v9404_v22 = vpop.eup %7458  ;;  %v1143_v16 = vpack.c.bf16 %v1135_v15, %v1134_v19  ;;  %v13770_v19 = vpack.c.bf16 %v13768_v26, %v13769_v14 }
 0x404   :  { %v9408_v59 = vpop.eup %7460  ;;  %v782_v38 = vmul.f32 1.442695, %v762_v25  ;;  %v778_v32 = vmul.f32 1.442695, %v760_v35  ;;  %744 = vmax.xlane.f32.xlu1 %v9402_v41  ;;  %812 = vadd.xlane.f32.xlu0 %v9404_v22 }
 0x405   :  { %808 = vadd.xlane.f32.xlu2 %v9408_v59  ;;  %1211 = vmatmul.bf16.gmra.mxu1 %v1143_v16  ;;  %v723_v50 = vpop.f32.mrf.mxu3  ;;  %v13771_v16 = vld [vmem:[#allocation31_spill] sm:$0xff] }
 0x406   :  { %7462 = vpow2.f32 %v782_v38  ;;  %v9463_v55 = vadd.f32 %v723_v50, %v9288_v0  ;;  %v13772_v38 = vld [vmem:[#allocation30_spill] sm:$0xff] }
 0x407   :  { %7464 = vpow2.f32 %v778_v32  ;;  %v13773_v32 = vpack.c.bf16 %v13771_v16, %v13772_v38  ;;  %v13774_v50 = vld [vmem:[#allocation38_spill] sm:$0xff]  ;;  %v13784_v16 = vld [vmem:[#allocation60_spill] sm:$0xff] }
 0x409   :  { %v737_v47 = vpop.xlane.xlu1 %736  ;;  %v741_v2 = vpop.xlane.xlu0 %740 }
 0x40a   :  { %v763_v63 = vsub.f32 %v9369_v61, %v737_v47  ;;  %v786_v61 = vmul.f32 1.442695, %v764_v27  ;;  %v765_v1 = vsub.f32 %v9373_v18, %v741_v2  ;;  %v9458_v24 = vpop.f32.mrf.mxu1  ;;  %v13775_v27 = vld [vmem:[#allocation37_spill] sm:$0xff] }
 0x40b   :  { %v13776_v2 = vpack.c.bf16 %v13774_v50, %v13775_v27 }
 0x40c   :  { %v9417_v21 = vpop.eup %7462  ;;  %v784_v5 = vmul.f32 1.442695, %v763_v63  ;;  %746 = vmax.xlane.f32.xlu1 %v9414_v52  ;;  %v788_v12 = vmul.f32 1.442695, %v765_v1 }
 0x40d   :  { %v9420_v20 = vpop.eup %7464  ;;  %814 = vadd.xlane.f32.xlu0 %v9417_v21  ;;  %v1300_v28 = vpop.f32.mrf.mxu3 }
 0x40e   :  { %810 = vadd.xlane.f32.xlu2 %v9420_v20  ;;  %7466 = vpow2.f32 %v784_v5  ;;  %v9478_v0 = vadd.f32 %v1300_v28, %v9096_v43 }
 0x40f   :  { %7468 = vpow2.f32 %v786_v61 }
 0x410   :  { %7470 = vpow2.f32 %v788_v12 }
 0x411   :  { %v743_v46 = vpop.xlane.xlu0 %742 }
 0x412   :  { %v766_v18 = vsub.f32 %v9378_v13, %v743_v46  ;;  %v9472_v13 = vpop.f32.mrf.mxu1  ;;  %v13780_v46 = vld [vmem:[#allocation54_spill] sm:$0xff] }
 0x414   :  { %v9434_v3 = vpop.eup %7466  ;;  %v790_v37 = vmul.f32 1.442695, %v766_v18  ;;  %v13781_v18 = vld [vmem:[#allocation53_spill] sm:$0xff] }
 0x415   :  { %752 = vmax.xlane.f32.xlu0 %v9428_v51  ;;  %1614 = vmatmul.bf16.vlgmr.msra.gmra.mxu1 %v13767_v56  ;;  %v9452_v23 = vpop.eup %7468  ;;  %v9460_v49 = vpop.f32.mrf.mxu3  ;;  %v13778_v56 = vld [vmem:[#allocation45_spill] sm:$0xff] }
 0x416   :  { %748 = vmax.xlane.f32.xlu2 %v9432_v17  ;;  %816 = vadd.xlane.f32.xlu1 %v9434_v3  ;;  %v9465_v6 = vpop.eup %7470  ;;  %7472 = vpow2.f32 %v790_v37  ;;  %v13779_v1 = vpack.c.bf16 %v13777_v9, %v13778_v56  ;;  %v13782_v37 = vpack.c.bf16 %v13780_v46, %v13781_v18 }
 0x41a   :  { %v9480_v35 = vpop.f32.mrf.mxu1 }
 0x41c   :  { %v9474_v15 = vpop.eup %7472 }
 0x41d   :  { %754 = vmax.xlane.f32.xlu0 %v9446_v11  ;;  %v1305_v25 = vpop.f32.mrf.mxu3 }
 0x41e   :  { %750 = vmax.xlane.f32.xlu2 %v9450_v54  ;;  %818 = vadd.xlane.f32.xlu1 %v9452_v23  ;;  %v9489_v47 = vadd.f32 %v1305_v25, %v9111_v60  ;;  %v13783_v25 = vld [vmem:[#allocation61_spill] sm:$0xff] }
 0x41f   :  { %v13785_v38 = vpack.c.bf16 %v13783_v25, %v13784_v16 }
 0x422   :  { %v9492_v63 = vpop.f32.mrf.mxu1 }
 0x425   :  { %1619 = vmatmul.bf16.gmra.mxu1 %v13770_v19  ;;  %v9486_v34 = vpop.f32.mrf.mxu3 }
 0x426   :  { %820 = vadd.xlane.f32.xlu2 %v9465_v6  ;;  %756 = vmax.xlane.f32.xlu1 %v9463_v55 }
 0x42a   :  { %v9501_v61 = vpop.f32.mrf.mxu1 }
 0x42d   :  { %v1310_v29 = vpop.f32.mrf.mxu3 }
 0x42e   :  { %822 = vadd.xlane.f32.xlu2 %v9474_v15  ;;  %v9495_v5 = vadd.f32 %v1310_v29, %v9129_v53 }
 0x435   :  { %1624 = vmatmul.bf16.gmra.mxu1 %v13773_v32 }
 0x436   :  { %1340 = vmax.xlane.f32.xlu2 %v9478_v0 }
 0x43e   :  { %1344 = vmax.xlane.f32.xlu2 %v9489_v47 }
 0x445   :  { %1629 = vmatmul.bf16.gmra.mxu1 %v13776_v2 }
 0x446   :  { %1348 = vmax.xlane.f32.xlu2 %v9495_v5 }
 0x451   :  { %v9503_v57 = vpop.f32.mrf.mxu1 }
 0x455   :  { %1634 = vmatmul.bf16.gmra.mxu1 %v13779_v1 }
 0x459   :  { %v9508_v28 = vpop.f32.mrf.mxu1 }
 0x461   :  { %v9510_v12 = vpop.f32.mrf.mxu1 }
 0x465   :  { %1639 = vmatmul.bf16.gmra.mxu1 %v13782_v37 }
 0x469   :  { %v9515_v26 = vpop.f32.mrf.mxu1 }
 0x46f   :  { %v807_v14 = vpop.xlane.xlu1 %806 }
 0x470   :  { %7474 = vrcp.f32 %v807_v14 }
 0x471   :  { %v9517_v19 = vpop.f32.mrf.mxu1 }
 0x475   :  { %1644 = vmatmul.bf16.gmra.mxu1 %v13785_v38 }
 0x476   :  { %v7475_v56 = vpop.eup %7474 }
 0x477   :  { %v813_v32 = vpop.xlane.xlu0 %812  ;;  %v745_v29 = vpop.xlane.xlu1 %744  ;;  %v854_v25 = vmul.f32 %v7475_v56, %v9394_v4 }
 0x478   :  { %v809_v50 = vpop.xlane.xlu2 %808  ;;  %v767_v27 = vsub.f32 %v9402_v41, %v745_v29 }
 0x479   :  { %7476 = vrcp.f32 %v809_v50  ;;  %v9523_v2 = vpop.f32.mrf.mxu1  ;;  %v13787_v50 = vld [vmem:[#allocation65_spill] sm:$0xff] }
 0x47a   :  { %v792_v9 = vmul.f32 1.442695, %v767_v27  ;;  %v13788_v27 = vld [vmem:[#allocation64_spill] sm:$0xff] }
 0x47c   :  { %7478 = vpow2.f32 %v792_v9  ;;  %v13789_v9 = vpack.c.bf16 %v13787_v50, %v13788_v27 }
 0x47f   :  { %v7477_v1 = vpop.eup %7476  ;;  %v747_v46 = vpop.xlane.xlu1 %746 }
 0x480   :  { %v815_v18 = vpop.xlane.xlu0 %814  ;;  %v768_v37 = vsub.f32 %v9414_v52, %v747_v46  ;;  %v855_v14 = vmul.f32 %v7477_v1, %v9408_v59 }
 0x481   :  { %v811_v16 = vpop.xlane.xlu2 %810 }
 0x482   :  { %v9528_v38 = vpop.eup %7478  ;;  %v794_v36 = vmul.f32 1.442695, %v768_v37  ;;  %v9530_v41 = vpop.f32.mrf.mxu1  ;;  %v870_v29 = vpack.c.bf16 %v855_v14, %v854_v25 }
 0x483   :  { %13786 = vst [vmem:[#allocation34_spill] sm:$0xff] %v9530_v41  ;;  %824 = vadd.xlane.f32.xlu0 %v9528_v38 }
 0x484   :  { %7480 = vpow2.f32 %v794_v36  ;;  %1225 = vmatmul.bf16.vlgmr.msrb.gmra.mxu2 %v870_v29 }
 0x485   :  { %7482 = vrcp.f32 %v811_v16  ;;  %1649 = vmatmul.bf16.gmra.mxu1 %v13789_v9 }
 0x486   :  { %7484 = vrcp.f32 %v813_v32 }
 0x488   :  { %v753_v56 = vpop.xlane.xlu0 %752 }
 0x489   :  { %v749_v4 = vpop.xlane.xlu2 %748  ;;  %v817_v52 = vpop.xlane.xlu1 %816  ;;  %v771_v14 = vsub.f32 %v9428_v51, %v753_v56 }
 0x48a   :  { %v9536_v59 = vpop.eup %7480  ;;  %v769_v1 = vsub.f32 %v9432_v17, %v749_v4  ;;  %v9539_v46 = vpop.f32.mrf.mxu1  ;;  %v9547_v17 = vadd.f32 %v9460_v49, %v9105_v39 }
 0x48b   :  { %13790 = vst [vmem:[#allocation40_spill] sm:$0xff] %v9539_v46  ;;  %v7483_v37 = vpop.eup %7482  ;;  %826 = vadd.xlane.f32.xlu0 %v9536_v59  ;;  %v800_v29 = vmul.f32 1.442695, %v771_v14 }
 0x48c   :  { %v796_v36 = vmul.f32 1.442695, %v769_v1  ;;  %v7485_v25 = vpop.eup %7484  ;;  %v856_v16 = vmul.f32 %v7483_v37, %v9420_v20 }
 0x48d   :  { %v857_v32 = vmul.f32 %v7485_v25, %v9404_v22  ;;  %v1312_v22 = vpop.f32.mrf.mxu3 }
 0x48e   :  { %7486 = vpow2.f32 %v796_v36 }
 0x48f   :  { %v871_v33 = vpack.c.bf16 %v857_v32, %v856_v16  ;;  %7488 = vrcp.f32 %v817_v52 }
 0x490   :  { %7490 = vpow2.f32 %v800_v29  ;;  %v755_v25 = vpop.xlane.xlu0 %754 }
 0x491   :  { %v751_v50 = vpop.xlane.xlu2 %750  ;;  %v819_v27 = vpop.xlane.xlu1 %818 }
 0x492   :  { %v770_v9 = vsub.f32 %v9450_v54, %v751_v50  ;;  %v1615_v4 = vpop.f32.mrf.mxu1 }
 0x493   :  { %1342 = vmax.xlane.f32.xlu0 %v9547_v17 }
 0x494   :  { %v9551_v1 = vpop.eup %7486  ;;  %v798_v51 = vmul.f32 1.442695, %v770_v9  ;;  %1230 = vmatmul.bf16.gmra.mxu2 %v871_v33 }
 0x495   :  { %828 = vadd.xlane.f32.xlu1 %v9551_v1  ;;  %v7489_v56 = vpop.eup %7488  ;;  %v1315_v29 = vpop.f32.mrf.mxu3 }
 0x496   :  { %7492 = vpow2.f32 %v798_v51  ;;  %v9555_v36 = vpop.eup %7490 }
 0x497   :  { %7494 = vrcp.f32 %v815_v18  ;;  %v772_v18 = vsub.f32 %v9446_v11, %v755_v25  ;;  %v9575_v11 = vadd.f32 %v1315_v29, %v9152_v10 }
 0x499   :  { %v821_v20 = vpop.xlane.xlu2 %820  ;;  %v757_v49 = vpop.xlane.xlu1 %756  ;;  %v802_v50 = vmul.f32 1.442695, %v772_v18 }
 0x49a   :  { %v773_v54 = vsub.f32 %v9463_v55, %v757_v49  ;;  %v1617_v37 = vpop.f32.mrf.mxu1  ;;  %v859_v55 = vmul.f32 %v7489_v56, %v9434_v3  ;;  %v9570_v49 = vadd.f32 %v9486_v34, %v9120_v30 }
 0x49b   :  { %v9558_v14 = vadd.f32 %v1617_v37, %v9105_v39  ;;  %v9582_v37 = vadd.f32 %v1615_v4, %v9096_v43 }
 0x49c   :  { %v9560_v52 = vpop.eup %7492  ;;  %v804_v33 = vmul.f32 1.442695, %v773_v54 }
 0x49d   :  { %v7495_v16 = vpop.eup %7494  ;;  %832 = vadd.xlane.f32.xlu1 %v9555_v36  ;;  %830 = vadd.xlane.f32.xlu0 %v9560_v52 }
 0x49e   :  { %7496 = vpow2.f32 %v804_v33  ;;  %1657 = vmax.xlane.f32.xlu2 %v9558_v14  ;;  %v858_v32 = vmul.f32 %v7495_v16, %v9417_v21 }
 0x49f   :  { %7498 = vrcp.f32 %v821_v20 }
 0x4a0   :  { %v872_v51 = vpack.c.bf16 %v859_v55, %v858_v32  ;;  %7500 = vpow2.f32 %v802_v50  ;;  %v1317_v32 = vpop.f32.mrf.mxu3 }
 0x4a1   :  { %v823_v39 = vpop.xlane.xlu2 %822  ;;  %7502 = vrcp.f32 %v819_v27 }
 0x4a2   :  { %v1620_v9 = vpop.f32.mrf.mxu1 }
 0x4a4   :  { %v9572_v54 = vpop.eup %7496  ;;  %1235 = vmatmul.bf16.gmra.mxu2 %v872_v51  ;;  %v9606_v51 = vadd.f32 %v1317_v32, %v9164_v44 }
 0x4a5   :  { %836 = vadd.xlane.f32.xlu1 %v9572_v54  ;;  %1346 = vmax.xlane.f32.xlu0 %v9570_v49  ;;  %v7499_v56 = vpop.eup %7498 }
 0x4a6   :  { %1352 = vmax.xlane.f32.xlu2 %v9575_v11  ;;  %v9587_v20 = vpop.eup %7500 }
 0x4a7   :  { %v7503_v16 = vpop.eup %7502 }
 0x4a8   :  { %v860_v27 = vmul.f32 %v7503_v16, %v9452_v23  ;;  %v9603_v23 = vadd.f32 %v1620_v9, %v9111_v60 }
 0x4a9   :  { %v1341_v21 = vpop.xlane.xlu2 %1340 }
 0x4aa   :  { %v1372_v3 = vsub.f32 %v9478_v0, %v1341_v21  ;;  %v1622_v34 = vpop.f32.mrf.mxu1  ;;  %v861_v0 = vmul.f32 %v7499_v56, %v9465_v6 }
 0x4ab   :  { %v9585_v25 = vadd.f32 %v1622_v34, %v9120_v30  ;;  %v9595_v30 = vadd.f32 %v1312_v22, %v9141_v31  ;;  %v1320_v31 = vpop.f32.mrf.mxu3 }
 0x4ac   :  { %v1388_v33 = vmul.f32 1.442695, %v1372_v3  ;;  %v873_v4 = vpack.c.bf16 %v861_v0, %v860_v27  ;;  %v9611_v21 = vadd.f32 %v1320_v31, %v9175_v48 }
 0x4ad   :  { %1655 = vmax.xlane.f32.xlu1 %v9582_v37  ;;  %834 = vadd.xlane.f32.xlu0 %v9587_v20 }
 0x4ae   :  { %7504 = vpow2.f32 %v1388_v33  ;;  %1661 = vmax.xlane.f32.xlu2 %v9585_v25 }
 0x4b1   :  { %v1345_v18 = vpop.xlane.xlu2 %1344 }
 0x4b2   :  { %v1625_v43 = vpop.f32.mrf.mxu1  ;;  %v1374_v29 = vsub.f32 %v9489_v47, %v1345_v18 }
 0x4b3   :  { %v9620_v44 = vadd.f32 %v1625_v43, %v9129_v53 }
 0x4b4   :  { %v9597_v55 = vpop.eup %7504  ;;  %1240 = vmatmul.bf16.gmra.mxu2 %v873_v4  ;;  %v1392_v50 = vmul.f32 1.442695, %v1374_v29 }
 0x4b5   :  { %1420 = vadd.xlane.f32.xlu1 %v9597_v55  ;;  %1350 = vmax.xlane.f32.xlu0 %v9595_v30 }
 0x4b6   :  { %7506 = vpow2.f32 %v1392_v50 }
 0x4b7   :  { %7508 = vrcp.f32 %v823_v39 }
 0x4b9   :  { %v9638_v29 = vpop.xlane.xlu2 %1348 }
 0x4ba   :  { %v1627_v6 = vpop.f32.mrf.mxu1 }
 0x4bc   :  { %v9613_v3 = vpop.eup %7506 }
 0x4bd   :  { %1659 = vmax.xlane.f32.xlu1 %v9603_v23  ;;  %1354 = vmax.xlane.f32.xlu0 %v9606_v51  ;;  %v7509_v16 = vpop.eup %7508 }
 0x4be   :  { %v862_v27 = vmul.f32 %v7509_v16, %v9474_v15 }
 0x4c2   :  { %v1630_v22 = vpop.f32.mrf.mxu1 }
 0x4c3   :  { %v9624_v9 = vadd.f32 %v1630_v22, %v9152_v10 }
 0x4c5   :  { %1356 = vmax.xlane.f32.xlu1 %v9611_v21  ;;  %1424 = vadd.xlane.f32.xlu0 %v9613_v3 }
 0x4ca   :  { %v9617_v60 = vpop.f32.mrf.mxu1 }
 0x4cd   :  { %1663 = vmax.xlane.f32.xlu1 %v9620_v44 }
 0x4d2   :  { %v1635_v47 = vpop.f32.mrf.mxu1 }
 0x4d3   :  { %v9627_v34 = vadd.f32 %v1635_v47, %v9175_v48 }
 0x4d5   :  { %1667 = vmax.xlane.f32.xlu1 %v9624_v9  ;;  %1671 = vmax.xlane.f32.xlu0 %v9627_v34 }
 0x4da   :  { %v1637_v56 = vpop.f32.mrf.mxu1 }
 0x4db   :  { %v9632_v33 = vadd.f32 %v1637_v56, %v9211_v42 }
 0x4dd   :  { %1673 = vmax.xlane.f32.xlu1 %v9632_v33 }
 0x4f6   :  { %v825_v53 = vpop.xlane.xlu0 %824 }
 0x4f7   :  { %7510 = vrcp.f32 %v825_v53 }
 0x4fd   :  { %v7511_v0 = vpop.eup %7510 }
 0x4fe   :  { %v827_v10 = vpop.xlane.xlu0 %826  ;;  %v863_v48 = vmul.f32 %v7511_v0, %v9528_v38  ;;  %v1322_v0 = vpop.f32.mrf.mxu3 }
 0x4ff   :  { %7512 = vrcp.f32 %v827_v10 }
 0x500   :  { %v874_v43 = vpack.c.bf16 %v863_v48, %v862_v27 }
 0x502   :  { %1245 = vmatmul.bf16.gmra.mxu2 %v874_v43 }
 0x505   :  { %v7513_v50 = vpop.eup %7512 }
 0x506   :  { %v1343_v4 = vpop.xlane.xlu0 %1342  ;;  %v864_v15 = vmul.f32 %v7513_v50, %v9536_v59  ;;  %v8036_v59 = vld [vmem:[%s13504_s1 + $0x28] sm:$0xff]  ;;  %v9656_v50 = vpop.f32.mrf.mxu3 }
 0x507   :  { %v1373_v18 = vsub.f32 %v9547_v17, %v1343_v4 }
 0x508   :  { %v829_v32 = vpop.xlane.xlu1 %828 }
 0x509   :  { %7514 = vrcp.f32 %v829_v32  ;;  %v1390_v39 = vmul.f32 1.442695, %v1373_v18 }
 0x50b   :  { %7516 = vpow2.f32 %v1390_v39  ;;  %v1640_v39 = vpop.f32.mrf.mxu1 }
 0x50f   :  { %v7515_v31 = vpop.eup %7514 }
 0x510   :  { %v833_v22 = vpop.xlane.xlu1 %832  ;;  %v831_v47 = vpop.xlane.xlu0 %830  ;;  %v865_v38 = vmul.f32 %v7515_v31, %v9551_v1  ;;  %v9649_v1 = vadd.f32 %v8036_v59, %v1627_v6 }
 0x511   :  { %v9642_v56 = vpop.eup %7516  ;;  %v1658_v53 = vpop.xlane.xlu2 %1657  ;;  %7518 = vrcp.f32 %v833_v22 }
 0x512   :  { %v1688_v16 = vsub.f32 %v9558_v14, %v1658_v53  ;;  %v875_v17 = vpack.c.bf16 %v865_v38, %v864_v15  ;;  %1422 = vadd.xlane.f32.xlu2 %v9642_v56  ;;  %7520 = vrcp.f32 %v831_v47  ;;  %v9663_v47 = vadd.f32 %v1322_v0, %v9211_v42  ;;  %v8037_v42 = vld [vmem:[%s13504_s1 + $0x38] sm:$0xff] }
 0x514   :  { %v1705_v10 = vmul.f32 1.442695, %v1688_v16  ;;  %1250 = vmatmul.bf16.gmra.mxu2 %v875_v17 }
 0x516   :  { %7522 = vpow2.f32 %v1705_v10 }
 0x517   :  { %v7519_v14 = vpop.eup %7518 }
 0x518   :  { %v837_v27 = vpop.xlane.xlu1 %836  ;;  %v1347_v48 = vpop.xlane.xlu0 %1346  ;;  %v867_v6 = vmul.f32 %v7519_v14, %v9555_v36 }
 0x519   :  { %v1375_v43 = vsub.f32 %v9570_v49, %v1347_v48  ;;  %v7521_v4 = vpop.eup %7520  ;;  %v9660_v22 = vpop.xlane.xlu2 %1352 }
 0x51a   :  { %1665 = vmax.xlane.f32.xlu2 %v9649_v1  ;;  %v866_v31 = vmul.f32 %v7521_v4, %v9560_v52  ;;  %v1642_v36 = vpop.f32.mrf.mxu1  ;;  %v1327_v52 = vpop.f32.mrf.mxu3 }
 0x51b   :  { %v1394_v18 = vmul.f32 1.442695, %v1375_v43  ;;  %v9682_v43 = vadd.f32 %v1327_v52, %v9236_v8 }
 0x51c   :  { %v9653_v32 = vpop.eup %7522  ;;  %v876_v53 = vpack.c.bf16 %v867_v6, %v866_v31 }
 0x51d   :  { %7524 = vpow2.f32 %v1394_v18  ;;  %1737 = vadd.xlane.f32.xlu1 %v9653_v32 }
 0x520   :  { %v1656_v49 = vpop.xlane.xlu1 %1655  ;;  %v835_v38 = vpop.xlane.xlu0 %834 }
 0x521   :  { %v1687_v15 = vsub.f32 %v9582_v37, %v1656_v49  ;;  %7526 = vrcp.f32 %v835_v38  ;;  %v9676_v37 = vadd.f32 %v8037_v42, %v9617_v60  ;;  %v1662_v0 = vpop.xlane.xlu2 %1661  ;;  %v8038_v60 = vld [vmem:[%s13504_s1 + $0x50] sm:$0xff] }
 0x522   :  { %1358 = vmax.xlane.f32.xlu2 %v9663_v47  ;;  %v9691_v18 = vadd.f32 %v8038_v60, %v1640_v39  ;;  %v1645_v31 = vpop.f32.mrf.mxu1  ;;  %v9704_v39 = vld [vmem:[%s13504_s1 + $0x60] sm:$0xff] }
 0x523   :  { %v9667_v16 = vpop.eup %7524  ;;  %v1703_v17 = vmul.f32 1.442695, %v1687_v15  ;;  %v8039_v15 = vld [vmem:[%s13504_s1 + $0x58] sm:$0xff] }
 0x524   :  { %1255 = vmatmul.bf16.gmra.mxu2 %v876_v53  ;;  %v9698_v38 = vadd.f32 %v8039_v15, %v1642_v36  ;;  %v9707_v53 = vadd.f32 %v9704_v39, %v1645_v31 }
 0x525   :  { %7528 = vpow2.f32 %v1703_v17  ;;  %1426 = vadd.xlane.f32.xlu1 %v9667_v16 }
 0x526   :  { %7530 = vrcp.f32 %v837_v27  ;;  %v1690_v27 = vsub.f32 %v9585_v25, %v1662_v0 }
 0x527   :  { %v7527_v48 = vpop.eup %7526 }
 0x528   :  { %v9670_v10 = vpop.xlane.xlu1 %1420  ;;  %v868_v4 = vmul.f32 %v7527_v48, %v9587_v20  ;;  %v1709_v6 = vmul.f32 1.442695, %v1690_v27  ;;  %v1351_v52 = vpop.xlane.xlu0 %1350 }
 0x529   :  { %v1377_v48 = vsub.f32 %v9595_v30, %v1351_v52  ;;  %v9728_v30 = vpop.f32.mrf.mxu3 }
 0x52a   :  { %1669 = vmax.xlane.f32.xlu2 %v9676_v37  ;;  %7532 = vpow2.f32 %v1709_v6  ;;  %v1378_v6 = vsub.f32 %v9575_v11, %v9660_v22  ;;  %v8041_v11 = vld [vmem:[%s13504_s1 + $0x68] sm:$0xff] }
 0x52b   :  { %v9679_v59 = vpop.eup %7528  ;;  %v1398_v27 = vmul.f32 1.442695, %v1377_v48 }
 0x52c   :  { %1735 = vadd.xlane.f32.xlu0 %v9679_v59  ;;  %v7531_v14 = vpop.eup %7530 }
 0x52d   :  { %1362 = vmax.xlane.f32.xlu1 %v9682_v43  ;;  %v869_v8 = vmul.f32 %v7531_v14, %v9572_v54 }
 0x52f   :  { %v877_v20 = vpack.c.bf16 %v869_v8, %v868_v4 }
 0x530   :  { %v1660_v49 = vpop.xlane.xlu1 %1659  ;;  %v9713_v42 = vpop.eup %7532 }
 0x531   :  { %v1689_v25 = vsub.f32 %v9603_v23, %v1660_v49  ;;  %v1376_v23 = vsub.f32 %v9495_v5, %v9638_v29  ;;  %v9722_v29 = vadd.f32 %v8038_v60, %v9656_v50  ;;  %v1400_v49 = vmul.f32 1.442695, %v1378_v6 }
 0x532   :  { %1675 = vmax.xlane.f32.xlu2 %v9691_v18 }
 0x533   :  { %v1707_v54 = vmul.f32 1.442695, %v1689_v25  ;;  %v1396_v36 = vmul.f32 1.442695, %v1376_v23  ;;  %v1332_v25 = vpop.f32.mrf.mxu3 }
 0x534   :  { %1677 = vmax.xlane.f32.xlu0 %v9698_v38  ;;  %1260 = vmatmul.bf16.gmra.mxu2 %v877_v20  ;;  %v9742_v22 = vadd.f32 %v8041_v11, %v1332_v25 }
 0x535   :  { %7534 = vpow2.f32 %v1707_v54  ;;  %1679 = vmax.xlane.f32.xlu1 %v9707_v53  ;;  %v1647_v54 = vpop.f32.mrf.mxu1 }
 0x536   :  { %7536 = vpow2.f32 %v1396_v36 }
 0x537   :  { %7538 = vpow2.f32 %v1398_v27  ;;  %v9755_v27 = vld [vmem:[%s13504_s1 + $0x70] sm:$0xff] }
 0x538   :  { %v1357_v17 = vpop.xlane.xlu1 %1356 }
 0x53b   :  { %v9715_v0 = vpop.eup %7534 }
 0x53c   :  { %1741 = vadd.xlane.f32.xlu0 %v9713_v42  ;;  %1739 = vadd.xlane.f32.xlu2 %v9715_v0  ;;  %v9724_v4 = vpop.eup %7536 }
 0x53d   :  { %v9732_v8 = vpop.eup %7538  ;;  %v1650_v52 = vpop.f32.mrf.mxu1 }
 0x540   :  { %v1664_v14 = vpop.xlane.xlu1 %1663 }
 0x541   :  { %v1691_v5 = vsub.f32 %v9620_v44, %v1664_v14  ;;  %v9758_v14 = vadd.f32 %v9755_v27, %v1650_v52 }
 0x543   :  { %v1711_v31 = vmul.f32 1.442695, %v1691_v5  ;;  %v1380_v5 = vsub.f32 %v9611_v21, %v1357_v17 }
 0x544   :  { %1360 = vmax.xlane.f32.xlu0 %v9722_v29  ;;  %1428 = vadd.xlane.f32.xlu2 %v9724_v4 }
 0x545   :  { %7540 = vpow2.f32 %v1711_v31  ;;  %v1404_v31 = vmul.f32 1.442695, %v1380_v5 }
 0x546   :  { %7542 = vpow2.f32 %v1400_v49  ;;  %v1355_v49 = vpop.xlane.xlu0 %1354 }
 0x548   :  { %v1668_v44 = vpop.xlane.xlu1 %1667 }
 0x549   :  { %v1693_v60 = vsub.f32 %v9624_v9, %v1668_v44 }
 0x54b   :  { %v9734_v50 = vpop.eup %7540  ;;  %v1715_v15 = vmul.f32 1.442695, %v1693_v60 }
 0x54c   :  { %1743 = vadd.xlane.f32.xlu1 %v9734_v50  ;;  %1430 = vadd.xlane.f32.xlu0 %v9732_v8  ;;  %v9744_v20 = vpop.eup %7542 }
 0x54d   :  { %7544 = vpow2.f32 %v1715_v15 }
 0x550   :  { %v1674_v23 = vpop.xlane.xlu1 %1673 }
 0x551   :  { %v1696_v9 = vsub.f32 %v9632_v33, %v1674_v23 }
 0x553   :  { %v9748_v36 = vpop.eup %7544  ;;  %v1721_v48 = vmul.f32 1.442695, %v1696_v9  ;;  %v1425_v9 = vpop.xlane.xlu0 %1424 }
 0x554   :  { %1432 = vadd.xlane.f32.xlu1 %v9744_v20  ;;  %1366 = vmax.xlane.f32.xlu0 %v9742_v22 }
 0x555   :  { %7546 = vpow2.f32 %v1721_v48 }
 0x556   :  { %7548 = vpow2.f32 %v1404_v31  ;;  %v9772_v31 = vpop.f32.mrf.mxu2 }
 0x557   :  { %7550 = vrcp.f32 %v9670_v10 }
 0x55b   :  { %v9762_v6 = vpop.eup %7546 }
 0x55c   :  { %1747 = vadd.xlane.f32.xlu0 %v9748_v36  ;;  %v9765_v33 = vpop.eup %7548 }
 0x55d   :  { %v7551_v60 = vpop.eup %7550 }
 0x55e   :  { %v1468_v21 = vmul.f32 %v7551_v60, %v9597_v55 }
 0x564   :  { %1683 = vmax.xlane.f32.xlu0 %v9758_v14 }
 0x56c   :  { %1753 = vadd.xlane.f32.xlu0 %v9762_v6 }
 0x574   :  { %1436 = vadd.xlane.f32.xlu0 %v9765_v33 }
 0x585   :  { %v1423_v44 = vpop.xlane.xlu2 %1422 }
 0x586   :  { %7552 = vrcp.f32 %v1423_v44  ;;  %v1672_v44 = vpop.xlane.xlu0 %1671 }
 0x58c   :  { %v7553_v25 = vpop.eup %7552 }
 0x58d   :  { %v1469_v17 = vmul.f32 %v7553_v25, %v9642_v56  ;;  %v1666_v15 = vpop.xlane.xlu2 %1665  ;;  %v9779_v56 = vpop.f32.mrf.mxu2 }
 0x58e   :  { %v1692_v23 = vsub.f32 %v9649_v1, %v1666_v15  ;;  %v9782_v15 = vadd.f32 %v8041_v11, %v1647_v54 }
 0x58f   :  { %v1484_v52 = vpack.c.bf16 %v1469_v17, %v1468_v21 }
 0x590   :  { %v1713_v48 = vmul.f32 1.442695, %v1692_v23  ;;  %v1738_v5 = vpop.xlane.xlu1 %1737 }
 0x591   :  { %1524 = vmatmul.bf16.vlgmr.msra.gmra.mxu0 %v1484_v52 }
 0x592   :  { %7554 = vpow2.f32 %v1713_v48 }
 0x593   :  { %7556 = vrcp.f32 %v1425_v9 }
 0x595   :  { %v9774_v10 = vpop.xlane.xlu2 %1358 }
 0x598   :  { %v9776_v40 = vpop.eup %7554  ;;  %v1427_v55 = vpop.xlane.xlu1 %1426 }
 0x599   :  { %7558 = vrcp.f32 %v1427_v55  ;;  %1745 = vadd.xlane.f32.xlu2 %v9776_v40  ;;  %v7557_v1 = vpop.eup %7556  ;;  %v1379_v55 = vsub.f32 %v9606_v51, %v1355_v49 }
 0x59a   :  { %7560 = vrcp.f32 %v1738_v5  ;;  %v1470_v52 = vmul.f32 %v7557_v1, %v9613_v3 }
 0x59d   :  { %v1670_v60 = vpop.xlane.xlu2 %1669 }
 0x59e   :  { %v1694_v25 = vsub.f32 %v9676_v37, %v1670_v60  ;;  %v9790_v37 = vpop.f32.mrf.mxu2  ;;  %v1402_v60 = vmul.f32 1.442695, %v1379_v55 }
 0x59f   :  { %v7559_v21 = vpop.eup %7558  ;;  %v1736_v17 = vpop.xlane.xlu0 %1735 }
 0x5a0   :  { %v1717_v23 = vmul.f32 1.442695, %v1694_v25  ;;  %7562 = vrcp.f32 %v1736_v17  ;;  %v9784_v9 = vpop.xlane.xlu1 %1362  ;;  %v1471_v48 = vmul.f32 %v7559_v21, %v9667_v16  ;;  %v7561_v45 = vpop.eup %7560  ;;  %v9794_v25 = vadd.f32 %v9704_v39, %v9728_v30 }
 0x5a1   :  { %1681 = vmax.xlane.f32.xlu2 %v9782_v15  ;;  %v1784_v3 = vmul.f32 %v7561_v45, %v9653_v32  ;;  %v1652_v30 = vpop.f32.mrf.mxu1 }
 0x5a2   :  { %7564 = vpow2.f32 %v1717_v23  ;;  %v1485_v5 = vpack.c.bf16 %v1471_v48, %v1470_v52  ;;  %v1695_v23 = vsub.f32 %v9627_v34, %v1672_v44  ;;  %v1335_v44 = vpop.f32.mrf.mxu3 }
 0x5a3   :  { %7566 = vpow2.f32 %v1402_v60 }
 0x5a4   :  { %1529 = vmatmul.bf16.gmra.mxu0 %v1485_v5  ;;  %v1719_v32 = vmul.f32 1.442695, %v1695_v23 }
 0x5a5   :  { %v1676_v11 = vpop.xlane.xlu2 %1675 }
 0x5a6   :  { %v7563_v54 = vpop.eup %7562 }
 0x5a7   :  { %v1783_v16 = vmul.f32 %v7563_v54, %v9679_v59  ;;  %v1678_v1 = vpop.xlane.xlu0 %1677  ;;  %v9805_v59 = vpop.f32.mrf.mxu2  ;;  %v1381_v54 = vsub.f32 %v9663_v47, %v9774_v10 }
 0x5a8   :  { %v9798_v21 = vpop.eup %7564  ;;  %v1698_v51 = vsub.f32 %v9698_v38, %v1678_v1  ;;  %v1680_v17 = vpop.xlane.xlu1 %1679  ;;  %v8043_v38 = vld [vmem:[%s13504_s1 + $0x78] sm:$0xff]  ;;  %v9822_v1 = vadd.f32 %v9755_v27, %v1335_v44 }
 0x5a9   :  { %v1799_v49 = vpack.c.bf16 %v1784_v3, %v1783_v16  ;;  %1364 = vmax.xlane.f32.xlu2 %v9794_v25  ;;  %1749 = vadd.xlane.f32.xlu1 %v9798_v21  ;;  %v1699_v45 = vsub.f32 %v9707_v53, %v1680_v17  ;;  %v9810_v48 = vadd.f32 %v8043_v38, %v1652_v30  ;;  %v9812_v55 = vpop.eup %7566  ;;  %v1406_v3 = vmul.f32 1.442695, %v1381_v54 }
 0x5aa   :  { %v1725_v39 = vmul.f32 1.442695, %v1698_v51  ;;  %v1697_v17 = vsub.f32 %v9691_v18, %v1676_v11 }
 0x5ab   :  { %1839 = vmatmul.bf16.vlgmr.msra.gmra.mxu2 %v1799_v49  ;;  %v1727_v5 = vmul.f32 1.442695, %v1699_v45 }
 0x5ac   :  { %7568 = vpow2.f32 %v1725_v39  ;;  %v1723_v45 = vmul.f32 1.442695, %v1697_v17 }
 0x5af   :  { %v1740_v52 = vpop.xlane.xlu2 %1739  ;;  %v1742_v34 = vpop.xlane.xlu0 %1741 }
 0x5b0   :  { %7570 = vrcp.f32 %v1740_v52  ;;  %v9829_v30 = vpop.f32.mrf.mxu2 }
 0x5b1   :  { %7572 = vrcp.f32 %v1742_v34  ;;  %1685 = vmax.xlane.f32.xlu1 %v9810_v48  ;;  %1434 = vadd.xlane.f32.xlu2 %v9812_v55 }
 0x5b2   :  { %v9816_v53 = vpop.eup %7568  ;;  %7574 = vpow2.f32 %v1719_v32 }
 0x5b3   :  { %1757 = vadd.xlane.f32.xlu0 %v9816_v53  ;;  %7576 = vpow2.f32 %v1727_v5 }
 0x5b4   :  { %7578 = vpow2.f32 %v1406_v3 }
 0x5b6   :  { %v7571_v60 = vpop.eup %7570 }
 0x5b7   :  { %v7573_v16 = vpop.eup %7572  ;;  %v1785_v51 = vmul.f32 %v7571_v60, %v9715_v0  ;;  %v1361_v23 = vpop.xlane.xlu0 %1360 }
 0x5b8   :  { %v9825_v49 = vpop.eup %7574  ;;  %v1786_v39 = vmul.f32 %v7573_v16, %v9713_v42  ;;  %v1382_v27 = vsub.f32 %v9722_v29, %v1361_v23  ;;  %v1337_v0 = vpop.f32.mrf.mxu3  ;;  %v1383_v29 = vsub.f32 %v9682_v43, %v9784_v9  ;;  %v7257_v43 = vld [vmem:[%s13505_s6 + $0x38] sm:$0xff] }
 0x5b9   :  { %1368 = vmax.xlane.f32.xlu1 %v9822_v1  ;;  %1751 = vadd.xlane.f32.xlu2 %v9825_v49  ;;  %v9833_v47 = vpop.eup %7576  ;;  %v1429_v18 = vpop.xlane.xlu2 %1428  ;;  %v9837_v42 = vadd.f32 %v8043_v38, %v1337_v0 }
 0x5ba   :  { %v1800_v10 = vpack.c.bf16 %v1786_v39, %v1785_v51  ;;  %v1408_v11 = vmul.f32 1.442695, %v1382_v27  ;;  %7580 = vrcp.f32 %v1429_v18  ;;  %v9839_v32 = vpop.eup %7578  ;;  %v9845_v5 = vpop.f32.mrf.mxu2  ;;  %v1410_v38 = vmul.f32 1.442695, %v1383_v29  ;;  %1972 = vmatpush.bf16.msra.mxu3 %v7257_v43  ;;  %v7254_v29 = vld [vmem:[%s13505_s6 + $0x20] sm:$0xff]  ;;  %v7251_v43 = vld [vmem:[%s13505_s6 + $0x8] sm:$0xff] }
 0x5bb   :  { %1759 = vadd.xlane.f32.xlu0 %v9833_v47  ;;  %7582 = vpow2.f32 %v1723_v45  ;;  %v7256_v45 = vld [vmem:[%s13505_s6 + $0x30] sm:$0xff] }
 0x5bc   :  { %1844 = vmatmul.bf16.gmra.mxu2 %v1800_v10 }
 0x5be   :  { %1973 = vmatpush.bf16.msra.mxu3 %v7256_v45 }
 0x5bf   :  { %v1431_v52 = vpop.xlane.xlu0 %1430 }
 0x5c0   :  { %7584 = vrcp.f32 %v1431_v52  ;;  %v7581_v34 = vpop.eup %7580 }
 0x5c1   :  { %1438 = vadd.xlane.f32.xlu1 %v9839_v32  ;;  %1370 = vmax.xlane.f32.xlu2 %v9837_v42  ;;  %7586 = vpow2.f32 %v1408_v11  ;;  %v9847_v44 = vpop.eup %7582  ;;  %v1472_v16 = vmul.f32 %v7581_v34, %v9724_v4  ;;  %v7255_v11 = vld [vmem:[%s13505_s6 + $0x28] sm:$0xff]  ;;  %v1744_v34 = vpop.xlane.xlu1 %1743 }
 0x5c2   :  { %7588 = vpow2.f32 %v1410_v38  ;;  %v9859_v39 = vpop.f32.mrf.mxu2  ;;  %1974 = vmatpush.bf16.msra.mxu3 %v7255_v11  ;;  %v7253_v38 = vld [vmem:[%s13505_s6 + $0x18] sm:$0xff] }
 0x5c6   :  { %v7585_v54 = vpop.eup %7584  ;;  %1975 = vmatpush.bf16.msra.mxu3 %v7254_v29 }
 0x5c7   :  { %v9849_v60 = vpop.eup %7586  ;;  %v1367_v3 = vpop.xlane.xlu0 %1366  ;;  %v1473_v51 = vmul.f32 %v7585_v54, %v9732_v8 }
 0x5c8   :  { %v1385_v17 = vsub.f32 %v9742_v22, %v1367_v3  ;;  %v9861_v4 = vpop.eup %7588 }
 0x5c9   :  { %1755 = vadd.xlane.f32.xlu2 %v9847_v44  ;;  %1440 = vadd.xlane.f32.xlu1 %v9849_v60  ;;  %v1486_v9 = vpack.c.bf16 %v1473_v51, %v1472_v16  ;;  %v7252_v16 = vld [vmem:[%s13505_s6 + $0x10] sm:$0xff] }
 0x5ca   :  { %v1414_v23 = vmul.f32 1.442695, %v1385_v17  ;;  %v9867_v22 = vpop.f32.mrf.mxu2  ;;  %1976 = vmatpush.bf16.msra.mxu3 %v7253_v38 }
 0x5cb   :  { %1534 = vmatmul.bf16.gmra.mxu0 %v1486_v9 }
 0x5cc   :  { %7590 = vpow2.f32 %v1414_v23  ;;  %v1433_v23 = vpop.xlane.xlu1 %1432 }
 0x5cd   :  { %7592 = vrcp.f32 %v1744_v34 }
 0x5ce   :  { %1977 = vmatpush.bf16.msra.mxu3 %v7252_v16  ;;  %v7250_v16 = vld [vmem:[%s13505_s6] sm:$0xff] }
 0x5cf   :  { %v1748_v3 = vpop.xlane.xlu0 %1747 }
 0x5d1   :  { %1442 = vadd.xlane.f32.xlu2 %v9861_v4 }
 0x5d2   :  { %v9864_v8 = vpop.eup %7590  ;;  %v9869_v27 = vpop.f32.mrf.mxu2  ;;  %1978 = vmatpush.bf16.msra.mxu3 %v7251_v43 }
 0x5d3   :  { %1446 = vadd.xlane.f32.xlu0 %v9864_v8  ;;  %v7593_v51 = vpop.eup %7592 }
 0x5d4   :  { %v1787_v11 = vmul.f32 %v7593_v51, %v9734_v50 }
 0x5d6   :  { %1979 = vmatpush.bf16.msra.mxu3 %v7250_v16 }
 0x5da   :  { %v9871_v10 = vpop.f32.mrf.mxu2 }
 0x5e2   :  { %v9873_v0 = vpop.f32.mrf.mxu2 }
 0x5ea   :  { %v9878_v18 = vpop.f32.mrf.mxu2 }
 0x5f2   :  { %v9883_v52 = vpop.f32.mrf.mxu2 }
 0x5fa   :  { %v9894_v17 = vpop.f32.mrf.mxu2 }
 0x5fb   :  { %13791 = vst [vmem:[#allocation39_spill] sm:$0xff] %v9894_v17 }
 0x602   :  { %v9906_v17 = vpop.f32.mrf.mxu2 }
 0x60c   :  { %v1746_v54 = vpop.xlane.xlu2 %1745 }
 0x60d   :  { %7594 = vrcp.f32 %v1746_v54  ;;  %v1684_v54 = vpop.xlane.xlu0 %1683 }
 0x60e   :  { %v1701_v41 = vsub.f32 %v9758_v14, %v1684_v54 }
 0x610   :  { %v1731_v51 = vmul.f32 1.442695, %v1701_v41  ;;  %v9915_v41 = vpop.f32.mrf.mxu2 }
 0x613   :  { %v7595_v9 = vpop.eup %7594 }
 0x614   :  { %v1682_v45 = vpop.xlane.xlu2 %1681  ;;  %v1788_v29 = vmul.f32 %v7595_v9, %v9776_v40 }
 0x615   :  { %v1700_v34 = vsub.f32 %v9782_v15, %v1682_v45 }
 0x616   :  { %v1801_v38 = vpack.c.bf16 %v1788_v29, %v1787_v11 }
 0x617   :  { %v1729_v46 = vmul.f32 1.442695, %v1700_v34  ;;  %v1525_v34 = vpop.f32.mrf.mxu0 }
 0x618   :  { %1849 = vmatmul.bf16.gmra.mxu2 %v1801_v38  ;;  %v1754_v38 = vpop.xlane.xlu0 %1753 }
 0x619   :  { %7596 = vpow2.f32 %v1729_v46 }
 0x61a   :  { %7598 = vrcp.f32 %v1748_v3 }
 0x61c   :  { %v1365_v50 = vpop.xlane.xlu2 %1364  ;;  %v1750_v40 = vpop.xlane.xlu1 %1749 }
 0x61d   :  { %v1384_v15 = vsub.f32 %v9794_v25, %v1365_v50  ;;  %7600 = vrcp.f32 %v1750_v40 }
 0x61f   :  { %v9909_v43 = vpop.eup %7596  ;;  %v1412_v9 = vmul.f32 1.442695, %v1384_v15 }
 0x620   :  { %1761 = vadd.xlane.f32.xlu1 %v9909_v43  ;;  %v7599_v45 = vpop.eup %7598 }
 0x621   :  { %7602 = vpow2.f32 %v1412_v9  ;;  %v1789_v3 = vmul.f32 %v7599_v45, %v9748_v36 }
 0x622   :  { %7604 = vpow2.f32 %v1731_v51 }
 0x623   :  { %v7601_v46 = vpop.eup %7600  ;;  %7606 = vrcp.f32 %v1433_v23 }
 0x624   :  { %v1686_v14 = vpop.xlane.xlu1 %1685  ;;  %v1435_v11 = vpop.xlane.xlu2 %1434  ;;  %v1790_v29 = vmul.f32 %v7601_v46, %v9798_v21 }
 0x625   :  { %v1702_v25 = vsub.f32 %v9810_v48, %v1686_v14  ;;  %7608 = vrcp.f32 %v1435_v11  ;;  %v1527_v11 = vpop.f32.mrf.mxu0 }
 0x626   :  { %v1802_v54 = vpack.c.bf16 %v1790_v29, %v1789_v3  ;;  %v1437_v29 = vpop.xlane.xlu0 %1436 }
 0x627   :  { %v9917_v16 = vpop.eup %7602  ;;  %v1733_v50 = vmul.f32 1.442695, %v1702_v25 }
 0x628   :  { %v9919_v40 = vpop.eup %7604  ;;  %1444 = vadd.xlane.f32.xlu2 %v9917_v16  ;;  %1854 = vmatmul.bf16.gmra.mxu2 %v1802_v54 }
 0x629   :  { %v7607_v23 = vpop.eup %7606  ;;  %7610 = vpow2.f32 %v1733_v50  ;;  %1763 = vadd.xlane.f32.xlu1 %v9919_v40 }
 0x62a   :  { %7612 = vrcp.f32 %v1754_v38  ;;  %v1474_v15 = vmul.f32 %v7607_v23, %v9744_v20  ;;  %v1227_v20 = vadd.f32 %v9772_v31, %v9406_v7 }
 0x62b   :  { %v7609_v36 = vpop.eup %7608 }
 0x62c   :  { %v1369_v21 = vpop.xlane.xlu1 %1368  ;;  %v1752_v48 = vpop.xlane.xlu2 %1751  ;;  %v1475_v51 = vmul.f32 %v7609_v36, %v9812_v55  ;;  %v1229_v55 = vadd.f32 %v9779_v56, %v9422_v58  ;;  %v1565_v36 = vadd.f32 %v1525_v34, %v1227_v20 }
 0x62d   :  { %v1386_v9 = vsub.f32 %v9822_v1, %v1369_v21  ;;  %7614 = vrcp.f32 %v1752_v48 }
 0x62e   :  { %v1840_v45 = vpop.f32.mrf.mxu2  ;;  %v1487_v46 = vpack.c.bf16 %v1475_v51, %v1474_v15  ;;  %v1566_v21 = vadd.f32 %v1527_v11, %v1229_v55  ;;  %v1758_v58 = vpop.xlane.xlu0 %1757 }
 0x62f   :  { %v9926_v14 = vpop.eup %7610  ;;  %v1416_v3 = vmul.f32 1.442695, %v1386_v9  ;;  %v1880_v7 = vadd.f32 %v1840_v45, %v1565_v36 }
 0x630   :  { %1765 = vadd.xlane.f32.xlu2 %v9926_v14  ;;  %1539 = vmatmul.bf16.gmra.mxu0 %v1487_v46  ;;  %v7613_v25 = vpop.eup %7612 }
 0x631   :  { %7616 = vpow2.f32 %v1416_v3  ;;  %v1792_v23 = vmul.f32 %v7613_v25, %v9762_v6 }
 0x632   :  { %7618 = vrcp.f32 %v1437_v29 }
 0x633   :  { %v7615_v38 = vpop.eup %7614 }
 0x634   :  { %v1439_v1 = vpop.xlane.xlu1 %1438  ;;  %v1371_v54 = vpop.xlane.xlu2 %1370  ;;  %v1791_v50 = vmul.f32 %v7615_v38, %v9825_v49 }
 0x635   :  { %7620 = vrcp.f32 %v1439_v1  ;;  %v1387_v48 = vsub.f32 %v9837_v42, %v1371_v54  ;;  %v1530_v49 = vpop.f32.mrf.mxu0  ;;  %v1232_v54 = vadd.f32 %v9790_v37, %v9442_v62 }
 0x636   :  { %v1842_v15 = vpop.f32.mrf.mxu2  ;;  %v1803_v51 = vpack.c.bf16 %v1792_v23, %v1791_v50 }
 0x637   :  { %v9936_v9 = vpop.eup %7616  ;;  %v1418_v31 = vmul.f32 1.442695, %v1387_v48  ;;  %v1881_v46 = vadd.f32 %v1842_v15, %v1566_v21  ;;  %v1567_v36 = vadd.f32 %v1530_v49, %v1232_v54 }
 0x638   :  { %1448 = vadd.xlane.f32.xlu0 %v9936_v9  ;;  %1859 = vmatmul.bf16.gmra.mxu2 %v1803_v51  ;;  %v7619_v56 = vpop.eup %7618 }
 0x639   :  { %7622 = vpow2.f32 %v1418_v31  ;;  %v1896_v6 = vpack.c.bf16 %v1881_v46, %v1880_v7  ;;  %v1476_v42 = vmul.f32 %v7619_v56, %v9765_v33  ;;  %v1234_v33 = vadd.f32 %v9805_v59, %v9458_v24  ;;  %v1760_v59 = vpop.xlane.xlu0 %1759 }
 0x63a   :  { %7624 = vrcp.f32 %v1758_v58 }
 0x63b   :  { %v7621_v34 = vpop.eup %7620  ;;  %1980 = vmatmul.bf16.vlgmr.msra.gmra.mxu3 %v1896_v6 }
 0x63c   :  { %v1756_v11 = vpop.xlane.xlu2 %1755  ;;  %v1477_v3 = vmul.f32 %v7621_v34, %v9839_v32  ;;  %v1441_v38 = vpop.xlane.xlu1 %1440 }
 0x63d   :  { %7626 = vrcp.f32 %v1756_v11  ;;  %v1532_v1 = vpop.f32.mrf.mxu0 }
 0x63e   :  { %v1488_v45 = vpack.c.bf16 %v1477_v3, %v1476_v42  ;;  %7628 = vrcp.f32 %v1441_v38  ;;  %v1568_v21 = vadd.f32 %v1532_v1, %v1234_v33  ;;  %v1237_v38 = vadd.f32 %v9829_v30, %v9472_v13 }
 0x63f   :  { %v9941_v29 = vpop.eup %7622  ;;  %v1845_v25 = vpop.f32.mrf.mxu2 }
 0x640   :  { %1450 = vadd.xlane.f32.xlu1 %v9941_v29  ;;  %1544 = vmatmul.bf16.gmra.mxu0 %v1488_v45  ;;  %v7625_v20 = vpop.eup %7624  ;;  %v1882_v51 = vadd.f32 %v1845_v25, %v1567_v36 }
 0x641   :  { %v1794_v23 = vmul.f32 %v7625_v20, %v9816_v53  ;;  %v1239_v20 = vadd.f32 %v9845_v5, %v9480_v35 }
 0x643   :  { %v7627_v55 = vpop.eup %7626 }
 0x644   :  { %v1443_v32 = vpop.xlane.xlu2 %1442  ;;  %v1793_v50 = vmul.f32 %v7627_v55, %v9847_v44  ;;  %v7629_v31 = vpop.eup %7628 }
 0x645   :  { %7630 = vrcp.f32 %v1443_v32  ;;  %v1478_v62 = vmul.f32 %v7629_v31, %v9849_v60 }
 0x646   :  { %v1804_v48 = vpack.c.bf16 %v1794_v23, %v1793_v50  ;;  %7632 = vrcp.f32 %v1760_v59  ;;  %v1447_v56 = vpop.xlane.xlu0 %1446 }
 0x647   :  { %v1847_v15 = vpop.f32.mrf.mxu2 }
 0x648   :  { %v1883_v7 = vadd.f32 %v1847_v15, %v1568_v21  ;;  %1864 = vmatmul.bf16.gmra.mxu2 %v1804_v48  ;;  %v1535_v44 = vpop.f32.mrf.mxu0 }
 0x649   :  { %v1569_v1 = vadd.f32 %v1535_v44, %v1237_v38 }
 0x64a   :  { %v1897_v46 = vpack.c.bf16 %v1883_v7, %v1882_v51 }
 0x64b   :  { %v7631_v58 = vpop.eup %7630 }
 0x64c   :  { %1985 = vmatmul.bf16.gmra.mxu3 %v1897_v46  ;;  %v1479_v24 = vmul.f32 %v7631_v58, %v9861_v4  ;;  %v7633_v49 = vpop.eup %7632  ;;  %v1244_v46 = vadd.f32 %v9867_v22, %v9501_v61 }
 0x64d   :  { %v1795_v42 = vmul.f32 %v7633_v49, %v9833_v47 }
 0x64e   :  { %v1489_v37 = vpack.c.bf16 %v1479_v24, %v1478_v62 }
 0x650   :  { %1549 = vmatmul.bf16.gmra.mxu0 %v1489_v37  ;;  %v1537_v4 = vpop.f32.mrf.mxu0 }
 0x651   :  { %v1570_v54 = vadd.f32 %v1537_v4, %v1239_v20 }
 0x693   :  { %v1762_v53 = vpop.xlane.xlu1 %1761 }
 0x694   :  { %7634 = vrcp.f32 %v1762_v53 }
 0x695   :  { %7636 = vrcp.f32 %v1447_v56 }
 0x69a   :  { %v7635_v6 = vpop.eup %7634 }
 0x69b   :  { %v1445_v34 = vpop.xlane.xlu2 %1444  ;;  %v1850_v11 = vpop.f32.mrf.mxu2  ;;  %v1796_v3 = vmul.f32 %v7635_v6, %v9909_v43 }
 0x69c   :  { %7638 = vrcp.f32 %v1445_v34  ;;  %v1764_v45 = vpop.xlane.xlu1 %1763  ;;  %v7637_v25 = vpop.eup %7636  ;;  %v1884_v50 = vadd.f32 %v1850_v11, %v1569_v1  ;;  %v13792_v34 = vld [vmem:[#allocation6_spill] sm:$0xff] }
 0x69d   :  { %v1805_v60 = vpack.c.bf16 %v1796_v3, %v1795_v42  ;;  %7640 = vrcp.f32 %v1764_v45  ;;  %v1481_v32 = vmul.f32 %v7637_v25, %v9864_v8  ;;  %v1242_v8 = vadd.f32 %v9859_v39, %v9492_v63  ;;  %v9969_v63 = vld [vmem:[%s13506_s7] ss:$0 sm:$0xff] }
 0x69e   :  { %v1247_v42 = vadd.f32 %v9869_v27, %v9503_v57 }
 0x69f   :  { %1869 = vmatmul.bf16.gmra.mxu2 %v1805_v60 }
 0x6a2   :  { %v7639_v55 = vpop.eup %7638 }
 0x6a3   :  { %v1766_v33 = vpop.xlane.xlu2 %1765  ;;  %v1852_v47 = vpop.f32.mrf.mxu2  ;;  %v1480_v43 = vmul.f32 %v7639_v55, %v9917_v16  ;;  %v13793_v55 = vld [vmem:[#allocation9_spill] sm:$0xff] }
 0x6a4   :  { %7642 = vrcp.f32 %v1766_v33  ;;  %v1885_v23 = vadd.f32 %v1852_v47, %v1570_v54  ;;  %v7641_v13 = vpop.eup %7640  ;;  %v13794_v47 = vld [vmem:[#allocation5_spill] sm:$0xff] }
 0x6a5   :  { %v1490_v36 = vpack.c.bf16 %v1481_v32, %v1480_v43  ;;  %v1797_v5 = vmul.f32 %v7641_v13, %v9919_v40  ;;  %v1254_v32 = vadd.f32 %v9878_v18, %v9515_v26 }
 0x6a6   :  { %v1898_v21 = vpack.c.bf16 %v1885_v23, %v1884_v50 }
 0x6a7   :  { %1554 = vmatmul.bf16.gmra.mxu0 %v1490_v36 }
 0x6a8   :  { %1990 = vmatmul.bf16.gmra.mxu3 %v1898_v21 }
 0x6aa   :  { %v7643_v30 = vpop.eup %7642 }
 0x6ab   :  { %v1855_v35 = vpop.f32.mrf.mxu2  ;;  %v1798_v48 = vmul.f32 %v7643_v30, %v9926_v14  ;;  %v1449_v7 = vpop.xlane.xlu0 %1448 }
 0x6ac   :  { %7644 = vrcp.f32 %v1449_v7 }
 0x6ad   :  { %v1540_v15 = vpop.f32.mrf.mxu0  ;;  %v1806_v51 = vpack.c.bf16 %v1798_v48, %v1797_v5  ;;  %v13795_v48 = vld [vmem:[#allocation8_spill] sm:$0xff] }
 0x6ae   :  { %v1571_v58 = vadd.f32 %v1540_v15, %v1242_v8 }
 0x6af   :  { %1874 = vmatmul.bf16.gmra.mxu2 %v1806_v51 }
 0x6b0   :  { %v1886_v37 = vadd.f32 %v1855_v35, %v1571_v58 }
 0x6b2   :  { %v7645_v40 = vpop.eup %7644 }
 0x6b3   :  { %v1857_v16 = vpop.f32.mrf.mxu2  ;;  %v1451_v31 = vpop.xlane.xlu1 %1450  ;;  %v1482_v39 = vmul.f32 %v7645_v40, %v9936_v9  ;;  %v1249_v9 = vadd.f32 %v9871_v10, %v9508_v28  ;;  %v1252_v10 = vadd.f32 %v9873_v0, %v9510_v12  ;;  %v8070_v0 = vmov 128.0  }
 0x6b4   :  { %7646 = vrcp.f32 %v1451_v31  ;;  %v13796_v31 = vld [vmem:[#allocation39_spill] sm:$0xff] }
 0x6b5   :  { %v1542_v62 = vpop.f32.mrf.mxu0  ;;  %7648 = vrcp.f32 %v8070_v0 }
 0x6b6   :  { %v1572_v24 = vadd.f32 %v1542_v62, %v1244_v46  ;;  %v1259_v46 = vadd.f32 %v13796_v31, %v9523_v2 }
 0x6b8   :  { %v1887_v14 = vadd.f32 %v1857_v16, %v1572_v24  ;;  %v1257_v16 = vadd.f32 %v9883_v52, %v9517_v19 }
 0x6ba   :  { %v7647_v59 = vpop.eup %7646  ;;  %v1899_v53 = vpack.c.bf16 %v1887_v14, %v1886_v37 }
 0x6bb   :  { %v1860_v44 = vpop.f32.mrf.mxu2  ;;  %v1483_v56 = vmul.f32 %v7647_v59, %v9941_v29  ;;  %v7649_v26 = vpop.eup %7648 }
 0x6bc   :  { %1995 = vmatmul.bf16.gmra.mxu3 %v1899_v53  ;;  %v2072_v7 = vmul.f32 128.0, %v7649_v26  ;;  %v13797_v53 = vld [vmem:[#allocation2_spill] sm:$0xff]  ;;  %vm2076_vm8 = vweird.f32 %v7649_v26 }
 0x6bd   :  { %v1545_v61 = vpop.f32.mrf.mxu0  ;;  %v1491_v22 = vpack.c.bf16 %v1483_v56, %v1482_v39 }
 0x6be   :  { %v1981_v49 = vpop.f32.mrf.mxu3  ;;  %v1573_v29 = vadd.f32 %v1545_v61, %v1247_v42  ;;  %v2073_v8 = vsub.f32 1.0, %v2072_v7 }
 0x6bf   :  { %v1982_v6 = vadd.f32 %v9969_v63, %v1981_v49  ;;  %1559 = vmatmul.bf16.gmra.mxu0 %v1491_v22  ;;  %v13799_v49 = vld [vmem:[#allocation3_spill] sm:$0xff] }
 0x6c0   :  { %v1888_v38 = vadd.f32 %v1860_v44, %v1573_v29  ;;  %v2074_v37 = vmul.f32 %v7649_v26, %v2073_v8 }
 0x6c1   :  { %v9975_v11 = vadd.f32 %v1982_v6, %v13792_v34 }
 0x6c2   :  { %v2075_v61 = vadd.f32 %v7649_v26, %v2074_v37  ;;  %v6764_v37 = vld [vmem:[%s13509_s10 + $0x70] sm:$0xf] }
 0x6c3   :  { %2039 = vadd.xlane.f32.xlu2 %v9975_v11  ;;  %v1862_v3 = vpop.f32.mrf.mxu2 }
 0x6c4   :  { %v10011_v22 = vsel %vm2076_vm8, %v7649_v26, %v2075_v61  ;;  %v6756_v61 = vld [vmem:[%s13509_s10 + $0x60] sm:$0xf] }
 0x6c5   :  { %v1547_v60 = vpop.f32.mrf.mxu0  ;;  %13798 = vst [vmem:[#allocation42_spill] sm:$0xff] %v10011_v22 }
 0x6c6   :  { %v1983_v4 = vpop.f32.mrf.mxu3  ;;  %v1574_v45 = vadd.f32 %v1547_v60, %v1249_v9 }
 0x6c7   :  { %v1984_v25 = vadd.f32 %v9969_v63, %v1983_v4 }
 0x6c8   :  { %v1889_v20 = vadd.f32 %v1862_v3, %v1574_v45 }
 0x6c9   :  { %v9984_v1 = vadd.f32 %v1984_v25, %v13793_v55 }
 0x6ca   :  { %v1900_v54 = vpack.c.bf16 %v1889_v20, %v1888_v38  ;;  %v13800_v20 = vld [vmem:[#allocation34_spill] sm:$0xff] }
 0x6cb   :  { %2041 = vadd.xlane.f32.xlu0 %v9984_v1  ;;  %v1865_v57 = vpop.f32.mrf.mxu2  ;;  %v1262_v55 = vadd.f32 %v9906_v17, %v13800_v20  ;;  %v7266_v20 = vld [vmem:[%s13509_s10 + $0x44] sm:$0xf] }
 0x6cc   :  { %2000 = vmatmul.bf16.gmra.mxu3 %v1900_v54 }
 0x6cd   :  { %v1550_v27 = vpop.f32.mrf.mxu0 }
 0x6ce   :  { %v1575_v50 = vadd.f32 %v1550_v27, %v1252_v10  ;;  %v13802_v27 = vld [vmem:[#allocation40_spill] sm:$0xff] }
 0x6cf   :  { %v1986_v33 = vpop.f32.mrf.mxu3 }
 0x6d0   :  { %v1987_v28 = vadd.f32 %v9969_v63, %v1986_v33  ;;  %v1890_v30 = vadd.f32 %v1865_v57, %v1575_v50  ;;  %v1264_v33 = vadd.f32 %v9915_v41, %v13802_v27  ;;  %v6742_v27 = vld [vmem:[%s13509_s10 + $0x48] sm:$0xf0] }
 0x6d2   :  { %v9991_v43 = vadd.f32 %v1987_v28, %v13794_v47 }
 0x6d3   :  { %v1867_v21 = vpop.f32.mrf.mxu2 }
 0x6d4   :  { %2043 = vadd.xlane.f32.xlu1 %v9991_v43 }
 0x6d5   :  { %v1552_v23 = vpop.f32.mrf.mxu0 }
 0x6d6   :  { %v1576_v36 = vadd.f32 %v1552_v23, %v1254_v32 }
 0x6d7   :  { %v1988_v13 = vpop.f32.mrf.mxu3 }
 0x6d8   :  { %v1989_v35 = vadd.f32 %v9969_v63, %v1988_v13  ;;  %v1891_v5 = vadd.f32 %v1867_v21, %v1576_v36 }
 0x6da   :  { %v9998_v15 = vadd.f32 %v1989_v35, %v13795_v48  ;;  %v1901_v12 = vpack.c.bf16 %v1891_v5, %v1890_v30  ;;  %v13803_v35 = vld [vmem:[#allocation11_spill] sm:$0xff] }
 0x6dc   :  { %2045 = vadd.xlane.f32.xlu2 %v9998_v15  ;;  %2005 = vmatmul.bf16.gmra.mxu3 %v1901_v12 }
 0x722   :  { %v1870_v18 = vpop.f32.mrf.mxu2 }
 0x724   :  { %v1555_v51 = vpop.f32.mrf.mxu0 }
 0x725   :  { %v1577_v58 = vadd.f32 %v1555_v51, %v1257_v16 }
 0x727   :  { %v1892_v39 = vadd.f32 %v1870_v18, %v1577_v58 }
 0x72a   :  { %v1872_v59 = vpop.f32.mrf.mxu2 }
 0x72b   :  { %v1991_v62 = vpop.f32.mrf.mxu3 }
 0x72c   :  { %v1992_v24 = vadd.f32 %v9969_v63, %v1991_v62  ;;  %v1557_v40 = vpop.f32.mrf.mxu0 }
 0x72d   :  { %v1578_v14 = vadd.f32 %v1557_v40, %v1259_v46  ;;  %v13805_v46 = vld [vmem:[#allocation14_spill] sm:$0xff] }
 0x72e   :  { %v10007_v44 = vadd.f32 %v1992_v24, %v13797_v53  ;;  %v13806_v24 = vld [vmem:[#allocation13_spill] sm:$0xff] }
 0x72f   :  { %v1893_v56 = vadd.f32 %v1872_v59, %v1578_v14  ;;  %v7273_v14 = vld [vmem:[%s13509_s10 + $0x74] sm:$0xf0]  ;;  %v7272_v59 = vld [vmem:[%s13509_s10 + $0x74] sm:$0xf] }
 0x730   :  { %2047 = vadd.xlane.f32.xlu0 %v10007_v44  ;;  %v6765_v53 = vor.u32 %v7273_v14, %v6764_v37 }
 0x731   :  { %v1902_v19 = vpack.c.bf16 %v1893_v56, %v1892_v39  ;;  %v6766_v39 = vld [vmem:[%s13509_s10 + $0x78] sm:$0xf0] }
 0x732   :  { %v1875_v29 = vpop.f32.mrf.mxu2  ;;  %v6769_v56 = vor.u32 %v7272_v59, %v6766_v39  ;;  %2514 = vmatpush.bf16.msrb.mxu0 %v6765_v53  ;;  %v6708_v53 = vld [vmem:[%s13509_s10] sm:$0xf]  ;;  %v7259_v39 = vld [vmem:[%s13509_s10 + $0x4] sm:$0xf0] }
 0x733   :  { %v1993_v52 = vpop.f32.mrf.mxu3  ;;  %2010 = vmatmul.bf16.gmra.mxu3 %v1902_v19  ;;  %v7271_v19 = vld [vmem:[%s13509_s10 + $0x64] sm:$0xf0] }
 0x734   :  { %v1994_v2 = vadd.f32 %v9969_v63, %v1993_v52  ;;  %2563 = vmatpush.bf16.msrb.mxu1 %v6769_v56  ;;  %v7270_v52 = vld [vmem:[%s13509_s10 + $0x64] sm:$0xf] }
 0x735   :  { %v7258_v56 = vld [vmem:[%s13509_s10 + $0x4] sm:$0xf] }
 0x736   :  { %v10014_v6 = vadd.f32 %v1994_v2, %v13799_v49  ;;  %v2040_v34 = vpop.xlane.xlu2 %2039  ;;  %v6757_v2 = vor.u32 %v7271_v19, %v6756_v61  ;;  %v6758_v49 = vld [vmem:[%s13509_s10 + $0x68] sm:$0xf0]  ;;  %v6709_v19 = vor.u32 %v7259_v39, %v6708_v53 }
 0x737   :  { %v2078_v42 = vmul.f32 %v10011_v22, %v2040_v34  ;;  %v6761_v34 = vor.u32 %v7270_v52, %v6758_v49  ;;  %v6710_v52 = vld [vmem:[%s13509_s10 + $0x8] sm:$0xf0] }
 0x738   :  { %2049 = vadd.xlane.f32.xlu1 %v10014_v6  ;;  %2515 = vmatpush.bf16.msrb.mxu0 %v6757_v2  ;;  %v6713_v2 = vor.u32 %v7258_v56, %v6710_v52 }
 0x739   :  { %v10019_v3 = vsub.f32 %v9975_v11, %v2078_v42  ;;  %v13801_v11 = vld [vmem:[#allocation12_spill] sm:$0xff]  ;;  %2564 = vmatpush.bf16.msrb.mxu1 %v6761_v34 }
 0x73a   :  { %v1877_v50 = vpop.f32.mrf.mxu2  ;;  %v6748_v42 = vld [vmem:[%s13509_s10 + $0x50] sm:$0xf] }
 0x73b   :  { %v2110_v9 = vmul.f32 %v10019_v3, %v10019_v3 }
 0x73c   :  { %v1560_v60 = vpop.f32.mrf.mxu0 }
 0x73d   :  { %2126 = vadd.xlane.f32.xlu2 %v2110_v9  ;;  %v1579_v28 = vadd.f32 %v1560_v60, %v1262_v55  ;;  %v7269_v9 = vld [vmem:[%s13509_s10 + $0x54] sm:$0xf0] }
 0x73e   :  { %v2042_v4 = vpop.xlane.xlu0 %2041  ;;  %v6749_v60 = vor.u32 %v7269_v9, %v6748_v42 }
 0x73f   :  { %v2079_v45 = vmul.f32 %v10011_v22, %v2042_v4  ;;  %v1996_v25 = vpop.f32.mrf.mxu3  ;;  %v1894_v17 = vadd.f32 %v1875_v29, %v1579_v28  ;;  %v7268_v29 = vld [vmem:[%s13509_s10 + $0x54] sm:$0xf]  ;;  %v6750_v4 = vld [vmem:[%s13509_s10 + $0x58] sm:$0xf0]  ;;  %v6745_v28 = vor.u32 %v7266_v20, %v6742_v27 }
 0x740   :  { %v1997_v38 = vadd.f32 %v9969_v63, %v1996_v25  ;;  %2516 = vmatpush.bf16.msrb.mxu0 %v6749_v60  ;;  %v6740_v25 = vld [vmem:[%s13509_s10 + $0x40] sm:$0xf]  ;;  %v13808_v60 = vld [vmem:[#allocation16_spill] sm:$0xff] }
 0x741   :  { %v10028_v54 = vsub.f32 %v9984_v1, %v2079_v45  ;;  %v6753_v45 = vor.u32 %v7268_v29, %v6750_v4 }
 0x742   :  { %v10031_v57 = vadd.f32 %v1997_v38, %v13801_v11  ;;  %v7267_v38 = vld [vmem:[%s13509_s10 + $0x44] sm:$0xf0] }
 0x743   :  { %v2111_v10 = vmul.f32 %v10028_v54, %v10028_v54  ;;  %2565 = vmatpush.bf16.msrb.mxu1 %v6753_v45  ;;  %v6741_v11 = vor.u32 %v7267_v38, %v6740_v25 }
 0x744   :  { %2051 = vadd.xlane.f32.xlu1 %v10031_v57  ;;  %v1562_v47 = vpop.f32.mrf.mxu0 }
 0x745   :  { %2128 = vadd.xlane.f32.xlu0 %v2111_v10  ;;  %v1580_v32 = vadd.f32 %v1562_v47, %v1264_v33  ;;  %2517 = vmatpush.bf16.msrb.mxu0 %v6741_v11  ;;  %v6732_v47 = vld [vmem:[%s13509_s10 + $0x30] sm:$0xf] }
 0x747   :  { %v2044_v23 = vpop.xlane.xlu1 %2043  ;;  %v1895_v1 = vadd.f32 %v1877_v50, %v1580_v32  ;;  %v1998_v36 = vpop.f32.mrf.mxu3  ;;  %2566 = vmatpush.bf16.msrb.mxu1 %v6745_v28  ;;  %v7265_v32 = vld [vmem:[%s13509_s10 + $0x34] sm:$0xf0]  ;;  %v7264_v50 = vld [vmem:[%s13509_s10 + $0x34] sm:$0xf] }
 0x748   :  { %v2080_v21 = vmul.f32 %v10011_v22, %v2044_v23  ;;  %v1999_v13 = vadd.f32 %v9969_v63, %v1998_v36  ;;  %v6734_v23 = vld [vmem:[%s13509_s10 + $0x38] sm:$0xf0] }
 0x749   :  { %v1903_v30 = vpack.c.bf16 %v1895_v1, %v1894_v17  ;;  %v6733_v17 = vor.u32 %v7265_v32, %v6732_v47  ;;  %v6737_v1 = vor.u32 %v7264_v50, %v6734_v23 }
 0x74a   :  { %v10041_v41 = vsub.f32 %v9991_v43, %v2080_v21  ;;  %v10044_v5 = vadd.f32 %v1999_v13, %v13803_v35  ;;  %v13804_v43 = vld [vmem:[#allocation4_spill] sm:$0xff]  ;;  %v6724_v21 = vld [vmem:[%s13509_s10 + $0x20] sm:$0xf]  ;;  %v7263_v13 = vld [vmem:[%s13509_s10 + $0x24] sm:$0xf0] }
 0x74b   :  { %2015 = vmatmul.bf16.gmra.mxu3 %v1903_v30  ;;  %2518 = vmatpush.bf16.msrb.mxu0 %v6733_v17  ;;  %v7262_v30 = vld [vmem:[%s13509_s10 + $0x24] sm:$0xf] }
 0x74c   :  { %v2112_v48 = vmul.f32 %v10041_v41, %v10041_v41  ;;  %2053 = vadd.xlane.f32.xlu2 %v10044_v5  ;;  %2567 = vmatpush.bf16.msrb.mxu1 %v6737_v1 }
 0x74e   :  { %2130 = vadd.xlane.f32.xlu0 %v2112_v48  ;;  %v6725_v48 = vor.u32 %v7263_v13, %v6724_v21  ;;  %v13809_v13 = vld [vmem:[#allocation15_spill] sm:$0xff] }
 0x74f   :  { %v2046_v12 = vpop.xlane.xlu2 %2045  ;;  %v2001_v0 = vpop.f32.mrf.mxu3 }
 0x750   :  { %v2081_v26 = vmul.f32 %v10011_v22, %v2046_v12  ;;  %v2002_v18 = vadd.f32 %v9969_v63, %v2001_v0  ;;  %v6726_v12 = vld [vmem:[%s13509_s10 + $0x28] sm:$0xf0]  ;;  %2519 = vmatpush.bf16.msrb.mxu0 %v6725_v48 }
 0x752   :  { %v10052_v51 = vsub.f32 %v9998_v15, %v2081_v26  ;;  %v10055_v7 = vadd.f32 %v2002_v18, %v13804_v43  ;;  %v6729_v18 = vor.u32 %v7262_v30, %v6726_v12 }
 0x754   :  { %v2113_v8 = vmul.f32 %v10052_v51, %v10052_v51  ;;  %2055 = vadd.xlane.f32.xlu2 %v10055_v7  ;;  %2568 = vmatpush.bf16.msrb.mxu1 %v6729_v18 }
 0x756   :  { %2132 = vadd.xlane.f32.xlu1 %v2113_v8  ;;  %v6716_v8 = vld [vmem:[%s13509_s10 + $0x10] sm:$0xf] }
 0x757   :  { %v2003_v16 = vpop.f32.mrf.mxu3 }
 0x758   :  { %v2004_v31 = vadd.f32 %v9969_v63, %v2003_v16  ;;  %v7261_v16 = vld [vmem:[%s13509_s10 + $0x14] sm:$0xf0] }
 0x75a   :  { %v10062_v58 = vadd.f32 %v2004_v31, %v13805_v46  ;;  %v7260_v31 = vld [vmem:[%s13509_s10 + $0x14] sm:$0xf]  ;;  %v6717_v46 = vor.u32 %v7261_v16, %v6716_v8 }
 0x75c   :  { %2057 = vadd.xlane.f32.xlu0 %v10062_v58  ;;  %2520 = vmatpush.bf16.msrb.mxu0 %v6717_v46 }
 0x75f   :  { %v2006_v62 = vpop.f32.mrf.mxu3 }
 0x760   :  { %v2007_v15 = vadd.f32 %v9969_v63, %v2006_v62  ;;  %v6718_v62 = vld [vmem:[%s13509_s10 + $0x18] sm:$0xf0]  ;;  %2521 = vmatpush.bf16.msrb.mxu0 %v6709_v19 }
 0x761   :  { %v6721_v14 = vor.u32 %v7260_v31, %v6718_v62  ;;  %v10216_v62 = vld [vmem:[%s13507_s8] ss:$0 sm:$0xff] }
 0x762   :  { %v10067_v40 = vadd.f32 %v2007_v15, %v13806_v24 }
 0x763   :  { %2569 = vmatpush.bf16.msrb.mxu1 %v6721_v14 }
 0x764   :  { %2059 = vadd.xlane.f32.xlu0 %v10067_v40 }
 0x767   :  { %v2008_v36 = vpop.f32.mrf.mxu3  ;;  %2570 = vmatpush.bf16.msrb.mxu1 %v6713_v2  ;;  %v10227_v2 = vld [vmem:[%s13508_s9] ss:$0 sm:$0xff] }
 0x768   :  { %v2009_v0 = vadd.f32 %v9969_v63, %v2008_v36 }
 0x7a3   :  { %v2048_v55 = vpop.xlane.xlu0 %2047 }
 0x7a4   :  { %v2082_v33 = vmul.f32 %v10011_v22, %v2048_v55 }
 0x7a6   :  { %v10120_v10 = vsub.f32 %v10007_v44, %v2082_v33 }
 0x7a8   :  { %v2114_v44 = vmul.f32 %v10120_v10, %v10120_v10 }
 0x7aa   :  { %2134 = vadd.xlane.f32.xlu1 %v2114_v44 }
 0x7ab   :  { %v2050_v35 = vpop.xlane.xlu1 %2049 }
 0x7ac   :  { %v2083_v26 = vmul.f32 %v10011_v22, %v2050_v35 }
 0x7ae   :  { %v10151_v43 = vsub.f32 %v10014_v6, %v2083_v26  ;;  %v13807_v6 = vld [vmem:[#allocation7_spill] sm:$0xff] }
 0x7af   :  { %v10166_v15 = vadd.f32 %v2009_v0, %v13807_v6 }
 0x7b0   :  { %v2127_v24 = vpop.xlane.xlu2 %2126  ;;  %v2115_v37 = vmul.f32 %v10151_v43, %v10151_v43 }
 0x7b1   :  { %v2158_v59 = vmul.f32 %v2127_v24, %v10011_v22 }
 0x7b2   :  { %2136 = vadd.xlane.f32.xlu2 %v2115_v37  ;;  %2061 = vadd.xlane.f32.xlu1 %v10166_v15 }
 0x7b3   :  { %v2174_v61 = vadd.f32 1e-05, %v2158_v59 }
 0x7b5   :  { %7650 = vrsqrt.f32 %v2174_v61  ;;  %vm2196_vm10 = vweird.f32 %v2174_v61 }
 0x7b6   :  { %v2011_v49 = vpop.f32.mrf.mxu3 }
 0x7b7   :  { %v2012_v34 = vadd.f32 %v9969_v63, %v2011_v49  ;;  %v2052_v42 = vpop.xlane.xlu1 %2051 }
 0x7b8   :  { %v2129_v9 = vpop.xlane.xlu0 %2128  ;;  %v2084_v29 = vmul.f32 %v10011_v22, %v2052_v42 }
 0x7b9   :  { %v10187_v4 = vadd.f32 %v2012_v34, %v13808_v60  ;;  %v2159_v45 = vmul.f32 %v2129_v9, %v10011_v22  ;;  %v13810_v9 = vld [vmem:[#allocation10_spill] sm:$0xff] }
 0x7ba   :  { %v10191_v25 = vsub.f32 %v10031_v57, %v2084_v29 }
 0x7bb   :  { %v7651_v38 = vpop.eup %7650  ;;  %v2175_v20 = vadd.f32 1e-05, %v2159_v45  ;;  %2063 = vadd.xlane.f32.xlu1 %v10187_v4 }
 0x7bc   :  { %v2191_v55 = vmul.f32 %v7651_v38, %v2174_v61  ;;  %v2116_v11 = vmul.f32 %v10191_v25, %v10191_v25  ;;  %vm2197_vm9 = vweird.f32 %v7651_v38 }
 0x7bd   :  { %7652 = vrsqrt.f32 %v2175_v20  ;;  %vm2198_vm11 = vmor %vm2196_vm10, %vm2197_vm9  ;;  %vm2206_vm13 = vweird.f32 %v2175_v20 }
 0x7be   :  { %v2192_v27 = vmul.f32 %v7651_v38, %v2191_v55  ;;  %2138 = vadd.xlane.f32.xlu2 %v2116_v11  ;;  %v2013_v33 = vpop.f32.mrf.mxu3 }
 0x7bf   :  { %v2054_v28 = vpop.xlane.xlu2 %2053  ;;  %v2014_v32 = vadd.f32 %v9969_v63, %v2013_v33 }
 0x7c0   :  { %v2193_v47 = vmul.f32 0.5, %v2192_v27  ;;  %v2085_v50 = vmul.f32 %v10011_v22, %v2054_v28 }
 0x7c1   :  { %v2131_v57 = vpop.xlane.xlu0 %2130  ;;  %v10203_v30 = vadd.f32 %v2014_v32, %v13809_v13 }
 0x7c2   :  { %v2194_v17 = vsub.f32 1.5, %v2193_v47  ;;  %v2160_v23 = vmul.f32 %v2131_v57, %v10011_v22  ;;  %v10200_v44 = vsub.f32 %v10044_v5, %v2085_v50 }
 0x7c3   :  { %v7653_v1 = vpop.eup %7652 }
 0x7c4   :  { %v2195_v36 = vmul.f32 %v7651_v38, %v2194_v17  ;;  %v2201_v21 = vmul.f32 %v7653_v1, %v2175_v20  ;;  %v2176_v35 = vadd.f32 1e-05, %v2160_v23  ;;  %v2117_v48 = vmul.f32 %v10200_v44, %v10200_v44  ;;  %v13811_v23 = vld [vmem:[#allocation17_spill] sm:$0xff] }
 0x7c5   :  { %vm2207_vm12 = vweird.f32 %v7653_v1 }
 0x7c6   :  { %v2202_v12 = vmul.f32 %v7653_v1, %v2201_v21  ;;  %7654 = vrsqrt.f32 %v2176_v35  ;;  %2065 = vadd.xlane.f32.xlu2 %v10203_v30  ;;  %2140 = vadd.xlane.f32.xlu0 %v2117_v48  ;;  %v2199_v0 = vsel %vm2198_vm11, %v7651_v38, %v2195_v36  ;;  %vm2208_vm14 = vmor %vm2206_vm13, %vm2207_vm12  ;;  %vm2216_vm0 = vweird.f32 %v2176_v35 }
 0x7c7   :  { %v2056_v5 = vpop.xlane.xlu2 %2055  ;;  %v2350_v6 = vmul.f32 %v2199_v0, %v10019_v3 }
 0x7c8   :  { %v2203_v26 = vmul.f32 0.5, %v2202_v12  ;;  %v2086_v18 = vmul.f32 %v10011_v22, %v2056_v5 }
 0x7c9   :  { %v2133_v8 = vpop.xlane.xlu1 %2132  ;;  %v2369_v56 = vmul.f32 %v10216_v62, %v2350_v6 }
 0x7ca   :  { %v2204_v16 = vsub.f32 1.5, %v2203_v26  ;;  %v2161_v31 = vmul.f32 %v2133_v8, %v10011_v22  ;;  %v10211_v46 = vsub.f32 %v10055_v7, %v2086_v18  ;;  %v7281_v18 = vld [vmem:[%s13510_s12 + $0x38] sm:$0xff] }
 0x7cb   :  { %v10239_v45 = vadd.f32 %v10227_v2, %v2369_v56  ;;  %2792 = vmatpush.bf16.msrb.mxu2 %v7281_v18 }
 0x7cc   :  { %v7655_v24 = vpop.eup %7654  ;;  %v2205_v37 = vmul.f32 %v7653_v1, %v2204_v16  ;;  %v2177_v14 = vadd.f32 1e-05, %v2161_v31  ;;  %v2118_v59 = vmul.f32 %v10211_v46, %v10211_v46  ;;  %v7289_v31 = vld [vmem:[%s13510_s12 + $0x78] sm:$0xff] }
 0x7cd   :  { %v2211_v53 = vmul.f32 %v7655_v24, %v2176_v35  ;;  %vm2217_vm15 = vweird.f32 %v7655_v24  ;;  %2841 = vmatpush.bf16.msrb.mxu3 %v7289_v31 }
 0x7ce   :  { %v2209_v39 = vsel %vm2208_vm14, %v7653_v1, %v2205_v37  ;;  %7656 = vrsqrt.f32 %v2177_v14  ;;  %v2016_v7 = vpop.f32.mrf.mxu3  ;;  %2142 = vadd.xlane.f32.xlu0 %v2118_v59  ;;  %vm2218_vm1 = vmor %vm2216_vm0, %vm2217_vm15  ;;  %vm2226_vm3 = vweird.f32 %v2177_v14  ;;  %v7280_v59 = vld [vmem:[%s13510_s12 + $0x30] sm:$0xff] }
 0x7cf   :  { %v2351_v61 = vmul.f32 %v2209_v39, %v10028_v54  ;;  %v2212_v19 = vmul.f32 %v7655_v24, %v2211_v53  ;;  %v2017_v52 = vadd.f32 %v9969_v63, %v2016_v7  ;;  %v2058_v3 = vpop.xlane.xlu0 %2057  ;;  %v7288_v53 = vld [vmem:[%s13510_s12 + $0x70] sm:$0xff]  ;;  %2793 = vmatpush.bf16.msrb.mxu2 %v7280_v59 }
 0x7d0   :  { %v2087_v49 = vmul.f32 %v10011_v22, %v2058_v3  ;;  %v7279_v3 = vld [vmem:[%s13510_s12 + $0x28] sm:$0xff] }
 0x7d1   :  { %v2370_v34 = vmul.f32 %v10216_v62, %v2351_v61  ;;  %v2213_v42 = vmul.f32 0.5, %v2212_v19  ;;  %v10232_v29 = vadd.f32 %v2017_v52, %v13810_v9  ;;  %2842 = vmatpush.bf16.msrb.mxu3 %v7288_v53 }
 0x7d2   :  { %v10235_v54 = vsub.f32 %v10062_v58, %v2087_v49  ;;  %v7287_v49 = vld [vmem:[%s13510_s12 + $0x68] sm:$0xff] }
 0x7d3   :  { %v2214_v60 = vsub.f32 1.5, %v2213_v42  ;;  %2067 = vadd.xlane.f32.xlu2 %v10232_v29  ;;  %v10242_v38 = vadd.f32 %v10227_v2, %v2370_v34  ;;  %2794 = vmatpush.bf16.msrb.mxu2 %v7279_v3 }
 0x7d4   :  { %v7657_v20 = vpop.eup %7656  ;;  %v2119_v55 = vmul.f32 %v10235_v54, %v10235_v54 }
 0x7d5   :  { %v2215_v11 = vmul.f32 %v7655_v24, %v2214_v60  ;;  %v2221_v27 = vmul.f32 %v7657_v20, %v2177_v14  ;;  %v2404_v58 = vpack.c.bf16 %v10242_v38, %v10239_v45  ;;  %vm2227_vm2 = vweird.f32 %v7657_v20  ;;  %2843 = vmatpush.bf16.msrb.mxu3 %v7287_v49  ;;  %v7278_v60 = vld [vmem:[%s13510_s12 + $0x20] sm:$0xff] }
 0x7d6   :  { %v2018_v33 = vpop.f32.mrf.mxu3  ;;  %2144 = vadd.xlane.f32.xlu1 %v2119_v55  ;;  %vm2228_vm4 = vmor %vm2226_vm3, %vm2227_vm2 }
 0x7d7   :  { %v2222_v28 = vmul.f32 %v7657_v20, %v2221_v27  ;;  %2522 = vmatmul.bf16.vlgmr.msrb.gmra.mxu0 %v2404_v58  ;;  %2571 = vmatmul.bf16.vlgmr.msrb.gmra.mxu1 %v2404_v58  ;;  %v2019_v47 = vadd.f32 %v9969_v63, %v2018_v33  ;;  %v2060_v32 = vpop.xlane.xlu0 %2059  ;;  %v2219_v57 = vsel %vm2218_vm1, %v7655_v24, %v2215_v11 }
 0x7d8   :  { %v2088_v50 = vmul.f32 %v10011_v22, %v2060_v32  ;;  %v2352_v63 = vmul.f32 %v2219_v57, %v10041_v41  ;;  %2795 = vmatpush.bf16.msrb.mxu2 %v7278_v60  ;;  %v7285_v57 = vld [vmem:[%s13510_s12 + $0x58] sm:$0xff] }
 0x7d9   :  { %v2223_v17 = vmul.f32 0.5, %v2222_v28  ;;  %v10251_v1 = vadd.f32 %v2019_v47, %v13811_v23 }
 0x7da   :  { %v10254_v36 = vsub.f32 %v10067_v40, %v2088_v50  ;;  %v2371_v5 = vmul.f32 %v10216_v62, %v2352_v63  ;;  %v7277_v50 = vld [vmem:[%s13510_s12 + $0x18] sm:$0xff]  ;;  %v7284_v63 = vld [vmem:[%s13510_s12 + $0x50] sm:$0xff] }
 0x7db   :  { %v2224_v21 = vsub.f32 1.5, %v2223_v17  ;;  %2069 = vadd.xlane.f32.xlu0 %v10251_v1 }
 0x7dc   :  { %v2120_v13 = vmul.f32 %v10254_v36, %v10254_v36  ;;  %v10264_v0 = vadd.f32 %v10227_v2, %v2371_v5  ;;  %2796 = vmatpush.bf16.msrb.mxu2 %v7277_v50 }
 0x7dd   :  { %v2225_v35 = vmul.f32 %v7657_v20, %v2224_v21 }
 0x7de   :  { %2146 = vadd.xlane.f32.xlu1 %v2120_v13  ;;  %v7276_v13 = vld [vmem:[%s13510_s12 + $0x10] sm:$0xff] }
 0x7df   :  { %v2229_v48 = vsel %vm2228_vm4, %v7657_v20, %v2225_v35  ;;  %v7286_v20 = vld [vmem:[%s13510_s12 + $0x60] sm:$0xff] }
 0x7e0   :  { %v2353_v12 = vmul.f32 %v2229_v48, %v10052_v51  ;;  %2844 = vmatpush.bf16.msrb.mxu3 %v7286_v20  ;;  %2797 = vmatpush.bf16.msrb.mxu2 %v7276_v13 }
 0x7e2   :  { %v2372_v40 = vmul.f32 %v10216_v62, %v2353_v12 }
 0x7e4   :  { %v10267_v26 = vadd.f32 %v10227_v2, %v2372_v40  ;;  %2845 = vmatpush.bf16.msrb.mxu3 %v7285_v57 }
 0x7e6   :  { %v2405_v41 = vpack.c.bf16 %v10267_v26, %v10264_v0 }
 0x7e8   :  { %2527 = vmatmul.bf16.gmra.mxu0 %v2405_v41  ;;  %2576 = vmatmul.bf16.gmra.mxu1 %v2405_v41 }
 0x7e9   :  { %2846 = vmatpush.bf16.msrb.mxu3 %v7284_v63 }
 0x81d   :  { %v2135_v51 = vpop.xlane.xlu1 %2134 }
 0x81e   :  { %v2162_v8 = vmul.f32 %v2135_v51, %v10011_v22  ;;  %v7275_v51 = vld [vmem:[%s13510_s12 + $0x8] sm:$0xff] }
 0x81f   :  { %2798 = vmatpush.bf16.msrb.mxu2 %v7275_v51 }
 0x820   :  { %v2178_v16 = vadd.f32 1e-05, %v2162_v8 }
 0x822   :  { %7658 = vrsqrt.f32 %v2178_v16  ;;  %vm2236_vm6 = vweird.f32 %v2178_v16 }
 0x825   :  { %v2137_v6 = vpop.xlane.xlu2 %2136  ;;  %v2062_v24 = vpop.xlane.xlu1 %2061 }
 0x826   :  { %v2163_v37 = vmul.f32 %v2137_v6, %v10011_v22  ;;  %v2089_v14 = vmul.f32 %v10011_v22, %v2062_v24 }
 0x828   :  { %v7659_v39 = vpop.eup %7658  ;;  %v2179_v7 = vadd.f32 1e-05, %v2163_v37  ;;  %v10287_v56 = vsub.f32 %v10166_v15, %v2089_v14 }
 0x829   :  { %v2231_v61 = vmul.f32 %v7659_v39, %v2178_v16  ;;  %vm2237_vm5 = vweird.f32 %v7659_v39 }
 0x82a   :  { %7660 = vrsqrt.f32 %v2179_v7  ;;  %v2121_v19 = vmul.f32 %v10287_v56, %v10287_v56  ;;  %vm2238_vm7 = vmor %vm2236_vm6, %vm2237_vm5  ;;  %vm2246_vm9 = vweird.f32 %v2179_v7 }
 0x82b   :  { %v2232_v52 = vmul.f32 %v7659_v39, %v2231_v61 }
 0x82c   :  { %2148 = vadd.xlane.f32.xlu2 %v2121_v19 }
 0x82d   :  { %v2233_v34 = vmul.f32 0.5, %v2232_v52 }
 0x82e   :  { %v2064_v15 = vpop.xlane.xlu1 %2063 }
 0x82f   :  { %v2234_v42 = vsub.f32 1.5, %v2233_v34  ;;  %v2090_v9 = vmul.f32 %v10011_v22, %v2064_v15 }
 0x830   :  { %v7661_v55 = vpop.eup %7660 }
 0x831   :  { %v2235_v11 = vmul.f32 %v7659_v39, %v2234_v42  ;;  %v2241_v27 = vmul.f32 %v7661_v55, %v2179_v7  ;;  %v10305_v58 = vsub.f32 %v10187_v4, %v2090_v9  ;;  %v2139_v33 = vpop.xlane.xlu2 %2138  ;;  %vm2247_vm8 = vweird.f32 %v7661_v55 }
 0x832   :  { %v2164_v28 = vmul.f32 %v2139_v33, %v10011_v22  ;;  %vm2248_vm10 = vmor %vm2246_vm9, %vm2247_vm8 }
 0x833   :  { %v2242_v47 = vmul.f32 %v7661_v55, %v2241_v27  ;;  %v2122_v32 = vmul.f32 %v10305_v58, %v10305_v58  ;;  %v2239_v17 = vsel %vm2238_vm7, %v7659_v39, %v2235_v11 }
 0x834   :  { %v2180_v4 = vadd.f32 1e-05, %v2164_v28  ;;  %v2354_v35 = vmul.f32 %v2239_v17, %v10120_v10  ;;  %v7283_v10 = vld [vmem:[%s13510_s12 + $0x48] sm:$0xff] }
 0x835   :  { %v2243_v23 = vmul.f32 0.5, %v2242_v47  ;;  %2150 = vadd.xlane.f32.xlu0 %v2122_v32  ;;  %2847 = vmatpush.bf16.msrb.mxu3 %v7283_v10  ;;  %v2428_v10 = vld [vmem:[%s13511_s11] sm:$0x3] }
 0x836   :  { %7662 = vrsqrt.f32 %v2180_v4  ;;  %v2373_v6 = vmul.f32 %v10216_v62, %v2354_v35  ;;  %vm2256_vm12 = vweird.f32 %v2180_v4 }
 0x837   :  { %v2244_v21 = vsub.f32 1.5, %v2243_v23 }
 0x838   :  { %v10346_v39 = vadd.f32 %v10227_v2, %v2373_v6 }
 0x839   :  { %v2245_v48 = vmul.f32 %v7661_v55, %v2244_v21  ;;  %v2066_v12 = vpop.xlane.xlu2 %2065  ;;  %v2141_v40 = vpop.xlane.xlu0 %2140 }
 0x83a   :  { %v2091_v5 = vmul.f32 %v10011_v22, %v2066_v12  ;;  %v2165_v18 = vmul.f32 %v2141_v40, %v10011_v22 }
 0x83b   :  { %v2249_v41 = vsel %vm2248_vm10, %v7661_v55, %v2245_v48 }
 0x83c   :  { %v7663_v8 = vpop.eup %7662  ;;  %v10332_v16 = vsub.f32 %v10203_v30, %v2091_v5  ;;  %v2355_v31 = vmul.f32 %v2249_v41, %v10151_v43  ;;  %v2181_v37 = vadd.f32 1e-05, %v2165_v18  ;;  %v7274_v30 = vld [vmem:[%s13510_s12] sm:$0xff] }
 0x83d   :  { %v2251_v24 = vmul.f32 %v7663_v8, %v2180_v4  ;;  %v7282_v43 = vld [vmem:[%s13510_s12 + $0x40] sm:$0xff]  ;;  %2799 = vmatpush.bf16.msrb.mxu2 %v7274_v30  ;;  %vm2257_vm11 = vweird.f32 %v7663_v8 }
 0x83e   :  { %v2123_v14 = vmul.f32 %v10332_v16, %v10332_v16  ;;  %v2374_v59 = vmul.f32 %v10216_v62, %v2355_v31  ;;  %7664 = vrsqrt.f32 %v2181_v37  ;;  %2848 = vmatpush.bf16.msrb.mxu3 %v7282_v43  ;;  %vm2258_vm13 = vmor %vm2256_vm12, %vm2257_vm11  ;;  %vm2266_vm15 = vweird.f32 %v2181_v37 }
 0x83f   :  { %v2252_v53 = vmul.f32 %v7663_v8, %v2251_v24 }
 0x840   :  { %2152 = vadd.xlane.f32.xlu1 %v2123_v14  ;;  %v10349_v7 = vadd.f32 %v10227_v2, %v2374_v59  ;;  %v10380_v14 = vperm.slane %v2428_v10, 0  ;;  %v10382_v59 = vperm.slane %v2428_v10, 1 }
 0x841   :  { %v2253_v61 = vmul.f32 0.5, %v2252_v53  ;;  %v2143_v19 = vpop.xlane.xlu0 %2142 }
 0x842   :  { %v2406_v52 = vpack.c.bf16 %v10349_v7, %v10346_v39  ;;  %v2166_v49 = vmul.f32 %v2143_v19, %v10011_v22 }
 0x843   :  { %v2254_v3 = vsub.f32 1.5, %v2253_v61 }
 0x844   :  { %2532 = vmatmul.bf16.gmra.mxu0 %v2406_v52  ;;  %2581 = vmatmul.bf16.gmra.mxu1 %v2406_v52  ;;  %v7665_v34 = vpop.eup %7664  ;;  %v2182_v15 = vadd.f32 1e-05, %v2166_v49 }
 0x845   :  { %v2261_v42 = vmul.f32 %v7665_v34, %v2181_v37  ;;  %v2255_v60 = vmul.f32 %v7663_v8, %v2254_v3  ;;  %vm2267_vm14 = vweird.f32 %v7665_v34 }
 0x846   :  { %v2068_v9 = vpop.xlane.xlu2 %2067  ;;  %7666 = vrsqrt.f32 %v2182_v15  ;;  %vm2268_vm0 = vmor %vm2266_vm15, %vm2267_vm14  ;;  %vm2276_vm2 = vweird.f32 %v2182_v15 }
 0x847   :  { %v2092_v20 = vmul.f32 %v10011_v22, %v2068_v9  ;;  %v2262_v55 = vmul.f32 %v7665_v34, %v2261_v42  ;;  %v2259_v47 = vsel %vm2258_vm13, %v7663_v8, %v2255_v60 }
 0x848   :  { %v2356_v21 = vmul.f32 %v2259_v47, %v10191_v25 }
 0x849   :  { %v10356_v11 = vsub.f32 %v10232_v29, %v2092_v20  ;;  %v2145_v27 = vpop.xlane.xlu1 %2144  ;;  %v2263_v33 = vmul.f32 0.5, %v2262_v55 }
 0x84a   :  { %v2167_v28 = vmul.f32 %v2145_v27, %v10011_v22  ;;  %v2375_v40 = vmul.f32 %v10216_v62, %v2356_v21 }
 0x84b   :  { %v2124_v32 = vmul.f32 %v10356_v11, %v10356_v11  ;;  %v2264_v50 = vsub.f32 1.5, %v2263_v33 }
 0x84c   :  { %v2183_v57 = vadd.f32 1e-05, %v2167_v28  ;;  %v7667_v17 = vpop.eup %7666  ;;  %v10375_v6 = vadd.f32 %v10227_v2, %v2375_v40 }
 0x84d   :  { %2154 = vadd.xlane.f32.xlu2 %v2124_v32  ;;  %v2265_v23 = vmul.f32 %v7665_v34, %v2264_v50  ;;  %v2271_v4 = vmul.f32 %v7667_v17, %v2182_v15  ;;  %vm2277_vm1 = vweird.f32 %v7667_v17 }
 0x84e   :  { %7668 = vrsqrt.f32 %v2183_v57  ;;  %v2070_v29 = vpop.xlane.xlu0 %2069  ;;  %vm2278_vm3 = vmor %vm2276_vm2, %vm2277_vm1  ;;  %vm2286_vm5 = vweird.f32 %v2183_v57 }
 0x84f   :  { %v2093_v13 = vmul.f32 %v10011_v22, %v2070_v29  ;;  %v2269_v63 = vsel %vm2268_vm0, %v7665_v34, %v2265_v23  ;;  %v2272_v35 = vmul.f32 %v7667_v17, %v2271_v4 }
 0x850   :  { %v2357_v12 = vmul.f32 %v2269_v63, %v10200_v44 }
 0x851   :  { %v10364_v48 = vsub.f32 %v10251_v1, %v2093_v13  ;;  %v2273_v5 = vmul.f32 0.5, %v2272_v35  ;;  %v2147_v10 = vpop.xlane.xlu1 %2146 }
 0x852   :  { %v2376_v18 = vmul.f32 %v10216_v62, %v2357_v12 }
 0x853   :  { %v2125_v41 = vmul.f32 %v10364_v48, %v10364_v48  ;;  %v2274_v25 = vsub.f32 1.5, %v2273_v5 }
 0x854   :  { %v7669_v51 = vpop.eup %7668  ;;  %v2523_v8 = vpop.f32.mrf.mxu0  ;;  %v10378_v24 = vadd.f32 %v10227_v2, %v2376_v18 }
 0x855   :  { %v2572_v31 = vpop.f32.mrf.mxu1  ;;  %v2281_v1 = vmul.f32 %v7669_v51, %v2183_v57  ;;  %2156 = vadd.xlane.f32.xlu0 %v2125_v41  ;;  %v2275_v44 = vmul.f32 %v7667_v17, %v2274_v25  ;;  %vm2287_vm4 = vweird.f32 %v7669_v51  ;;  %v2524_v19 = vadd.f32 %v2523_v8, %v10380_v14 }
 0x856   :  { %v2407_v53 = vpack.c.bf16 %v10378_v24, %v10375_v6  ;;  %v2573_v52 = vadd.f32 %v2572_v31, %v10382_v59  ;;  %vm2288_vm6 = vmor %vm2286_vm5, %vm2287_vm4  ;;  %v2168_v8 = vmul.f32 %v2147_v10, %v10011_v22 }
 0x857   :  { %v2282_v37 = vmul.f32 %v7669_v51, %v2281_v1  ;;  %v2279_v30 = vsel %vm2278_vm3, %v7667_v17, %v2275_v44  ;;  %v2612_v20 = vmax.f32 %v2524_v19, 0.0 }
 0x858   :  { %2537 = vmatmul.bf16.gmra.mxu0 %v2407_v53  ;;  %2586 = vmatmul.bf16.gmra.mxu1 %v2407_v53  ;;  %v2358_v34 = vmul.f32 %v2279_v30, %v10211_v46  ;;  %v2613_v27 = vmax.f32 %v2573_v52, 0.0  ;;  %v2184_v31 = vadd.f32 1e-05, %v2168_v8 }
 0x859   :  { %v2283_v43 = vmul.f32 0.5, %v2282_v37 }
 0x85a   :  { %v2377_v47 = vmul.f32 %v10216_v62, %v2358_v34  ;;  %7670 = vrsqrt.f32 %v2184_v31  ;;  %vm2296_vm8 = vweird.f32 %v2184_v31 }
 0x85b   :  { %v2284_v61 = vsub.f32 1.5, %v2283_v43 }
 0x85c   :  { %v2525_v3 = vpop.f32.mrf.mxu0  ;;  %v10395_v57 = vadd.f32 %v10227_v2, %v2377_v47 }
 0x85d   :  { %v2574_v49 = vpop.f32.mrf.mxu1  ;;  %v2285_v15 = vmul.f32 %v7669_v51, %v2284_v61  ;;  %v2526_v42 = vadd.f32 %v2525_v3, %v10380_v14 }
 0x85e   :  { %v2575_v9 = vadd.f32 %v2574_v49, %v10382_v59 }
 0x85f   :  { %v2289_v60 = vsel %vm2288_vm6, %v7669_v51, %v2285_v15  ;;  %v2614_v55 = vmax.f32 %v2526_v42, 0.0 }
 0x860   :  { %v2615_v33 = vmax.f32 %v2575_v9, 0.0  ;;  %v2359_v28 = vmul.f32 %v2289_v60, %v10235_v54  ;;  %v7671_v1 = vpop.eup %7670 }
 0x861   :  { %v2644_v32 = vpack.c.bf16 %v2614_v55, %v2612_v20  ;;  %v2291_v44 = vmul.f32 %v7671_v1, %v2184_v31  ;;  %vm2297_vm7 = vweird.f32 %v7671_v1 }
 0x862   :  { %v2645_v50 = vpack.c.bf16 %v2615_v33, %v2613_v27  ;;  %v2378_v46 = vmul.f32 %v10216_v62, %v2359_v28  ;;  %vm2298_vm9 = vmor %vm2296_vm8, %vm2297_vm7 }
 0x863   :  { %2800 = vmatmul.bf16.vlgmr.msrb.gmra.mxu2 %v2644_v32  ;;  %v2292_v37 = vmul.f32 %v7671_v1, %v2291_v44 }
 0x864   :  { %2849 = vmatmul.bf16.vlgmr.msrb.gmra.mxu3 %v2645_v50  ;;  %v10398_v17 = vadd.f32 %v10227_v2, %v2378_v46 }
 0x865   :  { %v2528_v23 = vpop.f32.mrf.mxu0  ;;  %v2577_v4 = vpop.f32.mrf.mxu1  ;;  %v2293_v61 = vmul.f32 0.5, %v2292_v37 }
 0x866   :  { %v2408_v29 = vpack.c.bf16 %v10398_v17, %v10395_v57  ;;  %v2529_v54 = vadd.f32 %v2528_v23, %v10380_v14  ;;  %v2578_v21 = vadd.f32 %v2577_v4, %v10382_v59 }
 0x867   :  { %v2294_v19 = vsub.f32 1.5, %v2293_v61 }
 0x868   :  { %2542 = vmatmul.bf16.gmra.mxu0 %v2408_v29  ;;  %2591 = vmatmul.bf16.gmra.mxu1 %v2408_v29  ;;  %v2616_v5 = vmax.f32 %v2529_v54, 0.0  ;;  %v2617_v40 = vmax.f32 %v2578_v21, 0.0 }
 0x869   :  { %v2295_v34 = vmul.f32 %v7671_v1, %v2294_v19 }
 0x86b   :  { %v2299_v60 = vsel %vm2298_vm9, %v7671_v1, %v2295_v34 }
 0x86c   :  { %v2360_v27 = vmul.f32 %v2299_v60, %v10254_v36 }
 0x86d   :  { %v2530_v13 = vpop.f32.mrf.mxu0  ;;  %v2579_v63 = vpop.f32.mrf.mxu1 }
 0x86e   :  { %v2531_v35 = vadd.f32 %v2530_v13, %v10380_v14  ;;  %v2580_v12 = vadd.f32 %v2579_v63, %v10382_v59  ;;  %v2379_v54 = vmul.f32 %v10216_v62, %v2360_v27 }
 0x870   :  { %v2618_v41 = vmax.f32 %v2531_v35, 0.0  ;;  %v2619_v18 = vmax.f32 %v2580_v12, 0.0  ;;  %v10415_v36 = vadd.f32 %v10227_v2, %v2379_v54 }
 0x872   :  { %v2646_v51 = vpack.c.bf16 %v2618_v41, %v2616_v5  ;;  %v2647_v25 = vpack.c.bf16 %v2619_v18, %v2617_v40 }
 0x874   :  { %2805 = vmatmul.bf16.gmra.mxu2 %v2646_v51  ;;  %2854 = vmatmul.bf16.gmra.mxu3 %v2647_v25 }
 0x89f   :  { %v2149_v53 = vpop.xlane.xlu2 %2148 }
 0x8a0   :  { %v2169_v30 = vmul.f32 %v2149_v53, %v10011_v22 }
 0x8a2   :  { %v2185_v43 = vadd.f32 1e-05, %v2169_v30 }
 0x8a4   :  { %7672 = vrsqrt.f32 %v2185_v43  ;;  %vm2306_vm11 = vweird.f32 %v2185_v43 }
 0x8a8   :  { %v2151_v52 = vpop.xlane.xlu0 %2150 }
 0x8a9   :  { %v2170_v3 = vmul.f32 %v2151_v52, %v10011_v22 }
 0x8aa   :  { %v7673_v49 = vpop.eup %7672 }
 0x8ab   :  { %v2301_v15 = vmul.f32 %v7673_v49, %v2185_v43  ;;  %v2186_v42 = vadd.f32 1e-05, %v2170_v3  ;;  %vm2307_vm10 = vweird.f32 %v7673_v49 }
 0x8ac   :  { %vm2308_vm12 = vmor %vm2306_vm11, %vm2307_vm10 }
 0x8ad   :  { %v2302_v9 = vmul.f32 %v7673_v49, %v2301_v15  ;;  %7674 = vrsqrt.f32 %v2186_v42  ;;  %vm2316_vm14 = vweird.f32 %v2186_v42 }
 0x8af   :  { %v2303_v20 = vmul.f32 0.5, %v2302_v9 }
 0x8b1   :  { %v2304_v55 = vsub.f32 1.5, %v2303_v20 }
 0x8b3   :  { %v7675_v33 = vpop.eup %7674  ;;  %v2305_v28 = vmul.f32 %v7673_v49, %v2304_v55  ;;  %v2153_v47 = vpop.xlane.xlu1 %2152 }
 0x8b4   :  { %v2311_v32 = vmul.f32 %v7675_v33, %v2186_v42  ;;  %v2171_v50 = vmul.f32 %v2153_v47, %v10011_v22  ;;  %vm2317_vm13 = vweird.f32 %v7675_v33 }
 0x8b5   :  { %v2309_v46 = vsel %vm2308_vm12, %v7673_v49, %v2305_v28  ;;  %vm2318_vm15 = vmor %vm2316_vm14, %vm2317_vm13 }
 0x8b6   :  { %v2312_v23 = vmul.f32 %v7675_v33, %v2311_v32  ;;  %v2187_v4 = vadd.f32 1e-05, %v2171_v50  ;;  %v2361_v29 = vmul.f32 %v2309_v46, %v10287_v56 }
 0x8b8   :  { %v2313_v21 = vmul.f32 0.5, %v2312_v23  ;;  %7676 = vrsqrt.f32 %v2187_v4  ;;  %v2380_v13 = vmul.f32 %v10216_v62, %v2361_v29  ;;  %vm2326_vm1 = vweird.f32 %v2187_v4 }
 0x8ba   :  { %v10418_v63 = vadd.f32 %v10227_v2, %v2380_v13  ;;  %v2314_v35 = vsub.f32 1.5, %v2313_v21 }
 0x8bc   :  { %v2409_v12 = vpack.c.bf16 %v10418_v63, %v10415_v36  ;;  %v2315_v40 = vmul.f32 %v7675_v33, %v2314_v35 }
 0x8be   :  { %v7677_v5 = vpop.eup %7676  ;;  %2547 = vmatmul.bf16.gmra.mxu0 %v2409_v12  ;;  %2596 = vmatmul.bf16.gmra.mxu1 %v2409_v12  ;;  %v2319_v1 = vsel %vm2318_vm15, %v7675_v33, %v2315_v40 }
 0x8bf   :  { %v2321_v56 = vmul.f32 %v7677_v5, %v2187_v4  ;;  %vm2327_vm0 = vweird.f32 %v7677_v5  ;;  %v2362_v30 = vmul.f32 %v2319_v1, %v10305_v58 }
 0x8c0   :  { %v2155_v41 = vpop.xlane.xlu2 %2154  ;;  %vm2328_vm2 = vmor %vm2326_vm1, %vm2327_vm0 }
 0x8c1   :  { %v2322_v18 = vmul.f32 %v7677_v5, %v2321_v56  ;;  %v2172_v51 = vmul.f32 %v2155_v41, %v10011_v22  ;;  %v2533_v25 = vpop.f32.mrf.mxu0  ;;  %v2582_v10 = vpop.f32.mrf.mxu1  ;;  %v2381_v58 = vmul.f32 %v10216_v62, %v2362_v30 }
 0x8c2   :  { %v2534_v53 = vadd.f32 %v2533_v25, %v10380_v14  ;;  %v2583_v43 = vadd.f32 %v2582_v10, %v10382_v59 }
 0x8c3   :  { %v2323_v8 = vmul.f32 0.5, %v2322_v18  ;;  %v2188_v31 = vadd.f32 1e-05, %v2172_v51  ;;  %v10433_v23 = vadd.f32 %v10227_v2, %v2381_v58 }
 0x8c4   :  { %v2620_v60 = vmax.f32 %v2534_v53, 0.0  ;;  %v2621_v27 = vmax.f32 %v2583_v43, 0.0 }
 0x8c5   :  { %v2324_v44 = vsub.f32 1.5, %v2323_v8  ;;  %7678 = vrsqrt.f32 %v2188_v31  ;;  %vm2336_vm4 = vweird.f32 %v2188_v31 }
 0x8c7   :  { %v2325_v37 = vmul.f32 %v7677_v5, %v2324_v44 }
 0x8c8   :  { %v2157_v61 = vpop.xlane.xlu0 %2156 }
 0x8c9   :  { %v2329_v19 = vsel %vm2328_vm2, %v7677_v5, %v2325_v37  ;;  %v2173_v52 = vmul.f32 %v2157_v61, %v10011_v22  ;;  %v2535_v3 = vpop.f32.mrf.mxu0  ;;  %v2584_v49 = vpop.f32.mrf.mxu1 }
 0x8ca   :  { %v2536_v34 = vadd.f32 %v2535_v3, %v10380_v14  ;;  %v2585_v15 = vadd.f32 %v2584_v49, %v10382_v59  ;;  %v2363_v42 = vmul.f32 %v2329_v19, %v10332_v16  ;;  %v10451_v49 = vld [vmem:[%s13512_s13] ss:$0 sm:$0xff] }
 0x8cb   :  { %v7679_v9 = vpop.eup %7678  ;;  %v2189_v20 = vadd.f32 1e-05, %v2173_v52 }
 0x8cc   :  { %v2331_v55 = vmul.f32 %v7679_v9, %v2188_v31  ;;  %v2622_v33 = vmax.f32 %v2536_v34, 0.0  ;;  %v2623_v28 = vmax.f32 %v2585_v15, 0.0  ;;  %v2382_v47 = vmul.f32 %v10216_v62, %v2363_v42 }
 0x8cd   :  { %7680 = vrsqrt.f32 %v2189_v20  ;;  %vm2337_vm3 = vweird.f32 %v7679_v9  ;;  %vm2346_vm7 = vweird.f32 %v2189_v20 }
 0x8ce   :  { %v2332_v32 = vmul.f32 %v7679_v9, %v2331_v55  ;;  %v2648_v50 = vpack.c.bf16 %v2622_v33, %v2620_v60  ;;  %v2649_v46 = vpack.c.bf16 %v2623_v28, %v2621_v27  ;;  %v10436_v16 = vadd.f32 %v10227_v2, %v2382_v47  ;;  %vm2338_vm5 = vmor %vm2336_vm4, %vm2337_vm3 }
 0x8d0   :  { %v2333_v4 = vmul.f32 0.5, %v2332_v32  ;;  %2810 = vmatmul.bf16.gmra.mxu2 %v2648_v50  ;;  %2859 = vmatmul.bf16.gmra.mxu3 %v2649_v46  ;;  %v2410_v29 = vpack.c.bf16 %v10436_v16, %v10433_v23 }
 0x8d2   :  { %v2334_v54 = vsub.f32 1.5, %v2333_v4  ;;  %2552 = vmatmul.bf16.gmra.mxu0 %v2410_v29  ;;  %2601 = vmatmul.bf16.gmra.mxu1 %v2410_v29 }
 0x8d3   :  { %v7681_v21 = vpop.eup %7680 }
 0x8d4   :  { %v2335_v13 = vmul.f32 %v7679_v9, %v2334_v54  ;;  %v2341_v35 = vmul.f32 %v7681_v21, %v2189_v20  ;;  %vm2347_vm6 = vweird.f32 %v7681_v21 }
 0x8d5   :  { %v2538_v5 = vpop.f32.mrf.mxu0  ;;  %v2587_v56 = vpop.f32.mrf.mxu1  ;;  %vm2348_vm8 = vmor %vm2346_vm7, %vm2347_vm6 }
 0x8d6   :  { %v2342_v12 = vmul.f32 %v7681_v21, %v2341_v35  ;;  %v2339_v40 = vsel %vm2338_vm5, %v7679_v9, %v2335_v13  ;;  %v2539_v8 = vadd.f32 %v2538_v5, %v10380_v14  ;;  %v2588_v1 = vadd.f32 %v2587_v56, %v10382_v59 }
 0x8d7   :  { %v2364_v51 = vmul.f32 %v2339_v40, %v10356_v11 }
 0x8d8   :  { %v2343_v41 = vmul.f32 0.5, %v2342_v12  ;;  %v2624_v61 = vmax.f32 %v2539_v8, 0.0  ;;  %v2625_v19 = vmax.f32 %v2588_v1, 0.0 }
 0x8d9   :  { %v2383_v53 = vmul.f32 %v10216_v62, %v2364_v51 }
 0x8da   :  { %v2344_v18 = vsub.f32 1.5, %v2343_v41 }
 0x8db   :  { %v10454_v34 = vadd.f32 %v10227_v2, %v2383_v53 }
 0x8dc   :  { %v2345_v25 = vmul.f32 %v7681_v21, %v2344_v18 }
 0x8dd   :  { %v2540_v44 = vpop.f32.mrf.mxu0  ;;  %v2589_v31 = vpop.f32.mrf.mxu1 }
 0x8de   :  { %v2349_v10 = vsel %vm2348_vm8, %v7681_v21, %v2345_v25  ;;  %v2541_v30 = vadd.f32 %v2540_v44, %v10380_v14  ;;  %v2590_v43 = vadd.f32 %v2589_v31, %v10382_v59 }
 0x8df   :  { %v2365_v37 = vmul.f32 %v2349_v10, %v10364_v48 }
 0x8e0   :  { %v2626_v52 = vmax.f32 %v2541_v30, 0.0  ;;  %v2627_v3 = vmax.f32 %v2590_v43, 0.0 }
 0x8e1   :  { %v2384_v11 = vmul.f32 %v10216_v62, %v2365_v37 }
 0x8e2   :  { %v2650_v15 = vpack.c.bf16 %v2626_v52, %v2624_v61  ;;  %v2651_v42 = vpack.c.bf16 %v2627_v3, %v2625_v19 }
 0x8e3   :  { %v10457_v48 = vadd.f32 %v10227_v2, %v2384_v11 }
 0x8e4   :  { %2815 = vmatmul.bf16.gmra.mxu2 %v2650_v15  ;;  %2864 = vmatmul.bf16.gmra.mxu3 %v2651_v42 }
 0x8e5   :  { %v2411_v62 = vpack.c.bf16 %v10457_v48, %v10454_v34  ;;  %v2543_v58 = vpop.f32.mrf.mxu0  ;;  %v2592_v55 = vpop.f32.mrf.mxu1 }
 0x8e6   :  { %v2801_v9 = vpop.f32.mrf.mxu2  ;;  %v2544_v2 = vadd.f32 %v2543_v58, %v10380_v14  ;;  %v2593_v47 = vadd.f32 %v2592_v55, %v10382_v59 }
 0x8e7   :  { %v2802_v60 = vadd.f32 %v10451_v49, %v2801_v9  ;;  %v2850_v20 = vpop.f32.mrf.mxu3  ;;  %2557 = vmatmul.bf16.gmra.mxu0 %v2411_v62  ;;  %2606 = vmatmul.bf16.gmra.mxu1 %v2411_v62 }
 0x8e8   :  { %v2628_v13 = vmax.f32 %v2544_v2, 0.0  ;;  %v2629_v35 = vmax.f32 %v2593_v47, 0.0 }
 0x8e9   :  { %v2851_v27 = vadd.f32 %v2850_v20, %v2802_v60 }
 0x8eb   :  { %v10463_v33 = vadd.f32 %v2851_v27, %v10239_v45 }
 0x8ed   :  { %2908 = vadd.xlane.f32.xlu1 %v10463_v33  ;;  %v2545_v46 = vpop.f32.mrf.mxu0  ;;  %v2594_v29 = vpop.f32.mrf.mxu1 }
 0x8ee   :  { %v2803_v28 = vpop.f32.mrf.mxu2  ;;  %v2546_v4 = vadd.f32 %v2545_v46, %v10380_v14  ;;  %v2595_v21 = vadd.f32 %v2594_v29, %v10382_v59 }
 0x8ef   :  { %v2804_v32 = vadd.f32 %v10451_v49, %v2803_v28  ;;  %v2852_v50 = vpop.f32.mrf.mxu3 }
 0x8f0   :  { %v2630_v45 = vmax.f32 %v2546_v4, 0.0  ;;  %v2631_v5 = vmax.f32 %v2595_v21, 0.0 }
 0x8f1   :  { %v2853_v54 = vadd.f32 %v2852_v50, %v2804_v32 }
 0x8f2   :  { %v2652_v56 = vpack.c.bf16 %v2630_v45, %v2628_v13  ;;  %v2653_v40 = vpack.c.bf16 %v2631_v5, %v2629_v35 }
 0x8f3   :  { %v10472_v12 = vadd.f32 %v2853_v54, %v10242_v38 }
 0x8f4   :  { %2820 = vmatmul.bf16.gmra.mxu2 %v2652_v56  ;;  %2869 = vmatmul.bf16.gmra.mxu3 %v2653_v40 }
 0x8f5   :  { %2910 = vadd.xlane.f32.xlu2 %v10472_v12 }
 0x8f7   :  { %v2806_v41 = vpop.f32.mrf.mxu2  ;;  %v2855_v18 = vpop.f32.mrf.mxu3 }
 0x8f8   :  { %v2807_v51 = vadd.f32 %v10451_v49, %v2806_v41 }
 0x8fa   :  { %v2856_v25 = vadd.f32 %v2855_v18, %v2807_v51 }
 0x8fc   :  { %v10477_v10 = vadd.f32 %v2856_v25, %v10264_v0 }
 0x8fe   :  { %2912 = vadd.xlane.f32.xlu0 %v10477_v10 }
 0x8ff   :  { %v2808_v8 = vpop.f32.mrf.mxu2  ;;  %v2857_v1 = vpop.f32.mrf.mxu3 }
 0x900   :  { %v2809_v38 = vadd.f32 %v10451_v49, %v2808_v8 }
 0x902   :  { %v2858_v44 = vadd.f32 %v2857_v1, %v2809_v38 }
 0x904   :  { %v10482_v31 = vadd.f32 %v2858_v44, %v10267_v26 }
 0x906   :  { %2914 = vadd.xlane.f32.xlu1 %v10482_v31 }
 0x93b   :  { %v2548_v37 = vpop.f32.mrf.mxu0  ;;  %v2597_v53 = vpop.f32.mrf.mxu1 }
 0x93c   :  { %v2549_v30 = vadd.f32 %v2548_v37, %v10380_v14  ;;  %v2598_v43 = vadd.f32 %v2597_v53, %v10382_v59 }
 0x93e   :  { %v2632_v52 = vmax.f32 %v2549_v30, 0.0  ;;  %v2633_v3 = vmax.f32 %v2598_v43, 0.0 }
 0x943   :  { %v2550_v0 = vpop.f32.mrf.mxu0  ;;  %v2599_v11 = vpop.f32.mrf.mxu1 }
 0x944   :  { %v2551_v61 = vadd.f32 %v2550_v0, %v10380_v14  ;;  %v2600_v19 = vadd.f32 %v2599_v11, %v10382_v59 }
 0x946   :  { %v2634_v15 = vmax.f32 %v2551_v61, 0.0  ;;  %v2635_v42 = vmax.f32 %v2600_v19, 0.0 }
 0x948   :  { %v2654_v26 = vpack.c.bf16 %v2634_v15, %v2632_v52  ;;  %v2655_v62 = vpack.c.bf16 %v2635_v42, %v2633_v3 }
 0x94a   :  { %2825 = vmatmul.bf16.gmra.mxu2 %v2654_v26  ;;  %2874 = vmatmul.bf16.gmra.mxu3 %v2655_v62 }
 0x94f   :  { %v2553_v9 = vpop.f32.mrf.mxu0  ;;  %v2602_v60 = vpop.f32.mrf.mxu1 }
 0x950   :  { %v2554_v27 = vadd.f32 %v2553_v9, %v10380_v14  ;;  %v2603_v2 = vadd.f32 %v2602_v60, %v10382_v59 }
 0x952   :  { %v2636_v29 = vmax.f32 %v2554_v27, 0.0  ;;  %v2637_v54 = vmax.f32 %v2603_v2, 0.0 }
 0x953   :  { %v2811_v20 = vpop.f32.mrf.mxu2  ;;  %v2860_v58 = vpop.f32.mrf.mxu3 }
 0x954   :  { %v2812_v55 = vadd.f32 %v10451_v49, %v2811_v20 }
 0x956   :  { %v2861_v28 = vadd.f32 %v2860_v58, %v2812_v55 }
 0x957   :  { %v2555_v32 = vpop.f32.mrf.mxu0  ;;  %v2604_v50 = vpop.f32.mrf.mxu1 }
 0x958   :  { %v10493_v47 = vadd.f32 %v2861_v28, %v10346_v39  ;;  %v2556_v46 = vadd.f32 %v2555_v32, %v10380_v14  ;;  %v2605_v4 = vadd.f32 %v2604_v50, %v10382_v59 }
 0x95a   :  { %2916 = vadd.xlane.f32.xlu2 %v10493_v47  ;;  %v2638_v21 = vmax.f32 %v2556_v46, 0.0  ;;  %v2639_v13 = vmax.f32 %v2605_v4, 0.0 }
 0x95b   :  { %v2813_v45 = vpop.f32.mrf.mxu2  ;;  %v2862_v5 = vpop.f32.mrf.mxu3 }
 0x95c   :  { %v2814_v35 = vadd.f32 %v10451_v49, %v2813_v45  ;;  %v2656_v56 = vpack.c.bf16 %v2638_v21, %v2636_v29  ;;  %v2657_v40 = vpack.c.bf16 %v2639_v13, %v2637_v54 }
 0x95e   :  { %v2863_v39 = vadd.f32 %v2862_v5, %v2814_v35  ;;  %2830 = vmatmul.bf16.gmra.mxu2 %v2656_v56  ;;  %2879 = vmatmul.bf16.gmra.mxu3 %v2657_v40 }
 0x960   :  { %v10500_v41 = vadd.f32 %v2863_v39, %v10349_v7  ;;  %v2909_v18 = vpop.xlane.xlu1 %2908  ;;  %v7311_v39 = vld [vmem:[%s13502_s4 + $0x16c] sm:$0xf] }
 0x961   :  { %v2940_v51 = vmul.f32 %v2909_v18, %v10011_v22 }
 0x962   :  { %2918 = vadd.xlane.f32.xlu0 %v10500_v41 }
 0x963   :  { %v10505_v25 = vsub.f32 %v10463_v33, %v2940_v51  ;;  %v6961_v51 = vld [vmem:[%s13502_s4 + $0x170] sm:$0xf] }
 0x964   :  { %v2558_v8 = vpop.f32.mrf.mxu0  ;;  %v2607_v38 = vpop.f32.mrf.mxu1 }
 0x965   :  { %v2972_v1 = vmul.f32 %v10505_v25, %v10505_v25  ;;  %v2559_v43 = vadd.f32 %v2558_v8, %v10380_v14  ;;  %v2608_v0 = vadd.f32 %v2607_v38, %v10382_v59  ;;  %v7313_v8 = vld [vmem:[%s13502_s4 + $0x178] sm:$0xf0] }
 0x967   :  { %2988 = vadd.xlane.f32.xlu1 %v2972_v1  ;;  %v2816_v53 = vpop.f32.mrf.mxu2  ;;  %v2865_v7 = vpop.f32.mrf.mxu3  ;;  %v2640_v26 = vmax.f32 %v2559_v43, 0.0  ;;  %v2641_v62 = vmax.f32 %v2608_v0, 0.0  ;;  %v6962_v1 = vor.u32 %v7313_v8, %v6961_v51  ;;  %v6949_v43 = vld [vmem:[%s13502_s4 + $0x158] sm:$0xf]  ;;  %v7310_v0 = vld [vmem:[%s13502_s4 + $0x160] sm:$0xf0] }
 0x968   :  { %v2911_v44 = vpop.xlane.xlu2 %2910  ;;  %v2817_v30 = vadd.f32 %v10451_v49, %v2816_v53  ;;  %v7308_v53 = vld [vmem:[%s13502_s4 + $0x154] sm:$0xf] }
 0x969   :  { %v2941_v37 = vmul.f32 %v2911_v44, %v10011_v22  ;;  %3542 = vmatpush.bf16.msra.mxu2 %v6962_v1  ;;  %v6941_v44 = vld [vmem:[%s13502_s4 + $0x150] sm:$0xf]  ;;  %v7297_v1 = vld [vmem:[%s13502_s4 + $0xf8] sm:$0xf0] }
 0x96a   :  { %v2866_v11 = vadd.f32 %v2865_v7, %v2817_v30  ;;  %v6943_v30 = vld [vmem:[%s13502_s4 + $0x15c] sm:$0xf0] }
 0x96b   :  { %v10514_v33 = vsub.f32 %v10472_v12, %v2941_v37  ;;  %v7309_v37 = vld [vmem:[%s13502_s4 + $0x158] sm:$0xf0] }
 0x96c   :  { %v2560_v61 = vpop.f32.mrf.mxu0  ;;  %v2609_v19 = vpop.f32.mrf.mxu1  ;;  %v10521_v42 = vadd.f32 %v2866_v11, %v10375_v6  ;;  %v6942_v7 = vor.u32 %v7309_v37, %v6941_v44  ;;  %v6946_v11 = vor.u32 %v7308_v53, %v6943_v30  ;;  %v6901_v30 = vld [vmem:[%s13502_s4 + $0xf8] sm:$0xf] }
 0x96d   :  { %v2561_v52 = vadd.f32 %v2560_v61, %v10380_v14  ;;  %v2610_v3 = vadd.f32 %v2609_v19, %v10382_v59  ;;  %v2973_v15 = vmul.f32 %v10514_v33, %v10514_v33  ;;  %v6950_v61 = vor.u32 %v7310_v0, %v6949_v43  ;;  %v6929_v19 = vld [vmem:[%s13502_s4 + $0x138] sm:$0xf]  ;;  %v7298_v43 = vld [vmem:[%s13502_s4 + $0x100] sm:$0xf0] }
 0x96e   :  { %2920 = vadd.xlane.f32.xlu0 %v10521_v42 }
 0x96f   :  { %v2642_v9 = vmax.f32 %v2561_v52, 0.0  ;;  %v2643_v60 = vmax.f32 %v2610_v3, 0.0  ;;  %2990 = vadd.xlane.f32.xlu2 %v2973_v15  ;;  %v2818_v20 = vpop.f32.mrf.mxu2  ;;  %v2867_v27 = vpop.f32.mrf.mxu3  ;;  %3543 = vmatpush.bf16.msra.mxu2 %v6950_v61  ;;  %v7306_v52 = vld [vmem:[%s13502_s4 + $0x140] sm:$0xf0]  ;;  %v7305_v3 = vld [vmem:[%s13502_s4 + $0x13c] sm:$0xf] }
 0x970   :  { %v2819_v59 = vadd.f32 %v10451_v49, %v2818_v20  ;;  %v6930_v15 = vor.u32 %v7306_v52, %v6929_v19  ;;  %v6917_v20 = vld [vmem:[%s13502_s4 + $0x120] sm:$0xf]  ;;  %v6902_v19 = vor.u32 %v7298_v43, %v6901_v30 }
 0x971   :  { %v2913_v12 = vpop.xlane.xlu0 %2912  ;;  %v2658_v58 = vpack.c.bf16 %v2642_v9, %v2640_v26  ;;  %v2659_v55 = vpack.c.bf16 %v2643_v60, %v2641_v62  ;;  %v6931_v26 = vld [vmem:[%s13502_s4 + $0x144] sm:$0xf0]  ;;  %v6937_v62 = vld [vmem:[%s13502_s4 + $0x140] sm:$0xf]  ;;  %v7307_v9 = vld [vmem:[%s13502_s4 + $0x148] sm:$0xf0] }
 0x972   :  { %v2942_v14 = vmul.f32 %v2913_v12, %v10011_v22  ;;  %v2868_v2 = vadd.f32 %v2867_v27, %v2819_v59  ;;  %v6934_v60 = vor.u32 %v7305_v3, %v6931_v26  ;;  %v6938_v12 = vor.u32 %v7307_v9, %v6937_v62  ;;  %v6881_v26 = vld [vmem:[%s13502_s4 + $0xd8] sm:$0xf]  ;;  %v7294_v62 = vld [vmem:[%s13502_s4 + $0xe0] sm:$0xf0]  ;;  %v7293_v9 = vld [vmem:[%s13502_s4 + $0xdc] sm:$0xf] }
 0x973   :  { %2835 = vmatmul.bf16.gmra.mxu2 %v2658_v58  ;;  %2884 = vmatmul.bf16.gmra.mxu3 %v2659_v55  ;;  %v7303_v58 = vld [vmem:[%s13502_s4 + $0x128] sm:$0xf0]  ;;  %v7302_v55 = vld [vmem:[%s13502_s4 + $0x124] sm:$0xf] }
 0x974   :  { %v10527_v6 = vsub.f32 %v10477_v10, %v2942_v14  ;;  %v10530_v28 = vadd.f32 %v2868_v2, %v10378_v24  ;;  %3544 = vmatpush.bf16.msra.mxu2 %v6938_v12  ;;  %v6918_v27 = vor.u32 %v7303_v58, %v6917_v20  ;;  %v6919_v2 = vld [vmem:[%s13502_s4 + $0x12c] sm:$0xf0]  ;;  %v6889_v12 = vld [vmem:[%s13502_s4 + $0xe0] sm:$0xf]  ;;  %v7295_v20 = vld [vmem:[%s13502_s4 + $0xe8] sm:$0xf0] }
 0x976   :  { %v2974_v32 = vmul.f32 %v10527_v6, %v10527_v6  ;;  %2922 = vadd.xlane.f32.xlu1 %v10530_v28 }
 0x977   :  { %v2821_v46 = vpop.f32.mrf.mxu2  ;;  %v2870_v54 = vpop.f32.mrf.mxu3 }
 0x978   :  { %2992 = vadd.xlane.f32.xlu2 %v2974_v32  ;;  %v2822_v29 = vadd.f32 %v10451_v49, %v2821_v46  ;;  %v6925_v32 = vld [vmem:[%s13502_s4 + $0x128] sm:$0xf] }
 0x979   :  { %v2915_v50 = vpop.xlane.xlu1 %2914 }
 0x97a   :  { %v2943_v4 = vmul.f32 %v2915_v50, %v10011_v22  ;;  %v2871_v21 = vadd.f32 %v2870_v54, %v2822_v29  ;;  %v7304_v50 = vld [vmem:[%s13502_s4 + $0x130] sm:$0xf0]  ;;  %v6922_v54 = vor.u32 %v7302_v55, %v6919_v2 }
 0x97c   :  { %v10538_v10 = vsub.f32 %v10482_v31, %v2943_v4  ;;  %v10541_v24 = vadd.f32 %v2871_v21, %v10395_v57  ;;  %v6953_v57 = vld [vmem:[%s13502_s4 + $0x168] sm:$0xf]  ;;  %v7312_v31 = vld [vmem:[%s13502_s4 + $0x170] sm:$0xf0]  ;;  %v6926_v21 = vor.u32 %v7304_v50, %v6925_v32  ;;  %v6869_v32 = vld [vmem:[%s13502_s4 + $0xc0] sm:$0xf] }
 0x97d   :  { %v6954_v18 = vor.u32 %v7312_v31, %v6953_v57  ;;  %v6913_v31 = vld [vmem:[%s13502_s4 + $0x110] sm:$0xf]  ;;  %v7290_v50 = vld [vmem:[%s13502_s4 + $0xc4] sm:$0xf] }
 0x97e   :  { %v2975_v13 = vmul.f32 %v10538_v10, %v10538_v10  ;;  %2924 = vadd.xlane.f32.xlu1 %v10541_v24  ;;  %3545 = vmatpush.bf16.msra.mxu2 %v6926_v21 }
 0x97f   :  { %v2823_v45 = vpop.f32.mrf.mxu2  ;;  %v2872_v5 = vpop.f32.mrf.mxu3  ;;  %3444 = vmatpush.bf16.msra.mxu0 %v6954_v18 }
 0x980   :  { %2994 = vadd.xlane.f32.xlu0 %v2975_v13  ;;  %v2824_v35 = vadd.f32 %v10451_v49, %v2823_v45 }
 0x982   :  { %v2873_v56 = vadd.f32 %v2872_v5, %v2824_v35  ;;  %v6905_v35 = vld [vmem:[%s13502_s4 + $0x108] sm:$0xf]  ;;  %v7300_v5 = vld [vmem:[%s13502_s4 + $0x110] sm:$0xf0] }
 0x983   :  { %3445 = vmatpush.bf16.msra.mxu0 %v6942_v7  ;;  %v6906_v57 = vor.u32 %v7300_v5, %v6905_v35  ;;  %v6895_v7 = vld [vmem:[%s13502_s4 + $0xfc] sm:$0xf0] }
 0x984   :  { %v10548_v40 = vadd.f32 %v2873_v56, %v10398_v17  ;;  %v6955_v17 = vld [vmem:[%s13502_s4 + $0x174] sm:$0xf0]  ;;  %v7299_v56 = vld [vmem:[%s13502_s4 + $0x10c] sm:$0xf] }
 0x985   :  { %v6958_v38 = vor.u32 %v7311_v39, %v6955_v17  ;;  %v7301_v39 = vld [vmem:[%s13502_s4 + $0x118] sm:$0xf0] }
 0x986   :  { %2926 = vadd.xlane.f32.xlu2 %v10548_v40  ;;  %v6914_v8 = vor.u32 %v7301_v39, %v6913_v31 }
 0x987   :  { %3493 = vmatpush.bf16.msra.mxu1 %v6958_v38  ;;  %3446 = vmatpush.bf16.msra.mxu0 %v6930_v15  ;;  %v6893_v38 = vld [vmem:[%s13502_s4 + $0xf0] sm:$0xf] }
 0x988   :  { %3546 = vmatpush.bf16.msra.mxu2 %v6914_v8  ;;  %v6894_v53 = vor.u32 %v7297_v1, %v6893_v38 }
 0x98b   :  { %3494 = vmatpush.bf16.msra.mxu1 %v6946_v11  ;;  %3447 = vmatpush.bf16.msra.mxu0 %v6918_v27  ;;  %v6890_v27 = vor.u32 %v7295_v20, %v6889_v12 }
 0x98c   :  { %3547 = vmatpush.bf16.msra.mxu2 %v6902_v19 }
 0x98f   :  { %3495 = vmatpush.bf16.msra.mxu1 %v6934_v60  ;;  %3448 = vmatpush.bf16.msra.mxu0 %v6906_v57  ;;  %v6882_v60 = vor.u32 %v7294_v62, %v6881_v26 }
 0x990   :  { %3548 = vmatpush.bf16.msra.mxu2 %v6890_v27 }
 0x993   :  { %3496 = vmatpush.bf16.msra.mxu1 %v6922_v54  ;;  %3449 = vmatpush.bf16.msra.mxu0 %v6894_v53  ;;  %v6877_v54 = vld [vmem:[%s13502_s4 + $0xc8] sm:$0xf] }
 0x997   :  { %3450 = vmatpush.bf16.msra.mxu0 %v6882_v60 }
 0x9cd   :  { %v2917_v14 = vpop.xlane.xlu2 %2916  ;;  %v2826_v59 = vpop.f32.mrf.mxu2 }
 0x9ce   :  { %v2944_v46 = vmul.f32 %v2917_v14, %v10011_v22  ;;  %v2827_v4 = vadd.f32 %v10451_v49, %v2826_v59  ;;  %v2875_v29 = vpop.f32.mrf.mxu3 }
 0x9d0   :  { %v10626_v13 = vsub.f32 %v10493_v47, %v2944_v46  ;;  %v2876_v45 = vadd.f32 %v2875_v29, %v2827_v4  ;;  %v6907_v47 = vld [vmem:[%s13502_s4 + $0x114] sm:$0xf0]  ;;  %v6871_v29 = vld [vmem:[%s13502_s4 + $0xcc] sm:$0xf0] }
 0x9d1   :  { %v6910_v51 = vor.u32 %v7299_v56, %v6907_v47  ;;  %v6874_v21 = vor.u32 %v7290_v50, %v6871_v29 }
 0x9d2   :  { %v10647_v18 = vadd.f32 %v2876_v45, %v10415_v36  ;;  %v2976_v17 = vmul.f32 %v10626_v13, %v10626_v13  ;;  %v7296_v36 = vld [vmem:[%s13502_s4 + $0xf4] sm:$0xf] }
 0x9d3   :  { %3497 = vmatpush.bf16.msra.mxu1 %v6910_v51  ;;  %v6898_v61 = vor.u32 %v7296_v36, %v6895_v7  ;;  %v7292_v45 = vld [vmem:[%s13502_s4 + $0xd0] sm:$0xf0] }
 0x9d4   :  { %2996 = vadd.xlane.f32.xlu0 %v2976_v17  ;;  %2928 = vadd.xlane.f32.xlu2 %v10647_v18  ;;  %v6878_v35 = vor.u32 %v7292_v45, %v6877_v54 }
 0x9d5   :  { %v2828_v44 = vpop.f32.mrf.mxu2  ;;  %v2919_v37 = vpop.xlane.xlu0 %2918 }
 0x9d6   :  { %v2829_v0 = vadd.f32 %v10451_v49, %v2828_v44  ;;  %v2945_v11 = vmul.f32 %v2919_v37, %v10011_v22  ;;  %v2877_v52 = vpop.f32.mrf.mxu3  ;;  %3549 = vmatpush.bf16.msra.mxu2 %v6878_v35 }
 0x9d7   :  { %3498 = vmatpush.bf16.msra.mxu1 %v6898_v61 }
 0x9d8   :  { %v2878_v3 = vadd.f32 %v2877_v52, %v2829_v0  ;;  %v10673_v15 = vsub.f32 %v10500_v41, %v2945_v11  ;;  %v6883_v41 = vld [vmem:[%s13502_s4 + $0xe4] sm:$0xf0] }
 0x9d9   :  { %v6886_v59 = vor.u32 %v7293_v9, %v6883_v41 }
 0x9da   :  { %v10694_v58 = vadd.f32 %v2878_v3, %v10418_v63  ;;  %v2989_v55 = vpop.xlane.xlu1 %2988  ;;  %v2977_v14 = vmul.f32 %v10673_v15, %v10673_v15  ;;  %v7291_v63 = vld [vmem:[%s13502_s4 + $0xc8] sm:$0xf0] }
 0x9db   :  { %v3020_v2 = vmul.f32 %v2989_v55, %v10011_v22  ;;  %3499 = vmatpush.bf16.msra.mxu1 %v6886_v59  ;;  %v6870_v4 = vor.u32 %v7291_v63, %v6869_v32  ;;  %v10750_v63 = vld [vmem:[%s13513_s14] ss:$0 sm:$0xff] }
 0x9dc   :  { %2930 = vadd.xlane.f32.xlu0 %v10694_v58  ;;  %2998 = vadd.xlane.f32.xlu1 %v2977_v14 }
 0x9dd   :  { %v3036_v46 = vadd.f32 1e-05, %v3020_v2  ;;  %3451 = vmatpush.bf16.msra.mxu0 %v6870_v4 }
 0x9df   :  { %7682 = vrsqrt.f32 %v3036_v46  ;;  %3500 = vmatpush.bf16.msra.mxu1 %v6874_v21  ;;  %vm3058_vm10 = vweird.f32 %v3036_v46 }
 0x9e1   :  { %v2831_v56 = vpop.f32.mrf.mxu2  ;;  %v2880_v31 = vpop.f32.mrf.mxu3 }
 0x9e2   :  { %v2991_v5 = vpop.xlane.xlu2 %2990  ;;  %v2832_v47 = vadd.f32 %v10451_v49, %v2831_v56  ;;  %v2921_v39 = vpop.xlane.xlu0 %2920 }
 0x9e3   :  { %v3021_v57 = vmul.f32 %v2991_v5, %v10011_v22  ;;  %v2946_v17 = vmul.f32 %v2921_v39, %v10011_v22 }
 0x9e4   :  { %v2881_v38 = vadd.f32 %v2880_v31, %v2832_v47 }
 0x9e5   :  { %v7683_v51 = vpop.eup %7682  ;;  %v3037_v8 = vadd.f32 1e-05, %v3021_v57  ;;  %v10722_v36 = vsub.f32 %v10521_v42, %v2946_v17 }
 0x9e6   :  { %v3053_v1 = vmul.f32 %v7683_v51, %v3036_v46  ;;  %v10725_v44 = vadd.f32 %v2881_v38, %v10433_v23  ;;  %vm3059_vm9 = vweird.f32 %v7683_v51 }
 0x9e7   :  { %7684 = vrsqrt.f32 %v3037_v8  ;;  %v2978_v53 = vmul.f32 %v10722_v36, %v10722_v36  ;;  %vm3060_vm11 = vmor %vm3058_vm10, %vm3059_vm9  ;;  %vm3068_vm13 = vweird.f32 %v3037_v8 }
 0x9e8   :  { %v3054_v37 = vmul.f32 %v7683_v51, %v3053_v1  ;;  %2932 = vadd.xlane.f32.xlu0 %v10725_v44 }
 0x9e9   :  { %3000 = vadd.xlane.f32.xlu1 %v2978_v53  ;;  %v2833_v30 = vpop.f32.mrf.mxu2  ;;  %v2923_v0 = vpop.xlane.xlu1 %2922 }
 0x9ea   :  { %v3055_v7 = vmul.f32 0.5, %v3054_v37  ;;  %v2834_v11 = vadd.f32 %v10451_v49, %v2833_v30  ;;  %v2947_v19 = vmul.f32 %v2923_v0, %v10011_v22  ;;  %v2882_v23 = vpop.f32.mrf.mxu3 }
 0x9eb   :  { %v2993_v43 = vpop.xlane.xlu2 %2992 }
 0x9ec   :  { %v3056_v61 = vsub.f32 1.5, %v3055_v7  ;;  %v3022_v42 = vmul.f32 %v2993_v43, %v10011_v22  ;;  %v2883_v3 = vadd.f32 %v2882_v23, %v2834_v11  ;;  %v10736_v60 = vsub.f32 %v10530_v28, %v2947_v19 }
 0x9ed   :  { %v7685_v52 = vpop.eup %7684 }
 0x9ee   :  { %v3063_v26 = vmul.f32 %v7685_v52, %v3037_v8  ;;  %v10733_v62 = vadd.f32 1e-05, %v3022_v42  ;;  %v3057_v9 = vmul.f32 %v7683_v51, %v3056_v61  ;;  %v10739_v41 = vadd.f32 %v2883_v3, %v10436_v16 }
 0x9ef   :  { %v2979_v20 = vmul.f32 %v10736_v60, %v10736_v60  ;;  %vm3069_vm12 = vweird.f32 %v7685_v52 }
 0x9f0   :  { %v3064_v12 = vmul.f32 %v7685_v52, %v3063_v26  ;;  %7686 = vrsqrt.f32 %v10733_v62  ;;  %v3061_v14 = vsel %vm3060_vm11, %v7683_v51, %v3057_v9  ;;  %vm3070_vm14 = vmor %vm3068_vm13, %vm3069_vm12  ;;  %vm3078_vm0 = vweird.f32 %v10733_v62 }
 0x9f1   :  { %2934 = vadd.xlane.f32.xlu1 %v10739_v41  ;;  %3002 = vadd.xlane.f32.xlu2 %v2979_v20  ;;  %v2925_v27 = vpop.xlane.xlu1 %2924  ;;  %v3212_v50 = vmul.f32 %v3061_v14, %v10505_v25 }
 0x9f2   :  { %v3065_v55 = vmul.f32 0.5, %v3064_v12  ;;  %v2948_v2 = vmul.f32 %v2925_v27, %v10011_v22 }
 0x9f3   :  { %v2995_v59 = vpop.xlane.xlu0 %2994  ;;  %v3231_v31 = vmul.f32 %v10750_v63, %v3212_v50 }
 0x9f4   :  { %v3066_v28 = vsub.f32 1.5, %v3065_v55  ;;  %v3023_v16 = vmul.f32 %v2995_v59, %v10011_v22  ;;  %v10754_v29 = vsub.f32 %v10541_v24, %v2948_v2  ;;  %v10765_v24 = vld [vmem:[%s13514_s15] ss:$0 sm:$0xff] }
 0x9f5   :  { %v10780_v30 = vadd.f32 %v10765_v24, %v3231_v31 }
 0x9f6   :  { %v7687_v32 = vpop.eup %7686  ;;  %v3067_v46 = vmul.f32 %v7685_v52, %v3066_v28  ;;  %v3039_v4 = vadd.f32 1e-05, %v3023_v16  ;;  %v2836_v54 = vpop.f32.mrf.mxu2  ;;  %v2980_v56 = vmul.f32 %v10754_v29, %v10754_v29 }
 0x9f7   :  { %v2885_v21 = vpop.f32.mrf.mxu3  ;;  %v3073_v45 = vmul.f32 %v7687_v32, %v10733_v62  ;;  %v2837_v35 = vadd.f32 %v10451_v49, %v2836_v54  ;;  %13813 = vst [vmem:[#allocation48_spill] sm:$0xff] %v10780_v30  ;;  %vm3079_vm15 = vweird.f32 %v7687_v32 }
 0x9f8   :  { %v3071_v5 = vsel %vm3070_vm14, %v7685_v52, %v3067_v46  ;;  %7688 = vrsqrt.f32 %v3039_v4  ;;  %vm3080_vm1 = vmor %vm3078_vm0, %vm3079_vm15  ;;  %vm3088_vm3 = vweird.f32 %v3039_v4 }
 0x9f9   :  { %v3213_v57 = vmul.f32 %v3071_v5, %v10514_v33  ;;  %v3074_v25 = vmul.f32 %v7687_v32, %v3073_v45  ;;  %v2886_v47 = vadd.f32 %v2885_v21, %v2837_v35  ;;  %3004 = vadd.xlane.f32.xlu2 %v2980_v56  ;;  %v2927_v8 = vpop.xlane.xlu2 %2926 }
 0x9fa   :  { %v2949_v38 = vmul.f32 %v2927_v8, %v10011_v22 }
 0x9fb   :  { %v3232_v39 = vmul.f32 %v10750_v63, %v3213_v57  ;;  %v3075_v17 = vmul.f32 0.5, %v3074_v25  ;;  %v10769_v51 = vadd.f32 %v2886_v47, %v10454_v34 }
 0x9fc   :  { %v10777_v53 = vsub.f32 %v10548_v40, %v2949_v38 }
 0x9fd   :  { %v3076_v33 = vsub.f32 1.5, %v3075_v17  ;;  %2936 = vadd.xlane.f32.xlu1 %v10769_v51  ;;  %v10774_v1 = vadd.f32 %v10765_v24, %v3232_v39 }
 0x9fe   :  { %v7689_v37 = vpop.eup %7688  ;;  %v2838_v7 = vpop.f32.mrf.mxu2  ;;  %v2981_v42 = vmul.f32 %v10777_v53, %v10777_v53 }
 0x9ff   :  { %13812 = vst [vmem:[#allocation41_spill] sm:$0xff] %v10774_v1  ;;  %v3077_v34 = vmul.f32 %v7687_v32, %v3076_v33  ;;  %v3083_v43 = vmul.f32 %v7689_v37, %v3039_v4  ;;  %v2839_v0 = vadd.f32 %v10451_v49, %v2838_v7  ;;  %v2887_v11 = vpop.f32.mrf.mxu3  ;;  %v3266_v61 = vpack.c.bf16 %v10774_v1, %v10780_v30 }
 0xa00   :  { %3006 = vadd.xlane.f32.xlu0 %v2981_v42  ;;  %vm3089_vm2 = vweird.f32 %v7689_v37 }
 0xa01   :  { %v3084_v40 = vmul.f32 %v7689_v37, %v3083_v43  ;;  %v2888_v19 = vadd.f32 %v2887_v11, %v2839_v0  ;;  %3452 = vmatmul.bf16.vlgmr.msra.gmra.mxu0 %v3266_v61  ;;  %3501 = vmatmul.bf16.vlgmr.msra.gmra.mxu1 %v3266_v61  ;;  %v3081_v23 = vsel %vm3080_vm1, %v7687_v32, %v3077_v34  ;;  %vm3090_vm4 = vmor %vm3088_vm3, %vm3089_vm2 }
 0xa02   :  { %3550 = vmatmul.bf16.vlgmr.msra.gmra.mxu2 %v3266_v61  ;;  %v3214_v26 = vmul.f32 %v3081_v23, %v10527_v6 }
 0xa03   :  { %v3085_v52 = vmul.f32 0.5, %v3084_v40  ;;  %v10789_v3 = vadd.f32 %v2888_v19, %v10457_v48 }
 0xa04   :  { %v3233_v20 = vmul.f32 %v10750_v63, %v3214_v26 }
 0xa05   :  { %v3086_v49 = vsub.f32 1.5, %v3085_v52  ;;  %2938 = vadd.xlane.f32.xlu2 %v10789_v3 }
 0xa06   :  { %v10797_v48 = vadd.f32 %v10765_v24, %v3233_v20 }
 0xa07   :  { %v3087_v9 = vmul.f32 %v7689_v37, %v3086_v49 }
 0xa08   :  { %13814 = vst [vmem:[#allocation47_spill] sm:$0xff] %v10797_v48 }
 0xa09   :  { %v3091_v62 = vsel %vm3090_vm4, %v7689_v37, %v3087_v9 }
 0xa0a   :  { %v3215_v12 = vmul.f32 %v3091_v62, %v10538_v10 }
 0xa0c   :  { %v3234_v55 = vmul.f32 %v10750_v63, %v3215_v12 }
 0xa0e   :  { %v10800_v14 = vadd.f32 %v10765_v24, %v3234_v55 }
 0xa10   :  { %13815 = vst [vmem:[#allocation50_spill] sm:$0xff] %v10800_v14  ;;  %v3267_v59 = vpack.c.bf16 %v10800_v14, %v10797_v48 }
 0xa12   :  { %3457 = vmatmul.bf16.gmra.mxu0 %v3267_v59  ;;  %3506 = vmatmul.bf16.gmra.mxu1 %v3267_v59 }
 0xa13   :  { %3555 = vmatmul.bf16.gmra.mxu2 %v3267_v59 }
 0xa47   :  { %v2929_v6 = vpop.xlane.xlu2 %2928  ;;  %v2997_v27 = vpop.xlane.xlu0 %2996 }
 0xa48   :  { %v2950_v10 = vmul.f32 %v2929_v6, %v10011_v22  ;;  %v3024_v28 = vmul.f32 %v2997_v27, %v10011_v22 }
 0xa4a   :  { %v10807_v16 = vsub.f32 %v10647_v18, %v2950_v10  ;;  %v3040_v2 = vadd.f32 1e-05, %v3024_v28 }
 0xa4c   :  { %7690 = vrsqrt.f32 %v3040_v2  ;;  %v2982_v32 = vmul.f32 %v10807_v16, %v10807_v16  ;;  %vm3098_vm6 = vweird.f32 %v3040_v2 }
 0xa4e   :  { %3008 = vadd.xlane.f32.xlu0 %v2982_v32 }
 0xa4f   :  { %v2999_v50 = vpop.xlane.xlu1 %2998  ;;  %v2931_v46 = vpop.xlane.xlu0 %2930 }
 0xa50   :  { %v3025_v4 = vmul.f32 %v2999_v50, %v10011_v22  ;;  %v2951_v54 = vmul.f32 %v2931_v46, %v10011_v22 }
 0xa52   :  { %v7691_v21 = vpop.eup %7690  ;;  %v3041_v45 = vadd.f32 1e-05, %v3025_v4  ;;  %v10814_v35 = vsub.f32 %v10694_v58, %v2951_v54 }
 0xa53   :  { %v3093_v5 = vmul.f32 %v7691_v21, %v3040_v2  ;;  %vm3099_vm5 = vweird.f32 %v7691_v21 }
 0xa54   :  { %7692 = vrsqrt.f32 %v3041_v45  ;;  %v2983_v18 = vmul.f32 %v10814_v35, %v10814_v35  ;;  %vm3100_vm7 = vmor %vm3098_vm6, %vm3099_vm5  ;;  %vm3108_vm9 = vweird.f32 %v3041_v45 }
 0xa55   :  { %v3094_v56 = vmul.f32 %v7691_v21, %v3093_v5 }
 0xa56   :  { %3010 = vadd.xlane.f32.xlu1 %v2983_v18 }
 0xa57   :  { %v3095_v57 = vmul.f32 0.5, %v3094_v56 }
 0xa59   :  { %v3096_v25 = vsub.f32 1.5, %v3095_v57 }
 0xa5a   :  { %v7693_v47 = vpop.eup %7692 }
 0xa5b   :  { %v3097_v31 = vmul.f32 %v7691_v21, %v3096_v25  ;;  %v3103_v39 = vmul.f32 %v7693_v47, %v3041_v45  ;;  %v2933_v17 = vpop.xlane.xlu0 %2932  ;;  %vm3109_vm8 = vweird.f32 %v7693_v47 }
 0xa5c   :  { %v3001_v38 = vpop.xlane.xlu1 %3000  ;;  %v2952_v58 = vmul.f32 %v2933_v17, %v10011_v22  ;;  %vm3110_vm10 = vmor %vm3108_vm9, %vm3109_vm8 }
 0xa5d   :  { %v3104_v8 = vmul.f32 %v7693_v47, %v3103_v39  ;;  %v3026_v33 = vmul.f32 %v3001_v38, %v10011_v22  ;;  %v3101_v37 = vsel %vm3100_vm7, %v7691_v21, %v3097_v31  ;;  %v10856_v38 = vld [vmem:[%s13503_s5 + $0x3] sm:$0x7] }
 0xa5e   :  { %v10821_v34 = vsub.f32 %v10725_v44, %v2952_v58  ;;  %v3216_v61 = vmul.f32 %v3101_v37, %v10626_v13 }
 0xa5f   :  { %v3105_v7 = vmul.f32 0.5, %v3104_v8  ;;  %v3042_v43 = vadd.f32 1e-05, %v3026_v33 }
 0xa60   :  { %v2984_v11 = vmul.f32 %v10821_v34, %v10821_v34  ;;  %v3235_v49 = vmul.f32 %v10750_v63, %v3216_v61  ;;  %v10866_v61 = vperm.slane %v10856_v38, 1 }
 0xa61   :  { %v3106_v0 = vsub.f32 1.5, %v3105_v7  ;;  %7694 = vrsqrt.f32 %v3042_v43  ;;  %vm3118_vm12 = vweird.f32 %v3042_v43 }
 0xa62   :  { %3012 = vadd.xlane.f32.xlu2 %v2984_v11  ;;  %v10837_v59 = vadd.f32 %v10765_v24, %v3235_v49  ;;  %v10863_v11 = vperm.slane %v10856_v38, 0 }
 0xa63   :  { %v3107_v42 = vmul.f32 %v7693_v47, %v3106_v0 }
 0xa64   :  { %v2935_v19 = vpop.xlane.xlu1 %2934  ;;  %v3003_v23 = vpop.xlane.xlu2 %3002  ;;  %13816 = vst [vmem:[#allocation49_spill] sm:$0xff] %v10837_v59 }
 0xa65   :  { %v3111_v40 = vsel %vm3110_vm10, %v7693_v47, %v3107_v42  ;;  %v2953_v52 = vmul.f32 %v2935_v19, %v10011_v22  ;;  %v3027_v26 = vmul.f32 %v3003_v23, %v10011_v22 }
 0xa66   :  { %v3217_v44 = vmul.f32 %v3111_v40, %v10673_v15 }
 0xa67   :  { %v7695_v9 = vpop.eup %7694  ;;  %v10831_v62 = vsub.f32 %v10739_v41, %v2953_v52  ;;  %v3043_v20 = vadd.f32 1e-05, %v3027_v26 }
 0xa68   :  { %v3236_v13 = vmul.f32 %v10750_v63, %v3217_v44  ;;  %v3113_v12 = vmul.f32 %v7695_v9, %v3042_v43  ;;  %vm3119_vm11 = vweird.f32 %v7695_v9 }
 0xa69   :  { %v2985_v55 = vmul.f32 %v10831_v62, %v10831_v62  ;;  %7696 = vrsqrt.f32 %v3043_v20  ;;  %vm3120_vm13 = vmor %vm3118_vm12, %vm3119_vm11  ;;  %vm3128_vm15 = vweird.f32 %v3043_v20 }
 0xa6a   :  { %v10840_v15 = vadd.f32 %v10765_v24, %v3236_v13  ;;  %v3114_v6 = vmul.f32 %v7695_v9, %v3113_v12 }
 0xa6b   :  { %3014 = vadd.xlane.f32.xlu0 %v2985_v55 }
 0xa6c   :  { %13817 = vst [vmem:[#allocation55_spill] sm:$0xff] %v10840_v15  ;;  %v3268_v41 = vpack.c.bf16 %v10840_v15, %v10837_v59  ;;  %v3115_v27 = vmul.f32 0.5, %v3114_v6  ;;  %v3005_v10 = vpop.xlane.xlu2 %3004 }
 0xa6d   :  { %v3028_v2 = vmul.f32 %v3005_v10, %v10011_v22 }
 0xa6e   :  { %3462 = vmatmul.bf16.gmra.mxu0 %v3268_v41  ;;  %3511 = vmatmul.bf16.gmra.mxu1 %v3268_v41  ;;  %v3116_v28 = vsub.f32 1.5, %v3115_v27 }
 0xa6f   :  { %3560 = vmatmul.bf16.gmra.mxu2 %v3268_v41  ;;  %v7697_v50 = vpop.eup %7696  ;;  %v3044_v46 = vadd.f32 1e-05, %v3028_v2 }
 0xa70   :  { %v2937_v32 = vpop.xlane.xlu1 %2936  ;;  %v3117_v54 = vmul.f32 %v7695_v9, %v3116_v28  ;;  %v3123_v21 = vmul.f32 %v7697_v50, %v3043_v20  ;;  %vm3129_vm14 = vweird.f32 %v7697_v50 }
 0xa71   :  { %v2954_v4 = vmul.f32 %v2937_v32, %v10011_v22  ;;  %7698 = vrsqrt.f32 %v3044_v46  ;;  %vm3130_vm0 = vmor %vm3128_vm15, %vm3129_vm14  ;;  %vm3138_vm2 = vweird.f32 %v3044_v46 }
 0xa72   :  { %v3124_v5 = vmul.f32 %v7697_v50, %v3123_v21  ;;  %v3121_v56 = vsel %vm3120_vm13, %v7695_v9, %v3117_v54 }
 0xa73   :  { %v10847_v45 = vsub.f32 %v10769_v51, %v2954_v4  ;;  %v3007_v25 = vpop.xlane.xlu0 %3006  ;;  %v3218_v58 = vmul.f32 %v3121_v56, %v10722_v36 }
 0xa74   :  { %v3125_v57 = vmul.f32 0.5, %v3124_v5  ;;  %v3029_v47 = vmul.f32 %v3007_v25, %v10011_v22 }
 0xa75   :  { %v2986_v18 = vmul.f32 %v10847_v45, %v10847_v45  ;;  %v3237_v40 = vmul.f32 %v10750_v63, %v3218_v58 }
 0xa76   :  { %v3126_v31 = vsub.f32 1.5, %v3125_v57  ;;  %v3045_v8 = vadd.f32 1e-05, %v3029_v47  ;;  %v13820_v47 = vld [vmem:[#allocation19_spill] sm:$0xff] }
 0xa77   :  { %3016 = vadd.xlane.f32.xlu1 %v2986_v18  ;;  %v7699_v17 = vpop.eup %7698  ;;  %v10876_v13 = vadd.f32 %v10765_v24, %v3237_v40 }
 0xa78   :  { %v2939_v39 = vpop.xlane.xlu2 %2938  ;;  %v3127_v33 = vmul.f32 %v7697_v50, %v3126_v31  ;;  %v3133_v37 = vmul.f32 %v7699_v17, %v3044_v46  ;;  %7700 = vrsqrt.f32 %v3045_v8  ;;  %vm3139_vm1 = vweird.f32 %v7699_v17 }
 0xa79   :  { %v2955_v51 = vmul.f32 %v2939_v39, %v10011_v22  ;;  %13818 = vst [vmem:[#allocation57_spill] sm:$0xff] %v10876_v13  ;;  %vm3140_vm3 = vmor %vm3138_vm2, %vm3139_vm1  ;;  %vm3148_vm5 = vweird.f32 %v3045_v8 }
 0xa7a   :  { %v3131_v43 = vsel %vm3130_vm0, %v7697_v50, %v3127_v33  ;;  %v3134_v0 = vmul.f32 %v7699_v17, %v3133_v37 }
 0xa7b   :  { %v10860_v7 = vsub.f32 %v10789_v3, %v2955_v51  ;;  %v3219_v36 = vmul.f32 %v3131_v43, %v10736_v60 }
 0xa7c   :  { %v3135_v19 = vmul.f32 0.5, %v3134_v0 }
 0xa7d   :  { %v2987_v42 = vmul.f32 %v10860_v7, %v10860_v7  ;;  %v3238_v3 = vmul.f32 %v10750_v63, %v3219_v36 }
 0xa7e   :  { %v3453_v23 = vpop.f32.mrf.mxu0  ;;  %v3502_v52 = vpop.f32.mrf.mxu1  ;;  %v3136_v44 = vsub.f32 1.5, %v3135_v19 }
 0xa7f   :  { %3018 = vadd.xlane.f32.xlu2 %v2987_v42  ;;  %v3454_v49 = vadd.f32 %v3453_v23, %v10863_v11  ;;  %v3503_v26 = vadd.f32 %v3502_v52, %v10866_v61  ;;  %v7701_v9 = vpop.eup %7700  ;;  %v10879_v12 = vadd.f32 %v10765_v24, %v3238_v3 }
 0xa80   :  { %v3137_v60 = vmul.f32 %v7699_v17, %v3136_v44  ;;  %v3143_v20 = vmul.f32 %v7701_v9, %v3045_v8  ;;  %vm3149_vm4 = vweird.f32 %v7701_v9 }
 0xa81   :  { %13819 = vst [vmem:[#allocation56_spill] sm:$0xff] %v10879_v12  ;;  %v10881_v55 = vpack.c.bf16 %v3503_v26, %v3454_v49  ;;  %v3269_v6 = vpack.c.bf16 %v10879_v12, %v10876_v13  ;;  %vm3150_vm6 = vmor %vm3148_vm5, %vm3149_vm4 }
 0xa82   :  { %v3144_v41 = vmul.f32 %v7701_v9, %v3143_v20  ;;  %v3141_v27 = vsel %vm3140_vm3, %v7699_v17, %v3137_v60 }
 0xa83   :  { %3467 = vmatmul.bf16.gmra.mxu0 %v3269_v6  ;;  %3516 = vmatmul.bf16.gmra.mxu1 %v3269_v6  ;;  %v3220_v54 = vmul.f32 %v3141_v27, %v10754_v29  ;;  %v10891_v5 = vunpack.c.l.bf16 %v10881_v55  ;;  %v13822_v29 = vld [vmem:[#allocation18_spill] sm:$0xff] }
 0xa84   :  { %v3145_v10 = vmul.f32 0.5, %v3144_v41  ;;  %3565 = vmatmul.bf16.gmra.mxu2 %v3269_v6 }
 0xa85   :  { %v3239_v25 = vmul.f32 %v10750_v63, %v3220_v54  ;;  %v10908_v17 = vmul.f32 %v10891_v5, %v13820_v47  ;;  %v10912_v8 = vmul.f32 %v10891_v5, %v13822_v29 }
 0xa86   :  { %v3455_v28 = vpop.f32.mrf.mxu0  ;;  %v3504_v2 = vpop.f32.mrf.mxu1  ;;  %v3146_v32 = vsub.f32 1.5, %v3145_v10 }
 0xa87   :  { %v3456_v50 = vadd.f32 %v3455_v28, %v10863_v11  ;;  %v3505_v4 = vadd.f32 %v3504_v2, %v10866_v61  ;;  %13824 = vst [vmem:[#allocation24_spill] sm:$0xff] %v10908_v17  ;;  %v10918_v43 = vadd.f32 %v10765_v24, %v3239_v25 }
 0xa88   :  { %v3147_v21 = vmul.f32 %v7701_v9, %v3146_v32  ;;  %13825 = vst [vmem:[#allocation25_spill] sm:$0xff] %v10912_v8 }
 0xa89   :  { %v10888_v46 = vpack.c.bf16 %v3505_v4, %v3456_v50  ;;  %13826 = vst [vmem:[#allocation28_spill] sm:$0xff] %v10918_v43 }
 0xa8a   :  { %v3151_v18 = vsel %vm3150_vm6, %v7701_v9, %v3147_v21 }
 0xa8b   :  { %v10894_v56 = vunpack.c.l.bf16 %v10888_v46  ;;  %v3221_v57 = vmul.f32 %v3151_v18, %v10777_v53 }
 0xa8d   :  { %v10900_v31 = vmul.f32 %v10894_v56, %v13820_v47  ;;  %v10904_v39 = vmul.f32 %v10894_v56, %v13822_v29  ;;  %v3240_v58 = vmul.f32 %v10750_v63, %v3221_v57 }
 0xa8f   :  { %13821 = vst [vmem:[#allocation23_spill] sm:$0xff] %v10900_v31  ;;  %v3458_v51 = vpop.f32.mrf.mxu0  ;;  %v3507_v53 = vpop.f32.mrf.mxu1  ;;  %v10921_v0 = vadd.f32 %v10765_v24, %v3240_v58 }
 0xa90   :  { %13823 = vst [vmem:[#allocation22_spill] sm:$0xff] %v10904_v39  ;;  %v3459_v33 = vadd.f32 %v3458_v51, %v10863_v11  ;;  %v3508_v37 = vadd.f32 %v3507_v53, %v10866_v61 }
 0xa91   :  { %13827 = vst [vmem:[#allocation29_spill] sm:$0xff] %v10921_v0  ;;  %v3270_v19 = vpack.c.bf16 %v10921_v0, %v10918_v43 }
 0xa92   :  { %v10927_v40 = vpack.c.bf16 %v3508_v37, %v3459_v33 }
 0xa93   :  { %3472 = vmatmul.bf16.gmra.mxu0 %v3270_v19  ;;  %3521 = vmatmul.bf16.gmra.mxu1 %v3270_v19 }
 0xa94   :  { %3570 = vmatmul.bf16.gmra.mxu2 %v3270_v19  ;;  %v10934_v49 = vunpack.c.l.bf16 %v10927_v40 }
 0xa96   :  { %v10943_v60 = vmul.f32 %v10934_v49, %v13820_v47  ;;  %v10951_v6 = vmul.f32 %v10934_v49, %v13822_v29 }
 0xa97   :  { %v3460_v23 = vpop.f32.mrf.mxu0  ;;  %v3509_v52 = vpop.f32.mrf.mxu1 }
 0xa98   :  { %v3461_v3 = vadd.f32 %v3460_v23, %v10863_v11  ;;  %v3510_v44 = vadd.f32 %v3509_v52, %v10866_v61  ;;  %13828 = vst [vmem:[#allocation35_spill] sm:$0xff] %v10943_v60 }
 0xa99   :  { %13830 = vst [vmem:[#allocation43_spill] sm:$0xff] %v10951_v6 }
 0xa9a   :  { %v10936_v26 = vpack.c.bf16 %v3510_v44, %v3461_v3 }
 0xa9c   :  { %v10939_v9 = vunpack.c.l.bf16 %v10936_v26 }
 0xa9e   :  { %v10947_v20 = vmul.f32 %v10939_v9, %v13820_v47  ;;  %v10955_v41 = vmul.f32 %v10939_v9, %v13822_v29 }
 0xaa0   :  { %13829 = vst [vmem:[#allocation36_spill] sm:$0xff] %v10947_v20 }
 0xaa1   :  { %13831 = vst [vmem:[#allocation44_spill] sm:$0xff] %v10955_v41 }
 0xac1   :  { %v3009_v28 = vpop.xlane.xlu0 %3008 }
 0xac2   :  { %v3030_v2 = vmul.f32 %v3009_v28, %v10011_v22 }
 0xac4   :  { %v3046_v32 = vadd.f32 1e-05, %v3030_v2 }
 0xac6   :  { %7702 = vrsqrt.f32 %v3046_v32  ;;  %vm3158_vm8 = vweird.f32 %v3046_v32 }
 0xac9   :  { %v3011_v50 = vpop.xlane.xlu1 %3010 }
 0xaca   :  { %v3031_v4 = vmul.f32 %v3011_v50, %v10011_v22 }
 0xacc   :  { %v7703_v54 = vpop.eup %7702  ;;  %v3047_v21 = vadd.f32 1e-05, %v3031_v4 }
 0xacd   :  { %v3153_v18 = vmul.f32 %v7703_v54, %v3046_v32  ;;  %vm3159_vm7 = vweird.f32 %v7703_v54 }
 0xace   :  { %7704 = vrsqrt.f32 %v3047_v21  ;;  %vm3160_vm9 = vmor %vm3158_vm8, %vm3159_vm7  ;;  %vm3168_vm11 = vweird.f32 %v3047_v21 }
 0xacf   :  { %v3154_v57 = vmul.f32 %v7703_v54, %v3153_v18 }
 0xad1   :  { %v3155_v25 = vmul.f32 0.5, %v3154_v57 }
 0xad3   :  { %v3156_v51 = vsub.f32 1.5, %v3155_v25 }
 0xad4   :  { %v7705_v53 = vpop.eup %7704 }
 0xad5   :  { %v3157_v58 = vmul.f32 %v7703_v54, %v3156_v51  ;;  %v3163_v33 = vmul.f32 %v7705_v53, %v3047_v21  ;;  %v3013_v37 = vpop.xlane.xlu2 %3012  ;;  %vm3169_vm10 = vweird.f32 %v7705_v53 }
 0xad6   :  { %v3032_v23 = vmul.f32 %v3013_v37, %v10011_v22  ;;  %vm3170_vm12 = vmor %vm3168_vm11, %vm3169_vm10 }
 0xad7   :  { %v3164_v19 = vmul.f32 %v7705_v53, %v3163_v33  ;;  %v3161_v52 = vsel %vm3160_vm9, %v7703_v54, %v3157_v58 }
 0xad8   :  { %v3048_v44 = vadd.f32 1e-05, %v3032_v23  ;;  %v3222_v2 = vmul.f32 %v3161_v52, %v10807_v16 }
 0xad9   :  { %v3165_v3 = vmul.f32 0.5, %v3164_v19 }
 0xada   :  { %7706 = vrsqrt.f32 %v3048_v44  ;;  %v3241_v25 = vmul.f32 %v10750_v63, %v3222_v2  ;;  %vm3178_vm14 = vweird.f32 %v3048_v44 }
 0xadb   :  { %v3166_v28 = vsub.f32 1.5, %v3165_v3 }
 0xadc   :  { %v10970_v16 = vadd.f32 %v10765_v24, %v3241_v25 }
 0xadd   :  { %v3167_v50 = vmul.f32 %v7705_v53, %v3166_v28 }
 0xade   :  { %v3015_v18 = vpop.xlane.xlu0 %3014  ;;  %13832 = vst [vmem:[#allocation51_spill] sm:$0xff] %v10970_v16 }
 0xadf   :  { %v3171_v4 = vsel %vm3170_vm12, %v7705_v53, %v3167_v50  ;;  %v3033_v57 = vmul.f32 %v3015_v18, %v10011_v22 }
 0xae0   :  { %v3223_v32 = vmul.f32 %v3171_v4, %v10814_v35  ;;  %v7707_v51 = vpop.eup %7706 }
 0xae1   :  { %v3173_v54 = vmul.f32 %v7707_v51, %v3048_v44  ;;  %v3049_v58 = vadd.f32 1e-05, %v3033_v57  ;;  %vm3179_vm13 = vweird.f32 %v7707_v51 }
 0xae2   :  { %v3242_v33 = vmul.f32 %v10750_v63, %v3223_v32  ;;  %vm3180_vm15 = vmor %vm3178_vm14, %vm3179_vm13 }
 0xae3   :  { %v3174_v37 = vmul.f32 %v7707_v51, %v3173_v54  ;;  %7708 = vrsqrt.f32 %v3049_v58  ;;  %vm3188_vm1 = vweird.f32 %v3049_v58 }
 0xae4   :  { %v10973_v21 = vadd.f32 %v10765_v24, %v3242_v33 }
 0xae5   :  { %v3175_v53 = vmul.f32 0.5, %v3174_v37 }
 0xae6   :  { %13833 = vst [vmem:[#allocation52_spill] sm:$0xff] %v10973_v21  ;;  %v3271_v19 = vpack.c.bf16 %v10973_v21, %v10970_v16 }
 0xae7   :  { %v3176_v35 = vsub.f32 1.5, %v3175_v53 }
 0xae8   :  { %3477 = vmatmul.bf16.gmra.mxu0 %v3271_v19  ;;  %3526 = vmatmul.bf16.gmra.mxu1 %v3271_v19 }
 0xae9   :  { %3575 = vmatmul.bf16.gmra.mxu2 %v3271_v19  ;;  %v7709_v23 = vpop.eup %7708  ;;  %v3177_v3 = vmul.f32 %v7707_v51, %v3176_v35 }
 0xaea   :  { %v3017_v52 = vpop.xlane.xlu1 %3016  ;;  %v3183_v28 = vmul.f32 %v7709_v23, %v3049_v58  ;;  %vm3189_vm0 = vweird.f32 %v7709_v23 }
 0xaeb   :  { %v3034_v2 = vmul.f32 %v3017_v52, %v10011_v22  ;;  %v3463_v50 = vpop.f32.mrf.mxu0  ;;  %v3512_v4 = vpop.f32.mrf.mxu1  ;;  %v3181_v33 = vsel %vm3180_vm15, %v7707_v51, %v3177_v3  ;;  %vm3190_vm2 = vmor %vm3188_vm1, %vm3189_vm0 }
 0xaec   :  { %v3464_v18 = vadd.f32 %v3463_v50, %v10863_v11  ;;  %v3513_v57 = vadd.f32 %v3512_v4, %v10866_v61  ;;  %v3184_v32 = vmul.f32 %v7709_v23, %v3183_v28  ;;  %v3224_v35 = vmul.f32 %v3181_v33, %v10821_v34 }
 0xaed   :  { %v3050_v25 = vadd.f32 1e-05, %v3034_v2 }
 0xaee   :  { %v10980_v54 = vpack.c.bf16 %v3513_v57, %v3464_v18  ;;  %v3185_v37 = vmul.f32 0.5, %v3184_v32  ;;  %v3243_v34 = vmul.f32 %v10750_v63, %v3224_v35 }
 0xaef   :  { %7710 = vrsqrt.f32 %v3050_v25  ;;  %vm3198_vm4 = vweird.f32 %v3050_v25 }
 0xaf0   :  { %v3186_v53 = vsub.f32 1.5, %v3185_v37  ;;  %v10991_v58 = vunpack.c.l.bf16 %v10980_v54 }
 0xaf2   :  { %v3019_v19 = vpop.xlane.xlu2 %3018  ;;  %v3187_v52 = vmul.f32 %v7709_v23, %v3186_v53 }
 0xaf3   :  { %v3035_v50 = vmul.f32 %v3019_v19, %v10011_v22  ;;  %v3465_v10 = vpop.f32.mrf.mxu0  ;;  %v3514_v4 = vpop.f32.mrf.mxu1 }
 0xaf4   :  { %v3466_v44 = vadd.f32 %v3465_v10, %v10863_v11  ;;  %v3515_v28 = vadd.f32 %v3514_v4, %v10866_v61  ;;  %v3191_v51 = vsel %vm3190_vm2, %v7709_v23, %v3187_v52  ;;  %v10998_v23 = vadd.f32 %v10765_v24, %v3243_v34 }
 0xaf5   :  { %v7711_v2 = vpop.eup %7710  ;;  %v3051_v3 = vadd.f32 1e-05, %v3035_v50  ;;  %v3225_v32 = vmul.f32 %v3191_v51, %v10831_v62  ;;  %v11005_v62 = vmul.f32 %v10991_v58, %v13820_v47  ;;  %v11013_v52 = vmul.f32 %v10991_v58, %v13822_v29 }
 0xaf6   :  { %v3193_v18 = vmul.f32 %v7711_v2, %v3050_v25  ;;  %v10986_v57 = vpack.c.bf16 %v3515_v28, %v3466_v44  ;;  %13834 = vst [vmem:[#allocation58_spill] sm:$0xff] %v10998_v23  ;;  %vm3199_vm3 = vweird.f32 %v7711_v2 }
 0xaf7   :  { %7712 = vrsqrt.f32 %v3051_v3  ;;  %v3244_v10 = vmul.f32 %v10750_v63, %v3225_v32  ;;  %13836 = vst [vmem:[#allocation63_spill] sm:$0xff] %v11005_v62  ;;  %vm3200_vm5 = vmor %vm3198_vm4, %vm3199_vm3  ;;  %vm3208_vm7 = vweird.f32 %v3051_v3 }
 0xaf8   :  { %v3194_v33 = vmul.f32 %v7711_v2, %v3193_v18  ;;  %v10994_v37 = vunpack.c.l.bf16 %v10986_v57  ;;  %13838 = vst [vmem:[#allocation20_spill] sm:$0xff] %v11013_v52 }
 0xaf9   :  { %v11001_v19 = vadd.f32 %v10765_v24, %v3244_v10 }
 0xafa   :  { %v3195_v53 = vmul.f32 0.5, %v3194_v33  ;;  %v11009_v35 = vmul.f32 %v10994_v37, %v13820_v47  ;;  %v11017_v50 = vmul.f32 %v10994_v37, %v13822_v29 }
 0xafb   :  { %13835 = vst [vmem:[#allocation59_spill] sm:$0xff] %v11001_v19  ;;  %v3272_v44 = vpack.c.bf16 %v11001_v19, %v10998_v23 }
 0xafc   :  { %13837 = vst [vmem:[#allocation62_spill] sm:$0xff] %v11009_v35  ;;  %v3196_v4 = vsub.f32 1.5, %v3195_v53 }
 0xafd   :  { %13839 = vst [vmem:[#allocation21_spill] sm:$0xff] %v11017_v50  ;;  %v7713_v28 = vpop.eup %7712  ;;  %3482 = vmatmul.bf16.gmra.mxu0 %v3272_v44  ;;  %3531 = vmatmul.bf16.gmra.mxu1 %v3272_v44 }
 0xafe   :  { %v3197_v32 = vmul.f32 %v7711_v2, %v3196_v4  ;;  %v3203_v34 = vmul.f32 %v7713_v28, %v3051_v3  ;;  %3580 = vmatmul.bf16.gmra.mxu2 %v3272_v44  ;;  %vm3209_vm6 = vweird.f32 %v7713_v28 }
 0xaff   :  { %vm3210_vm8 = vmor %vm3208_vm7, %vm3209_vm6 }
 0xb00   :  { %v3204_v33 = vmul.f32 %v7713_v28, %v3203_v34  ;;  %v3201_v10 = vsel %vm3200_vm5, %v7711_v2, %v3197_v32  ;;  %v3468_v36 = vpop.f32.mrf.mxu0  ;;  %v3517_v27 = vpop.f32.mrf.mxu1 }
 0xb01   :  { %v3469_v42 = vadd.f32 %v3468_v36, %v10863_v11  ;;  %v3518_v51 = vadd.f32 %v3517_v27, %v10866_v61  ;;  %v3226_v4 = vmul.f32 %v3201_v10, %v10847_v45  ;;  %v11050_v10 = vpop.f32.mrf.mxu2 }
 0xb02   :  { %v3205_v53 = vmul.f32 0.5, %v3204_v33 }
 0xb03   :  { %v11027_v18 = vpack.c.bf16 %v3518_v51, %v3469_v42  ;;  %v3245_v2 = vmul.f32 %v10750_v63, %v3226_v4 }
 0xb04   :  { %v3206_v19 = vsub.f32 1.5, %v3205_v53  ;;  %v13843_v53 = vld [vmem:[#allocation33_spill] sm:$0xff] }
 0xb05   :  { %v3629_v42 = vunpack.c.l.bf16 %v11027_v18  ;;  %v11039_v45 = vadd.f32 %v10765_v24, %v3245_v2 }
 0xb06   :  { %v3207_v23 = vmul.f32 %v7713_v28, %v3206_v19  ;;  %v13842_v19 = vld [vmem:[#allocation32_spill] sm:$0xff] }
 0xb07   :  { %13840 = vst [vmem:[#allocation27_spill] sm:$0xff] %v11039_v45  ;;  %v11056_v4 = vmul.f32 %v3629_v42, %v13843_v53  ;;  %v11062_v2 = vmul.f32 %v3629_v42, %v13820_v47 }
 0xb08   :  { %v3211_v25 = vsel %vm3210_vm8, %v7713_v28, %v3207_v23  ;;  %v3470_v32 = vpop.f32.mrf.mxu0  ;;  %v3519_v34 = vpop.f32.mrf.mxu1  ;;  %v11048_v28 = vmul.f32 %v3629_v42, %v13842_v19 }
 0xb09   :  { %v3227_v44 = vmul.f32 %v3211_v25, %v10860_v7  ;;  %v3471_v36 = vadd.f32 %v3470_v32, %v10863_v11  ;;  %v3520_v27 = vadd.f32 %v3519_v34, %v10866_v61  ;;  %13844 = vst [vmem:[#allocation31_spill] sm:$0xff] %v11062_v2  ;;  %v11068_v34 = vmul.f32 %v3629_v42, %v13822_v29  ;;  %v11087_v0 = vpop.f32.mrf.mxu2 }
 0xb0b   :  { %v3246_v33 = vmul.f32 %v10750_v63, %v3227_v44  ;;  %v11036_v51 = vpack.c.bf16 %v3520_v27, %v3471_v36  ;;  %13846 = vst [vmem:[#allocation38_spill] sm:$0xff] %v11068_v34 }
 0xb0d   :  { %v11042_v3 = vadd.f32 %v10765_v24, %v3246_v33  ;;  %v3630_v7 = vunpack.c.l.bf16 %v11036_v51 }
 0xb0f   :  { %13841 = vst [vmem:[#allocation26_spill] sm:$0xff] %v11042_v3  ;;  %v3273_v23 = vpack.c.bf16 %v11042_v3, %v11039_v45  ;;  %v11053_v63 = vmul.f32 %v3630_v7, %v13842_v19  ;;  %v11059_v24 = vmul.f32 %v3630_v7, %v13843_v53  ;;  %v11065_v32 = vmul.f32 %v3630_v7, %v13820_v47 }
 0xb10   :  { %v3473_v25 = vpop.f32.mrf.mxu0  ;;  %v3522_v44 = vpop.f32.mrf.mxu1  ;;  %v11071_v36 = vmul.f32 %v3630_v7, %v13822_v29 }
 0xb11   :  { %3487 = vmatmul.bf16.gmra.mxu0 %v3273_v23  ;;  %3536 = vmatmul.bf16.gmra.mxu1 %v3273_v23  ;;  %13845 = vst [vmem:[#allocation30_spill] sm:$0xff] %v11065_v32  ;;  %v3474_v27 = vadd.f32 %v3473_v25, %v10863_v11  ;;  %v3523_v33 = vadd.f32 %v3522_v44, %v10866_v61  ;;  %v11125_v59 = vpop.f32.mrf.mxu2 }
 0xb12   :  { %3585 = vmatmul.bf16.gmra.mxu2 %v3273_v23  ;;  %13847 = vst [vmem:[#allocation37_spill] sm:$0xff] %v11071_v36 }
 0xb13   :  { %v11083_v21 = vpack.c.bf16 %v3523_v33, %v3474_v27 }
 0xb15   :  { %v3631_v3 = vunpack.c.l.bf16 %v11083_v21 }
 0xb17   :  { %v11094_v45 = vmul.f32 %v3631_v3, %v13842_v19  ;;  %v11097_v27 = vmul.f32 %v3631_v3, %v13843_v53 }
 0xb18   :  { %v3475_v7 = vpop.f32.mrf.mxu0  ;;  %v3524_v16 = vpop.f32.mrf.mxu1 }
 0xb19   :  { %v3476_v25 = vadd.f32 %v3475_v7, %v10863_v11  ;;  %v3525_v44 = vadd.f32 %v3524_v16, %v10866_v61  ;;  %13848 = vst [vmem:[#allocation46_spill] sm:$0xff] %v11094_v45  ;;  %v11106_v16 = vmul.f32 %v3631_v3, %v13820_v47  ;;  %v11127_v14 = vpop.f32.mrf.mxu2  ;;  %v11228_v45 = vperm.slane %v10856_v38, 2 }
 0xb1a   :  { %13849 = vst [vmem:[#allocation45_spill] sm:$0xff] %v11097_v27 }
 0xb1b   :  { %v11090_v43 = vpack.c.bf16 %v3525_v44, %v3476_v25  ;;  %13852 = vst [vmem:[#allocation61_spill] sm:$0xff] %v11106_v16  ;;  %v11112_v44 = vmul.f32 %v3631_v3, %v13822_v29 }
 0xb1d   :  { %v3632_v23 = vunpack.c.l.bf16 %v11090_v43  ;;  %13854 = vst [vmem:[#allocation65_spill] sm:$0xff] %v11112_v44 }
 0xb1f   :  { %v11100_v33 = vmul.f32 %v3632_v23, %v13842_v19  ;;  %v11103_v7 = vmul.f32 %v3632_v23, %v13843_v53  ;;  %v11109_v25 = vmul.f32 %v3632_v23, %v13820_v47  ;;  %v11115_v42 = vmul.f32 %v3632_v23, %v13822_v29 }
 0xb21   :  { %13850 = vst [vmem:[#allocation54_spill] sm:$0xff] %v11100_v33  ;;  %v11129_v3 = vpop.f32.mrf.mxu2 }
 0xb22   :  { %13851 = vst [vmem:[#allocation53_spill] sm:$0xff] %v11103_v7 }
 0xb23   :  { %13853 = vst [vmem:[#allocation60_spill] sm:$0xff] %v11109_v25 }
 0xb24   :  { %13855 = vst [vmem:[#allocation64_spill] sm:$0xff] %v11115_v42 }
 0xb29   :  { %v11131_v23 = vpop.f32.mrf.mxu2 }
 0xb31   :  { %v11133_v48 = vpop.f32.mrf.mxu2 }
 0xb39   :  { %v11135_v12 = vpop.f32.mrf.mxu2 }
 0xb41   :  { %v11137_v1 = vpop.f32.mrf.mxu2 }
 0xb49   :  { %v11141_v44 = vpop.f32.mrf.mxu2 }
 0xb65   :  { %v3478_v13 = vpop.f32.mrf.mxu0  ;;  %v3527_v30 = vpop.f32.mrf.mxu1 }
 0xb66   :  { %v3479_v22 = vadd.f32 %v3478_v13, %v10863_v11  ;;  %v3528_v15 = vadd.f32 %v3527_v30, %v10866_v61 }
 0xb68   :  { %v11143_v42 = vpack.c.bf16 %v3528_v15, %v3479_v22 }
 0xb6a   :  { %v3633_v6 = vunpack.c.l.bf16 %v11143_v42 }
 0xb6c   :  { %v3576_v41 = vpop.f32.mrf.mxu2  ;;  %v11152_v13 = vmul.f32 %v3633_v6, %v13842_v19  ;;  %v11155_v30 = vmul.f32 %v3633_v6, %v13843_v53 }
 0xb6d   :  { %v3480_v34 = vpop.f32.mrf.mxu0  ;;  %v3529_v36 = vpop.f32.mrf.mxu1 }
 0xb6e   :  { %v3481_v52 = vadd.f32 %v3480_v34, %v10863_v11  ;;  %v3530_v50 = vadd.f32 %v3529_v36, %v10866_v61  ;;  %13856 = vst [vmem:[#allocation6_spill] sm:$0xff] %v11152_v13  ;;  %v11164_v34 = vmul.f32 %v3633_v6, %v13820_v47 }
 0xb6f   :  { %13857 = vst [vmem:[#allocation9_spill] sm:$0xff] %v11155_v30 }
 0xb70   :  { %v11148_v8 = vpack.c.bf16 %v3530_v50, %v3481_v52  ;;  %13860 = vst [vmem:[#allocation39_spill] sm:$0xff] %v11164_v34  ;;  %v11170_v50 = vmul.f32 %v3633_v6, %v13822_v29 }
 0xb72   :  { %v3634_v39 = vunpack.c.l.bf16 %v11148_v8  ;;  %13862 = vst [vmem:[#allocation3_spill] sm:$0xff] %v11170_v50 }
 0xb74   :  { %v11158_v22 = vmul.f32 %v3634_v39, %v13842_v19  ;;  %v11161_v15 = vmul.f32 %v3634_v39, %v13843_v53  ;;  %v11167_v52 = vmul.f32 %v3634_v39, %v13820_v47  ;;  %v11173_v36 = vmul.f32 %v3634_v39, %v13822_v29  ;;  %v3578_v62 = vpop.f32.mrf.mxu2 }
 0xb76   :  { %13858 = vst [vmem:[#allocation5_spill] sm:$0xff] %v11158_v22 }
 0xb77   :  { %13859 = vst [vmem:[#allocation8_spill] sm:$0xff] %v11161_v15 }
 0xb78   :  { %13861 = vst [vmem:[#allocation2_spill] sm:$0xff] %v11167_v52 }
 0xb79   :  { %13863 = vst [vmem:[#allocation34_spill] sm:$0xff] %v11173_v36 }
 0xb7a   :  { %v3483_v35 = vpop.f32.mrf.mxu0  ;;  %v3532_v60 = vpop.f32.mrf.mxu1 }
 0xb7b   :  { %v3484_v6 = vadd.f32 %v3483_v35, %v10863_v11  ;;  %v3533_v39 = vadd.f32 %v3532_v60, %v10866_v61 }
 0xb7d   :  { %v11185_v20 = vpack.c.bf16 %v3533_v39, %v3484_v6 }
 0xb7f   :  { %v3635_v2 = vunpack.c.l.bf16 %v11185_v20 }
 0xb81   :  { %v3581_v17 = vpop.f32.mrf.mxu2  ;;  %v11194_v50 = vmul.f32 %v3635_v2, %v13842_v19  ;;  %v11197_v60 = vmul.f32 %v3635_v2, %v13843_v53 }
 0xb82   :  { %v3485_v16 = vpop.f32.mrf.mxu0  ;;  %v3534_v31 = vpop.f32.mrf.mxu1 }
 0xb83   :  { %v3486_v25 = vadd.f32 %v3485_v16, %v10863_v11  ;;  %v3535_v30 = vadd.f32 %v3534_v31, %v10866_v61  ;;  %13864 = vst [vmem:[#allocation12_spill] sm:$0xff] %v11194_v50  ;;  %v11206_v31 = vmul.f32 %v3635_v2, %v13820_v47 }
 0xb84   :  { %13865 = vst [vmem:[#allocation40_spill] sm:$0xff] %v11197_v60  ;;  %v3582_v60 = vadd.f32 %v3581_v17, %v11228_v45 }
 0xb85   :  { %v11190_v34 = vpack.c.bf16 %v3535_v30, %v3486_v25  ;;  %13868 = vst [vmem:[#allocation14_spill] sm:$0xff] %v11206_v31  ;;  %v11212_v25 = vmul.f32 %v3635_v2, %v13822_v29 }
 0xb87   :  { %v3636_v32 = vunpack.c.l.bf16 %v11190_v34  ;;  %13870 = vst [vmem:[#allocation7_spill] sm:$0xff] %v11212_v25 }
 0xb89   :  { %v11200_v35 = vmul.f32 %v3636_v32, %v13842_v19  ;;  %v11203_v6 = vmul.f32 %v3636_v32, %v13843_v53  ;;  %v11209_v16 = vmul.f32 %v3636_v32, %v13820_v47  ;;  %v11215_v30 = vmul.f32 %v3636_v32, %v13822_v29  ;;  %v3583_v15 = vpop.f32.mrf.mxu2 }
 0xb8a   :  { %v3584_v38 = vadd.f32 %v3583_v15, %v11228_v45 }
 0xb8b   :  { %13866 = vst [vmem:[#allocation11_spill] sm:$0xff] %v11200_v35 }
 0xb8c   :  { %13867 = vst [vmem:[#allocation4_spill] sm:$0xff] %v11203_v6 }
 0xb8d   :  { %13869 = vst [vmem:[#allocation13_spill] sm:$0xff] %v11209_v16 }
 0xb8e   :  { %13871 = vst [vmem:[#allocation16_spill] sm:$0xff] %v11215_v30  ;;  %v3488_v22 = vpop.f32.mrf.mxu0  ;;  %v3537_v27 = vpop.f32.mrf.mxu1 }
 0xb8f   :  { %v3489_v2 = vadd.f32 %v3488_v22, %v10863_v11  ;;  %v3538_v32 = vadd.f32 %v3537_v27, %v10866_v61  ;;  %v3577_v22 = vadd.f32 %v3576_v41, %v11228_v45  ;;  %v3579_v27 = vadd.f32 %v3578_v62, %v11228_v45 }
 0xb91   :  { %v3619_v7 = vpack.c.bf16 %v3538_v32, %v3489_v2  ;;  %v3616_v2 = vpack.c.bf16 %v3582_v60, %v3582_v60 }
 0xb93   :  { %v3637_v13 = vunpack.c.l.bf16 %v3619_v7  ;;  %v3693_v32 = vunpack.c.h.b16 %v3619_v7 }
 0xb95   :  { %v3586_v39 = vpop.f32.mrf.mxu2  ;;  %v11238_v17 = vmul.f32 %v3637_v13, %v13842_v19  ;;  %v11259_v60 = vmul.f32 %v3637_v13, %v13822_v29 }
 0xb96   :  { %v3490_v50 = vpop.f32.mrf.mxu0  ;;  %v3539_v36 = vpop.f32.mrf.mxu1  ;;  %v3587_v25 = vadd.f32 %v3586_v39, %v11228_v45 }
 0xb97   :  { %v3491_v52 = vadd.f32 %v3490_v50, %v10863_v11  ;;  %v3540_v31 = vadd.f32 %v3539_v36, %v10866_v61  ;;  %v11241_v11 = vmul.f32 %v3637_v13, %v13843_v53  ;;  %v11244_v61 = vmul.f32 %v3637_v13, %v13820_v47  ;;  %13874 = vst [vmem:[#allocation17_spill] sm:$0xff] %v11259_v60 }
 0xb98   :  { %v3620_v35 = vpack.c.bf16 %v3587_v25, %v3587_v25  ;;  %v3618_v50 = vpack.c.bf16 %v3584_v38, %v3584_v38  ;;  %v3574_v38 = vadd.f32 %v11141_v44, %v11228_v45  ;;  %v3572_v25 = vadd.f32 %v11137_v1, %v11228_v45 }
 0xb99   :  { %v3621_v30 = vpack.c.bf16 %v3540_v31, %v3491_v52  ;;  %13872 = vst [vmem:[#allocation15_spill] sm:$0xff] %v11244_v61  ;;  %v3569_v1 = vadd.f32 %v11135_v12, %v11228_v45  ;;  %v3567_v61 = vadd.f32 %v11133_v48, %v11228_v45 }
 0xb9a   :  { %v11272_v39 = vunpack.c.l.bf16 %v3620_v35  ;;  %v11279_v33 = vunpack.c.l.bf16 %v3618_v50  ;;  %v3691_v35 = vunpack.c.h.b16 %v11185_v20  ;;  %v3608_v12 = vpack.c.bf16 %v3572_v25, %v3572_v25 }
 0xb9b   :  { %v3638_v16 = vunpack.c.l.bf16 %v3621_v30  ;;  %v3694_v6 = vunpack.c.h.b16 %v3621_v30  ;;  %v3612_v30 = vpack.c.bf16 %v3577_v22, %v3577_v22  ;;  %v3610_v22 = vpack.c.bf16 %v3574_v38, %v3574_v38 }
 0xb9c   :  { %v4190_v60 = vmul.f32 %v11279_v33, %v13843_v53 }
 0xb9d   :  { %v3588_v52 = vpop.f32.mrf.mxu2  ;;  %v11246_v41 = vpack.c.b16 %v3694_v6, %v3693_v32  ;;  %v11249_v62 = vmul.f32 %v3638_v16, %v13842_v19  ;;  %v11252_v7 = vmul.f32 %v3638_v16, %v13843_v53  ;;  %v11255_v15 = vmul.f32 %v3638_v16, %v13820_v47 }
 0xb9e   :  { %v3589_v36 = vadd.f32 %v3588_v52, %v11228_v45  ;;  %v11262_v31 = vmul.f32 %v3638_v16, %v13822_v29  ;;  %v3614_v32 = vpack.c.bf16 %v3579_v27, %v3579_v27  ;;  %v3692_v52 = vunpack.c.h.b16 %v11190_v34 }
 0xb9f   :  { %13873 = vst [vmem:[#allocation10_spill] sm:$0xff] %v11255_v15  ;;  %3711 = vmatpush.bf16.xpose.msra.mxu3 %v11246_v41  ;;  %3976 = vmatpush.bf16.xpose.msrb.mxu0 %v11246_v41  ;;  %v4191_v16 = vmul.f32 %v11272_v39, %v13843_v53  ;;  %v3942_v34 = vmul.f32 %v11272_v39, %v13842_v19  ;;  %v11310_v38 = vunpack.c.l.bf16 %v3612_v30  ;;  %v11318_v48 = vunpack.c.l.bf16 %v3610_v22 }
 0xba0   :  { %13875 = vst [vmem:[#allocation19_spill] sm:$0xff] %v11262_v31  ;;  %v3622_v13 = vpack.c.bf16 %v3589_v36, %v3589_v36  ;;  %v11286_v36 = vunpack.c.l.bf16 %v3616_v2  ;;  %v11298_v50 = vunpack.c.l.bf16 %v3614_v32  ;;  %v11300_v20 = vpack.c.b16 %v3692_v52, %v3691_v35 }
 0xba1   :  { %v3941_v31 = vmul.f32 %v11279_v33, %v13842_v19  ;;  %v3564_v52 = vadd.f32 %v11131_v23, %v11228_v45  ;;  %v3606_v35 = vpack.c.bf16 %v3569_v1, %v3569_v1  ;;  %v3604_v15 = vpack.c.bf16 %v3567_v61, %v3567_v61 }
 0xba2   :  { %v11281_v6 = vunpack.c.l.bf16 %v3622_v13  ;;  %v3940_v32 = vmul.f32 %v11286_v36, %v13842_v19  ;;  %v4188_v30 = vmul.f32 %v11298_v50, %v13843_v53  ;;  %v11328_v23 = vunpack.c.l.bf16 %v3608_v12 }
 0xba3   :  { %v3602_v1 = vpack.c.bf16 %v3564_v52, %v3564_v52  ;;  %v11336_v22 = vunpack.c.l.bf16 %v3606_v35  ;;  %v4186_v12 = vmul.f32 %v11318_v48, %v13843_v53  ;;  %v11348_v52 = vunpack.c.l.bf16 %v3604_v15 }
 0xba4   :  { %v4192_v44 = vmul.f32 %v11281_v6, %v13843_v53  ;;  %v3943_v27 = vmul.f32 %v11281_v6, %v13842_v19  ;;  %v3950_v25 = vpack.c.bf16 %v3941_v31, %v3940_v32  ;;  %v3559_v31 = vadd.f32 %v11127_v14, %v11228_v45 }
 0xba5   :  { %v3557_v32 = vadd.f32 %v11125_v59, %v11228_v45  ;;  %v4185_v35 = vmul.f32 %v11328_v23, %v13843_v53  ;;  %v11356_v59 = vunpack.c.l.bf16 %v3602_v1  ;;  %v4184_v15 = vmul.f32 %v11336_v22, %v13843_v53 }
 0xba6   :  { %v4200_v2 = vpack.c.bf16 %v4192_v44, %v4191_v16  ;;  %v3951_v13 = vpack.c.bf16 %v3943_v27, %v3942_v34  ;;  %v4189_v16 = vmul.f32 %v11286_v36, %v13843_v53  ;;  %v3690_v44 = vunpack.c.h.b16 %v11148_v8 }
 0xba7   :  { %3712 = vmatpush.bf16.xpose.msra.mxu3 %v11300_v20  ;;  %3977 = vmatpush.bf16.xpose.msrb.mxu0 %v11300_v20  ;;  %v3939_v27 = vmul.f32 %v11298_v50, %v13842_v19  ;;  %v4187_v8 = vmul.f32 %v11310_v38, %v13843_v53 }
 0xba8   :  { %4201 = vmatpush.bf16.msrb.mxu1 %v4200_v2  ;;  %4250 = vmatpush.bf16.msrb.mxu2 %v3951_v13  ;;  %v4199_v34 = vpack.c.bf16 %v4190_v60, %v4189_v16  ;;  %v3562_v2 = vadd.f32 %v11129_v3, %v11228_v45  ;;  %v3689_v13 = vunpack.c.h.b16 %v11143_v42  ;;  %v3938_v60 = vmul.f32 %v11310_v38, %v13842_v19 }
 0xba9   :  { %v4198_v42 = vpack.c.bf16 %v4188_v30, %v4187_v8  ;;  %v3937_v16 = vmul.f32 %v11318_v48, %v13842_v19  ;;  %v3688_v30 = vunpack.c.h.b16 %v11090_v43  ;;  %v3552_v8 = vadd.f32 %v11050_v10, %v11228_v45 }
 0xbaa   :  { %v11338_v3 = vpack.c.b16 %v3690_v44, %v3689_v13  ;;  %v3949_v61 = vpack.c.bf16 %v3939_v27, %v3938_v60  ;;  %v3600_v14 = vpack.c.bf16 %v3562_v2, %v3562_v2  ;;  %v3936_v44 = vmul.f32 %v11328_v23, %v13842_v19 }
 0xbab   :  { %v4197_v27 = vpack.c.bf16 %v4186_v12, %v4185_v35  ;;  %v3935_v13 = vmul.f32 %v11336_v22, %v13842_v19  ;;  %v3687_v60 = vunpack.c.h.b16 %v11083_v21  ;;  %v4183_v43 = vmul.f32 %v11348_v52, %v13843_v53 }
 0xbac   :  { %4202 = vmatpush.bf16.msrb.mxu1 %v4199_v34  ;;  %4251 = vmatpush.bf16.msrb.mxu2 %v3950_v25  ;;  %v3554_v34 = vadd.f32 %v11087_v0, %v11228_v45  ;;  %v3598_v25 = vpack.c.bf16 %v3559_v31, %v3559_v31  ;;  %v3948_v2 = vpack.c.bf16 %v3937_v16, %v3936_v44  ;;  %v11366_v0 = vunpack.c.l.bf16 %v3600_v14 }
 0xbad   :  { %v3934_v31 = vmul.f32 %v11348_v52, %v13842_v19  ;;  %v11374_v12 = vpack.c.b16 %v3688_v30, %v3687_v60  ;;  %v4196_v16 = vpack.c.bf16 %v4184_v15, %v4183_v43  ;;  %v4182_v21 = vmul.f32 %v11356_v59, %v13843_v53 }
 0xbae   :  { %v3594_v1 = vpack.c.bf16 %v3554_v34, %v3554_v34  ;;  %v3933_v10 = vmul.f32 %v11356_v59, %v13842_v19  ;;  %v4181_v35 = vmul.f32 %v11366_v0, %v13843_v53  ;;  %v3932_v44 = vmul.f32 %v11366_v0, %v13842_v19 }
 0xbaf   :  { %3713 = vmatpush.bf16.xpose.msra.mxu3 %v11338_v3  ;;  %3978 = vmatpush.bf16.xpose.msrb.mxu0 %v11338_v3  ;;  %v3947_v45 = vpack.c.bf16 %v3935_v13, %v3934_v31  ;;  %v3685_v13 = vunpack.c.h.b16 %v11027_v18 }
 0xbb0   :  { %4203 = vmatpush.bf16.msrb.mxu1 %v4198_v42  ;;  %4252 = vmatpush.bf16.msrb.mxu2 %v3949_v61  ;;  %v3596_v42 = vpack.c.bf16 %v3557_v32, %v3557_v32  ;;  %v11372_v61 = vunpack.c.l.bf16 %v3598_v25  ;;  %v3592_v32 = vpack.c.bf16 %v3552_v8, %v3552_v8  ;;  %v11388_v34 = vunpack.c.l.bf16 %v3594_v1 }
 0xbb1   :  { %v3686_v25 = vunpack.c.h.b16 %v11036_v51  ;;  %v4195_v30 = vpack.c.bf16 %v4182_v21, %v4181_v35 }
 0xbb2   :  { %v11382_v14 = vunpack.c.l.bf16 %v3596_v42  ;;  %v3931_v15 = vmul.f32 %v11372_v61, %v13842_v19  ;;  %v11396_v8 = vunpack.c.l.bf16 %v3592_v32  ;;  %v4178_v1 = vmul.f32 %v11388_v34, %v13843_v53 }
 0xbb3   :  { %v11402_v42 = vpack.c.b16 %v3686_v25, %v3685_v13  ;;  %v3929_v18 = vmul.f32 %v11388_v34, %v13842_v19  ;;  %v4852_v32 = vmul.f32 %v11272_v39, %v13822_v29  ;;  %v3683_v25 = vunpack.c.h.b16 %v10980_v54 }
 0xbb4   :  { %4204 = vmatpush.bf16.msrb.mxu1 %v4197_v27  ;;  %4253 = vmatpush.bf16.msrb.mxu2 %v3948_v2  ;;  %v3946_v27 = vpack.c.bf16 %v3933_v10, %v3932_v44  ;;  %v4180_v2 = vmul.f32 %v11372_v61, %v13843_v53  ;;  %v4179_v60 = vmul.f32 %v11382_v14, %v13843_v53  ;;  %v3684_v10 = vunpack.c.h.b16 %v10986_v57 }
 0xbb5   :  { %v3930_v51 = vmul.f32 %v11382_v14, %v13842_v19  ;;  %v3928_v21 = vmul.f32 %v11396_v8, %v13842_v19  ;;  %v4850_v57 = vmul.f32 %v11286_v36, %v13822_v29  ;;  %v4849_v54 = vmul.f32 %v11298_v50, %v13822_v29 }
 0xbb6   :  { %v4194_v43 = vpack.c.bf16 %v4180_v2, %v4179_v60  ;;  %v11423_v2 = vpack.c.b16 %v3684_v10, %v3683_v25  ;;  %v3682_v13 = vunpack.c.h.b16 %v10936_v26  ;;  %v4848_v60 = vmul.f32 %v11310_v38, %v13822_v29 }
 0xbb7   :  { %3714 = vmatpush.bf16.xpose.msra.mxu3 %v11374_v12  ;;  %3979 = vmatpush.bf16.xpose.msrb.mxu0 %v11374_v12  ;;  %v3945_v31 = vpack.c.bf16 %v3931_v15, %v3930_v51  ;;  %v3944_v44 = vpack.c.bf16 %v3929_v18, %v3928_v21  ;;  %v3681_v51 = vunpack.c.h.b16 %v10927_v40  ;;  %v4846_v18 = vmul.f32 %v11328_v23, %v13822_v29 }
 0xbb8   :  { %4205 = vmatpush.bf16.msrb.mxu1 %v4196_v16  ;;  %4254 = vmatpush.bf16.msrb.mxu2 %v3947_v45  ;;  %v4853_v16 = vmul.f32 %v11281_v6, %v13822_v29  ;;  %v4177_v45 = vmul.f32 %v11396_v8, %v13843_v53  ;;  %v4845_v40 = vmul.f32 %v11336_v22, %v13822_v29  ;;  %v3679_v10 = vunpack.c.h.b16 %v10881_v55 }
 0xbb9   :  { %v4539_v21 = vmul.f32 %v11281_v6, %v13820_v47  ;;  %v4842_v25 = vmul.f32 %v11366_v0, %v13822_v29  ;;  %v4537_v6 = vmul.f32 %v11279_v33, %v13820_v47 }
 0xbba   :  { %v4193_v35 = vpack.c.bf16 %v4178_v1, %v4177_v45  ;;  %v11438_v1 = vpack.c.b16 %v3682_v13, %v3681_v51  ;;  %v4844_v45 = vmul.f32 %v11348_v52, %v13822_v29  ;;  %v3952_v13 = vmul.f32 %v10891_v5, %v13843_v53 }
 0xbbc   :  { %4206 = vmatpush.bf16.msrb.mxu1 %v4195_v30  ;;  %4255 = vmatpush.bf16.msrb.mxu2 %v3946_v27  ;;  %v4861_v30 = vpack.c.bf16 %v4853_v16, %v4852_v32  ;;  %v4851_v27 = vmul.f32 %v11279_v33, %v13822_v29  ;;  %v3680_v16 = vunpack.c.h.b16 %v10888_v46  ;;  %v4857_v32 = vpack.c.bf16 %v4845_v40, %v4844_v45 }
 0xbbd   :  { %v4536_v33 = vmul.f32 %v11286_v36, %v13820_v47  ;;  %v4532_v40 = vmul.f32 %v11328_v23, %v13820_v47  ;;  %v3642_v23 = vmul.f32 %v10939_v9, %v13842_v19 }
 0xbbe   :  { %v4860_v15 = vpack.c.bf16 %v4851_v27, %v4850_v57  ;;  %v11457_v46 = vpack.c.b16 %v3680_v16, %v3679_v10  ;;  %v3640_v27 = vmul.f32 %v10894_v56, %v13842_v19  ;;  %v3953_v57 = vmul.f32 %v10894_v56, %v13843_v53 }
 0xbbf   :  { %3715 = vmatpush.bf16.xpose.msra.mxu3 %v11402_v42  ;;  %3980 = vmatpush.bf16.xpose.msrb.mxu0 %v11402_v42  ;;  %v4535_v56 = vmul.f32 %v11298_v50, %v13820_v47  ;;  %v4533_v50 = vmul.f32 %v11318_v48, %v13820_v47  ;;  %v4531_v16 = vmul.f32 %v11336_v22, %v13820_v47 }
 0xbc0   :  { %4207 = vmatpush.bf16.msrb.mxu1 %v4194_v43  ;;  %4256 = vmatpush.bf16.msrb.mxu2 %v3945_v31  ;;  %v4859_v43 = vpack.c.bf16 %v4849_v54, %v4848_v60  ;;  %v4847_v31 = vmul.f32 %v11318_v48, %v13822_v29  ;;  %v3639_v54 = vmul.f32 %v10891_v5, %v13842_v19 }
 0xbc1   :  { %v4546_v60 = vpack.c.bf16 %v4537_v6, %v4536_v33  ;;  %v4838_v5 = vmul.f32 %v11396_v8, %v13822_v29  ;;  %v4529_v48 = vmul.f32 %v11356_v59, %v13820_v47  ;;  %v3955_v22 = vmul.f32 %v10939_v9, %v13843_v53 }
 0xbc2   :  { %v4858_v26 = vpack.c.bf16 %v4847_v31, %v4846_v18  ;;  %v3655_v36 = vpack.c.bf16 %v3640_v27, %v3639_v54  ;;  %v4534_v31 = vmul.f32 %v11310_v38, %v13820_v47  ;;  %v4544_v38 = vpack.c.bf16 %v4533_v50, %v4532_v40  ;;  %v11593_v40 = vld [vmem:[%s13504_s1 + $0x18] sm:$0xff] }
 0xbc3   :  { %v3954_v10 = vmul.f32 %v10934_v49, %v13843_v53  ;;  %v13897_v54 = vpack.c.bf16 %v11252_v7, %v11241_v11  ;;  %v11584_v7 = vld [vmem:[%s13504_s1 + $0x10] sm:$0xff] }
 0xbc4   :  { %4208 = vmatpush.bf16.msrb.mxu1 %v4193_v35  ;;  %4257 = vmatpush.bf16.msrb.mxu2 %v3944_v44  ;;  %v4843_v35 = vmul.f32 %v11356_v59, %v13822_v29  ;;  %v4538_v44 = vmul.f32 %v11272_v39, %v13820_v47  ;;  %v4841_v39 = vmul.f32 %v11372_v61, %v13822_v29 }
 0xbc5   :  { %v4545_v18 = vpack.c.bf16 %v4535_v56, %v4534_v31 }
 0xbc6   :  { %v4856_v55 = vpack.c.bf16 %v4843_v35, %v4842_v25  ;;  %v4525_v35 = vmul.f32 %v11388_v34, %v13820_v47 }
 0xbc7   :  { %3716 = vmatpush.bf16.xpose.msra.mxu3 %v11423_v2  ;;  %3981 = vmatpush.bf16.xpose.msrb.mxu0 %v11423_v2 }
 0xbc8   :  { %4637 = vmatpush.bf16.xpose.msra.mxu1 %v11246_v41  ;;  %4862 = vmatpush.bf16.msra.mxu2 %v4861_v30  ;;  %v4547_v30 = vpack.c.bf16 %v4539_v21, %v4538_v44  ;;  %v3957_v44 = vmul.f32 %v10994_v37, %v13843_v53 }
 0xbcc   :  { %4863 = vmatpush.bf16.msra.mxu2 %v4860_v15  ;;  %v4840_v15 = vmul.f32 %v11382_v14, %v13822_v29 }
 0xbce   :  { %v4855_v51 = vpack.c.bf16 %v4841_v39, %v4840_v15  ;;  %v13896_v15 = vpack.c.bf16 %v11249_v62, %v11238_v17  ;;  %v11578_v17 = vld [vmem:[%s13504_s1 + $0x8] sm:$0xff] }
 0xbcf   :  { %3717 = vmatpush.bf16.xpose.msra.mxu3 %v11438_v1  ;;  %3982 = vmatpush.bf16.xpose.msrb.mxu0 %v11438_v1 }
 0xbd0   :  { %4638 = vmatpush.bf16.xpose.msra.mxu1 %v11300_v20  ;;  %4864 = vmatpush.bf16.msra.mxu2 %v4859_v43  ;;  %v3968_v43 = vpack.c.bf16 %v3953_v57, %v3952_v13  ;;  %v13894_v57 = vld [vmem:[#allocation40_spill] sm:$0xff] }
 0xbd4   :  { %4865 = vmatpush.bf16.msra.mxu2 %v4858_v26 }
 0xbd7   :  { %3718 = vmatpush.bf16.xpose.msra.mxu3 %v11457_v46  ;;  %3983 = vmatpush.bf16.xpose.msrb.mxu0 %v11457_v46 }
 0xbd8   :  { %4639 = vmatpush.bf16.xpose.msra.mxu1 %v11338_v3  ;;  %4866 = vmatpush.bf16.msra.mxu2 %v4857_v32  ;;  %v3969_v32 = vpack.c.bf16 %v3955_v22, %v3954_v10 }
 0xbdc   :  { %4867 = vmatpush.bf16.msra.mxu2 %v4856_v55 }
 0xbde   :  { %3719 = vmatmul.bf16.vlgmr.msra.gmra.mxu3 %v3655_v36  ;;  %3984 = vmatmul.bf16.vlgmr.msrb.gmra.mxu0 %v3968_v43 }
 0xbdf   :  { %4323 = vmatpush.bf16.xpose.msrb.mxu3 %v11246_v41  ;;  %4548 = vmatpush.bf16.msra.mxu0 %v4547_v30  ;;  %v4839_v41 = vmul.f32 %v11388_v34, %v13822_v29  ;;  %v4530_v29 = vmul.f32 %v11348_v52, %v13820_v47  ;;  %v3641_v52 = vmul.f32 %v10934_v49, %v13842_v19  ;;  %v13882_v30 = vld [vmem:[#allocation45_spill] sm:$0xff] }
 0xbe0   :  { %4640 = vmatpush.bf16.xpose.msra.mxu1 %v11374_v12  ;;  %4868 = vmatpush.bf16.msra.mxu2 %v4855_v51  ;;  %v4524_v49 = vmul.f32 %v11396_v8, %v13820_v47  ;;  %v3643_v34 = vmul.f32 %v10991_v58, %v13842_v19  ;;  %v13876_v8 = vpack.c.bf16 %v11053_v63, %v11048_v28  ;;  %v13887_v28 = vld [vmem:[#allocation8_spill] sm:$0xff]  ;;  %v13888_v63 = vld [vmem:[#allocation9_spill] sm:$0xff]  ;;  %v13898_v51 = vld [vmem:[#allocation23_spill] sm:$0xff] }
 0xbe1   :  { %v4854_v26 = vpack.c.bf16 %v4839_v41, %v4838_v5  ;;  %v4543_v45 = vpack.c.bf16 %v4531_v16, %v4530_v29  ;;  %v3656_v59 = vpack.c.bf16 %v3642_v23, %v3641_v52  ;;  %v13889_v39 = vpack.c.bf16 %v13887_v28, %v13888_v63  ;;  %v13899_v41 = vld [vmem:[#allocation24_spill] sm:$0xff]  ;;  %v11602_v29 = vld [vmem:[%s13504_s1 + $0x20] sm:$0xff] }
 0xbe2   :  { %v13900_v36 = vpack.c.bf16 %v13898_v51, %v13899_v41  ;;  %v13901_v5 = vld [vmem:[#allocation36_spill] sm:$0xff] }
 0xbe3   :  { %4549 = vmatpush.bf16.msra.mxu0 %v4546_v60  ;;  %v11569_v60 = vld [vmem:[%s13504_s1] sm:$0xff] }
 0xbe4   :  { %4869 = vmatpush.bf16.msra.mxu2 %v4854_v26 }
 0xbe7   :  { %4324 = vmatpush.bf16.xpose.msrb.mxu3 %v11300_v20  ;;  %4550 = vmatpush.bf16.msra.mxu0 %v4545_v18  ;;  %v4528_v20 = vmul.f32 %v11366_v0, %v13820_v47  ;;  %v4526_v0 = vmul.f32 %v11382_v14, %v13820_v47  ;;  %v3644_v14 = vmul.f32 %v10994_v37, %v13842_v19  ;;  %v13879_v19 = vld [vmem:[#allocation46_spill] sm:$0xff]  ;;  %v13902_v18 = vld [vmem:[#allocation35_spill] sm:$0xff] }
 0xbe8   :  { %4641 = vmatpush.bf16.xpose.msra.mxu1 %v11402_v42  ;;  %v13877_v37 = vpack.c.bf16 %v11059_v24, %v11056_v4  ;;  %v13890_v4 = vld [vmem:[#allocation11_spill] sm:$0xff]  ;;  %v13891_v24 = vld [vmem:[#allocation12_spill] sm:$0xff]  ;;  %v13903_v50 = vpack.c.bf16 %v13901_v5, %v13902_v18 }
 0xbe9   :  { %v4542_v21 = vpack.c.bf16 %v4529_v48, %v4528_v20  ;;  %v3657_v25 = vpack.c.bf16 %v3644_v14, %v3643_v34  ;;  %v13892_v27 = vpack.c.bf16 %v13890_v4, %v13891_v24  ;;  %v13904_v48 = vld [vmem:[#allocation62_spill] sm:$0xff]  ;;  %v13905_v20 = vld [vmem:[#allocation63_spill] sm:$0xff]  ;;  %v11639_v14 = vld [vmem:[%s13504_s1 + $0x38] sm:$0xff] }
 0xbea   :  { %v13906_v23 = vpack.c.bf16 %v13904_v48, %v13905_v20  ;;  %v13919_v4 = vld [vmem:[#allocation10_spill] sm:$0xff]  ;;  %v13920_v24 = vld [vmem:[#allocation15_spill] sm:$0xff] }
 0xbeb   :  { %4551 = vmatpush.bf16.msra.mxu0 %v4544_v38  ;;  %v11684_v5 = vld [vmem:[%s13504_s1 + $0x48] sm:$0xff] }
 0xbee   :  { %3724 = vmatmul.bf16.gmra.mxu3 %v3656_v59  ;;  %3989 = vmatmul.bf16.gmra.mxu0 %v3969_v32  ;;  %v11625_v59 = vld [vmem:[%s13504_s1 + $0x30] sm:$0xff] }
 0xbef   :  { %4325 = vmatpush.bf16.xpose.msrb.mxu3 %v11338_v3  ;;  %4552 = vmatpush.bf16.msra.mxu0 %v4543_v45  ;;  %v4527_v3 = vmul.f32 %v11372_v61, %v13820_v47  ;;  %v4540_v61 = vpack.c.bf16 %v4525_v35, %v4524_v49 }
 0xbf0   :  { %4642 = vmatpush.bf16.xpose.msra.mxu1 %v11423_v2 }
 0xbf1   :  { %v4541_v9 = vpack.c.bf16 %v4527_v3, %v4526_v0  ;;  %v13907_v0 = vld [vmem:[#allocation30_spill] sm:$0xff] }
 0xbf3   :  { %4553 = vmatpush.bf16.msra.mxu0 %v4542_v21  ;;  %v11614_v21 = vld [vmem:[%s13504_s1 + $0x28] sm:$0xff] }
 0xbf7   :  { %4326 = vmatpush.bf16.xpose.msrb.mxu3 %v11374_v12  ;;  %4554 = vmatpush.bf16.msra.mxu0 %v4541_v9  ;;  %v3956_v12 = vmul.f32 %v10991_v58, %v13843_v53  ;;  %v13878_v58 = vld [vmem:[#allocation54_spill] sm:$0xff]  ;;  %v13908_v9 = vld [vmem:[#allocation31_spill] sm:$0xff] }
 0xbf8   :  { %4643 = vmatpush.bf16.xpose.msra.mxu1 %v11438_v1  ;;  %v13880_v53 = vpack.c.bf16 %v13878_v58, %v13879_v19  ;;  %v13909_v35 = vpack.c.bf16 %v13907_v0, %v13908_v9  ;;  %v11710_v0 = vld [vmem:[%s13504_s1 + $0x58] sm:$0xff] }
 0xbf9   :  { %v3970_v47 = vpack.c.bf16 %v3957_v44, %v3956_v12 }
 0xbfb   :  { %4555 = vmatpush.bf16.msra.mxu0 %v4540_v61 }
 0xbfe   :  { %3729 = vmatmul.bf16.gmra.mxu3 %v3657_v25  ;;  %3994 = vmatmul.bf16.gmra.mxu0 %v3970_v47  ;;  %v11650_v25 = vld [vmem:[%s13504_s1 + $0x40] sm:$0xff] }
 0xbff   :  { %4327 = vmatpush.bf16.xpose.msrb.mxu3 %v11402_v42  ;;  %v13881_v42 = vld [vmem:[#allocation53_spill] sm:$0xff] }
 0xc00   :  { %4644 = vmatpush.bf16.xpose.msra.mxu1 %v11457_v46  ;;  %v13883_v6 = vpack.c.bf16 %v13881_v42, %v13882_v30  ;;  %v13914_v42 = vld [vmem:[#allocation39_spill] sm:$0xff] }
 0xc07   :  { %4328 = vmatpush.bf16.xpose.msrb.mxu3 %v11423_v2  ;;  %v13884_v2 = vld [vmem:[#allocation5_spill] sm:$0xff] }
 0xc0e   :  { %3734 = vmatmul.bf16.gmra.mxu3 %v13876_v8  ;;  %3999 = vmatmul.bf16.gmra.mxu0 %v13877_v37  ;;  %v13910_v8 = vld [vmem:[#allocation60_spill] sm:$0xff]  ;;  %v13911_v37 = vld [vmem:[#allocation61_spill] sm:$0xff] }
 0xc0f   :  { %4329 = vmatpush.bf16.xpose.msrb.mxu3 %v11438_v1  ;;  %v13885_v1 = vld [vmem:[#allocation6_spill] sm:$0xff]  ;;  %v13912_v58 = vpack.c.bf16 %v13910_v8, %v13911_v37 }
 0xc10   :  { %v13886_v55 = vpack.c.bf16 %v13884_v2, %v13885_v1  ;;  %v13916_v1 = vld [vmem:[#allocation13_spill] sm:$0xff] }
 0xc17   :  { %4330 = vmatpush.bf16.xpose.msrb.mxu3 %v11457_v46  ;;  %v13893_v46 = vld [vmem:[#allocation4_spill] sm:$0xff] }
 0xc18   :  { %v13895_v33 = vpack.c.bf16 %v13893_v46, %v13894_v57 }
 0xc1e   :  { %3739 = vmatmul.bf16.gmra.mxu3 %v13880_v53  ;;  %4004 = vmatmul.bf16.gmra.mxu0 %v13883_v6  ;;  %v13913_v53 = vld [vmem:[#allocation2_spill] sm:$0xff] }
 0xc1f   :  { %v13915_v30 = vpack.c.bf16 %v13913_v53, %v13914_v42 }
 0xc2e   :  { %3744 = vmatmul.bf16.gmra.mxu3 %v13886_v55  ;;  %4009 = vmatmul.bf16.gmra.mxu0 %v13889_v39  ;;  %v13917_v55 = vld [vmem:[#allocation14_spill] sm:$0xff] }
 0xc2f   :  { %v13918_v28 = vpack.c.bf16 %v13916_v1, %v13917_v55  ;;  %v11736_v1 = vld [vmem:[%s13504_s1 + $0x68] sm:$0xff] }
 0xc3e   :  { %3749 = vmatmul.bf16.gmra.mxu3 %v13892_v27  ;;  %4014 = vmatmul.bf16.gmra.mxu0 %v13895_v33  ;;  %v13921_v27 = vpack.c.bf16 %v13919_v4, %v13920_v24 }
 0xc4e   :  { %3754 = vmatmul.bf16.gmra.mxu3 %v13896_v15  ;;  %4019 = vmatmul.bf16.gmra.mxu0 %v13897_v54 }
 0xc5b   :  { %v3985_v13 = vpop.f32.mrf.mxu0 }
 0xc5c   :  { %v3986_v56 = vadd.f32 %v11569_v60, %v3985_v13 }
 0xc5e   :  { %4025 = vmax.xlane.f32.xlu0 %v3986_v56  ;;  %4331 = vmatmul.bf16.vlgmr.msrb.gmra.mxu3 %v13900_v36 }
 0xc61   :  { %v11620_v10 = vpop.f32.mrf.mxu3 }
 0xc63   :  { %v3987_v43 = vpop.f32.mrf.mxu0 }
 0xc64   :  { %v3988_v11 = vadd.f32 %v11578_v17, %v3987_v43 }
 0xc66   :  { %4027 = vmax.xlane.f32.xlu1 %v3988_v11 }
 0xc69   :  { %v11634_v49 = vpop.f32.mrf.mxu3 }
 0xc6b   :  { %v3990_v62 = vpop.f32.mrf.mxu0 }
 0xc6c   :  { %v3991_v31 = vadd.f32 %v11584_v7, %v3990_v62 }
 0xc6e   :  { %4029 = vmax.xlane.f32.xlu2 %v3991_v31  ;;  %4336 = vmatmul.bf16.gmra.mxu3 %v13903_v50 }
 0xc71   :  { %v11645_v12 = vpop.f32.mrf.mxu3 }
 0xc73   :  { %v3992_v26 = vpop.f32.mrf.mxu0 }
 0xc74   :  { %v11596_v38 = vadd.f32 %v11593_v40, %v3992_v26 }
 0xc76   :  { %4031 = vmax.xlane.f32.xlu0 %v11596_v38 }
 0xc79   :  { %v11659_v19 = vpop.f32.mrf.mxu3 }
 0xc7b   :  { %v3995_v16 = vpop.f32.mrf.mxu0 }
 0xc7c   :  { %v11605_v45 = vadd.f32 %v11602_v29, %v3995_v16  ;;  %v11697_v16 = vld [vmem:[%s13504_s1 + $0x50] sm:$0xff] }
 0xc7e   :  { %4033 = vmax.xlane.f32.xlu1 %v11605_v45  ;;  %4341 = vmatmul.bf16.gmra.mxu3 %v13906_v23 }
 0xc81   :  { %v11664_v6 = vpop.f32.mrf.mxu3 }
 0xc83   :  { %v3997_v22 = vpop.f32.mrf.mxu0 }
 0xc84   :  { %v11617_v52 = vadd.f32 %v11614_v21, %v3997_v22 }
 0xc86   :  { %4035 = vmax.xlane.f32.xlu2 %v11617_v52 }
 0xc89   :  { %v11666_v2 = vpop.f32.mrf.mxu3 }
 0xc8b   :  { %v4000_v3 = vpop.f32.mrf.mxu0 }
 0xc8c   :  { %v11628_v32 = vadd.f32 %v11625_v59, %v4000_v3 }
 0xc8e   :  { %4037 = vmax.xlane.f32.xlu0 %v11628_v32  ;;  %4346 = vmatmul.bf16.gmra.mxu3 %v13909_v35 }
 0xc91   :  { %v11671_v63 = vpop.f32.mrf.mxu3 }
 0xc93   :  { %v4002_v61 = vpop.f32.mrf.mxu0 }
 0xc94   :  { %v11642_v44 = vadd.f32 %v11639_v14, %v4002_v61 }
 0xc96   :  { %4039 = vmax.xlane.f32.xlu1 %v11642_v44 }
 0xc99   :  { %v11673_v39 = vpop.f32.mrf.mxu3 }
 0xc9b   :  { %v4005_v34 = vpop.f32.mrf.mxu0 }
 0xc9c   :  { %v11653_v47 = vadd.f32 %v11650_v25, %v4005_v34 }
 0xc9e   :  { %4041 = vmax.xlane.f32.xlu1 %v11653_v47  ;;  %4351 = vmatmul.bf16.gmra.mxu3 %v13912_v58 }
 0xca3   :  { %v4007_v33 = vpop.f32.mrf.mxu0 }
 0xcab   :  { %v4010_v36 = vpop.f32.mrf.mxu0 }
 0xcac   :  { %v11700_v48 = vadd.f32 %v11697_v16, %v4010_v36 }
 0xcae   :  { %4356 = vmatmul.bf16.gmra.mxu3 %v13915_v30 }
 0xcb3   :  { %v4012_v50 = vpop.f32.mrf.mxu0 }
 0xcb4   :  { %v11713_v9 = vadd.f32 %v11710_v0, %v4012_v50 }
 0xcbb   :  { %v4015_v3 = vpop.f32.mrf.mxu0 }
 0xcbe   :  { %4361 = vmatmul.bf16.gmra.mxu3 %v13918_v28 }
 0xcc3   :  { %v4017_v53 = vpop.f32.mrf.mxu0 }
 0xcc4   :  { %v11739_v55 = vadd.f32 %v11736_v1, %v4017_v53 }
 0xccb   :  { %v4020_v24 = vpop.f32.mrf.mxu0 }
 0xcce   :  { %4366 = vmatmul.bf16.gmra.mxu3 %v13921_v27 }
 0xcd1   :  { %v4026_v46 = vpop.xlane.xlu0 %4025 }
 0xcd2   :  { %v4057_v57 = vsub.f32 %v3986_v56, %v4026_v46  ;;  %v11687_v56 = vadd.f32 %v11684_v5, %v4007_v33  ;;  %v11749_v46 = vld [vmem:[%s13504_s1 + $0x70] sm:$0xff] }
 0xcd4   :  { %v4073_v15 = vmul.f32 1.442695, %v4057_v57  ;;  %v11752_v57 = vadd.f32 %v11749_v46, %v4020_v24 }
 0xcd6   :  { %7714 = vpow2.f32 %v4073_v15 }
 0xcd9   :  { %v4028_v54 = vpop.xlane.xlu1 %4027 }
 0xcda   :  { %v4058_v13 = vsub.f32 %v3988_v11, %v4028_v54  ;;  %v4022_v54 = vpop.f32.mrf.mxu0 }
 0xcdc   :  { %v11678_v51 = vpop.eup %7714  ;;  %v4075_v41 = vmul.f32 1.442695, %v4058_v13 }
 0xcdd   :  { %4105 = vadd.xlane.f32.xlu2 %v11678_v51 }
 0xcde   :  { %7716 = vpow2.f32 %v4075_v41  ;;  %v11762_v41 = vld [vmem:[%s13504_s1 + $0x78] sm:$0xff] }
 0xcdf   :  { %v11765_v36 = vadd.f32 %v11762_v41, %v4022_v54 }
 0xce1   :  { %v4030_v43 = vpop.xlane.xlu2 %4029 }
 0xce2   :  { %v4059_v62 = vsub.f32 %v3991_v31, %v4030_v43 }
 0xce4   :  { %v11689_v18 = vpop.eup %7716  ;;  %v4077_v11 = vmul.f32 1.442695, %v4059_v62 }
 0xce5   :  { %4107 = vadd.xlane.f32.xlu0 %v11689_v18  ;;  %4043 = vmax.xlane.f32.xlu2 %v11687_v56 }
 0xce6   :  { %7718 = vpow2.f32 %v4077_v11 }
 0xce9   :  { %v4032_v26 = vpop.xlane.xlu0 %4031 }
 0xcea   :  { %v4060_v31 = vsub.f32 %v11596_v38, %v4032_v26 }
 0xcec   :  { %v11702_v20 = vpop.eup %7718  ;;  %v4079_v23 = vmul.f32 1.442695, %v4060_v31 }
 0xced   :  { %4109 = vadd.xlane.f32.xlu0 %v11702_v20  ;;  %4045 = vmax.xlane.f32.xlu2 %v11700_v48 }
 0xcee   :  { %7720 = vpow2.f32 %v4079_v23 }
 0xcf1   :  { %v4034_v22 = vpop.xlane.xlu1 %4033 }
 0xcf2   :  { %v4061_v38 = vsub.f32 %v11605_v45, %v4034_v22  ;;  %v11723_v45 = vld [vmem:[%s13504_s1 + $0x60] sm:$0xff] }
 0xcf3   :  { %v11726_v37 = vadd.f32 %v11723_v45, %v4015_v3 }
 0xcf4   :  { %v11715_v35 = vpop.eup %7720  ;;  %v4081_v61 = vmul.f32 1.442695, %v4061_v38 }
 0xcf5   :  { %4047 = vmax.xlane.f32.xlu0 %v11713_v9  ;;  %4111 = vadd.xlane.f32.xlu1 %v11715_v35 }
 0xcf6   :  { %7722 = vpow2.f32 %v4081_v61 }
 0xcf9   :  { %v4036_v34 = vpop.xlane.xlu2 %4035 }
 0xcfa   :  { %v4062_v8 = vsub.f32 %v11617_v52, %v4036_v34 }
 0xcfc   :  { %v11728_v58 = vpop.eup %7722  ;;  %v4083_v42 = vmul.f32 1.442695, %v4062_v8 }
 0xcfd   :  { %4113 = vadd.xlane.f32.xlu1 %v11728_v58  ;;  %4049 = vmax.xlane.f32.xlu0 %v11726_v37 }
 0xcfe   :  { %7724 = vpow2.f32 %v4083_v42 }
 0xd01   :  { %v4038_v30 = vpop.xlane.xlu0 %4037 }
 0xd02   :  { %v4063_v52 = vsub.f32 %v11628_v32, %v4038_v30 }
 0xd04   :  { %v11741_v28 = vpop.eup %7724  ;;  %v4085_v4 = vmul.f32 1.442695, %v4063_v52 }
 0xd05   :  { %4115 = vadd.xlane.f32.xlu2 %v11741_v28  ;;  %4051 = vmax.xlane.f32.xlu1 %v11739_v55 }
 0xd06   :  { %7726 = vpow2.f32 %v4085_v4 }
 0xd09   :  { %v4040_v27 = vpop.xlane.xlu1 %4039 }
 0xd0a   :  { %v4064_v32 = vsub.f32 %v11642_v44, %v4040_v27 }
 0xd0c   :  { %v11754_v33 = vpop.eup %7726  ;;  %v4087_v15 = vmul.f32 1.442695, %v4064_v32 }
 0xd0d   :  { %4117 = vadd.xlane.f32.xlu2 %v11754_v33  ;;  %4053 = vmax.xlane.f32.xlu1 %v11752_v57 }
 0xd0e   :  { %7728 = vpow2.f32 %v4087_v15 }
 0xd11   :  { %v4042_v13 = vpop.xlane.xlu1 %4041 }
 0xd12   :  { %v4065_v44 = vsub.f32 %v11653_v47, %v4042_v13 }
 0xd14   :  { %v11767_v43 = vpop.eup %7728  ;;  %v4089_v62 = vmul.f32 1.442695, %v4065_v44 }
 0xd15   :  { %4055 = vmax.xlane.f32.xlu2 %v11765_v36  ;;  %4119 = vadd.xlane.f32.xlu0 %v11767_v43 }
 0xd16   :  { %7730 = vpow2.f32 %v4089_v62 }
 0xd1c   :  { %v11771_v11 = vpop.eup %7730 }
 0xd1d   :  { %4121 = vadd.xlane.f32.xlu0 %v11771_v11 }
 0xd50   :  { %v4106_v47 = vpop.xlane.xlu2 %4105 }
 0xd51   :  { %7732 = vrcp.f32 %v4106_v47 }
 0xd57   :  { %v7733_v22 = vpop.eup %7732 }
 0xd58   :  { %v4044_v50 = vpop.xlane.xlu2 %4043  ;;  %v4108_v26 = vpop.xlane.xlu0 %4107  ;;  %v4153_v38 = vmul.f32 %v7733_v22, %v11678_v51 }
 0xd59   :  { %v4066_v31 = vsub.f32 %v11687_v56, %v4044_v50  ;;  %7734 = vrcp.f32 %v4108_v26 }
 0xd5b   :  { %v4091_v23 = vmul.f32 1.442695, %v4066_v31 }
 0xd5d   :  { %7736 = vpow2.f32 %v4091_v23 }
 0xd5f   :  { %v7735_v3 = vpop.eup %7734 }
 0xd60   :  { %v4154_v61 = vmul.f32 %v7735_v3, %v11689_v18  ;;  %v4046_v34 = vpop.xlane.xlu2 %4045  ;;  %v4110_v8 = vpop.xlane.xlu0 %4109 }
 0xd61   :  { %v4067_v53 = vsub.f32 %v11700_v48, %v4046_v34 }
 0xd62   :  { %v4169_v42 = vpack.c.bf16 %v4154_v61, %v4153_v38 }
 0xd63   :  { %v11778_v30 = vpop.eup %7736  ;;  %v4093_v52 = vmul.f32 1.442695, %v4067_v53 }
 0xd64   :  { %4209 = vmatmul.bf16.vlgmr.msrb.gmra.mxu1 %v4169_v42  ;;  %4123 = vadd.xlane.f32.xlu1 %v11778_v30 }
 0xd65   :  { %7738 = vpow2.f32 %v4093_v52 }
 0xd66   :  { %7740 = vrcp.f32 %v4110_v8 }
 0xd68   :  { %v4112_v56 = vpop.xlane.xlu1 %4111  ;;  %v4048_v4 = vpop.xlane.xlu0 %4047 }
 0xd69   :  { %7742 = vrcp.f32 %v4112_v56  ;;  %v4068_v51 = vsub.f32 %v11713_v9, %v4048_v4 }
 0xd6b   :  { %v11782_v24 = vpop.eup %7738  ;;  %v4095_v18 = vmul.f32 1.442695, %v4068_v51 }
 0xd6c   :  { %4125 = vadd.xlane.f32.xlu2 %v11782_v24  ;;  %v7741_v48 = vpop.eup %7740 }
 0xd6d   :  { %7744 = vpow2.f32 %v4095_v18  ;;  %v4155_v54 = vmul.f32 %v7741_v48, %v11702_v20 }
 0xd6f   :  { %v7743_v27 = vpop.eup %7742 }
 0xd70   :  { %v4114_v32 = vpop.xlane.xlu1 %4113  ;;  %v4050_v15 = vpop.xlane.xlu0 %4049  ;;  %v4156_v13 = vmul.f32 %v7743_v27, %v11715_v35 }
 0xd71   :  { %v4069_v44 = vsub.f32 %v11726_v37, %v4050_v15 }
 0xd72   :  { %v4170_v62 = vpack.c.bf16 %v4156_v13, %v4155_v54 }
 0xd73   :  { %v11788_v47 = vpop.eup %7744  ;;  %v4097_v9 = vmul.f32 1.442695, %v4069_v44 }
 0xd74   :  { %4214 = vmatmul.bf16.gmra.mxu1 %v4170_v62  ;;  %4127 = vadd.xlane.f32.xlu0 %v11788_v47 }
 0xd75   :  { %7746 = vpow2.f32 %v4097_v9 }
 0xd76   :  { %7748 = vrcp.f32 %v4114_v32 }
 0xd78   :  { %v4116_v50 = vpop.xlane.xlu2 %4115  ;;  %v4052_v26 = vpop.xlane.xlu1 %4051 }
 0xd79   :  { %7750 = vrcp.f32 %v4116_v50  ;;  %v4070_v31 = vsub.f32 %v11739_v55, %v4052_v26 }
 0xd7b   :  { %v11792_v23 = vpop.eup %7746  ;;  %v4099_v20 = vmul.f32 1.442695, %v4070_v31 }
 0xd7c   :  { %4129 = vadd.xlane.f32.xlu1 %v11792_v23  ;;  %v7749_v35 = vpop.eup %7748 }
 0xd7d   :  { %7752 = vpow2.f32 %v4099_v20  ;;  %v4157_v38 = vmul.f32 %v7749_v35, %v11728_v58  ;;  %v11804_v58 = vadd.f32 %v11569_v60, %v11620_v10  ;;  %v11818_v10 = vadd.f32 %v11593_v40, %v11659_v19 }
 0xd7e   :  { %v11835_v19 = vadd.f32 %v11584_v7, %v11645_v12  ;;  %v3740_v12 = vpop.f32.mrf.mxu3 }
 0xd7f   :  { %v7751_v37 = vpop.eup %7750 }
 0xd80   :  { %v4118_v22 = vpop.xlane.xlu2 %4117  ;;  %v4054_v3 = vpop.xlane.xlu1 %4053  ;;  %v4158_v61 = vmul.f32 %v7751_v37, %v11741_v28 }
 0xd81   :  { %v4071_v34 = vsub.f32 %v11752_v57, %v4054_v3 }
 0xd82   :  { %v4171_v8 = vpack.c.bf16 %v4158_v61, %v4157_v38 }
 0xd83   :  { %v11798_v53 = vpop.eup %7752  ;;  %v4101_v55 = vmul.f32 1.442695, %v4071_v34 }
 0xd84   :  { %4219 = vmatmul.bf16.gmra.mxu1 %v4171_v8  ;;  %4131 = vadd.xlane.f32.xlu2 %v11798_v53 }
 0xd85   :  { %7754 = vpow2.f32 %v4101_v55 }
 0xd86   :  { %7756 = vrcp.f32 %v4118_v22  ;;  %v3742_v9 = vpop.f32.mrf.mxu3 }
 0xd88   :  { %v4056_v42 = vpop.xlane.xlu2 %4055  ;;  %v4120_v52 = vpop.xlane.xlu0 %4119 }
 0xd89   :  { %v4072_v56 = vsub.f32 %v11765_v36, %v4056_v42  ;;  %7758 = vrcp.f32 %v4120_v52  ;;  %v11814_v36 = vadd.f32 %v11578_v17, %v11634_v49  ;;  %v11831_v49 = vadd.f32 %v11625_v59, %v11671_v63 }
 0xd8a   :  { %v11851_v63 = vadd.f32 %v11650_v25, %v3740_v12 }
 0xd8b   :  { %v11806_v28 = vpop.eup %7754  ;;  %v4103_v57 = vmul.f32 1.442695, %v4072_v56 }
 0xd8c   :  { %3760 = vmax.xlane.f32.xlu2 %v11804_v58  ;;  %4133 = vadd.xlane.f32.xlu0 %v11806_v28  ;;  %v7757_v4 = vpop.eup %7756 }
 0xd8d   :  { %7760 = vpow2.f32 %v4103_v57  ;;  %v4159_v18 = vmul.f32 %v7757_v4, %v11754_v33  ;;  %v11827_v33 = vadd.f32 %v11602_v29, %v11664_v6  ;;  %v11846_v6 = vadd.f32 %v11614_v21, %v11666_v2 }
 0xd8e   :  { %v3745_v20 = vpop.f32.mrf.mxu3 }
 0xd8f   :  { %v7759_v51 = vpop.eup %7758 }
 0xd90   :  { %v4160_v48 = vmul.f32 %v7759_v51, %v11767_v43  ;;  %v11842_v43 = vadd.f32 %v11639_v14, %v11673_v39  ;;  %v4122_v15 = vpop.xlane.xlu0 %4121 }
 0xd91   :  { %7762 = vrcp.f32 %v4122_v15 }
 0xd92   :  { %v4172_v27 = vpack.c.bf16 %v4160_v48, %v4159_v18 }
 0xd93   :  { %v11820_v32 = vpop.eup %7760 }
 0xd94   :  { %3766 = vmax.xlane.f32.xlu2 %v11818_v10  ;;  %3762 = vmax.xlane.f32.xlu0 %v11814_v36 }
 0xd95   :  { %4135 = vadd.xlane.f32.xlu1 %v11820_v32  ;;  %4224 = vmatmul.bf16.gmra.mxu1 %v4172_v27 }
 0xd97   :  { %v7763_v39 = vpop.eup %7762 }
 0xd98   :  { %v4161_v44 = vmul.f32 %v7763_v39, %v11771_v11  ;;  %v11858_v11 = vpop.f32.mrf.mxu3 }
 0xd9c   :  { %3772 = vmax.xlane.f32.xlu2 %v11831_v49  ;;  %3768 = vmax.xlane.f32.xlu0 %v11827_v33 }
 0xd9d   :  { %3764 = vmax.xlane.f32.xlu1 %v11835_v19 }
 0xda0   :  { %v11862_v56 = vpop.f32.mrf.mxu3 }
 0xda4   :  { %3774 = vmax.xlane.f32.xlu0 %v11842_v43 }
 0xda5   :  { %3770 = vmax.xlane.f32.xlu1 %v11846_v6 }
 0xdac   :  { %3776 = vmax.xlane.f32.xlu0 %v11851_v63 }
 0xdd7   :  { %v4124_v54 = vpop.xlane.xlu1 %4123 }
 0xdd8   :  { %7764 = vrcp.f32 %v4124_v54 }
 0xdde   :  { %v7765_v13 = vpop.eup %7764 }
 0xddf   :  { %v4162_v2 = vmul.f32 %v7765_v13, %v11778_v30  ;;  %v4126_v50 = vpop.xlane.xlu2 %4125 }
 0xde0   :  { %7766 = vrcp.f32 %v4126_v50 }
 0xde1   :  { %v4173_v62 = vpack.c.bf16 %v4162_v2, %v4161_v44  ;;  %v11874_v2 = vadd.f32 %v11684_v5, %v3742_v9 }
 0xde3   :  { %4229 = vmatmul.bf16.gmra.mxu1 %v4173_v62 }
 0xde6   :  { %v7767_v31 = vpop.eup %7766 }
 0xde7   :  { %v4128_v26 = vpop.xlane.xlu0 %4127  ;;  %v4163_v37 = vmul.f32 %v7767_v31, %v11782_v24 }
 0xde8   :  { %7768 = vrcp.f32 %v4128_v26  ;;  %v11879_v26 = vpop.f32.mrf.mxu1 }
 0xdee   :  { %v7769_v35 = vpop.eup %7768 }
 0xdef   :  { %v4164_v22 = vmul.f32 %v7769_v35, %v11788_v47  ;;  %v4130_v38 = vpop.xlane.xlu1 %4129 }
 0xdf0   :  { %7770 = vrcp.f32 %v4130_v38 }
 0xdf1   :  { %v4174_v3 = vpack.c.bf16 %v4164_v22, %v4163_v37 }
 0xdf3   :  { %4234 = vmatmul.bf16.gmra.mxu1 %v4174_v3 }
 0xdf6   :  { %v7771_v61 = vpop.eup %7770 }
 0xdf7   :  { %v4132_v30 = vpop.xlane.xlu2 %4131  ;;  %v4165_v42 = vmul.f32 %v7771_v61, %v11792_v23  ;;  %v11895_v61 = vpop.f32.mrf.mxu1 }
 0xdf8   :  { %7772 = vrcp.f32 %v4132_v30 }
 0xdfe   :  { %v7773_v34 = vpop.eup %7772 }
 0xdff   :  { %v3761_v8 = vpop.xlane.xlu2 %3760  ;;  %v4134_v55 = vpop.xlane.xlu0 %4133  ;;  %v4166_v52 = vmul.f32 %v7773_v34, %v11798_v53 }
 0xe00   :  { %v3792_v24 = vsub.f32 %v11804_v58, %v3761_v8  ;;  %v3752_v53 = vpop.f32.mrf.mxu3 }
 0xe01   :  { %v4175_v47 = vpack.c.bf16 %v4166_v52, %v4165_v42  ;;  %v11907_v42 = vadd.f32 %v11736_v1, %v3752_v53  ;;  %v13922_v52 = vld [vmem:[#allocation22_spill] sm:$0xff]  ;;  %v11922_v1 = vadd.f32 %v11723_v45, %v11862_v56 }
 0xe02   :  { %v3808_v57 = vmul.f32 1.442695, %v3792_v24  ;;  %v13923_v24 = vld [vmem:[#allocation25_spill] sm:$0xff] }
 0xe03   :  { %4239 = vmatmul.bf16.gmra.mxu1 %v4175_v47  ;;  %v11915_v47 = vpop.f32.mrf.mxu1 }
 0xe04   :  { %7774 = vpow2.f32 %v3808_v57 }
 0xe05   :  { %7776 = vrcp.f32 %v4134_v55  ;;  %v11904_v55 = vadd.f32 %v11710_v0, %v11858_v11 }
 0xe07   :  { %v3767_v4 = vpop.xlane.xlu2 %3766  ;;  %v3763_v51 = vpop.xlane.xlu0 %3762 }
 0xe08   :  { %v3795_v18 = vsub.f32 %v11818_v10, %v3767_v4  ;;  %v4136_v48 = vpop.xlane.xlu1 %4135  ;;  %v3793_v27 = vsub.f32 %v11814_v36, %v3763_v51 }
 0xe09   :  { %7778 = vrcp.f32 %v4136_v48 }
 0xe0a   :  { %v11867_v23 = vpop.eup %7774  ;;  %v3814_v12 = vmul.f32 1.442695, %v3795_v18  ;;  %v3810_v15 = vmul.f32 1.442695, %v3793_v27 }
 0xe0b   :  { %3840 = vadd.xlane.f32.xlu1 %v11867_v23  ;;  %v7777_v58 = vpop.eup %7776  ;;  %v11931_v27 = vpop.f32.mrf.mxu1 }
 0xe0c   :  { %7780 = vpow2.f32 %v3814_v12  ;;  %v4167_v10 = vmul.f32 %v7777_v58, %v11806_v28  ;;  %v3755_v28 = vpop.f32.mrf.mxu3  ;;  %v13926_v58 = vld [vmem:[#allocation43_spill] sm:$0xff] }
 0xe0d   :  { %7782 = vpow2.f32 %v3810_v15  ;;  %v11925_v18 = vadd.f32 %v11749_v46, %v3755_v28  ;;  %v13925_v15 = vld [vmem:[#allocation44_spill] sm:$0xff] }
 0xe0f   :  { %v7779_v54 = vpop.eup %7778  ;;  %v3769_v39 = vpop.xlane.xlu0 %3768 }
 0xe10   :  { %v3765_v13 = vpop.xlane.xlu1 %3764  ;;  %v3796_v44 = vsub.f32 %v11827_v33, %v3769_v39  ;;  %v4168_v36 = vmul.f32 %v7779_v54, %v11820_v32  ;;  %v11887_v33 = vadd.f32 %v11697_v16, %v3745_v20  ;;  %v3773_v9 = vpop.xlane.xlu2 %3772  ;;  %v13927_v54 = vpack.c.bf16 %v13925_v15, %v13926_v58  ;;  %v13940_v15 = vld [vmem:[#allocation16_spill] sm:$0xff]  ;;  %v13941_v58 = vld [vmem:[#allocation7_spill] sm:$0xff] }
 0xe11   :  { %v3794_v62 = vsub.f32 %v11835_v19, %v3765_v13  ;;  %v3798_v34 = vsub.f32 %v11831_v49, %v3773_v9  ;;  %v13924_v49 = vpack.c.bf16 %v13922_v52, %v13923_v24  ;;  %v13932_v9 = vld [vmem:[#allocation38_spill] sm:$0xff] }
 0xe12   :  { %v11877_v50 = vpop.eup %7780  ;;  %v3816_v31 = vmul.f32 1.442695, %v3796_v44  ;;  %v4176_v35 = vpack.c.bf16 %v4168_v36, %v4167_v10  ;;  %v13928_v10 = vld [vmem:[#allocation21_spill] sm:$0xff]  ;;  %v13929_v36 = vld [vmem:[#allocation20_spill] sm:$0xff] }
 0xe13   :  { %v11881_v37 = vpop.eup %7782  ;;  %v3812_v22 = vmul.f32 1.442695, %v3794_v62  ;;  %3846 = vadd.xlane.f32.xlu0 %v11877_v50  ;;  %3778 = vmax.xlane.f32.xlu1 %v11874_v2  ;;  %v3820_v20 = vmul.f32 1.442695, %v3798_v34  ;;  %v13930_v62 = vpack.c.bf16 %v13928_v10, %v13929_v36 }
 0xe14   :  { %4244 = vmatmul.bf16.gmra.mxu1 %v4176_v35  ;;  %3842 = vadd.xlane.f32.xlu2 %v11881_v37  ;;  %v3757_v16 = vpop.f32.mrf.mxu3 }
 0xe15   :  { %7784 = vpow2.f32 %v3812_v22  ;;  %v11934_v53 = vadd.f32 %v11762_v41, %v3757_v16 }
 0xe16   :  { %7786 = vpow2.f32 %v3816_v31 }
 0xe18   :  { %v3771_v32 = vpop.xlane.xlu1 %3770 }
 0xe19   :  { %v3797_v19 = vsub.f32 %v11846_v6, %v3771_v32  ;;  %v3775_v6 = vpop.xlane.xlu0 %3774 }
 0xe1a   :  { %v3799_v57 = vsub.f32 %v11842_v43, %v3775_v6  ;;  %v13935_v6 = vld [vmem:[#allocation65_spill] sm:$0xff] }
 0xe1b   :  { %v11890_v3 = vpop.eup %7784  ;;  %v3818_v38 = vmul.f32 1.442695, %v3797_v19  ;;  %3780 = vmax.xlane.f32.xlu1 %v11887_v33  ;;  %v13931_v19 = vld [vmem:[#allocation37_spill] sm:$0xff] }
 0xe1c   :  { %v11893_v30 = vpop.eup %7786  ;;  %3844 = vadd.xlane.f32.xlu2 %v11890_v3  ;;  %v4332_v11 = vpop.f32.mrf.mxu3  ;;  %v3822_v4 = vmul.f32 1.442695, %v3799_v57  ;;  %v13937_v57 = vld [vmem:[#allocation34_spill] sm:$0xff] }
 0xe1d   :  { %7788 = vpow2.f32 %v3818_v38  ;;  %3848 = vadd.xlane.f32.xlu0 %v11893_v30  ;;  %v11951_v13 = vadd.f32 %v11569_v60, %v4332_v11  ;;  %v13933_v38 = vpack.c.bf16 %v13931_v19, %v13932_v9  ;;  %v13938_v11 = vld [vmem:[#allocation3_spill] sm:$0xff] }
 0xe1e   :  { %7790 = vpow2.f32 %v3820_v20  ;;  %v13934_v20 = vld [vmem:[#allocation64_spill] sm:$0xff] }
 0xe1f   :  { %7792 = vpow2.f32 %v3822_v4  ;;  %v13936_v52 = vpack.c.bf16 %v13934_v20, %v13935_v6  ;;  %v13939_v4 = vpack.c.bf16 %v13937_v57, %v13938_v11 }
 0xe21   :  { %v3777_v48 = vpop.xlane.xlu0 %3776 }
 0xe22   :  { %v3800_v43 = vsub.f32 %v11851_v63, %v3777_v48  ;;  %v11945_v63 = vpop.f32.mrf.mxu1 }
 0xe23   :  { %v11900_v8 = vpop.eup %7788 }
 0xe24   :  { %3850 = vadd.xlane.f32.xlu1 %v11900_v8  ;;  %4645 = vmatmul.bf16.vlgmr.msra.gmra.mxu1 %v13924_v49  ;;  %v11918_v51 = vpop.eup %7790  ;;  %v11936_v56 = vpop.f32.mrf.mxu3  ;;  %v3824_v12 = vmul.f32 1.442695, %v3800_v43 }
 0xe25   :  { %3782 = vmax.xlane.f32.xlu2 %v11904_v55  ;;  %3786 = vmax.xlane.f32.xlu0 %v11907_v42  ;;  %v11938_v46 = vpop.eup %7792 }
 0xe26   :  { %7794 = vpow2.f32 %v3824_v12 }
 0xe2a   :  { %v11953_v44 = vpop.f32.mrf.mxu1 }
 0xe2c   :  { %3852 = vadd.xlane.f32.xlu1 %v11918_v51  ;;  %v11947_v39 = vpop.eup %7794  ;;  %v4337_v41 = vpop.f32.mrf.mxu3 }
 0xe2d   :  { %3788 = vmax.xlane.f32.xlu0 %v11925_v18  ;;  %3784 = vmax.xlane.f32.xlu2 %v11922_v1  ;;  %v11962_v35 = vadd.f32 %v11584_v7, %v4337_v41 }
 0xe32   :  { %v11965_v22 = vpop.f32.mrf.mxu1 }
 0xe34   :  { %4650 = vmatmul.bf16.gmra.mxu1 %v13927_v54  ;;  %3790 = vmax.xlane.f32.xlu1 %v11934_v53  ;;  %v11959_v31 = vpop.f32.mrf.mxu3  ;;  %v13942_v54 = vpack.c.bf16 %v13940_v15, %v13941_v58 }
 0xe35   :  { %3854 = vadd.xlane.f32.xlu2 %v11938_v46 }
 0xe3a   :  { %v11974_v34 = vpop.f32.mrf.mxu1 }
 0xe3c   :  { %v4342_v28 = vpop.f32.mrf.mxu3 }
 0xe3d   :  { %3856 = vadd.xlane.f32.xlu2 %v11947_v39  ;;  %v11968_v32 = vadd.f32 %v11602_v29, %v4342_v28 }
 0xe44   :  { %4655 = vmatmul.bf16.gmra.mxu1 %v13930_v62 }
 0xe45   :  { %4372 = vmax.xlane.f32.xlu2 %v11951_v13 }
 0xe4d   :  { %4376 = vmax.xlane.f32.xlu2 %v11962_v35 }
 0xe54   :  { %4660 = vmatmul.bf16.gmra.mxu1 %v13933_v38 }
 0xe55   :  { %4380 = vmax.xlane.f32.xlu2 %v11968_v32 }
 0xe60   :  { %v11976_v16 = vpop.f32.mrf.mxu1 }
 0xe64   :  { %4665 = vmatmul.bf16.gmra.mxu1 %v13936_v52 }
 0xe68   :  { %v11981_v24 = vpop.f32.mrf.mxu1 }
 0xe70   :  { %v11983_v49 = vpop.f32.mrf.mxu1 }
 0xe74   :  { %4670 = vmatmul.bf16.gmra.mxu1 %v13939_v4 }
 0xe78   :  { %v11988_v48 = vpop.f32.mrf.mxu1 }
 0xe7e   :  { %v3841_v43 = vpop.xlane.xlu1 %3840 }
 0xe7f   :  { %7796 = vrcp.f32 %v3841_v43 }
 0xe80   :  { %v11990_v12 = vpop.f32.mrf.mxu1 }
 0xe84   :  { %4675 = vmatmul.bf16.gmra.mxu1 %v13942_v54  ;;  %v13944_v54 = vld [vmem:[#allocation19_spill] sm:$0xff] }
 0xe85   :  { %v7797_v9 = vpop.eup %7796 }
 0xe86   :  { %v3779_v41 = vpop.xlane.xlu1 %3778  ;;  %v3847_v10 = vpop.xlane.xlu0 %3846  ;;  %v3888_v6 = vmul.f32 %v7797_v9, %v11867_v23 }
 0xe87   :  { %v3801_v36 = vsub.f32 %v11874_v2, %v3779_v41  ;;  %v3843_v62 = vpop.xlane.xlu2 %3842  ;;  %v13945_v41 = vld [vmem:[#allocation17_spill] sm:$0xff] }
 0xe88   :  { %7798 = vrcp.f32 %v3843_v62  ;;  %v11996_v28 = vpop.f32.mrf.mxu1  ;;  %v13946_v23 = vpack.c.bf16 %v13944_v54, %v13945_v41 }
 0xe89   :  { %v3826_v19 = vmul.f32 1.442695, %v3801_v36 }
 0xe8b   :  { %7800 = vpow2.f32 %v3826_v19 }
 0xe8e   :  { %v7799_v38 = vpop.eup %7798  ;;  %v3781_v20 = vpop.xlane.xlu1 %3780 }
 0xe8f   :  { %v3889_v52 = vmul.f32 %v7799_v38, %v11881_v37  ;;  %v3802_v57 = vsub.f32 %v11887_v33, %v3781_v20  ;;  %v3845_v11 = vpop.xlane.xlu2 %3844 }
 0xe90   :  { %v3849_v4 = vpop.xlane.xlu0 %3848 }
 0xe91   :  { %v12001_v43 = vpop.eup %7800  ;;  %v3904_v2 = vpack.c.bf16 %v3889_v52, %v3888_v6  ;;  %v3828_v15 = vmul.f32 1.442695, %v3802_v57  ;;  %v12003_v58 = vpop.f32.mrf.mxu1 }
 0xe92   :  { %13943 = vst [vmem:[#allocation18_spill] sm:$0xff] %v12003_v58  ;;  %3858 = vadd.xlane.f32.xlu0 %v12001_v43 }
 0xe93   :  { %7802 = vpow2.f32 %v3828_v15  ;;  %4258 = vmatmul.bf16.vlgmr.msrb.gmra.mxu2 %v3904_v2  ;;  %v12020_v2 = vadd.f32 %v11578_v17, %v11936_v56 }
 0xe94   :  { %7804 = vrcp.f32 %v3845_v11  ;;  %4680 = vmatmul.bf16.gmra.mxu1 %v13946_v23 }
 0xe95   :  { %7806 = vrcp.f32 %v3847_v10 }
 0xe97   :  { %v3851_v37 = vpop.xlane.xlu1 %3850 }
 0xe98   :  { %v3783_v33 = vpop.xlane.xlu2 %3782  ;;  %v3787_v38 = vpop.xlane.xlu0 %3786 }
 0xe99   :  { %v12009_v36 = vpop.eup %7802  ;;  %v3803_v62 = vsub.f32 %v11904_v55, %v3783_v33  ;;  %v12012_v19 = vpop.f32.mrf.mxu1  ;;  %v3805_v52 = vsub.f32 %v11907_v42, %v3787_v38 }
 0xe9a   :  { %13947 = vst [vmem:[#allocation32_spill] sm:$0xff] %v12012_v19  ;;  %v7805_v9 = vpop.eup %7804  ;;  %3860 = vadd.xlane.f32.xlu0 %v12009_v36 }
 0xe9b   :  { %v3830_v20 = vmul.f32 1.442695, %v3803_v62  ;;  %v7807_v6 = vpop.eup %7806  ;;  %v3890_v57 = vmul.f32 %v7805_v9, %v11890_v3  ;;  %v3834_v15 = vmul.f32 1.442695, %v3805_v52 }
 0xe9c   :  { %v3891_v11 = vmul.f32 %v7807_v6, %v11877_v50  ;;  %v4344_v50 = vpop.f32.mrf.mxu3 }
 0xe9d   :  { %7808 = vpow2.f32 %v3830_v20 }
 0xe9e   :  { %v3905_v23 = vpack.c.bf16 %v3891_v11, %v3890_v57  ;;  %7810 = vrcp.f32 %v3849_v4 }
 0xe9f   :  { %v3853_v10 = vpop.xlane.xlu1 %3852  ;;  %7812 = vrcp.f32 %v3851_v37 }
 0xea0   :  { %v3785_v55 = vpop.xlane.xlu2 %3784  ;;  %7814 = vpow2.f32 %v3834_v15  ;;  %v3789_v52 = vpop.xlane.xlu0 %3788 }
 0xea1   :  { %v3804_v54 = vsub.f32 %v11922_v1, %v3785_v55  ;;  %v4646_v41 = vpop.f32.mrf.mxu1  ;;  %v3806_v57 = vsub.f32 %v11925_v18, %v3789_v52 }
 0xea2   :  { %4374 = vmax.xlane.f32.xlu0 %v12020_v2 }
 0xea3   :  { %v12024_v33 = vpop.eup %7808  ;;  %v3832_v42 = vmul.f32 1.442695, %v3804_v54  ;;  %4263 = vmatmul.bf16.gmra.mxu2 %v3905_v23 }
 0xea4   :  { %3862 = vadd.xlane.f32.xlu1 %v12024_v33  ;;  %v7811_v1 = vpop.eup %7810  ;;  %v4347_v11 = vpop.f32.mrf.mxu3 }
 0xea5   :  { %7816 = vpow2.f32 %v3832_v42  ;;  %v7813_v38 = vpop.eup %7812  ;;  %v12044_v42 = vadd.f32 %v11625_v59, %v4347_v11 }
 0xea6   :  { %v12031_v4 = vpop.eup %7814 }
 0xea7   :  { %v3791_v3 = vpop.xlane.xlu1 %3790 }
 0xea8   :  { %v3807_v56 = vsub.f32 %v11934_v53, %v3791_v3  ;;  %v3855_v62 = vpop.xlane.xlu2 %3854  ;;  %v3893_v53 = vmul.f32 %v7813_v38, %v11900_v8  ;;  %v3836_v3 = vmul.f32 1.442695, %v3806_v57 }
 0xea9   :  { %v4648_v9 = vpop.f32.mrf.mxu1 }
 0xeaa   :  { %v3838_v20 = vmul.f32 1.442695, %v3807_v56  ;;  %v12029_v6 = vadd.f32 %v11578_v17, %v4648_v9  ;;  %v3892_v17 = vmul.f32 %v7811_v1, %v11893_v30  ;;  %v12048_v56 = vadd.f32 %v11593_v40, %v11959_v31 }
 0xeab   :  { %v12033_v37 = vpop.eup %7816  ;;  %v12055_v9 = vadd.f32 %v11569_v60, %v4646_v41 }
 0xeac   :  { %7818 = vpow2.f32 %v3838_v20  ;;  %3866 = vadd.xlane.f32.xlu1 %v12031_v4  ;;  %4688 = vmax.xlane.f32.xlu2 %v12029_v6  ;;  %v3906_v54 = vpack.c.bf16 %v3893_v53, %v3892_v17  ;;  %v4349_v57 = vpop.f32.mrf.mxu3 }
 0xead   :  { %3864 = vadd.xlane.f32.xlu0 %v12033_v37  ;;  %7820 = vrcp.f32 %v3855_v62 }
 0xeae   :  { %7822 = vrcp.f32 %v3853_v10 }
 0xeaf   :  { %7824 = vpow2.f32 %v3836_v3 }
 0xeb0   :  { %v3857_v55 = vpop.xlane.xlu2 %3856 }
 0xeb1   :  { %v4651_v15 = vpop.f32.mrf.mxu1 }
 0xeb2   :  { %v12041_v23 = vpop.eup %7818 }
 0xeb3   :  { %4268 = vmatmul.bf16.gmra.mxu2 %v3906_v54  ;;  %v7821_v1 = vpop.eup %7820  ;;  %v12079_v54 = vadd.f32 %v11639_v14, %v4349_v57 }
 0xeb4   :  { %3870 = vadd.xlane.f32.xlu1 %v12041_v23  ;;  %4384 = vmax.xlane.f32.xlu2 %v12044_v42  ;;  %v7823_v62 = vpop.eup %7822 }
 0xeb5   :  { %4378 = vmax.xlane.f32.xlu0 %v12048_v56  ;;  %v12060_v20 = vpop.eup %7824  ;;  %v3894_v10 = vmul.f32 %v7823_v62, %v11918_v51 }
 0xeb8   :  { %v4373_v30 = vpop.xlane.xlu2 %4372 }
 0xeb9   :  { %v4404_v8 = vsub.f32 %v11951_v13, %v4373_v30  ;;  %v4653_v18 = vpop.f32.mrf.mxu1  ;;  %v3895_v13 = vmul.f32 %v7821_v1, %v11938_v46  ;;  %v12076_v46 = vadd.f32 %v11584_v7, %v4651_v15 }
 0xeba   :  { %v12058_v31 = vadd.f32 %v11593_v40, %v4653_v18  ;;  %v12070_v40 = vadd.f32 %v11614_v21, %v4344_v50  ;;  %v4352_v21 = vpop.f32.mrf.mxu3 }
 0xebb   :  { %v4420_v38 = vmul.f32 1.442695, %v4404_v8  ;;  %v3907_v41 = vpack.c.bf16 %v3895_v13, %v3894_v10  ;;  %v12084_v3 = vadd.f32 %v11650_v25, %v4352_v21 }
 0xebc   :  { %4686 = vmax.xlane.f32.xlu1 %v12055_v9  ;;  %4692 = vmax.xlane.f32.xlu2 %v12058_v31 }
 0xebd   :  { %7826 = vpow2.f32 %v4420_v38  ;;  %3868 = vadd.xlane.f32.xlu0 %v12060_v20 }
 0xec0   :  { %v4377_v53 = vpop.xlane.xlu2 %4376 }
 0xec1   :  { %v4656_v60 = vpop.f32.mrf.mxu1  ;;  %v4406_v11 = vsub.f32 %v11962_v35, %v4377_v53 }
 0xec2   :  { %v12093_v14 = vadd.f32 %v11602_v29, %v4656_v60 }
 0xec3   :  { %v12067_v52 = vpop.eup %7826  ;;  %4273 = vmatmul.bf16.gmra.mxu2 %v3907_v41  ;;  %v4424_v51 = vmul.f32 1.442695, %v4406_v11 }
 0xec4   :  { %4452 = vadd.xlane.f32.xlu1 %v12067_v52 }
 0xec5   :  { %4382 = vmax.xlane.f32.xlu0 %v12070_v40  ;;  %7828 = vpow2.f32 %v4424_v51 }
 0xec6   :  { %7830 = vrcp.f32 %v3857_v55 }
 0xec8   :  { %v12111_v53 = vpop.xlane.xlu2 %4380 }
 0xec9   :  { %v4658_v17 = vpop.f32.mrf.mxu1 }
 0xecb   :  { %v12086_v30 = vpop.eup %7828 }
 0xecc   :  { %4690 = vmax.xlane.f32.xlu1 %v12076_v46  ;;  %v7831_v62 = vpop.eup %7830 }
 0xecd   :  { %4386 = vmax.xlane.f32.xlu0 %v12079_v54  ;;  %v3896_v13 = vmul.f32 %v7831_v62, %v11947_v39 }
 0xed1   :  { %v4661_v50 = vpop.f32.mrf.mxu1 }
 0xed2   :  { %v12097_v15 = vadd.f32 %v11625_v59, %v4661_v50 }
 0xed4   :  { %4388 = vmax.xlane.f32.xlu1 %v12084_v3 }
 0xed5   :  { %4456 = vadd.xlane.f32.xlu0 %v12086_v30 }
 0xed9   :  { %v12090_v7 = vpop.f32.mrf.mxu1 }
 0xedc   :  { %4694 = vmax.xlane.f32.xlu1 %v12093_v14 }
 0xee1   :  { %v4666_v35 = vpop.f32.mrf.mxu1 }
 0xee2   :  { %v12100_v8 = vadd.f32 %v11650_v25, %v4666_v35 }
 0xee4   :  { %4698 = vmax.xlane.f32.xlu1 %v12097_v15  ;;  %4702 = vmax.xlane.f32.xlu0 %v12100_v8 }
 0xee9   :  { %v4668_v18 = vpop.f32.mrf.mxu1 }
 0xeea   :  { %v12105_v1 = vadd.f32 %v11684_v5, %v4668_v18 }
 0xeec   :  { %4704 = vmax.xlane.f32.xlu1 %v12105_v1 }
 0xf05   :  { %v3859_v29 = vpop.xlane.xlu0 %3858 }
 0xf06   :  { %7832 = vrcp.f32 %v3859_v29 }
 0xf0c   :  { %v7833_v38 = vpop.eup %7832 }
 0xf0d   :  { %v3861_v59 = vpop.xlane.xlu0 %3860  ;;  %v3897_v25 = vmul.f32 %v7833_v38, %v12001_v43  ;;  %v4354_v38 = vpop.f32.mrf.mxu3 }
 0xf0e   :  { %7834 = vrcp.f32 %v3861_v59 }
 0xf0f   :  { %v3908_v10 = vpack.c.bf16 %v3897_v25, %v3896_v13 }
 0xf11   :  { %4278 = vmatmul.bf16.gmra.mxu2 %v3908_v10 }
 0xf14   :  { %v7835_v11 = vpop.eup %7834 }
 0xf15   :  { %v4375_v60 = vpop.xlane.xlu0 %4374  ;;  %v3898_v39 = vmul.f32 %v7835_v11, %v12009_v36  ;;  %v8060_v36 = vld [vmem:[%s13504_s1 + $0x28] sm:$0xff] }
 0xf16   :  { %v4405_v41 = vsub.f32 %v12020_v2, %v4375_v60  ;;  %v12122_v59 = vadd.f32 %v8060_v36, %v4658_v17 }
 0xf17   :  { %v3863_v57 = vpop.xlane.xlu1 %3862 }
 0xf18   :  { %7836 = vrcp.f32 %v3863_v57  ;;  %v4422_v55 = vmul.f32 1.442695, %v4405_v41  ;;  %v4671_v41 = vpop.f32.mrf.mxu1 }
 0xf1a   :  { %7838 = vpow2.f32 %v4422_v55  ;;  %v12129_v55 = vpop.f32.mrf.mxu3 }
 0xf1e   :  { %v7837_v51 = vpop.eup %7836 }
 0xf1f   :  { %v3867_v21 = vpop.xlane.xlu1 %3866  ;;  %v4689_v50 = vpop.xlane.xlu2 %4688  ;;  %v3899_v43 = vmul.f32 %v7837_v51, %v12024_v33 }
 0xf20   :  { %v12115_v35 = vpop.eup %7838  ;;  %v3865_v18 = vpop.xlane.xlu0 %3864  ;;  %v4719_v29 = vsub.f32 %v12029_v6, %v4689_v50  ;;  %7840 = vrcp.f32 %v3867_v21  ;;  %v12136_v21 = vadd.f32 %v11684_v5, %v4354_v38  ;;  %v8061_v5 = vld [vmem:[%s13504_s1 + $0x38] sm:$0xff] }
 0xf21   :  { %4454 = vadd.xlane.f32.xlu2 %v12115_v35  ;;  %v3909_v2 = vpack.c.bf16 %v3899_v43, %v3898_v39  ;;  %7842 = vrcp.f32 %v3865_v18 }
 0xf22   :  { %v4736_v62 = vmul.f32 1.442695, %v4719_v29 }
 0xf23   :  { %4283 = vmatmul.bf16.gmra.mxu2 %v3909_v2 }
 0xf24   :  { %7844 = vpow2.f32 %v4736_v62 }
 0xf26   :  { %v7841_v13 = vpop.eup %7840 }
 0xf27   :  { %v3871_v33 = vpop.xlane.xlu1 %3870  ;;  %v7843_v10 = vpop.eup %7842  ;;  %v3901_v11 = vmul.f32 %v7841_v13, %v12031_v4 }
 0xf28   :  { %v4379_v25 = vpop.xlane.xlu0 %4378  ;;  %v3900_v17 = vmul.f32 %v7843_v10, %v12033_v37  ;;  %v12133_v51 = vpop.xlane.xlu2 %4384  ;;  %v8062_v10 = vld [vmem:[%s13504_s1 + $0x50] sm:$0xff] }
 0xf29   :  { %v4407_v6 = vsub.f32 %v12048_v56, %v4379_v25  ;;  %4696 = vmax.xlane.f32.xlu2 %v12122_v59  ;;  %v4673_v4 = vpop.f32.mrf.mxu1  ;;  %v4359_v37 = vpop.f32.mrf.mxu3 }
 0xf2a   :  { %v12126_v60 = vpop.eup %7844  ;;  %v3910_v43 = vpack.c.bf16 %v3901_v11, %v3900_v17  ;;  %v12155_v13 = vadd.f32 %v11710_v0, %v4359_v37 }
 0xf2b   :  { %v4426_v57 = vmul.f32 1.442695, %v4407_v6  ;;  %4768 = vadd.xlane.f32.xlu1 %v12126_v60  ;;  %v12164_v6 = vadd.f32 %v8062_v10, %v4671_v41 }
 0xf2d   :  { %7846 = vpow2.f32 %v4426_v57 }
 0xf2f   :  { %v4687_v56 = vpop.xlane.xlu1 %4686 }
 0xf30   :  { %v4718_v50 = vsub.f32 %v12055_v9, %v4687_v56  ;;  %v3869_v39 = vpop.xlane.xlu0 %3868  ;;  %v12147_v9 = vadd.f32 %v8061_v5, %v12090_v7  ;;  %v4693_v62 = vpop.xlane.xlu2 %4692  ;;  %v8063_v56 = vld [vmem:[%s13504_s1 + $0x58] sm:$0xff] }
 0xf31   :  { %4390 = vmax.xlane.f32.xlu2 %v12136_v21  ;;  %7848 = vrcp.f32 %v3869_v39  ;;  %v4676_v57 = vpop.f32.mrf.mxu1 }
 0xf32   :  { %v4734_v18 = vmul.f32 1.442695, %v4718_v50  ;;  %v12171_v50 = vadd.f32 %v8063_v56, %v4673_v4  ;;  %v12175_v39 = vadd.f32 %v11723_v45, %v4676_v57 }
 0xf33   :  { %v12140_v29 = vpop.eup %7846  ;;  %4288 = vmatmul.bf16.gmra.mxu2 %v3910_v43 }
 0xf34   :  { %7850 = vpow2.f32 %v4734_v18  ;;  %4458 = vadd.xlane.f32.xlu1 %v12140_v29 }
 0xf35   :  { %7852 = vrcp.f32 %v3871_v33  ;;  %v4721_v33 = vsub.f32 %v12058_v31, %v4693_v62 }
 0xf37   :  { %v12149_v2 = vpop.xlane.xlu1 %4452  ;;  %v7849_v38 = vpop.eup %7848  ;;  %v4740_v17 = vmul.f32 1.442695, %v4721_v33 }
 0xf38   :  { %v3902_v7 = vmul.f32 %v7849_v38, %v12060_v20  ;;  %v4383_v18 = vpop.xlane.xlu0 %4382 }
 0xf39   :  { %4700 = vmax.xlane.f32.xlu2 %v12147_v9  ;;  %7854 = vpow2.f32 %v4740_v17  ;;  %v4409_v45 = vsub.f32 %v12070_v40, %v4383_v18  ;;  %v12196_v40 = vpop.f32.mrf.mxu3 }
 0xf3a   :  { %v12152_v36 = vpop.eup %7850 }
 0xf3b   :  { %4766 = vadd.xlane.f32.xlu0 %v12152_v36  ;;  %v7853_v25 = vpop.eup %7852  ;;  %v4430_v5 = vmul.f32 1.442695, %v4409_v45 }
 0xf3c   :  { %4394 = vmax.xlane.f32.xlu1 %v12155_v13  ;;  %v3903_v0 = vmul.f32 %v7853_v25, %v12041_v23  ;;  %v4408_v23 = vsub.f32 %v11968_v32, %v12111_v53  ;;  %v12190_v53 = vadd.f32 %v8062_v10, %v12129_v55  ;;  %v4410_v25 = vsub.f32 %v12044_v42, %v12133_v51  ;;  %v8064_v42 = vld [vmem:[%s13504_s1 + $0x68] sm:$0xff] }
 0xf3e   :  { %v3911_v20 = vpack.c.bf16 %v3903_v0, %v3902_v7  ;;  %v4428_v43 = vmul.f32 1.442695, %v4408_v23  ;;  %v4432_v7 = vmul.f32 1.442695, %v4410_v25 }
 0xf3f   :  { %v4691_v11 = vpop.xlane.xlu1 %4690  ;;  %v12181_v4 = vpop.eup %7854 }
 0xf40   :  { %v4720_v31 = vsub.f32 %v12076_v46, %v4691_v11 }
 0xf41   :  { %4706 = vmax.xlane.f32.xlu2 %v12164_v6  ;;  %v4364_v17 = vpop.f32.mrf.mxu3 }
 0xf42   :  { %v4738_v41 = vmul.f32 1.442695, %v4720_v31  ;;  %v12210_v51 = vadd.f32 %v8064_v42, %v4364_v17  ;;  %v4678_v31 = vpop.f32.mrf.mxu1 }
 0xf43   :  { %4293 = vmatmul.bf16.gmra.mxu2 %v3911_v20  ;;  %4708 = vmax.xlane.f32.xlu0 %v12171_v50 }
 0xf44   :  { %7856 = vpow2.f32 %v4738_v41  ;;  %4710 = vmax.xlane.f32.xlu1 %v12175_v39 }
 0xf45   :  { %7858 = vpow2.f32 %v4428_v43  ;;  %v12223_v43 = vld [vmem:[%s13504_s1 + $0x70] sm:$0xff] }
 0xf46   :  { %7860 = vpow2.f32 %v4430_v5 }
 0xf47   :  { %v4389_v46 = vpop.xlane.xlu1 %4388 }
 0xf48   :  { %v4412_v45 = vsub.f32 %v12084_v3, %v4389_v46 }
 0xf4a   :  { %v12183_v37 = vpop.eup %7856  ;;  %v4681_v41 = vpop.f32.mrf.mxu1  ;;  %v4436_v5 = vmul.f32 1.442695, %v4412_v45 }
 0xf4b   :  { %4770 = vadd.xlane.f32.xlu2 %v12183_v37  ;;  %4772 = vadd.xlane.f32.xlu0 %v12181_v4  ;;  %v12192_v38 = vpop.eup %7858  ;;  %v12226_v18 = vadd.f32 %v12223_v43, %v4681_v41  ;;  %v12240_v41 = vpop.f32.mrf.mxu2 }
 0xf4c   :  { %v12200_v57 = vpop.eup %7860 }
 0xf4f   :  { %v4695_v62 = vpop.xlane.xlu1 %4694 }
 0xf50   :  { %v4722_v32 = vsub.f32 %v12093_v14, %v4695_v62 }
 0xf52   :  { %v4742_v33 = vmul.f32 1.442695, %v4722_v32  ;;  %v4387_v32 = vpop.xlane.xlu0 %4386 }
 0xf53   :  { %4460 = vadd.xlane.f32.xlu2 %v12192_v38  ;;  %4392 = vmax.xlane.f32.xlu0 %v12190_v53 }
 0xf54   :  { %7862 = vpow2.f32 %v4742_v33 }
 0xf55   :  { %7864 = vpow2.f32 %v4432_v7 }
 0xf57   :  { %v4699_v14 = vpop.xlane.xlu1 %4698 }
 0xf58   :  { %v4724_v10 = vsub.f32 %v12097_v15, %v4699_v14 }
 0xf5a   :  { %v12202_v55 = vpop.eup %7862  ;;  %v4746_v11 = vmul.f32 1.442695, %v4724_v10  ;;  %v4457_v17 = vpop.xlane.xlu0 %4456 }
 0xf5b   :  { %4774 = vadd.xlane.f32.xlu1 %v12202_v55  ;;  %4462 = vadd.xlane.f32.xlu0 %v12200_v57  ;;  %v12212_v0 = vpop.eup %7864 }
 0xf5c   :  { %7866 = vpow2.f32 %v4746_v11 }
 0xf5f   :  { %v4705_v56 = vpop.xlane.xlu1 %4704 }
 0xf60   :  { %v4727_v15 = vsub.f32 %v12105_v1, %v4705_v56 }
 0xf62   :  { %v12216_v20 = vpop.eup %7866  ;;  %v4752_v23 = vmul.f32 1.442695, %v4727_v15 }
 0xf63   :  { %4464 = vadd.xlane.f32.xlu1 %v12212_v0  ;;  %4398 = vmax.xlane.f32.xlu0 %v12210_v51 }
 0xf64   :  { %7868 = vpow2.f32 %v4752_v23  ;;  %v4703_v23 = vpop.xlane.xlu0 %4702 }
 0xf65   :  { %7870 = vpow2.f32 %v4436_v5 }
 0xf66   :  { %7872 = vrcp.f32 %v12149_v2 }
 0xf6a   :  { %v12230_v62 = vpop.eup %7868 }
 0xf6b   :  { %4778 = vadd.xlane.f32.xlu0 %v12216_v20  ;;  %v12233_v1 = vpop.eup %7870 }
 0xf6c   :  { %v7873_v25 = vpop.eup %7872 }
 0xf6d   :  { %v4500_v3 = vmul.f32 %v7873_v25, %v12067_v52 }
 0xf73   :  { %4714 = vmax.xlane.f32.xlu0 %v12226_v18 }
 0xf7b   :  { %4784 = vadd.xlane.f32.xlu0 %v12230_v62 }
 0xf83   :  { %4468 = vadd.xlane.f32.xlu0 %v12233_v1 }
 0xf94   :  { %v4455_v33 = vpop.xlane.xlu2 %4454 }
 0xf95   :  { %7874 = vrcp.f32 %v4455_v33 }
 0xf9b   :  { %v7875_v7 = vpop.eup %7874 }
 0xf9c   :  { %v4501_v46 = vmul.f32 %v7875_v7, %v12115_v35  ;;  %v4697_v14 = vpop.xlane.xlu2 %4696  ;;  %v12247_v35 = vpop.f32.mrf.mxu2  ;;  %v12250_v7 = vadd.f32 %v8064_v42, %v4678_v31 }
 0xf9d   :  { %v4723_v10 = vsub.f32 %v12122_v59, %v4697_v14 }
 0xf9e   :  { %v4516_v11 = vpack.c.bf16 %v4501_v46, %v4500_v3  ;;  %v4769_v56 = vpop.xlane.xlu1 %4768 }
 0xf9f   :  { %v4744_v15 = vmul.f32 1.442695, %v4723_v10 }
 0xfa0   :  { %4556 = vmatmul.bf16.vlgmr.msra.gmra.mxu0 %v4516_v11  ;;  %v4411_v11 = vsub.f32 %v12079_v54, %v4387_v32 }
 0xfa1   :  { %7876 = vpow2.f32 %v4744_v15 }
 0xfa2   :  { %7878 = vrcp.f32 %v4457_v17  ;;  %v4434_v31 = vmul.f32 1.442695, %v4411_v11 }
 0xfa4   :  { %v12242_v2 = vpop.xlane.xlu2 %4390 }
 0xfa7   :  { %v12244_v45 = vpop.eup %7876  ;;  %v4459_v52 = vpop.xlane.xlu1 %4458 }
 0xfa8   :  { %7880 = vrcp.f32 %v4459_v52  ;;  %4776 = vadd.xlane.f32.xlu2 %v12244_v45  ;;  %v7879_v59 = vpop.eup %7878 }
 0xfa9   :  { %7882 = vrcp.f32 %v4769_v56  ;;  %v4502_v10 = vmul.f32 %v7879_v59, %v12086_v30 }
 0xfac   :  { %v4701_v5 = vpop.xlane.xlu2 %4700 }
 0xfad   :  { %v4725_v33 = vsub.f32 %v12147_v9, %v4701_v5  ;;  %v12258_v9 = vpop.f32.mrf.mxu2  ;;  %v8066_v5 = vld [vmem:[%s13504_s1 + $0x60] sm:$0xff] }
 0xfae   :  { %v7881_v25 = vpop.eup %7880  ;;  %v4767_v3 = vpop.xlane.xlu0 %4766  ;;  %v12264_v30 = vadd.f32 %v8066_v5, %v12196_v40 }
 0xfaf   :  { %7884 = vrcp.f32 %v4767_v3  ;;  %v4748_v46 = vmul.f32 1.442695, %v4725_v33  ;;  %v12252_v14 = vpop.xlane.xlu1 %4394  ;;  %v4503_v17 = vmul.f32 %v7881_v25, %v12140_v29  ;;  %v7883_v15 = vpop.eup %7882 }
 0xfb0   :  { %4712 = vmax.xlane.f32.xlu2 %v12250_v7  ;;  %v4815_v29 = vmul.f32 %v7883_v15, %v12126_v60 }
 0xfb1   :  { %7886 = vpow2.f32 %v4748_v46  ;;  %v4517_v56 = vpack.c.bf16 %v4503_v17, %v4502_v10  ;;  %v4726_v46 = vsub.f32 %v12100_v8, %v4703_v23  ;;  %v4683_v10 = vpop.f32.mrf.mxu1  ;;  %v4367_v23 = vpop.f32.mrf.mxu3 }
 0xfb2   :  { %7888 = vpow2.f32 %v4434_v31  ;;  %v4413_v31 = vsub.f32 %v12136_v21, %v12242_v2 }
 0xfb3   :  { %4561 = vmatmul.bf16.gmra.mxu0 %v4517_v56 }
 0xfb4   :  { %v4707_v52 = vpop.xlane.xlu2 %4706 }
 0xfb5   :  { %v7885_v42 = vpop.eup %7884  ;;  %v12280_v11 = vpop.f32.mrf.mxu2 }
 0xfb6   :  { %v4814_v54 = vmul.f32 %v7885_v42, %v12152_v36  ;;  %v4709_v32 = vpop.xlane.xlu0 %4708  ;;  %v4750_v36 = vmul.f32 1.442695, %v4726_v46  ;;  %v4728_v46 = vsub.f32 %v12164_v6, %v4707_v52 }
 0xfb7   :  { %v12268_v59 = vpop.eup %7886  ;;  %v4729_v33 = vsub.f32 %v12171_v50, %v4709_v32  ;;  %v4711_v3 = vpop.xlane.xlu1 %4710  ;;  %v8067_v50 = vld [vmem:[%s13504_s1 + $0x78] sm:$0xff]  ;;  %v12292_v32 = vadd.f32 %v12223_v43, %v4367_v23 }
 0xfb8   :  { %v4830_v25 = vpack.c.bf16 %v4815_v29, %v4814_v54  ;;  %4396 = vmax.xlane.f32.xlu2 %v12264_v30  ;;  %4780 = vadd.xlane.f32.xlu1 %v12268_v59  ;;  %v4730_v60 = vsub.f32 %v12175_v39, %v4711_v3  ;;  %v12278_v17 = vadd.f32 %v8067_v50, %v4683_v10  ;;  %v12282_v15 = vpop.eup %7888  ;;  %v4438_v29 = vmul.f32 1.442695, %v4413_v31 }
 0xfb9   :  { %v4756_v40 = vmul.f32 1.442695, %v4729_v33 }
 0xfba   :  { %4870 = vmatmul.bf16.vlgmr.msra.gmra.mxu2 %v4830_v25  ;;  %v4758_v42 = vmul.f32 1.442695, %v4730_v60  ;;  %v4754_v60 = vmul.f32 1.442695, %v4728_v46 }
 0xfbb   :  { %7890 = vpow2.f32 %v4756_v40 }
 0xfbd   :  { %v12299_v10 = vpop.f32.mrf.mxu2 }
 0xfbe   :  { %v4773_v56 = vpop.xlane.xlu0 %4772  ;;  %v4771_v8 = vpop.xlane.xlu2 %4770 }
 0xfbf   :  { %7892 = vrcp.f32 %v4773_v56 }
 0xfc0   :  { %7894 = vrcp.f32 %v4771_v8  ;;  %4466 = vadd.xlane.f32.xlu2 %v12282_v15  ;;  %4716 = vmax.xlane.f32.xlu1 %v12278_v17 }
 0xfc1   :  { %v12286_v39 = vpop.eup %7890  ;;  %7896 = vpow2.f32 %v4750_v36 }
 0xfc2   :  { %4788 = vadd.xlane.f32.xlu0 %v12286_v39  ;;  %7898 = vpow2.f32 %v4758_v42 }
 0xfc3   :  { %7900 = vpow2.f32 %v4438_v29 }
 0xfc5   :  { %v7893_v5 = vpop.eup %7892  ;;  %v12315_v42 = vpop.f32.mrf.mxu2 }
 0xfc6   :  { %v7895_v54 = vpop.eup %7894  ;;  %v4393_v33 = vpop.xlane.xlu0 %4392  ;;  %v4817_v25 = vmul.f32 %v7893_v5, %v12181_v4 }
 0xfc7   :  { %v12295_v3 = vpop.eup %7896  ;;  %v4816_v40 = vmul.f32 %v7895_v54, %v12183_v37  ;;  %v4414_v43 = vsub.f32 %v12190_v53, %v4393_v33  ;;  %v4369_v4 = vpop.f32.mrf.mxu3  ;;  %v4415_v53 = vsub.f32 %v12155_v13, %v12252_v14  ;;  %v7321_v13 = vld [vmem:[%s13505_s6 + $0x78] sm:$0xff] }
 0xfc8   :  { %4782 = vadd.xlane.f32.xlu2 %v12295_v3  ;;  %4400 = vmax.xlane.f32.xlu1 %v12292_v32  ;;  %v12303_v21 = vpop.eup %7898  ;;  %v4461_v36 = vpop.xlane.xlu2 %4460  ;;  %v12307_v37 = vadd.f32 %v8067_v50, %v4369_v4 }
 0xfc9   :  { %v4831_v2 = vpack.c.bf16 %v4817_v25, %v4816_v40  ;;  %v4440_v6 = vmul.f32 1.442695, %v4414_v43  ;;  %7902 = vrcp.f32 %v4461_v36  ;;  %v12309_v52 = vpop.eup %7900  ;;  %v4442_v50 = vmul.f32 1.442695, %v4415_v53  ;;  %5005 = vmatpush.bf16.msra.mxu3 %v7321_v13 }
 0xfca   :  { %4790 = vadd.xlane.f32.xlu0 %v12303_v21  ;;  %7904 = vpow2.f32 %v4754_v60  ;;  %v7320_v60 = vld [vmem:[%s13505_s6 + $0x70] sm:$0xff] }
 0xfcb   :  { %4875 = vmatmul.bf16.gmra.mxu2 %v4831_v2 }
 0xfcd   :  { %v12329_v40 = vpop.f32.mrf.mxu2  ;;  %5006 = vmatpush.bf16.msra.mxu3 %v7320_v60 }
 0xfce   :  { %v4463_v56 = vpop.xlane.xlu0 %4462  ;;  %v4775_v53 = vpop.xlane.xlu1 %4774 }
 0xfcf   :  { %7906 = vrcp.f32 %v4463_v56  ;;  %v7903_v8 = vpop.eup %7902 }
 0xfd0   :  { %4402 = vmax.xlane.f32.xlu2 %v12307_v37  ;;  %4470 = vadd.xlane.f32.xlu1 %v12309_v52  ;;  %7908 = vpow2.f32 %v4440_v6  ;;  %v12317_v23 = vpop.eup %7904  ;;  %v4504_v54 = vmul.f32 %v7903_v8, %v12192_v38  ;;  %v7319_v6 = vld [vmem:[%s13505_s6 + $0x68] sm:$0xff]  ;;  %v7318_v8 = vld [vmem:[%s13505_s6 + $0x60] sm:$0xff] }
 0xfd1   :  { %7910 = vpow2.f32 %v4442_v50  ;;  %5007 = vmatpush.bf16.msra.mxu3 %v7319_v6 }
 0xfd5   :  { %v7907_v31 = vpop.eup %7906  ;;  %5008 = vmatpush.bf16.msra.mxu3 %v7318_v8 }
 0xfd6   :  { %v12319_v5 = vpop.eup %7908  ;;  %v4399_v29 = vpop.xlane.xlu0 %4398  ;;  %v4505_v33 = vmul.f32 %v7907_v31, %v12200_v57  ;;  %v7317_v31 = vld [vmem:[%s13505_s6 + $0x58] sm:$0xff] }
 0xfd7   :  { %v4417_v25 = vsub.f32 %v12210_v51, %v4399_v29  ;;  %v12331_v38 = vpop.eup %7910  ;;  %v12337_v51 = vpop.f32.mrf.mxu2 }
 0xfd8   :  { %4472 = vadd.xlane.f32.xlu1 %v12319_v5  ;;  %4786 = vadd.xlane.f32.xlu2 %v12317_v23  ;;  %v4518_v14 = vpack.c.bf16 %v4505_v33, %v4504_v54 }
 0xfd9   :  { %v4446_v46 = vmul.f32 1.442695, %v4417_v25  ;;  %5009 = vmatpush.bf16.msra.mxu3 %v7317_v31  ;;  %v7316_v25 = vld [vmem:[%s13505_s6 + $0x50] sm:$0xff] }
 0xfda   :  { %4566 = vmatmul.bf16.gmra.mxu0 %v4518_v14  ;;  %v7315_v14 = vld [vmem:[%s13505_s6 + $0x48] sm:$0xff] }
 0xfdb   :  { %7912 = vpow2.f32 %v4446_v46  ;;  %v4465_v46 = vpop.xlane.xlu1 %4464 }
 0xfdc   :  { %7914 = vrcp.f32 %v4775_v53 }
 0xfdd   :  { %5010 = vmatpush.bf16.msra.mxu3 %v7316_v25  ;;  %v7314_v25 = vld [vmem:[%s13505_s6 + $0x40] sm:$0xff] }
 0xfde   :  { %v4779_v50 = vpop.xlane.xlu0 %4778 }
 0xfdf   :  { %v12339_v43 = vpop.f32.mrf.mxu2 }
 0xfe0   :  { %4474 = vadd.xlane.f32.xlu2 %v12331_v38 }
 0xfe1   :  { %v12334_v57 = vpop.eup %7912  ;;  %5011 = vmatpush.bf16.msra.mxu3 %v7315_v14 }
 0xfe2   :  { %4478 = vadd.xlane.f32.xlu0 %v12334_v57  ;;  %v7915_v54 = vpop.eup %7914 }
 0xfe3   :  { %v4818_v6 = vmul.f32 %v7915_v54, %v12202_v55 }
 0xfe5   :  { %5012 = vmatpush.bf16.msra.mxu3 %v7314_v25 }
 0xfe6   :  { %v4715_v8 = vpop.xlane.xlu0 %4714 }
 0xfe7   :  { %v12341_v2 = vpop.f32.mrf.mxu2  ;;  %v4732_v58 = vsub.f32 %v12226_v18, %v4715_v8 }
 0xfe9   :  { %v4762_v55 = vmul.f32 1.442695, %v4732_v58 }
 0xfef   :  { %v12343_v4 = vpop.f32.mrf.mxu2 }
 0xff7   :  { %v12348_v36 = vpop.f32.mrf.mxu2 }
 0xfff   :  { %v12353_v56 = vpop.f32.mrf.mxu2 }
0x1007   :  { %v12361_v33 = vpop.f32.mrf.mxu2 }
0x1008   :  { %13948 = vst [vmem:[#allocation33_spill] sm:$0xff] %v12361_v33 }
0x100f   :  { %v12376_v33 = vpop.f32.mrf.mxu2 }
0x101b   :  { %v4777_v29 = vpop.xlane.xlu2 %4776 }
0x101c   :  { %7916 = vrcp.f32 %v4777_v29 }
0x1022   :  { %v7917_v13 = vpop.eup %7916 }
0x1023   :  { %v4713_v60 = vpop.xlane.xlu2 %4712  ;;  %v4819_v53 = vmul.f32 %v7917_v13, %v12244_v45 }
0x1024   :  { %v4731_v31 = vsub.f32 %v12250_v7, %v4713_v60 }
0x1025   :  { %v4832_v29 = vpack.c.bf16 %v4819_v53, %v4818_v6  ;;  %v4557_v53 = vpop.f32.mrf.mxu0 }
0x1026   :  { %v4760_v19 = vmul.f32 1.442695, %v4731_v31  ;;  %v12387_v31 = vpop.f32.mrf.mxu2 }
0x1027   :  { %4880 = vmatmul.bf16.gmra.mxu2 %v4832_v29  ;;  %v4785_v29 = vpop.xlane.xlu0 %4784 }
0x1028   :  { %7918 = vpow2.f32 %v4760_v19 }
0x1029   :  { %7920 = vrcp.f32 %v4779_v50 }
0x102b   :  { %v4781_v45 = vpop.xlane.xlu1 %4780  ;;  %v4397_v54 = vpop.xlane.xlu2 %4396 }
0x102c   :  { %7922 = vrcp.f32 %v4781_v45  ;;  %v4416_v7 = vsub.f32 %v12264_v30, %v4397_v54 }
0x102d   :  { %7924 = vpow2.f32 %v4762_v55 }
0x102e   :  { %v12379_v13 = vpop.eup %7918  ;;  %v4444_v14 = vmul.f32 1.442695, %v4416_v7 }
0x102f   :  { %4792 = vadd.xlane.f32.xlu1 %v12379_v13  ;;  %v7921_v19 = vpop.eup %7920 }
0x1030   :  { %7926 = vpow2.f32 %v4444_v14  ;;  %v4820_v50 = vmul.f32 %v7921_v19, %v12216_v20 }
0x1031   :  { %7928 = vrcp.f32 %v4465_v46 }
0x1032   :  { %v7923_v18 = vpop.eup %7922 }
0x1033   :  { %v4717_v60 = vpop.xlane.xlu1 %4716  ;;  %v4467_v6 = vpop.xlane.xlu2 %4466  ;;  %v4821_v58 = vmul.f32 %v7923_v18, %v12268_v59 }
0x1034   :  { %v4733_v8 = vsub.f32 %v12278_v17, %v4717_v60  ;;  %7930 = vrcp.f32 %v4467_v6  ;;  %v12385_v30 = vpop.eup %7924  ;;  %v4559_v6 = vpop.f32.mrf.mxu0 }
0x1035   :  { %v4833_v25 = vpack.c.bf16 %v4821_v58, %v4820_v50  ;;  %v4469_v58 = vpop.xlane.xlu0 %4468 }
0x1036   :  { %v12389_v55 = vpop.eup %7926  ;;  %v4764_v45 = vmul.f32 1.442695, %v4733_v8 }
0x1037   :  { %4885 = vmatmul.bf16.gmra.mxu2 %v4833_v25  ;;  %4794 = vadd.xlane.f32.xlu1 %v12385_v30  ;;  %v7929_v46 = vpop.eup %7928 }
0x1038   :  { %7932 = vpow2.f32 %v4764_v45  ;;  %4476 = vadd.xlane.f32.xlu2 %v12389_v55  ;;  %v4506_v54 = vmul.f32 %v7929_v46, %v12212_v0  ;;  %v4260_v0 = vadd.f32 %v12240_v41, %v11879_v26 }
0x1039   :  { %7934 = vrcp.f32 %v4785_v29 }
0x103a   :  { %v7931_v20 = vpop.eup %7930 }
0x103b   :  { %v4401_v59 = vpop.xlane.xlu1 %4400  ;;  %v4783_v17 = vpop.xlane.xlu2 %4782  ;;  %v4507_v7 = vmul.f32 %v7931_v20, %v12282_v15  ;;  %v4262_v15 = vadd.f32 %v12247_v35, %v11895_v61  ;;  %v4597_v20 = vadd.f32 %v4557_v53, %v4260_v0 }
0x103c   :  { %v4418_v14 = vsub.f32 %v12292_v32, %v4401_v59  ;;  %7936 = vrcp.f32 %v4783_v17  ;;  %v4562_v35 = vpop.f32.mrf.mxu0 }
0x103d   :  { %v4871_v19 = vpop.f32.mrf.mxu2  ;;  %v4519_v18 = vpack.c.bf16 %v4507_v7, %v4506_v54  ;;  %v4598_v59 = vadd.f32 %v4559_v6, %v4262_v15 }
0x103e   :  { %v12396_v60 = vpop.eup %7932  ;;  %v4448_v50 = vmul.f32 1.442695, %v4418_v14  ;;  %v4911_v26 = vadd.f32 %v4871_v19, %v4597_v20 }
0x103f   :  { %4571 = vmatmul.bf16.gmra.mxu0 %v4519_v18  ;;  %v7935_v8 = vpop.eup %7934 }
0x1040   :  { %7938 = vpow2.f32 %v4448_v50  ;;  %4796 = vadd.xlane.f32.xlu2 %v12396_v60  ;;  %v4823_v46 = vmul.f32 %v7935_v8, %v12230_v62 }
0x1041   :  { %7940 = vrcp.f32 %v4469_v58 }
0x1042   :  { %v7937_v29 = vpop.eup %7936 }
0x1043   :  { %v4471_v32 = vpop.xlane.xlu1 %4470  ;;  %v4403_v25 = vpop.xlane.xlu2 %4402  ;;  %v4822_v45 = vmul.f32 %v7937_v29, %v12295_v3 }
0x1044   :  { %7942 = vrcp.f32 %v4471_v32  ;;  %v4419_v17 = vsub.f32 %v12307_v37, %v4403_v25  ;;  %v4789_v3 = vpop.xlane.xlu0 %4788  ;;  %v4564_v15 = vpop.f32.mrf.mxu0  ;;  %v4265_v25 = vadd.f32 %v12258_v9, %v11915_v47 }
0x1045   :  { %v4873_v54 = vpop.f32.mrf.mxu2  ;;  %v4834_v7 = vpack.c.bf16 %v4823_v46, %v4822_v45 }
0x1046   :  { %v12406_v14 = vpop.eup %7938  ;;  %v4912_v41 = vadd.f32 %v4873_v54, %v4598_v59  ;;  %v4450_v18 = vmul.f32 1.442695, %v4419_v17  ;;  %v4599_v20 = vadd.f32 %v4562_v35, %v4265_v25 }
0x1047   :  { %4480 = vadd.xlane.f32.xlu0 %v12406_v14  ;;  %4890 = vmatmul.bf16.gmra.mxu2 %v4834_v7  ;;  %v7941_v61 = vpop.eup %7940 }
0x1048   :  { %v4927_v50 = vpack.c.bf16 %v4912_v41, %v4911_v26  ;;  %7944 = vpow2.f32 %v4450_v18  ;;  %v4508_v37 = vmul.f32 %v7941_v61, %v12233_v1  ;;  %v4267_v1 = vadd.f32 %v12280_v11, %v11931_v27 }
0x1049   :  { %7946 = vrcp.f32 %v4789_v3 }
0x104a   :  { %v7943_v62 = vpop.eup %7942  ;;  %5013 = vmatmul.bf16.vlgmr.msra.gmra.mxu3 %v4927_v50  ;;  %v4600_v59 = vadd.f32 %v4564_v15, %v4267_v1 }
0x104b   :  { %v4787_v53 = vpop.xlane.xlu2 %4786  ;;  %v4509_v6 = vmul.f32 %v7943_v62, %v12309_v52  ;;  %v4473_v29 = vpop.xlane.xlu1 %4472 }
0x104c   :  { %7948 = vrcp.f32 %v4787_v53  ;;  %v4791_v11 = vpop.xlane.xlu0 %4790 }
0x104d   :  { %v4520_v19 = vpack.c.bf16 %v4509_v6, %v4508_v37  ;;  %7950 = vrcp.f32 %v4473_v29 }
0x104e   :  { %v12411_v58 = vpop.eup %7944  ;;  %v4876_v8 = vpop.f32.mrf.mxu2 }
0x104f   :  { %4576 = vmatmul.bf16.gmra.mxu0 %v4520_v19  ;;  %4482 = vadd.xlane.f32.xlu1 %v12411_v58  ;;  %v7947_v0 = vpop.eup %7946  ;;  %v4913_v7 = vadd.f32 %v4876_v8, %v4599_v20  ;;  %v4270_v19 = vadd.f32 %v12299_v10, %v11945_v63  ;;  %v4272_v8 = vadd.f32 %v12315_v42, %v11953_v44 }
0x1050   :  { %v4825_v46 = vmul.f32 %v7947_v0, %v12286_v39 }
0x1052   :  { %v7949_v32 = vpop.eup %7948 }
0x1053   :  { %v4475_v52 = vpop.xlane.xlu2 %4474  ;;  %v4824_v45 = vmul.f32 %v7949_v32, %v12317_v23  ;;  %v7951_v41 = vpop.eup %7950 }
0x1054   :  { %7952 = vrcp.f32 %v4475_v52  ;;  %v4510_v47 = vmul.f32 %v7951_v41, %v12319_v5 }
0x1055   :  { %v4835_v54 = vpack.c.bf16 %v4825_v46, %v4824_v45  ;;  %7954 = vrcp.f32 %v4791_v11  ;;  %v4479_v3 = vpop.xlane.xlu0 %4478 }
0x1056   :  { %v4878_v17 = vpop.f32.mrf.mxu2 }
0x1057   :  { %v4914_v26 = vadd.f32 %v4878_v17, %v4600_v59  ;;  %4895 = vmatmul.bf16.gmra.mxu2 %v4835_v54  ;;  %v4567_v23 = vpop.f32.mrf.mxu0 }
0x1058   :  { %v4601_v15 = vadd.f32 %v4567_v23, %v4270_v19 }
0x1059   :  { %v4928_v18 = vpack.c.bf16 %v4914_v26, %v4913_v7 }
0x105a   :  { %v7953_v61 = vpop.eup %7952 }
0x105b   :  { %5018 = vmatmul.bf16.gmra.mxu3 %v4928_v18  ;;  %v4511_v27 = vmul.f32 %v7953_v61, %v12331_v38  ;;  %v7955_v35 = vpop.eup %7954  ;;  %v4277_v18 = vadd.f32 %v12337_v51, %v11974_v34 }
0x105c   :  { %v4826_v53 = vmul.f32 %v7955_v35, %v12303_v21 }
0x105d   :  { %v4521_v9 = vpack.c.bf16 %v4511_v27, %v4510_v47 }
0x105f   :  { %4581 = vmatmul.bf16.gmra.mxu0 %v4521_v9  ;;  %v4569_v38 = vpop.f32.mrf.mxu0 }
0x1060   :  { %v4602_v32 = vadd.f32 %v4569_v38, %v4272_v8 }
0x10a2   :  { %v4793_v39 = vpop.xlane.xlu1 %4792 }
0x10a3   :  { %7956 = vrcp.f32 %v4793_v39 }
0x10a4   :  { %7958 = vrcp.f32 %v4479_v3 }
0x10a9   :  { %v7957_v50 = vpop.eup %7956 }
0x10aa   :  { %v4881_v62 = vpop.f32.mrf.mxu2  ;;  %v4827_v37 = vmul.f32 %v7957_v50, %v12379_v13  ;;  %v4795_v29 = vpop.xlane.xlu1 %4794 }
0x10ab   :  { %v4477_v6 = vpop.xlane.xlu2 %4476  ;;  %v7959_v0 = vpop.eup %7958  ;;  %v4915_v1 = vadd.f32 %v4881_v62, %v4601_v15  ;;  %v13949_v62 = vld [vmem:[#allocation48_spill] sm:$0xff]  ;;  %v13950_v15 = vld [vmem:[#allocation41_spill] sm:$0xff] }
0x10ac   :  { %7960 = vrcp.f32 %v4477_v6  ;;  %v4836_v5 = vpack.c.bf16 %v4827_v37, %v4826_v53  ;;  %v4513_v46 = vmul.f32 %v7959_v0, %v12334_v57  ;;  %v4280_v37 = vadd.f32 %v12339_v43, %v11976_v16 }
0x10ad   :  { %7962 = vrcp.f32 %v4795_v29 }
0x10ae   :  { %4900 = vmatmul.bf16.gmra.mxu2 %v4836_v5  ;;  %v4282_v5 = vadd.f32 %v12341_v2, %v11981_v24  ;;  %v4285_v24 = vadd.f32 %v12343_v4, %v11983_v49  ;;  %v13951_v2 = vld [vmem:[#allocation47_spill] sm:$0xff] }
0x10b2   :  { %v7961_v25 = vpop.eup %7960  ;;  %v4883_v21 = vpop.f32.mrf.mxu2 }
0x10b3   :  { %v4916_v13 = vadd.f32 %v4883_v21, %v4602_v32  ;;  %v4797_v52 = vpop.xlane.xlu2 %4796  ;;  %v4512_v45 = vmul.f32 %v7961_v25, %v12389_v55  ;;  %v7963_v44 = vpop.eup %7962  ;;  %v4275_v55 = vadd.f32 %v12329_v40, %v11965_v22  ;;  %v12439_v22 = vld [vmem:[%s13506_s7 + $0x1] ss:$0 sm:$0xff] }
0x10b4   :  { %7964 = vrcp.f32 %v4797_v52  ;;  %v4828_v59 = vmul.f32 %v7963_v44, %v12385_v30  ;;  %v4287_v52 = vadd.f32 %v12348_v36, %v11988_v48  ;;  %v4290_v36 = vadd.f32 %v12353_v56, %v11990_v12  ;;  %v13955_v56 = vld [vmem:[#allocation55_spill] sm:$0xff] }
0x10b5   :  { %v4929_v20 = vpack.c.bf16 %v4916_v13, %v4915_v1  ;;  %v4522_v63 = vpack.c.bf16 %v4513_v46, %v4512_v45 }
0x10b7   :  { %4586 = vmatmul.bf16.gmra.mxu0 %v4522_v63  ;;  %5023 = vmatmul.bf16.gmra.mxu3 %v4929_v20 }
0x10ba   :  { %v7965_v10 = vpop.eup %7964  ;;  %v4886_v42 = vpop.f32.mrf.mxu2 }
0x10bb   :  { %v4829_v17 = vmul.f32 %v7965_v10, %v12396_v60  ;;  %v4481_v26 = vpop.xlane.xlu0 %4480 }
0x10bc   :  { %v4572_v54 = vpop.f32.mrf.mxu0  ;;  %7966 = vrcp.f32 %v4481_v26  ;;  %v13953_v26 = vld [vmem:[#allocation33_spill] sm:$0xff] }
0x10bd   :  { %v4837_v7 = vpack.c.bf16 %v4829_v17, %v4828_v59  ;;  %v4603_v61 = vadd.f32 %v4572_v54, %v4275_v55  ;;  %v13952_v17 = vld [vmem:[#allocation50_spill] sm:$0xff]  ;;  %v4292_v55 = vadd.f32 %v13953_v26, %v11996_v28 }
0x10bf   :  { %4905 = vmatmul.bf16.gmra.mxu2 %v4837_v7  ;;  %v4917_v9 = vadd.f32 %v4886_v42, %v4603_v61  ;;  %v13954_v61 = vld [vmem:[#allocation49_spill] sm:$0xff] }
0x10c2   :  { %v4888_v57 = vpop.f32.mrf.mxu2  ;;  %v4483_v41 = vpop.xlane.xlu1 %4482 }
0x10c3   :  { %7968 = vrcp.f32 %v4483_v41  ;;  %v7967_v30 = vpop.eup %7966 }
0x10c4   :  { %v4574_v47 = vpop.f32.mrf.mxu0  ;;  %v4514_v40 = vmul.f32 %v7967_v30, %v12406_v14 }
0x10c5   :  { %v4604_v27 = vadd.f32 %v4574_v47, %v4277_v18 }
0x10c7   :  { %v4918_v60 = vadd.f32 %v4888_v57, %v4604_v27 }
0x10c9   :  { %v7969_v11 = vpop.eup %7968  ;;  %v4930_v39 = vpack.c.bf16 %v4918_v60, %v4917_v9 }
0x10ca   :  { %v4891_v23 = vpop.f32.mrf.mxu2  ;;  %v4515_v35 = vmul.f32 %v7969_v11, %v12411_v58 }
0x10cb   :  { %5028 = vmatmul.bf16.gmra.mxu3 %v4930_v39 }
0x10cc   :  { %v4577_v34 = vpop.f32.mrf.mxu0  ;;  %v4523_v51 = vpack.c.bf16 %v4515_v35, %v4514_v40  ;;  %v13956_v40 = vld [vmem:[#allocation42_spill] sm:$0xff] }
0x10cd   :  { %v5014_v3 = vpop.f32.mrf.mxu3  ;;  %v4605_v14 = vadd.f32 %v4577_v34, %v4280_v37 }
0x10ce   :  { %v5015_v50 = vadd.f32 %v12439_v22, %v5014_v3  ;;  %4591 = vmatmul.bf16.gmra.mxu0 %v4523_v51 }
0x10cf   :  { %v4919_v29 = vadd.f32 %v4891_v23, %v4605_v14  ;;  %v13957_v14 = vld [vmem:[#allocation18_spill] sm:$0xff] }
0x10d0   :  { %v5054_v53 = vadd.f32 %v5015_v50, %v13949_v62 }
0x10d2   :  { %5074 = vadd.xlane.f32.xlu2 %v5054_v53  ;;  %v4893_v6 = vpop.f32.mrf.mxu2 }
0x10d4   :  { %v4579_v38 = vpop.f32.mrf.mxu0 }
0x10d5   :  { %v5016_v58 = vpop.f32.mrf.mxu3  ;;  %v4606_v19 = vadd.f32 %v4579_v38, %v4282_v5  ;;  %v4295_v38 = vadd.f32 %v12376_v33, %v13957_v14  ;;  %v7065_v14 = vld [vmem:[%s13509_s10 + $0xc0] sm:$0xf] }
0x10d6   :  { %v5017_v8 = vadd.f32 %v12439_v22, %v5016_v58 }
0x10d7   :  { %v4920_v0 = vadd.f32 %v4893_v6, %v4606_v19  ;;  %v13958_v19 = vld [vmem:[#allocation57_spill] sm:$0xff] }
0x10d8   :  { %v5055_v32 = vadd.f32 %v5017_v8, %v13950_v15  ;;  %v13959_v8 = vld [vmem:[#allocation32_spill] sm:$0xff] }
0x10d9   :  { %v4931_v25 = vpack.c.bf16 %v4920_v0, %v4919_v29  ;;  %v4297_v29 = vadd.f32 %v12387_v31, %v13959_v8 }
0x10da   :  { %5076 = vadd.xlane.f32.xlu0 %v5055_v32  ;;  %v4896_v21 = vpop.f32.mrf.mxu2 }
0x10db   :  { %5033 = vmatmul.bf16.gmra.mxu3 %v4931_v25 }
0x10dc   :  { %v4582_v16 = vpop.f32.mrf.mxu0 }
0x10dd   :  { %v4607_v45 = vadd.f32 %v4582_v16, %v4285_v24 }
0x10de   :  { %v5019_v43 = vpop.f32.mrf.mxu3 }
0x10df   :  { %v5020_v1 = vadd.f32 %v12439_v22, %v5019_v43  ;;  %v4921_v10 = vadd.f32 %v4896_v21, %v4607_v45  ;;  %v13960_v45 = vld [vmem:[#allocation56_spill] sm:$0xff] }
0x10e1   :  { %v12455_v13 = vadd.f32 %v5020_v1, %v13951_v2 }
0x10e2   :  { %v4898_v63 = vpop.f32.mrf.mxu2 }
0x10e3   :  { %5078 = vadd.xlane.f32.xlu1 %v12455_v13 }
0x10e4   :  { %v4584_v46 = vpop.f32.mrf.mxu0 }
0x10e5   :  { %v4608_v20 = vadd.f32 %v4584_v46, %v4287_v52 }
0x10e6   :  { %v5021_v44 = vpop.f32.mrf.mxu3 }
0x10e7   :  { %v5022_v42 = vadd.f32 %v12439_v22, %v5021_v44  ;;  %v4922_v59 = vadd.f32 %v4898_v63, %v4608_v20 }
0x10e9   :  { %v12462_v54 = vadd.f32 %v5022_v42, %v13952_v17  ;;  %v4932_v49 = vpack.c.bf16 %v4922_v59, %v4921_v10 }
0x10eb   :  { %5080 = vadd.xlane.f32.xlu2 %v12462_v54  ;;  %5038 = vmatmul.bf16.gmra.mxu3 %v4932_v49 }
0x1131   :  { %v4901_v4 = vpop.f32.mrf.mxu2 }
0x1134   :  { %v4587_v48 = vpop.f32.mrf.mxu0 }
0x1135   :  { %v4609_v57 = vadd.f32 %v4587_v48, %v4290_v36  ;;  %v13962_v36 = vld [vmem:[#allocation29_spill] sm:$0xff] }
0x1137   :  { %v4923_v9 = vadd.f32 %v4901_v4, %v4609_v57 }
0x1139   :  { %v4903_v30 = vpop.f32.mrf.mxu2 }
0x113a   :  { %v5024_v7 = vpop.f32.mrf.mxu3 }
0x113b   :  { %v5025_v41 = vadd.f32 %v12439_v22, %v5024_v7 }
0x113c   :  { %v4589_v18 = vpop.f32.mrf.mxu0 }
0x113d   :  { %v12471_v47 = vadd.f32 %v5025_v41, %v13954_v61  ;;  %v4610_v27 = vadd.f32 %v4589_v18, %v4292_v55  ;;  %v13963_v55 = vld [vmem:[#allocation51_spill] sm:$0xff]  ;;  %v7089_v41 = vld [vmem:[%s13509_s10 + $0xf0] sm:$0xf]  ;;  %v7337_v18 = vld [vmem:[%s13509_s10 + $0xf4] sm:$0xf0] }
0x113e   :  { %v7336_v61 = vld [vmem:[%s13509_s10 + $0xf4] sm:$0xf] }
0x113f   :  { %v4924_v60 = vadd.f32 %v4903_v30, %v4610_v27  ;;  %5082 = vadd.xlane.f32.xlu0 %v12471_v47  ;;  %v7090_v27 = vor.u32 %v7337_v18, %v7089_v41  ;;  %v7091_v30 = vld [vmem:[%s13509_s10 + $0xf8] sm:$0xf0] }
0x1140   :  { %v7043_v18 = vld [vmem:[%s13509_s10 + $0x98] sm:$0xf0] }
0x1141   :  { %v4933_v11 = vpack.c.bf16 %v4924_v60, %v4923_v9  ;;  %v7094_v9 = vor.u32 %v7336_v61, %v7091_v30  ;;  %5544 = vmatpush.bf16.msrb.mxu0 %v7090_v27  ;;  %v7081_v60 = vld [vmem:[%s13509_s10 + $0xe0] sm:$0xf] }
0x1142   :  { %v5026_v39 = vpop.f32.mrf.mxu3  ;;  %v4906_v3 = vpop.f32.mrf.mxu2  ;;  %v7033_v30 = vld [vmem:[%s13509_s10 + $0x80] sm:$0xf] }
0x1143   :  { %v5027_v12 = vadd.f32 %v12439_v22, %v5026_v39  ;;  %5043 = vmatmul.bf16.gmra.mxu3 %v4933_v11  ;;  %5593 = vmatpush.bf16.msrb.mxu1 %v7094_v9  ;;  %v7335_v11 = vld [vmem:[%s13509_s10 + $0xe4] sm:$0xf0]  ;;  %v7334_v39 = vld [vmem:[%s13509_s10 + $0xe4] sm:$0xf] }
0x1144   :  { %v7323_v9 = vld [vmem:[%s13509_s10 + $0x84] sm:$0xf0] }
0x1145   :  { %v12476_v28 = vadd.f32 %v5027_v12, %v13955_v56  ;;  %v5075_v23 = vpop.xlane.xlu2 %5074  ;;  %v7082_v12 = vor.u32 %v7335_v11, %v7081_v60  ;;  %v7083_v56 = vld [vmem:[%s13509_s10 + $0xe8] sm:$0xf0]  ;;  %v7322_v60 = vld [vmem:[%s13509_s10 + $0x84] sm:$0xf]  ;;  %v7034_v11 = vor.u32 %v7323_v9, %v7033_v30  ;;  %v12684_v9 = vld [vmem:[%s13508_s9 + $0x1] ss:$0 sm:$0xff] }
0x1146   :  { %v5106_v35 = vmul.f32 %v5075_v23, %v13956_v40  ;;  %v7086_v23 = vor.u32 %v7334_v39, %v7083_v56  ;;  %v7035_v39 = vld [vmem:[%s13509_s10 + $0x88] sm:$0xf0] }
0x1147   :  { %5084 = vadd.xlane.f32.xlu1 %v12476_v28  ;;  %5545 = vmatpush.bf16.msrb.mxu0 %v7082_v12 }
0x1148   :  { %v12480_v34 = vsub.f32 %v5054_v53, %v5106_v35  ;;  %5594 = vmatpush.bf16.msrb.mxu1 %v7086_v23  ;;  %v7073_v35 = vld [vmem:[%s13509_s10 + $0xd0] sm:$0xf]  ;;  %v7038_v23 = vor.u32 %v7322_v60, %v7035_v39 }
0x114a   :  { %v5138_v51 = vmul.f32 %v12480_v34, %v12480_v34  ;;  %v4908_v16 = vpop.f32.mrf.mxu2 }
0x114b   :  { %v4592_v50 = vpop.f32.mrf.mxu0 }
0x114c   :  { %5154 = vadd.xlane.f32.xlu2 %v5138_v51  ;;  %v4611_v0 = vadd.f32 %v4592_v50, %v4295_v38  ;;  %v7333_v51 = vld [vmem:[%s13509_s10 + $0xd4] sm:$0xf0]  ;;  %v7331_v38 = vld [vmem:[%s13509_s10 + $0xc4] sm:$0xf0] }
0x114d   :  { %v5077_v62 = vpop.xlane.xlu0 %5076  ;;  %v7074_v50 = vor.u32 %v7333_v51, %v7073_v35 }
0x114e   :  { %v5107_v37 = vmul.f32 %v5077_v62, %v13956_v40  ;;  %v5029_v6 = vpop.f32.mrf.mxu3  ;;  %v4925_v43 = vadd.f32 %v4906_v3, %v4611_v0  ;;  %v7332_v3 = vld [vmem:[%s13509_s10 + $0xd4] sm:$0xf]  ;;  %v7075_v62 = vld [vmem:[%s13509_s10 + $0xd8] sm:$0xf0]  ;;  %v7067_v0 = vld [vmem:[%s13509_s10 + $0xc8] sm:$0xf0] }
0x114f   :  { %v5030_v5 = vadd.f32 %v12439_v22, %v5029_v6  ;;  %v7078_v6 = vor.u32 %v7332_v3, %v7075_v62  ;;  %5546 = vmatpush.bf16.msrb.mxu0 %v7074_v50  ;;  %v13965_v62 = vld [vmem:[#allocation58_spill] sm:$0xff] }
0x1150   :  { %v12488_v58 = vsub.f32 %v5055_v32, %v5107_v37 }
0x1151   :  { %v12491_v53 = vadd.f32 %v5030_v5, %v13958_v19  ;;  %5595 = vmatpush.bf16.msrb.mxu1 %v7078_v6  ;;  %v7330_v19 = vld [vmem:[%s13509_s10 + $0xc4] sm:$0xf] }
0x1152   :  { %v5139_v15 = vmul.f32 %v12488_v58, %v12488_v58 }
0x1153   :  { %5086 = vadd.xlane.f32.xlu1 %v12491_v53  ;;  %v4594_v25 = vpop.f32.mrf.mxu0 }
0x1154   :  { %5156 = vadd.xlane.f32.xlu0 %v5139_v15  ;;  %v4612_v21 = vadd.f32 %v4594_v25, %v4297_v29  ;;  %v7066_v29 = vor.u32 %v7331_v38, %v7065_v14  ;;  %v7070_v15 = vor.u32 %v7330_v19, %v7067_v0 }
0x1156   :  { %v5079_v33 = vpop.xlane.xlu1 %5078  ;;  %v4926_v32 = vadd.f32 %v4908_v16, %v4612_v21  ;;  %v5031_v1 = vpop.f32.mrf.mxu3  ;;  %5547 = vmatpush.bf16.msrb.mxu0 %v7066_v29  ;;  %5596 = vmatpush.bf16.msrb.mxu1 %v7070_v15  ;;  %v7057_v16 = vld [vmem:[%s13509_s10 + $0xb0] sm:$0xf] }
0x1157   :  { %v5108_v24 = vmul.f32 %v5079_v33, %v13956_v40  ;;  %v5032_v2 = vadd.f32 %v12439_v22, %v5031_v1 }
0x1158   :  { %v4934_v52 = vpack.c.bf16 %v4926_v32, %v4925_v43  ;;  %v7328_v43 = vld [vmem:[%s13509_s10 + $0xb4] sm:$0xf]  ;;  %v7059_v32 = vld [vmem:[%s13509_s10 + $0xb8] sm:$0xf0] }
0x1159   :  { %v12501_v31 = vsub.f32 %v12455_v13, %v5108_v24  ;;  %v12504_v46 = vadd.f32 %v5032_v2, %v13960_v45  ;;  %v13961_v13 = vld [vmem:[#allocation28_spill] sm:$0xff]  ;;  %v7062_v24 = vor.u32 %v7328_v43, %v7059_v32  ;;  %v7049_v45 = vld [vmem:[%s13509_s10 + $0xa0] sm:$0xf] }
0x115a   :  { %5048 = vmatmul.bf16.gmra.mxu3 %v4934_v52 }
0x115b   :  { %v5140_v20 = vmul.f32 %v12501_v31, %v12501_v31  ;;  %5088 = vadd.xlane.f32.xlu2 %v12504_v46  ;;  %5597 = vmatpush.bf16.msrb.mxu1 %v7062_v24 }
0x115d   :  { %5158 = vadd.xlane.f32.xlu0 %v5140_v20  ;;  %v7327_v20 = vld [vmem:[%s13509_s10 + $0xa4] sm:$0xf0] }
0x115e   :  { %v5081_v63 = vpop.xlane.xlu2 %5080  ;;  %v5034_v44 = vpop.f32.mrf.mxu3 }
0x115f   :  { %v5109_v10 = vmul.f32 %v5081_v63, %v13956_v40  ;;  %v5035_v42 = vadd.f32 %v12439_v22, %v5034_v44  ;;  %v7326_v63 = vld [vmem:[%s13509_s10 + $0xa4] sm:$0xf] }
0x1161   :  { %v12512_v59 = vsub.f32 %v12462_v54, %v5109_v10  ;;  %v12515_v17 = vadd.f32 %v5035_v42, %v13961_v13  ;;  %v7050_v10 = vor.u32 %v7327_v20, %v7049_v45  ;;  %v7051_v42 = vld [vmem:[%s13509_s10 + $0xa8] sm:$0xf0] }
0x1162   :  { %v7054_v13 = vor.u32 %v7326_v63, %v7051_v42 }
0x1163   :  { %v5141_v49 = vmul.f32 %v12512_v59, %v12512_v59  ;;  %5090 = vadd.xlane.f32.xlu2 %v12515_v17 }
0x1164   :  { %5598 = vmatpush.bf16.msrb.mxu1 %v7054_v13 }
0x1165   :  { %5160 = vadd.xlane.f32.xlu1 %v5141_v49  ;;  %v13964_v49 = vld [vmem:[#allocation52_spill] sm:$0xff] }
0x1166   :  { %v5036_v4 = vpop.f32.mrf.mxu3 }
0x1167   :  { %v5037_v48 = vadd.f32 %v12439_v22, %v5036_v4 }
0x1169   :  { %v12522_v7 = vadd.f32 %v5037_v48, %v13962_v36 }
0x116b   :  { %5092 = vadd.xlane.f32.xlu0 %v12522_v7 }
0x116e   :  { %v5039_v26 = vpop.f32.mrf.mxu3 }
0x116f   :  { %v5040_v54 = vadd.f32 %v12439_v22, %v5039_v26 }
0x1171   :  { %v12527_v57 = vadd.f32 %v5040_v54, %v13963_v55  ;;  %v7325_v54 = vld [vmem:[%s13509_s10 + $0x94] sm:$0xf0]  ;;  %v7324_v55 = vld [vmem:[%s13509_s10 + $0x94] sm:$0xf] }
0x1172   :  { %v7046_v27 = vor.u32 %v7324_v55, %v7043_v18 }
0x1173   :  { %5094 = vadd.xlane.f32.xlu0 %v12527_v57 }
0x1174   :  { %5599 = vmatpush.bf16.msrb.mxu1 %v7046_v27 }
0x1176   :  { %v5041_v21 = vpop.f32.mrf.mxu3 }
0x1177   :  { %v5042_v2 = vadd.f32 %v12439_v22, %v5041_v21 }
0x1178   :  { %5600 = vmatpush.bf16.msrb.mxu1 %v7038_v23 }
0x1179   :  { %v12614_v4 = vadd.f32 %v5042_v2, %v13964_v49 }
0x11b2   :  { %v5083_v37 = vpop.xlane.xlu0 %5082 }
0x11b3   :  { %v5110_v5 = vmul.f32 %v5083_v37, %v13956_v40 }
0x11b5   :  { %v12577_v8 = vsub.f32 %v12471_v47, %v5110_v5  ;;  %v7329_v47 = vld [vmem:[%s13509_s10 + $0xb4] sm:$0xf0] }
0x11b6   :  { %v7058_v33 = vor.u32 %v7329_v47, %v7057_v16 }
0x11b7   :  { %v5142_v25 = vmul.f32 %v12577_v8, %v12577_v8 }
0x11b8   :  { %5548 = vmatpush.bf16.msrb.mxu0 %v7058_v33 }
0x11b9   :  { %5162 = vadd.xlane.f32.xlu1 %v5142_v25 }
0x11ba   :  { %v5085_v1 = vpop.xlane.xlu1 %5084 }
0x11bb   :  { %v5111_v52 = vmul.f32 %v5085_v1, %v13956_v40 }
0x11bc   :  { %5549 = vmatpush.bf16.msrb.mxu0 %v7050_v10 }
0x11bd   :  { %v12608_v44 = vsub.f32 %v12476_v28, %v5111_v52  ;;  %v7041_v28 = vld [vmem:[%s13509_s10 + $0x90] sm:$0xf]  ;;  %v13966_v52 = vld [vmem:[#allocation59_spill] sm:$0xff] }
0x11be   :  { %v7042_v41 = vor.u32 %v7325_v54, %v7041_v28  ;;  %v12676_v28 = vld [vmem:[%s13507_s8 + $0x1] ss:$0 sm:$0xff] }
0x11bf   :  { %v5155_v48 = vpop.xlane.xlu2 %5154  ;;  %v5143_v36 = vmul.f32 %v12608_v44, %v12608_v44 }
0x11c0   :  { %v5186_v26 = vmul.f32 %v5155_v48, %v13956_v40  ;;  %5550 = vmatpush.bf16.msrb.mxu0 %v7042_v41 }
0x11c1   :  { %5164 = vadd.xlane.f32.xlu2 %v5143_v36  ;;  %5096 = vadd.xlane.f32.xlu1 %v12614_v4 }
0x11c2   :  { %v5202_v61 = vadd.f32 1e-05, %v5186_v26 }
0x11c4   :  { %7970 = vrsqrt.f32 %v5202_v61  ;;  %5551 = vmatpush.bf16.msrb.mxu0 %v7034_v11  ;;  %vm5224_vm10 = vweird.f32 %v5202_v61 }
0x11c6   :  { %v5044_v12 = vpop.f32.mrf.mxu3  ;;  %v5087_v56 = vpop.xlane.xlu1 %5086 }
0x11c7   :  { %v5157_v35 = vpop.xlane.xlu0 %5156  ;;  %v5045_v51 = vadd.f32 %v12439_v22, %v5044_v12  ;;  %v5112_v3 = vmul.f32 %v5087_v56, %v13956_v40 }
0x11c8   :  { %v5187_v50 = vmul.f32 %v5157_v35, %v13956_v40 }
0x11c9   :  { %v12648_v37 = vadd.f32 %v5045_v51, %v13965_v62  ;;  %v12651_v6 = vsub.f32 %v12491_v53, %v5112_v3  ;;  %v13967_v51 = vld [vmem:[#allocation27_spill] sm:$0xff] }
0x11ca   :  { %v7971_v5 = vpop.eup %7970  ;;  %v5203_v14 = vadd.f32 1e-05, %v5187_v50 }
0x11cb   :  { %v5219_v38 = vmul.f32 %v7971_v5, %v5202_v61  ;;  %5098 = vadd.xlane.f32.xlu1 %v12648_v37  ;;  %v5144_v19 = vmul.f32 %v12651_v6, %v12651_v6  ;;  %vm5225_vm9 = vweird.f32 %v7971_v5 }
0x11cc   :  { %7972 = vrsqrt.f32 %v5203_v14  ;;  %vm5226_vm11 = vmor %vm5224_vm10, %vm5225_vm9  ;;  %vm5234_vm13 = vweird.f32 %v5203_v14 }
0x11cd   :  { %v5220_v29 = vmul.f32 %v7971_v5, %v5219_v38  ;;  %5166 = vadd.xlane.f32.xlu2 %v5144_v19 }
0x11ce   :  { %v5046_v0 = vpop.f32.mrf.mxu3  ;;  %v5089_v15 = vpop.xlane.xlu2 %5088 }
0x11cf   :  { %v5221_v25 = vmul.f32 0.5, %v5220_v29  ;;  %v5047_v21 = vadd.f32 %v12439_v22, %v5046_v0  ;;  %v5113_v16 = vmul.f32 %v5089_v15, %v13956_v40 }
0x11d0   :  { %v5159_v53 = vpop.xlane.xlu0 %5158 }
0x11d1   :  { %v5222_v47 = vsub.f32 1.5, %v5221_v25  ;;  %v5188_v43 = vmul.f32 %v5159_v53, %v13956_v40  ;;  %v12660_v33 = vsub.f32 %v12504_v46, %v5113_v16  ;;  %v12663_v45 = vadd.f32 %v5047_v21, %v13966_v52 }
0x11d2   :  { %v7973_v32 = vpop.eup %7972 }
0x11d3   :  { %v5223_v1 = vmul.f32 %v7971_v5, %v5222_v47  ;;  %v5229_v24 = vmul.f32 %v7973_v32, %v5203_v14  ;;  %v5204_v2 = vadd.f32 1e-05, %v5188_v43  ;;  %v5145_v20 = vmul.f32 %v12660_v33, %v12660_v33  ;;  %v13968_v43 = vld [vmem:[#allocation26_spill] sm:$0xff] }
0x11d4   :  { %vm5235_vm12 = vweird.f32 %v7973_v32 }
0x11d5   :  { %v5230_v63 = vmul.f32 %v7973_v32, %v5229_v24  ;;  %7974 = vrsqrt.f32 %v5204_v2  ;;  %5100 = vadd.xlane.f32.xlu2 %v12663_v45  ;;  %5168 = vadd.xlane.f32.xlu0 %v5145_v20  ;;  %v5227_v10 = vsel %vm5226_vm11, %v7971_v5, %v5223_v1  ;;  %vm5236_vm14 = vmor %vm5234_vm13, %vm5235_vm12  ;;  %vm5244_vm0 = vweird.f32 %v5204_v2 }
0x11d6   :  { %v5091_v46 = vpop.xlane.xlu2 %5090  ;;  %v5378_v54 = vmul.f32 %v5227_v10, %v12480_v34 }
0x11d7   :  { %v5231_v42 = vmul.f32 0.5, %v5230_v63  ;;  %v5114_v13 = vmul.f32 %v5091_v46, %v13956_v40 }
0x11d8   :  { %v5161_v49 = vpop.xlane.xlu1 %5160  ;;  %v5397_v60 = vmul.f32 %v12676_v28, %v5378_v54 }
0x11d9   :  { %v5232_v48 = vsub.f32 1.5, %v5231_v42  ;;  %v5189_v36 = vmul.f32 %v5161_v49, %v13956_v40  ;;  %v12671_v26 = vsub.f32 %v12515_v17, %v5114_v13 }
0x11da   :  { %v12698_v62 = vadd.f32 %v12684_v9, %v5397_v60  ;;  %v7344_v60 = vld [vmem:[%s13510_s12 + $0xb0] sm:$0xff] }
0x11db   :  { %v7975_v55 = vpop.eup %7974  ;;  %v5233_v41 = vmul.f32 %v7973_v32, %v5232_v48  ;;  %v5205_v18 = vadd.f32 1e-05, %v5189_v36  ;;  %v5146_v61 = vmul.f32 %v12671_v26, %v12671_v26 }
0x11dc   :  { %v5239_v27 = vmul.f32 %v7975_v55, %v5204_v2  ;;  %vm5245_vm15 = vweird.f32 %v7975_v55 }
0x11dd   :  { %v5237_v30 = vsel %vm5236_vm14, %v7973_v32, %v5233_v41  ;;  %7976 = vrsqrt.f32 %v5205_v18  ;;  %v5049_v17 = vpop.f32.mrf.mxu3  ;;  %5170 = vadd.xlane.f32.xlu0 %v5146_v61  ;;  %vm5246_vm1 = vmor %vm5244_vm0, %vm5245_vm15  ;;  %vm5254_vm3 = vweird.f32 %v5205_v18  ;;  %v7345_v41 = vld [vmem:[%s13510_s12 + $0xb8] sm:$0xff] }
0x11de   :  { %v5379_v34 = vmul.f32 %v5237_v30, %v12488_v58  ;;  %v5240_v11 = vmul.f32 %v7975_v55, %v5239_v27  ;;  %v5050_v39 = vadd.f32 %v12439_v22, %v5049_v17  ;;  %v5093_v12 = vpop.xlane.xlu0 %5092  ;;  %5824 = vmatpush.bf16.msrb.mxu2 %v7345_v41 }
0x11df   :  { %v5115_v56 = vmul.f32 %v5093_v12, %v13956_v40 }
0x11e0   :  { %v5398_v23 = vmul.f32 %v12676_v28, %v5379_v34  ;;  %v5241_v35 = vmul.f32 0.5, %v5240_v11  ;;  %v12692_v3 = vadd.f32 %v5050_v39, %v13967_v51 }
0x11e1   :  { %v12695_v50 = vsub.f32 %v12522_v7, %v5115_v56 }
0x11e2   :  { %v12701_v58 = vadd.f32 %v12684_v9, %v5398_v23  ;;  %v5242_v5 = vsub.f32 1.5, %v5241_v35  ;;  %5102 = vadd.xlane.f32.xlu2 %v12692_v3  ;;  %5825 = vmatpush.bf16.msrb.mxu2 %v7344_v60 }
0x11e3   :  { %v7977_v14 = vpop.eup %7976  ;;  %v5147_v38 = vmul.f32 %v12695_v50, %v12695_v50 }
0x11e4   :  { %v5243_v19 = vmul.f32 %v7975_v55, %v5242_v5  ;;  %v5249_v29 = vmul.f32 %v7977_v14, %v5205_v18  ;;  %v5432_v7 = vpack.c.bf16 %v12701_v58, %v12698_v62  ;;  %vm5255_vm2 = vweird.f32 %v7977_v14 }
0x11e5   :  { %v5051_v0 = vpop.f32.mrf.mxu3  ;;  %5172 = vadd.xlane.f32.xlu1 %v5147_v38  ;;  %vm5256_vm4 = vmor %vm5254_vm3, %vm5255_vm2 }
0x11e6   :  { %v5250_v15 = vmul.f32 %v7977_v14, %v5249_v29  ;;  %5552 = vmatmul.bf16.vlgmr.msrb.gmra.mxu0 %v5432_v7  ;;  %5601 = vmatmul.bf16.vlgmr.msrb.gmra.mxu1 %v5432_v7  ;;  %v5052_v25 = vadd.f32 %v12439_v22, %v5051_v0  ;;  %v5095_v21 = vpop.xlane.xlu0 %5094  ;;  %v5247_v53 = vsel %vm5246_vm1, %v7975_v55, %v5243_v19  ;;  %v7342_v19 = vld [vmem:[%s13510_s12 + $0xa0] sm:$0xff] }
0x11e7   :  { %v5116_v16 = vmul.f32 %v5095_v21, %v13956_v40  ;;  %v5380_v2 = vmul.f32 %v5247_v53, %v12501_v31  ;;  %v7353_v21 = vld [vmem:[%s13510_s12 + $0xf8] sm:$0xff] }
0x11e8   :  { %v5251_v47 = vmul.f32 0.5, %v5250_v15  ;;  %v12711_v32 = vadd.f32 %v5052_v25, %v13968_v43  ;;  %7362 = vmatpush.bf16.msrb.mxu3 %v7353_v21  ;;  %5873 = vmatpush.bf16.msra.mxu1 %v7353_v21 }
0x11e9   :  { %v12714_v1 = vsub.f32 %v12527_v57, %v5116_v16  ;;  %v5399_v46 = vmul.f32 %v12676_v28, %v5380_v2 }
0x11ea   :  { %v5252_v24 = vsub.f32 1.5, %v5251_v47  ;;  %5104 = vadd.xlane.f32.xlu0 %v12711_v32 }
0x11eb   :  { %v5148_v22 = vmul.f32 %v12714_v1, %v12714_v1  ;;  %v12724_v10 = vadd.f32 %v12684_v9, %v5399_v46 }
0x11ec   :  { %v5253_v52 = vmul.f32 %v7977_v14, %v5252_v24 }
0x11ed   :  { %5174 = vadd.xlane.f32.xlu1 %v5148_v22  ;;  %v7340_v22 = vld [vmem:[%s13510_s12 + $0x90] sm:$0xff] }
0x11ee   :  { %v5257_v20 = vsel %vm5256_vm4, %v7977_v14, %v5253_v52  ;;  %v7352_v52 = vld [vmem:[%s13510_s12 + $0xf0] sm:$0xff] }
0x11ef   :  { %v5381_v63 = vmul.f32 %v5257_v20, %v12512_v59  ;;  %7363 = vmatpush.bf16.msrb.mxu3 %v7352_v52  ;;  %5874 = vmatpush.bf16.msra.mxu1 %v7352_v52 }
0x11f1   :  { %v5400_v57 = vmul.f32 %v12676_v28, %v5381_v63 }
0x11f3   :  { %v12727_v42 = vadd.f32 %v12684_v9, %v5400_v57 }
0x11f5   :  { %v5433_v31 = vpack.c.bf16 %v12727_v42, %v12724_v10 }
0x11f7   :  { %5557 = vmatmul.bf16.gmra.mxu0 %v5433_v31  ;;  %5606 = vmatmul.bf16.gmra.mxu1 %v5433_v31 }
0x122c   :  { %v5163_v13 = vpop.xlane.xlu1 %5162 }
0x122d   :  { %v5190_v49 = vmul.f32 %v5163_v13, %v13956_v40 }
0x122f   :  { %v5206_v48 = vadd.f32 1e-05, %v5190_v49 }
0x1231   :  { %7978 = vrsqrt.f32 %v5206_v48  ;;  %vm5264_vm6 = vweird.f32 %v5206_v48 }
0x1234   :  { %v5097_v59 = vpop.xlane.xlu1 %5096  ;;  %v5165_v36 = vpop.xlane.xlu2 %5164 }
0x1235   :  { %v5117_v54 = vmul.f32 %v5097_v59, %v13956_v40  ;;  %v5191_v55 = vmul.f32 %v5165_v36, %v13956_v40 }
0x1237   :  { %v7979_v18 = vpop.eup %7978  ;;  %v12738_v61 = vsub.f32 %v12614_v4, %v5117_v54  ;;  %v5207_v27 = vadd.f32 1e-05, %v5191_v55  ;;  %v7343_v4 = vld [vmem:[%s13510_s12 + $0xa8] sm:$0xff] }
0x1238   :  { %v5259_v30 = vmul.f32 %v7979_v18, %v5206_v48  ;;  %5826 = vmatpush.bf16.msrb.mxu2 %v7343_v4  ;;  %vm5265_vm5 = vweird.f32 %v7979_v18 }
0x1239   :  { %7980 = vrsqrt.f32 %v5207_v27  ;;  %v5149_v17 = vmul.f32 %v12738_v61, %v12738_v61  ;;  %vm5266_vm7 = vmor %vm5264_vm6, %vm5265_vm5  ;;  %vm5274_vm9 = vweird.f32 %v5207_v27 }
0x123a   :  { %v5260_v34 = vmul.f32 %v7979_v18, %v5259_v30  ;;  %v7338_v30 = vld [vmem:[%s13510_s12 + $0x80] sm:$0xff] }
0x123b   :  { %5176 = vadd.xlane.f32.xlu2 %v5149_v17  ;;  %v7350_v17 = vld [vmem:[%s13510_s12 + $0xe0] sm:$0xff] }
0x123c   :  { %v5261_v11 = vmul.f32 0.5, %v5260_v34  ;;  %5827 = vmatpush.bf16.msrb.mxu2 %v7342_v19  ;;  %v7348_v19 = vld [vmem:[%s13510_s12 + $0xd0] sm:$0xff] }
0x123e   :  { %v5262_v39 = vsub.f32 1.5, %v5261_v11  ;;  %v5099_v12 = vpop.xlane.xlu1 %5098 }
0x123f   :  { %v7981_v56 = vpop.eup %7980  ;;  %v5118_v23 = vmul.f32 %v5099_v12, %v13956_v40 }
0x1240   :  { %v5263_v35 = vmul.f32 %v7979_v18, %v5262_v39  ;;  %v5269_v51 = vmul.f32 %v7981_v56, %v5207_v27  ;;  %v5167_v5 = vpop.xlane.xlu2 %5166  ;;  %vm5275_vm8 = vweird.f32 %v7981_v56 }
0x1241   :  { %v12750_v14 = vsub.f32 %v12648_v37, %v5118_v23  ;;  %v5192_v38 = vmul.f32 %v5167_v5, %v13956_v40  ;;  %v7341_v37 = vld [vmem:[%s13510_s12 + $0x98] sm:$0xff]  ;;  %vm5276_vm10 = vmor %vm5274_vm9, %vm5275_vm8 }
0x1242   :  { %v5270_v29 = vmul.f32 %v7981_v56, %v5269_v51  ;;  %v5267_v15 = vsel %vm5266_vm7, %v7979_v18, %v5263_v35  ;;  %5828 = vmatpush.bf16.msrb.mxu2 %v7341_v37 }
0x1243   :  { %v12756_v7 = vadd.f32 1e-05, %v5192_v38  ;;  %v5150_v0 = vmul.f32 %v12750_v14, %v12750_v14  ;;  %v5382_v53 = vmul.f32 %v5267_v15, %v12577_v8 }
0x1244   :  { %v5271_v25 = vmul.f32 0.5, %v5270_v29 }
0x1245   :  { %7982 = vrsqrt.f32 %v12756_v7  ;;  %5178 = vadd.xlane.f32.xlu0 %v5150_v0  ;;  %v5401_v31 = vmul.f32 %v12676_v28, %v5382_v53  ;;  %vm5284_vm12 = vweird.f32 %v12756_v7 }
0x1246   :  { %v5272_v16 = vsub.f32 1.5, %v5271_v25  ;;  %5829 = vmatpush.bf16.msrb.mxu2 %v7340_v22 }
0x1247   :  { %v12792_v54 = vadd.f32 %v12684_v9, %v5401_v31 }
0x1248   :  { %v5273_v47 = vmul.f32 %v7981_v56, %v5272_v16  ;;  %v5101_v43 = vpop.xlane.xlu2 %5100  ;;  %v5169_v24 = vpop.xlane.xlu0 %5168 }
0x1249   :  { %v5119_v2 = vmul.f32 %v5101_v43, %v13956_v40  ;;  %v5193_v8 = vmul.f32 %v5169_v24, %v13956_v40  ;;  %v7347_v43 = vld [vmem:[%s13510_s12 + $0xc8] sm:$0xff] }
0x124a   :  { %v5277_v20 = vsel %vm5276_vm10, %v7981_v56, %v5273_v47  ;;  %v7349_v56 = vld [vmem:[%s13510_s12 + $0xd8] sm:$0xff] }
0x124b   :  { %v7983_v63 = vpop.eup %7982  ;;  %v5383_v46 = vmul.f32 %v5277_v20, %v12608_v44  ;;  %v12778_v57 = vsub.f32 %v12663_v45, %v5119_v2  ;;  %v5209_v49 = vadd.f32 1e-05, %v5193_v8  ;;  %v7339_v44 = vld [vmem:[%s13510_s12 + $0x88] sm:$0xff] }
0x124c   :  { %v5279_v13 = vmul.f32 %v7983_v63, %v12756_v7  ;;  %v7351_v45 = vld [vmem:[%s13510_s12 + $0xe8] sm:$0xff]  ;;  %5830 = vmatpush.bf16.msrb.mxu2 %v7339_v44  ;;  %vm5285_vm11 = vweird.f32 %v7983_v63 }
0x124d   :  { %v5151_v48 = vmul.f32 %v12778_v57, %v12778_v57  ;;  %v5402_v59 = vmul.f32 %v12676_v28, %v5383_v46  ;;  %7984 = vrsqrt.f32 %v5209_v49  ;;  %7364 = vmatpush.bf16.msrb.mxu3 %v7351_v45  ;;  %5875 = vmatpush.bf16.msra.mxu1 %v7351_v45  ;;  %vm5286_vm13 = vmor %vm5284_vm12, %vm5285_vm11  ;;  %vm5294_vm15 = vweird.f32 %v5209_v49 }
0x124e   :  { %v5280_v36 = vmul.f32 %v7983_v63, %v5279_v13 }
0x124f   :  { %5180 = vadd.xlane.f32.xlu1 %v5151_v48  ;;  %v12795_v55 = vadd.f32 %v12684_v9, %v5402_v59 }
0x1250   :  { %v5281_v41 = vmul.f32 0.5, %v5280_v36  ;;  %v5171_v18 = vpop.xlane.xlu0 %5170  ;;  %5831 = vmatpush.bf16.msrb.mxu2 %v7338_v30 }
0x1251   :  { %v5434_v27 = vpack.c.bf16 %v12795_v55, %v12792_v54  ;;  %v5194_v34 = vmul.f32 %v5171_v18, %v13956_v40  ;;  %7365 = vmatpush.bf16.msrb.mxu3 %v7350_v17  ;;  %5876 = vmatpush.bf16.msra.mxu1 %v7350_v17 }
0x1252   :  { %v5282_v60 = vsub.f32 1.5, %v5281_v41 }
0x1253   :  { %5562 = vmatmul.bf16.gmra.mxu0 %v5434_v27  ;;  %5611 = vmatmul.bf16.gmra.mxu1 %v5434_v27  ;;  %v7985_v11 = vpop.eup %7984  ;;  %v12806_v4 = vadd.f32 1e-05, %v5194_v34 }
0x1254   :  { %v5289_v39 = vmul.f32 %v7985_v11, %v5209_v49  ;;  %v5283_v23 = vmul.f32 %v7983_v63, %v5282_v60  ;;  %vm5295_vm14 = vweird.f32 %v7985_v11 }
0x1255   :  { %v5103_v12 = vpop.xlane.xlu2 %5102  ;;  %7986 = vrsqrt.f32 %v12806_v4  ;;  %7366 = vmatpush.bf16.msrb.mxu3 %v7349_v56  ;;  %5877 = vmatpush.bf16.msra.mxu1 %v7349_v56  ;;  %vm5296_vm0 = vmor %vm5294_vm15, %vm5295_vm14  ;;  %vm5304_vm2 = vweird.f32 %v12806_v4 }
0x1256   :  { %v5120_v35 = vmul.f32 %v5103_v12, %v13956_v40  ;;  %v5290_v51 = vmul.f32 %v7985_v11, %v5289_v39  ;;  %v5287_v15 = vsel %vm5286_vm13, %v7983_v63, %v5283_v23  ;;  %v7346_v63 = vld [vmem:[%s13510_s12 + $0xc0] sm:$0xff] }
0x1257   :  { %v5384_v21 = vmul.f32 %v5287_v15, %v12651_v6 }
0x1258   :  { %v12815_v5 = vsub.f32 %v12692_v3, %v5120_v35  ;;  %v5173_v38 = vpop.xlane.xlu1 %5172  ;;  %v5291_v29 = vmul.f32 0.5, %v5290_v51 }
0x1259   :  { %v5195_v0 = vmul.f32 %v5173_v38, %v13956_v40  ;;  %7367 = vmatpush.bf16.msrb.mxu3 %v7348_v19  ;;  %5878 = vmatpush.bf16.msra.mxu1 %v7348_v19  ;;  %v5403_v8 = vmul.f32 %v12676_v28, %v5384_v21 }
0x125a   :  { %v5152_v25 = vmul.f32 %v12815_v5, %v12815_v5  ;;  %v5292_v37 = vsub.f32 1.5, %v5291_v29 }
0x125b   :  { %v5211_v7 = vadd.f32 1e-05, %v5195_v0  ;;  %v7987_v3 = vpop.eup %7986  ;;  %v12844_v45 = vadd.f32 %v12684_v9, %v5403_v8 }
0x125c   :  { %5182 = vadd.xlane.f32.xlu2 %v5152_v25  ;;  %v5293_v16 = vmul.f32 %v7985_v11, %v5292_v37  ;;  %v5299_v53 = vmul.f32 %v7987_v3, %v12806_v4  ;;  %vm5305_vm1 = vweird.f32 %v7987_v3 }
0x125d   :  { %7988 = vrsqrt.f32 %v5211_v7  ;;  %v5105_v47 = vpop.xlane.xlu0 %5104  ;;  %7368 = vmatpush.bf16.msrb.mxu3 %v7347_v43  ;;  %5879 = vmatpush.bf16.msra.mxu1 %v7347_v43  ;;  %vm5306_vm3 = vmor %vm5304_vm2, %vm5305_vm1  ;;  %vm5314_vm5 = vweird.f32 %v5211_v7 }
0x125e   :  { %v5121_v24 = vmul.f32 %v5105_v47, %v13956_v40  ;;  %v5297_v2 = vsel %vm5296_vm0, %v7985_v11, %v5293_v16  ;;  %v5300_v22 = vmul.f32 %v7987_v3, %v5299_v53 }
0x125f   :  { %v5385_v52 = vmul.f32 %v5297_v2, %v12660_v33  ;;  %v7030_v33 = vld [vmem:[%s13511_s11 + $0x2] sm:$0x3] }
0x1260   :  { %v12831_v20 = vsub.f32 %v12711_v32, %v5121_v24  ;;  %v5301_v6 = vmul.f32 0.5, %v5300_v22  ;;  %v12850_v18 = vperm.slane %v7030_v33, 0  ;;  %v12852_v27 = vperm.slane %v7030_v33, 1  ;;  %v5175_v33 = vpop.xlane.xlu1 %5174 }
0x1261   :  { %v5404_v31 = vmul.f32 %v12676_v28, %v5385_v52  ;;  %7369 = vmatpush.bf16.msrb.mxu3 %v7346_v63  ;;  %5880 = vmatpush.bf16.msra.mxu1 %v7346_v63 }
0x1262   :  { %v5153_v46 = vmul.f32 %v12831_v20, %v12831_v20  ;;  %v5302_v49 = vsub.f32 1.5, %v5301_v6 }
0x1263   :  { %v7989_v13 = vpop.eup %7988  ;;  %v5553_v32 = vpop.f32.mrf.mxu0  ;;  %v12847_v36 = vadd.f32 %v12684_v9, %v5404_v31 }
0x1264   :  { %v5602_v48 = vpop.f32.mrf.mxu1  ;;  %v5309_v59 = vmul.f32 %v7989_v13, %v5211_v7  ;;  %5184 = vadd.xlane.f32.xlu0 %v5153_v46  ;;  %v5303_v44 = vmul.f32 %v7987_v3, %v5302_v49  ;;  %vm5315_vm4 = vweird.f32 %v7989_v13  ;;  %v5554_v11 = vadd.f32 %v5553_v32, %v12850_v18 }
0x1265   :  { %v5435_v30 = vpack.c.bf16 %v12847_v36, %v12844_v45  ;;  %v5603_v4 = vadd.f32 %v5602_v48, %v12852_v27  ;;  %vm5316_vm6 = vmor %vm5314_vm5, %vm5315_vm4  ;;  %v5196_v32 = vmul.f32 %v5175_v33, %v13956_v40 }
0x1266   :  { %v5310_v41 = vmul.f32 %v7989_v13, %v5309_v59  ;;  %v5307_v17 = vsel %vm5306_vm3, %v7987_v3, %v5303_v44  ;;  %v5642_v19 = vmax.f32 %v5554_v11, 0.0 }
0x1267   :  { %5567 = vmatmul.bf16.gmra.mxu0 %v5435_v30  ;;  %5616 = vmatmul.bf16.gmra.mxu1 %v5435_v30  ;;  %v5386_v39 = vmul.f32 %v5307_v17, %v12671_v26  ;;  %v5643_v15 = vmax.f32 %v5603_v4, 0.0  ;;  %v5212_v48 = vadd.f32 1e-05, %v5196_v32 }
0x1268   :  { %v5311_v60 = vmul.f32 0.5, %v5310_v41 }
0x1269   :  { %v5405_v26 = vmul.f32 %v12676_v28, %v5386_v39  ;;  %7990 = vrsqrt.f32 %v5212_v48  ;;  %vm5324_vm8 = vweird.f32 %v5212_v48 }
0x126a   :  { %v5312_v34 = vsub.f32 1.5, %v5311_v60 }
0x126b   :  { %v5555_v12 = vpop.f32.mrf.mxu0  ;;  %v12867_v7 = vadd.f32 %v12684_v9, %v5405_v26 }
0x126c   :  { %v5604_v56 = vpop.f32.mrf.mxu1  ;;  %v5313_v23 = vmul.f32 %v7989_v13, %v5312_v34  ;;  %v5556_v35 = vadd.f32 %v5555_v12, %v12850_v18 }
0x126d   :  { %v5605_v51 = vadd.f32 %v5604_v56, %v12852_v27 }
0x126e   :  { %v5317_v38 = vsel %vm5316_vm6, %v7989_v13, %v5313_v23  ;;  %v5644_v29 = vmax.f32 %v5556_v35, 0.0 }
0x126f   :  { %v5387_v0 = vmul.f32 %v5317_v38, %v12695_v50  ;;  %v5645_v25 = vmax.f32 %v5605_v51, 0.0  ;;  %v7991_v59 = vpop.eup %7990 }
0x1270   :  { %v5674_v37 = vpack.c.bf16 %v5644_v29, %v5642_v19  ;;  %v5319_v44 = vmul.f32 %v7991_v59, %v5212_v48  ;;  %vm5325_vm7 = vweird.f32 %v7991_v59 }
0x1271   :  { %v12863_v3 = vpack.c.bf16 %v5645_v25, %v5643_v15  ;;  %v5406_v21 = vmul.f32 %v12676_v28, %v5387_v0  ;;  %vm5326_vm9 = vmor %vm5324_vm8, %vm5325_vm7 }
0x1272   :  { %5832 = vmatmul.bf16.vlgmr.msrb.gmra.mxu2 %v5674_v37  ;;  %v5320_v41 = vmul.f32 %v7991_v59, %v5319_v44 }
0x1273   :  { %v12870_v16 = vadd.f32 %v12684_v9, %v5406_v21 }
0x1274   :  { %v5558_v53 = vpop.f32.mrf.mxu0  ;;  %v5607_v47 = vpop.f32.mrf.mxu1  ;;  %v5321_v34 = vmul.f32 0.5, %v5320_v41 }
0x1275   :  { %v5436_v50 = vpack.c.bf16 %v12870_v16, %v12867_v7  ;;  %v5559_v43 = vadd.f32 %v5558_v53, %v12850_v18  ;;  %v5608_v24 = vadd.f32 %v5607_v47, %v12852_v27 }
0x1276   :  { %v5322_v11 = vsub.f32 1.5, %v5321_v34 }
0x1277   :  { %5572 = vmatmul.bf16.gmra.mxu0 %v5436_v50  ;;  %5621 = vmatmul.bf16.gmra.mxu1 %v5436_v50  ;;  %v5646_v8 = vmax.f32 %v5559_v43, 0.0  ;;  %v5647_v63 = vmax.f32 %v5608_v24, 0.0 }
0x1278   :  { %v5323_v56 = vmul.f32 %v7991_v59, %v5322_v11 }
0x127a   :  { %v5327_v38 = vsel %vm5326_vm9, %v7991_v59, %v5323_v56 }
0x127b   :  { %v5388_v0 = vmul.f32 %v5327_v38, %v12714_v1 }
0x127c   :  { %v5560_v2 = vpop.f32.mrf.mxu0  ;;  %v5609_v22 = vpop.f32.mrf.mxu1 }
0x127d   :  { %v5561_v52 = vadd.f32 %v5560_v2, %v12850_v18  ;;  %v5610_v6 = vadd.f32 %v5609_v22, %v12852_v27  ;;  %v5407_v43 = vmul.f32 %v12676_v28, %v5388_v0 }
0x127f   :  { %v5648_v46 = vmax.f32 %v5561_v52, 0.0  ;;  %v5649_v31 = vmax.f32 %v5610_v6, 0.0  ;;  %v12887_v1 = vadd.f32 %v12684_v9, %v5407_v43 }
0x1281   :  { %v5676_v13 = vpack.c.bf16 %v5648_v46, %v5646_v8  ;;  %v5677_v49 = vpack.c.bf16 %v5649_v31, %v5647_v63 }
0x1283   :  { %5837 = vmatmul.bf16.gmra.mxu2 %v5676_v13  ;;  %5886 = vmatmul.bf16.vlgmr.msrb.gmra.mxu3 %v5677_v49 }
0x12ae   :  { %v5177_v30 = vpop.xlane.xlu2 %5176 }
0x12af   :  { %v5197_v17 = vmul.f32 %v5177_v30, %v13956_v40 }
0x12b1   :  { %v5213_v60 = vadd.f32 1e-05, %v5197_v17 }
0x12b3   :  { %7992 = vrsqrt.f32 %v5213_v60  ;;  %vm5334_vm11 = vweird.f32 %v5213_v60 }
0x12b8   :  { %v5179_v39 = vpop.xlane.xlu0 %5178 }
0x12b9   :  { %v7993_v4 = vpop.eup %7992  ;;  %v5198_v12 = vmul.f32 %v5179_v39, %v13956_v40 }
0x12ba   :  { %v5329_v23 = vmul.f32 %v7993_v4, %v5213_v60  ;;  %vm5335_vm10 = vweird.f32 %v7993_v4 }
0x12bb   :  { %v5214_v35 = vadd.f32 1e-05, %v5198_v12  ;;  %vm5336_vm12 = vmor %vm5334_vm11, %vm5335_vm10 }
0x12bc   :  { %v5330_v51 = vmul.f32 %v7993_v4, %v5329_v23 }
0x12bd   :  { %7994 = vrsqrt.f32 %v5214_v35  ;;  %vm5344_vm14 = vweird.f32 %v5214_v35 }
0x12be   :  { %v5331_v19 = vmul.f32 0.5, %v5330_v51 }
0x12c0   :  { %v5332_v29 = vsub.f32 1.5, %v5331_v19 }
0x12c2   :  { %v5333_v15 = vmul.f32 %v7993_v4, %v5332_v29  ;;  %v5181_v25 = vpop.xlane.xlu1 %5180 }
0x12c3   :  { %v7995_v26 = vpop.eup %7994  ;;  %v5199_v37 = vmul.f32 %v5181_v25, %v13956_v40 }
0x12c4   :  { %v5337_v21 = vsel %vm5336_vm12, %v7993_v4, %v5333_v15  ;;  %v5339_v53 = vmul.f32 %v7995_v26, %v5214_v35  ;;  %vm5345_vm13 = vweird.f32 %v7995_v26 }
0x12c5   :  { %v5389_v47 = vmul.f32 %v5337_v21, %v12738_v61  ;;  %v5215_v50 = vadd.f32 1e-05, %v5199_v37  ;;  %vm5346_vm15 = vmor %vm5344_vm14, %vm5345_vm13 }
0x12c6   :  { %v5340_v24 = vmul.f32 %v7995_v26, %v5339_v53 }
0x12c7   :  { %7996 = vrsqrt.f32 %v5215_v50  ;;  %v5408_v2 = vmul.f32 %v12676_v28, %v5389_v47  ;;  %vm5354_vm1 = vweird.f32 %v5215_v50 }
0x12c8   :  { %v5341_v22 = vmul.f32 0.5, %v5340_v24 }
0x12c9   :  { %v12890_v52 = vadd.f32 %v12684_v9, %v5408_v2 }
0x12ca   :  { %v5342_v6 = vsub.f32 1.5, %v5341_v22 }
0x12cb   :  { %v5437_v8 = vpack.c.bf16 %v12890_v52, %v12887_v1 }
0x12cc   :  { %v5343_v46 = vmul.f32 %v7995_v26, %v5342_v6 }
0x12cd   :  { %v7997_v63 = vpop.eup %7996  ;;  %5577 = vmatmul.bf16.gmra.mxu0 %v5437_v8  ;;  %5626 = vmatmul.bf16.gmra.mxu1 %v5437_v8 }
0x12ce   :  { %v5349_v61 = vmul.f32 %v7997_v63, %v5215_v50  ;;  %v5347_v44 = vsel %vm5346_vm15, %v7995_v26, %v5343_v46  ;;  %vm5355_vm0 = vweird.f32 %v7997_v63 }
0x12cf   :  { %v5183_v31 = vpop.xlane.xlu2 %5182  ;;  %v5390_v30 = vmul.f32 %v5347_v44, %v12750_v14  ;;  %vm5356_vm2 = vmor %vm5354_vm1, %vm5355_vm0 }
0x12d0   :  { %v5350_v13 = vmul.f32 %v7997_v63, %v5349_v61  ;;  %v5200_v49 = vmul.f32 %v5183_v31, %v13956_v40  ;;  %v5563_v33 = vpop.f32.mrf.mxu0  ;;  %v5612_v32 = vpop.f32.mrf.mxu1 }
0x12d1   :  { %v5564_v60 = vadd.f32 %v5563_v33, %v12850_v18  ;;  %v5613_v34 = vadd.f32 %v5612_v32, %v12852_v27  ;;  %v5409_v29 = vmul.f32 %v12676_v28, %v5390_v30 }
0x12d2   :  { %v5351_v48 = vmul.f32 0.5, %v5350_v13  ;;  %v5216_v59 = vadd.f32 1e-05, %v5200_v49 }
0x12d3   :  { %v5650_v38 = vmax.f32 %v5564_v60, 0.0  ;;  %v5651_v15 = vmax.f32 %v5613_v34, 0.0 }
0x12d4   :  { %v5352_v41 = vsub.f32 1.5, %v5351_v48  ;;  %7998 = vrsqrt.f32 %v5216_v59  ;;  %vm5364_vm4 = vweird.f32 %v5216_v59 }
0x12d6   :  { %v5353_v17 = vmul.f32 %v7997_v63, %v5352_v41 }
0x12d7   :  { %v5185_v11 = vpop.xlane.xlu0 %5184 }
0x12d8   :  { %v5357_v39 = vsel %vm5356_vm2, %v7997_v63, %v5353_v17  ;;  %v5201_v4 = vmul.f32 %v5185_v11, %v13956_v40  ;;  %v5565_v12 = vpop.f32.mrf.mxu0  ;;  %v5614_v56 = vpop.f32.mrf.mxu1 }
0x12d9   :  { %v5391_v23 = vmul.f32 %v5357_v39, %v12778_v57  ;;  %v5566_v35 = vadd.f32 %v5565_v12, %v12850_v18  ;;  %v5615_v51 = vadd.f32 %v5614_v56, %v12852_v27  ;;  %v12905_v57 = vadd.f32 %v12684_v9, %v5409_v29 }
0x12da   :  { %v7999_v14 = vpop.eup %7998  ;;  %v5217_v19 = vadd.f32 1e-05, %v5201_v4 }
0x12db   :  { %v5359_v0 = vmul.f32 %v7999_v14, %v5216_v59  ;;  %v5652_v25 = vmax.f32 %v5566_v35, 0.0  ;;  %v5653_v26 = vmax.f32 %v5615_v51, 0.0  ;;  %v5410_v37 = vmul.f32 %v12676_v28, %v5391_v23 }
0x12dc   :  { %8000 = vrsqrt.f32 %v5217_v19  ;;  %vm5365_vm3 = vweird.f32 %v7999_v14  ;;  %vm5374_vm7 = vweird.f32 %v5217_v19 }
0x12dd   :  { %v5360_v21 = vmul.f32 %v7999_v14, %v5359_v0  ;;  %v5678_v53 = vpack.c.bf16 %v5652_v25, %v5650_v38  ;;  %v5679_v47 = vpack.c.bf16 %v5653_v26, %v5651_v15  ;;  %v12908_v50 = vadd.f32 %v12684_v9, %v5410_v37  ;;  %vm5366_vm5 = vmor %vm5364_vm4, %vm5365_vm3 }
0x12df   :  { %v5361_v43 = vmul.f32 0.5, %v5360_v21  ;;  %5842 = vmatmul.bf16.gmra.mxu2 %v5678_v53  ;;  %5891 = vmatmul.bf16.gmra.mxu3 %v5679_v47  ;;  %v5438_v24 = vpack.c.bf16 %v12908_v50, %v12905_v57 }
0x12e1   :  { %v5362_v2 = vsub.f32 1.5, %v5361_v43  ;;  %5582 = vmatmul.bf16.gmra.mxu0 %v5438_v24  ;;  %5631 = vmatmul.bf16.gmra.mxu1 %v5438_v24 }
0x12e2   :  { %v8001_v22 = vpop.eup %8000 }
0x12e3   :  { %v5363_v6 = vmul.f32 %v7999_v14, %v5362_v2  ;;  %v5369_v8 = vmul.f32 %v8001_v22, %v5217_v19  ;;  %vm5375_vm6 = vweird.f32 %v8001_v22 }
0x12e4   :  { %v5568_v61 = vpop.f32.mrf.mxu0  ;;  %v5617_v46 = vpop.f32.mrf.mxu1  ;;  %vm5376_vm8 = vmor %vm5374_vm7, %vm5375_vm6 }
0x12e5   :  { %v5370_v63 = vmul.f32 %v8001_v22, %v5369_v8  ;;  %v5367_v31 = vsel %vm5366_vm5, %v7999_v14, %v5363_v6  ;;  %v5569_v44 = vadd.f32 %v5568_v61, %v12850_v18  ;;  %v5618_v41 = vadd.f32 %v5617_v46, %v12852_v27 }
0x12e6   :  { %v5392_v33 = vmul.f32 %v5367_v31, %v12815_v5 }
0x12e7   :  { %v5371_v13 = vmul.f32 0.5, %v5370_v63  ;;  %v5654_v39 = vmax.f32 %v5569_v44, 0.0  ;;  %v5655_v4 = vmax.f32 %v5618_v41, 0.0 }
0x12e8   :  { %v5411_v60 = vmul.f32 %v12676_v28, %v5392_v33 }
0x12e9   :  { %v5372_v49 = vsub.f32 1.5, %v5371_v13 }
0x12ea   :  { %v12921_v23 = vadd.f32 %v12684_v9, %v5411_v60 }
0x12eb   :  { %v5373_v32 = vmul.f32 %v8001_v22, %v5372_v49 }
0x12ec   :  { %v5570_v30 = vpop.f32.mrf.mxu0  ;;  %v5619_v17 = vpop.f32.mrf.mxu1 }
0x12ed   :  { %v5377_v48 = vsel %vm5376_vm8, %v8001_v22, %v5373_v32  ;;  %v5571_v34 = vadd.f32 %v5570_v30, %v12850_v18  ;;  %v5620_v11 = vadd.f32 %v5619_v17, %v12852_v27 }
0x12ee   :  { %v5393_v59 = vmul.f32 %v5377_v48, %v12831_v20 }
0x12ef   :  { %v5656_v12 = vmax.f32 %v5571_v34, 0.0  ;;  %v5657_v56 = vmax.f32 %v5620_v11, 0.0  ;;  %v12948_v11 = vld [vmem:[%s13512_s13 + $0x1] ss:$0 sm:$0xff] }
0x12f0   :  { %v5412_v5 = vmul.f32 %v12676_v28, %v5393_v59 }
0x12f1   :  { %v5680_v20 = vpack.c.bf16 %v5656_v12, %v5654_v39  ;;  %v5681_v51 = vpack.c.bf16 %v5657_v56, %v5655_v4 }
0x12f2   :  { %v12924_v35 = vadd.f32 %v12684_v9, %v5412_v5 }
0x12f3   :  { %5847 = vmatmul.bf16.gmra.mxu2 %v5680_v20  ;;  %5896 = vmatmul.bf16.gmra.mxu3 %v5681_v51 }
0x12f4   :  { %v5439_v14 = vpack.c.bf16 %v12924_v35, %v12921_v23  ;;  %v5573_v38 = vpop.f32.mrf.mxu0  ;;  %v5622_v19 = vpop.f32.mrf.mxu1 }
0x12f5   :  { %v5574_v28 = vadd.f32 %v5573_v38, %v12850_v18  ;;  %v5623_v29 = vadd.f32 %v5622_v19, %v12852_v27  ;;  %v12933_v24 = vpop.f32.mrf.mxu2 }
0x12f6   :  { %5587 = vmatmul.bf16.gmra.mxu0 %v5439_v14  ;;  %5636 = vmatmul.bf16.gmra.mxu1 %v5439_v14 }
0x12f7   :  { %v5658_v26 = vmax.f32 %v5574_v28, 0.0  ;;  %v5659_v37 = vmax.f32 %v5623_v29, 0.0 }
0x12fc   :  { %v5575_v0 = vpop.f32.mrf.mxu0  ;;  %v5624_v15 = vpop.f32.mrf.mxu1 }
0x12fd   :  { %v5576_v9 = vadd.f32 %v5575_v0, %v12850_v18  ;;  %v5625_v25 = vadd.f32 %v5624_v15, %v12852_v27  ;;  %v12935_v2 = vpop.f32.mrf.mxu2 }
0x12ff   :  { %v5660_v21 = vmax.f32 %v5576_v9, 0.0  ;;  %v5661_v53 = vmax.f32 %v5625_v25, 0.0 }
0x1301   :  { %v5682_v47 = vpack.c.bf16 %v5660_v21, %v5658_v26  ;;  %v5683_v43 = vpack.c.bf16 %v5661_v53, %v5659_v37 }
0x1303   :  { %5852 = vmatmul.bf16.gmra.mxu2 %v5682_v47  ;;  %5901 = vmatmul.bf16.gmra.mxu3 %v5683_v43 }
0x1306   :  { %5881 = vmatmul.bf16.vlgmr.msra.gmra.mxu1 %v12863_v3  ;;  %v12937_v8 = vpop.f32.mrf.mxu2  ;;  %v12939_v63 = vpop.f32.mrf.mxu3 }
0x130e   :  { %v5840_v30 = vpop.f32.mrf.mxu2  ;;  %v5889_v17 = vpop.f32.mrf.mxu3 }
0x134a   :  { %v5578_v22 = vpop.f32.mrf.mxu0  ;;  %v5627_v6 = vpop.f32.mrf.mxu1 }
0x134b   :  { %v5579_v61 = vadd.f32 %v5578_v22, %v12850_v18  ;;  %v5628_v46 = vadd.f32 %v5627_v6, %v12852_v27 }
0x134d   :  { %v5662_v33 = vmax.f32 %v5579_v61, 0.0  ;;  %v5663_v32 = vmax.f32 %v5628_v46, 0.0 }
0x1352   :  { %v5580_v31 = vpop.f32.mrf.mxu0  ;;  %v5629_v13 = vpop.f32.mrf.mxu1 }
0x1353   :  { %v5581_v49 = vadd.f32 %v5580_v31, %v12850_v18  ;;  %v5630_v3 = vadd.f32 %v5629_v13, %v12852_v27 }
0x1355   :  { %v5664_v48 = vmax.f32 %v5581_v49, 0.0  ;;  %v5665_v44 = vmax.f32 %v5630_v3, 0.0 }
0x1357   :  { %v5684_v41 = vpack.c.bf16 %v5664_v48, %v5662_v33  ;;  %v5685_v59 = vpack.c.bf16 %v5665_v44, %v5663_v32 }
0x1359   :  { %5857 = vmatmul.bf16.gmra.mxu2 %v5684_v41  ;;  %5906 = vmatmul.bf16.gmra.mxu3 %v5685_v59 }
0x135e   :  { %v5583_v60 = vpop.f32.mrf.mxu0  ;;  %v5632_v34 = vpop.f32.mrf.mxu1 }
0x135f   :  { %v5584_v56 = vadd.f32 %v5583_v60, %v12850_v18  ;;  %v5633_v20 = vadd.f32 %v5632_v34, %v12852_v27  ;;  %v5834_v34 = vadd.f32 %v12948_v11, %v12933_v24 }
0x1361   :  { %v5666_v29 = vmax.f32 %v5584_v56, 0.0  ;;  %v5667_v0 = vmax.f32 %v5633_v20, 0.0  ;;  %v5836_v20 = vadd.f32 %v12948_v11, %v12935_v2 }
0x1362   :  { %v5843_v5 = vpop.f32.mrf.mxu2  ;;  %v5892_v4 = vpop.f32.mrf.mxu3 }
0x1363   :  { %v5844_v39 = vadd.f32 %v12948_v11, %v5843_v5 }
0x1365   :  { %v5893_v12 = vadd.f32 %v5892_v4, %v5844_v39 }
0x1366   :  { %v5585_v14 = vpop.f32.mrf.mxu0  ;;  %v5634_v38 = vpop.f32.mrf.mxu1 }
0x1367   :  { %v12954_v51 = vadd.f32 %v5893_v12, %v12792_v54  ;;  %v5586_v19 = vadd.f32 %v5585_v14, %v12850_v18  ;;  %v5635_v28 = vadd.f32 %v5634_v38, %v12852_v27 }
0x1369   :  { %5950 = vadd.xlane.f32.xlu0 %v12954_v51  ;;  %v5668_v15 = vmax.f32 %v5586_v19, 0.0  ;;  %v5669_v9 = vmax.f32 %v5635_v28, 0.0 }
0x136a   :  { %v5845_v37 = vpop.f32.mrf.mxu2  ;;  %v5894_v21 = vpop.f32.mrf.mxu3 }
0x136b   :  { %v5686_v25 = vpack.c.bf16 %v5668_v15, %v5666_v29  ;;  %v5687_v26 = vpack.c.bf16 %v5669_v9, %v5667_v0 }
0x136d   :  { %5862 = vmatmul.bf16.gmra.mxu2 %v5686_v25  ;;  %5911 = vmatmul.bf16.gmra.mxu3 %v5687_v26 }
0x1373   :  { %v5588_v54 = vpop.f32.mrf.mxu0  ;;  %v5637_v53 = vpop.f32.mrf.mxu1 }
0x1374   :  { %v5589_v22 = vadd.f32 %v5588_v54, %v12850_v18  ;;  %v5638_v6 = vadd.f32 %v5637_v53, %v12852_v27 }
0x1376   :  { %v5848_v47 = vpop.f32.mrf.mxu2  ;;  %v5897_v43 = vpop.f32.mrf.mxu3  ;;  %v5670_v49 = vmax.f32 %v5589_v22, 0.0  ;;  %v5671_v3 = vmax.f32 %v5638_v6, 0.0 }
0x1377   :  { %v5849_v0 = vadd.f32 %v12948_v11, %v5848_v47 }
0x137b   :  { %v5590_v61 = vpop.f32.mrf.mxu0  ;;  %v5639_v46 = vpop.f32.mrf.mxu1 }
0x137c   :  { %v5591_v31 = vadd.f32 %v5590_v61, %v12850_v18  ;;  %v5640_v13 = vadd.f32 %v5639_v46, %v12852_v27  ;;  %v5841_v27 = vadd.f32 %v12948_v11, %v5840_v30 }
0x137e   :  { %v5672_v33 = vmax.f32 %v5591_v31, 0.0  ;;  %v5673_v32 = vmax.f32 %v5640_v13, 0.0  ;;  %v5850_v41 = vpop.f32.mrf.mxu2  ;;  %v5899_v59 = vpop.f32.mrf.mxu3  ;;  %v5890_v24 = vadd.f32 %v5889_v17, %v5841_v27  ;;  %v5898_v17 = vadd.f32 %v5897_v43, %v5849_v0 }
0x137f   :  { %v5851_v60 = vadd.f32 %v12948_v11, %v5850_v41 }
0x1380   :  { %v5688_v48 = vpack.c.bf16 %v5672_v33, %v5670_v49  ;;  %v5689_v44 = vpack.c.bf16 %v5673_v32, %v5671_v3  ;;  %v12982_v30 = vadd.f32 %v5890_v24, %v12727_v42  ;;  %v12994_v42 = vadd.f32 %v5898_v17, %v12844_v45 }
0x1381   :  { %v12966_v5 = vadd.f32 %v5899_v59, %v5851_v60 }
0x1382   :  { %5867 = vmatmul.bf16.gmra.mxu2 %v5688_v48  ;;  %5916 = vmatmul.bf16.gmra.mxu3 %v5689_v44 }
0x1383   :  { %v5882_v18 = vpop.f32.mrf.mxu1 }
0x1384   :  { %v5883_v39 = vadd.f32 %v5882_v18, %v5834_v34 }
0x1386   :  { %v12970_v4 = vadd.f32 %v5883_v39, %v12698_v62  ;;  %v5853_v12 = vpop.f32.mrf.mxu2  ;;  %v5902_v14 = vpop.f32.mrf.mxu3  ;;  %v5839_v62 = vadd.f32 %v12948_v11, %v12937_v8  ;;  %v5846_v8 = vadd.f32 %v12948_v11, %v5845_v37 }
0x1387   :  { %v5854_v56 = vadd.f32 %v12948_v11, %v5853_v12 }
0x1388   :  { %5942 = vadd.xlane.f32.xlu1 %v12970_v4  ;;  %v5888_v2 = vadd.f32 %v12939_v63, %v5839_v62  ;;  %v5895_v26 = vadd.f32 %v5894_v21, %v5846_v8 }
0x1389   :  { %v5903_v38 = vadd.f32 %v5902_v14, %v5854_v56 }
0x138a   :  { %v12990_v9 = vadd.f32 %v5888_v2, %v12724_v10  ;;  %v13000_v63 = vadd.f32 %v5895_v26, %v12795_v55 }
0x138b   :  { %v5884_v19 = vpop.f32.mrf.mxu1  ;;  %v12977_v29 = vadd.f32 %v5903_v38, %v12867_v7 }
0x138c   :  { %v5885_v28 = vadd.f32 %v5884_v19, %v5836_v20 }
0x138d   :  { %5958 = vadd.xlane.f32.xlu0 %v12977_v29 }
0x138e   :  { %v5923_v15 = vadd.f32 %v5885_v28, %v12701_v58  ;;  %v5855_v7 = vpop.f32.mrf.mxu2  ;;  %v5904_v58 = vpop.f32.mrf.mxu3 }
0x138f   :  { %v5856_v25 = vadd.f32 %v12948_v11, %v5855_v7 }
0x1390   :  { %5944 = vadd.xlane.f32.xlu2 %v5923_v15  ;;  %5948 = vadd.xlane.f32.xlu1 %v12982_v30 }
0x1391   :  { %v5905_v54 = vadd.f32 %v5904_v58, %v5856_v25 }
0x1393   :  { %v13003_v10 = vadd.f32 %v5905_v54, %v12870_v16 }
0x1398   :  { %5946 = vadd.xlane.f32.xlu2 %v12990_v9  ;;  %5954 = vadd.xlane.f32.xlu1 %v12994_v42 }
0x13a0   :  { %5952 = vadd.xlane.f32.xlu2 %v13000_v63  ;;  %5960 = vadd.xlane.f32.xlu1 %v13003_v10 }
0x13dc   :  { %v5858_v45 = vpop.f32.mrf.mxu2  ;;  %v5907_v53 = vpop.f32.mrf.mxu3 }
0x13dd   :  { %v5859_v37 = vadd.f32 %v12948_v11, %v5858_v45 }
0x13df   :  { %v5908_v47 = vadd.f32 %v5907_v53, %v5859_v37 }
0x13e1   :  { %v13009_v43 = vadd.f32 %v5908_v47, %v12887_v1 }
0x13e3   :  { %5962 = vadd.xlane.f32.xlu0 %v13009_v43 }
0x13e4   :  { %v5860_v21 = vpop.f32.mrf.mxu2  ;;  %v5909_v22 = vpop.f32.mrf.mxu3 }
0x13e5   :  { %v5861_v55 = vadd.f32 %v12948_v11, %v5860_v21 }
0x13e7   :  { %v5910_v16 = vadd.f32 %v5909_v22, %v5861_v55 }
0x13e9   :  { %v13014_v6 = vadd.f32 %v5910_v16, %v12890_v52 }
0x13eb   :  { %5964 = vadd.xlane.f32.xlu2 %v13014_v6 }
0x13f0   :  { %v5863_v61 = vpop.f32.mrf.mxu2  ;;  %v5912_v46 = vpop.f32.mrf.mxu3 }
0x13f1   :  { %v5864_v31 = vadd.f32 %v12948_v11, %v5863_v61 }
0x13f3   :  { %v5913_v13 = vadd.f32 %v5912_v46, %v5864_v31 }
0x13f5   :  { %v13019_v1 = vadd.f32 %v5913_v13, %v12905_v57  ;;  %v13029_v57 = vadd.f32 %v12966_v5, %v12847_v36  ;;  %v5951_v5 = vpop.xlane.xlu0 %5950 }
0x13f7   :  { %5966 = vadd.xlane.f32.xlu1 %v13019_v1 }
0x13f8   :  { %v5865_v49 = vpop.f32.mrf.mxu2  ;;  %v5914_v33 = vpop.f32.mrf.mxu3 }
0x13f9   :  { %v5866_v3 = vadd.f32 %v12948_v11, %v5865_v49 }
0x13fb   :  { %v5915_v32 = vadd.f32 %v5914_v33, %v5866_v3  ;;  %v5943_v48 = vpop.xlane.xlu1 %5942 }
0x13fd   :  { %v13024_v52 = vadd.f32 %v5915_v32, %v12908_v50  ;;  %v5974_v50 = vmul.f32 %v5943_v48, %v13956_v40 }
0x13ff   :  { %5968 = vadd.xlane.f32.xlu0 %v13024_v52  ;;  %v13042_v20 = vsub.f32 %v12970_v4, %v5974_v50 }
0x1400   :  { %v5959_v8 = vpop.xlane.xlu0 %5958 }
0x1401   :  { %v5982_v58 = vmul.f32 %v5959_v8, %v13956_v40 }
0x1403   :  { %v5945_v44 = vpop.xlane.xlu2 %5944  ;;  %v5949_v12 = vpop.xlane.xlu1 %5948  ;;  %v13078_v54 = vsub.f32 %v12977_v29, %v5982_v58 }
0x1404   :  { %v5975_v60 = vmul.f32 %v5945_v44, %v13956_v40  ;;  %v5977_v62 = vmul.f32 %v5949_v12, %v13956_v40 }
0x1405   :  { %v5868_v41 = vpop.f32.mrf.mxu2  ;;  %v5917_v59 = vpop.f32.mrf.mxu3 }
0x1406   :  { %v5869_v34 = vadd.f32 %v12948_v11, %v5868_v41  ;;  %v13035_v39 = vsub.f32 %v5923_v15, %v5975_v60  ;;  %v6006_v15 = vmul.f32 %v13042_v20, %v13042_v20  ;;  %v13063_v7 = vsub.f32 %v12982_v30, %v5977_v62 }
0x1407   :  { %5956 = vadd.xlane.f32.xlu0 %v13029_v57 }
0x1408   :  { %v5918_v18 = vadd.f32 %v5917_v59, %v5869_v34  ;;  %v6007_v38 = vmul.f32 %v13035_v39, %v13035_v39  ;;  %v6009_v30 = vmul.f32 %v13063_v7, %v13063_v7 }
0x140a   :  { %v13038_v27 = vadd.f32 %v5918_v18, %v12921_v23  ;;  %v5978_v23 = vmul.f32 %v5951_v5, %v13956_v40 }
0x140b   :  { %v5947_v56 = vpop.xlane.xlu2 %5946  ;;  %v5955_v17 = vpop.xlane.xlu1 %5954 }
0x140c   :  { %5970 = vadd.xlane.f32.xlu2 %v13038_v27  ;;  %v5976_v24 = vmul.f32 %v5947_v56, %v13956_v40  ;;  %v13060_v2 = vsub.f32 %v12954_v51, %v5978_v23  ;;  %v5980_v26 = vmul.f32 %v5955_v17, %v13956_v40 }
0x140d   :  { %v5870_v36 = vpop.f32.mrf.mxu2  ;;  %v5919_v19 = vpop.f32.mrf.mxu3 }
0x140e   :  { %v5871_v14 = vadd.f32 %v12948_v11, %v5870_v36  ;;  %v13051_v0 = vsub.f32 %v12990_v9, %v5976_v24  ;;  %v6010_v25 = vmul.f32 %v13060_v2, %v13060_v2  ;;  %v13081_v45 = vsub.f32 %v12994_v42, %v5980_v26 }
0x140f   :  { %6024 = vadd.xlane.f32.xlu0 %v6007_v38 }
0x1410   :  { %v5920_v28 = vadd.f32 %v5919_v19, %v5871_v14  ;;  %v6012_v21 = vmul.f32 %v13081_v45, %v13081_v45 }
0x1412   :  { %v13054_v4 = vadd.f32 %v5920_v28, %v12924_v35  ;;  %v6008_v35 = vmul.f32 %v13051_v0, %v13051_v0 }
0x1413   :  { %v5953_v11 = vpop.xlane.xlu2 %5952  ;;  %v5961_v53 = vpop.xlane.xlu1 %5960 }
0x1414   :  { %5972 = vadd.xlane.f32.xlu1 %v13054_v4  ;;  %6022 = vadd.xlane.f32.xlu2 %v6006_v15  ;;  %v5979_v9 = vmul.f32 %v5953_v11, %v13956_v40  ;;  %v5983_v47 = vmul.f32 %v5961_v53, %v13956_v40 }
0x1416   :  { %v13073_v51 = vsub.f32 %v13000_v63, %v5979_v9  ;;  %v6014_v63 = vmul.f32 %v13078_v54, %v13078_v54  ;;  %v13091_v29 = vsub.f32 %v13003_v10, %v5983_v47 }
0x1417   :  { %6026 = vadd.xlane.f32.xlu0 %v6008_v35 }
0x1418   :  { %v6011_v37 = vmul.f32 %v13073_v51, %v13073_v51  ;;  %v6015_v42 = vmul.f32 %v13091_v29, %v13091_v29 }
0x141c   :  { %6030 = vadd.xlane.f32.xlu1 %v6010_v25  ;;  %6028 = vadd.xlane.f32.xlu2 %v6009_v30 }
0x141f   :  { %6032 = vadd.xlane.f32.xlu0 %v6011_v37 }
0x1424   :  { %6038 = vadd.xlane.f32.xlu1 %v6014_v63  ;;  %6034 = vadd.xlane.f32.xlu2 %v6012_v21 }
0x142c   :  { %6040 = vadd.xlane.f32.xlu2 %v6015_v42 }
0x1456   :  { %v5963_v55 = vpop.xlane.xlu0 %5962 }
0x1457   :  { %v5984_v22 = vmul.f32 %v5963_v55, %v13956_v40 }
0x1459   :  { %v13097_v16 = vsub.f32 %v13009_v43, %v5984_v22 }
0x145b   :  { %v6016_v61 = vmul.f32 %v13097_v16, %v13097_v16 }
0x145d   :  { %6042 = vadd.xlane.f32.xlu1 %v6016_v61 }
0x145e   :  { %v5965_v46 = vpop.xlane.xlu2 %5964 }
0x145f   :  { %v5985_v31 = vmul.f32 %v5965_v46, %v13956_v40 }
0x1461   :  { %v13103_v10 = vsub.f32 %v13014_v6, %v5985_v31 }
0x1463   :  { %v6017_v13 = vmul.f32 %v13103_v10, %v13103_v10 }
0x1465   :  { %6044 = vadd.xlane.f32.xlu0 %v6017_v13 }
0x146a   :  { %v5967_v49 = vpop.xlane.xlu1 %5966 }
0x146b   :  { %v5986_v3 = vmul.f32 %v5967_v49, %v13956_v40 }
0x146d   :  { %v13109_v43 = vsub.f32 %v13019_v1, %v5986_v3 }
0x146f   :  { %v6018_v33 = vmul.f32 %v13109_v43, %v13109_v43 }
0x1471   :  { %6046 = vadd.xlane.f32.xlu2 %v6018_v33 }
0x1472   :  { %v5969_v32 = vpop.xlane.xlu0 %5968 }
0x1473   :  { %v5987_v48 = vmul.f32 %v5969_v32, %v13956_v40 }
0x1475   :  { %v13115_v6 = vsub.f32 %v13024_v52, %v5987_v48  ;;  %v13164_v48 = vld [vmem:[%s13513_s14 + $0x1] ss:$0 sm:$0xff] }
0x1477   :  { %v6019_v44 = vmul.f32 %v13115_v6, %v13115_v6 }
0x1479   :  { %6048 = vadd.xlane.f32.xlu1 %v6019_v44 }
0x147a   :  { %v5957_v41 = vpop.xlane.xlu0 %5956 }
0x147b   :  { %v5981_v59 = vmul.f32 %v5957_v41, %v13956_v40 }
0x147d   :  { %v13121_v1 = vsub.f32 %v13029_v57, %v5981_v59 }
0x147f   :  { %v5971_v60 = vpop.xlane.xlu2 %5970  ;;  %v6013_v18 = vmul.f32 %v13121_v1, %v13121_v1 }
0x1480   :  { %v5988_v34 = vmul.f32 %v5971_v60, %v13956_v40 }
0x1481   :  { %6036 = vadd.xlane.f32.xlu1 %v6013_v18 }
0x1482   :  { %v13127_v50 = vsub.f32 %v13038_v27, %v5988_v34  ;;  %v6025_v5 = vpop.xlane.xlu0 %6024 }
0x1483   :  { %v6055_v24 = vmul.f32 %v6025_v5, %v13956_v40 }
0x1484   :  { %v6020_v52 = vmul.f32 %v13127_v50, %v13127_v50 }
0x1485   :  { %v6071_v27 = vadd.f32 1e-05, %v6055_v24 }
0x1486   :  { %6050 = vadd.xlane.f32.xlu0 %v6020_v52  ;;  %v13176_v52 = vld [vmem:[%s13514_s15 + $0x1] ss:$0 sm:$0xff] }
0x1487   :  { %v5973_v12 = vpop.xlane.xlu1 %5972  ;;  %v6023_v14 = vpop.xlane.xlu2 %6022  ;;  %8002 = vrsqrt.f32 %v6071_v27  ;;  %vm6102_vm10 = vweird.f32 %v6071_v27 }
0x1488   :  { %v5989_v56 = vmul.f32 %v5973_v12, %v13956_v40  ;;  %v6054_v38 = vmul.f32 %v6023_v14, %v13956_v40 }
0x148a   :  { %v13133_v57 = vsub.f32 %v13054_v4, %v5989_v56  ;;  %v6070_v19 = vadd.f32 1e-05, %v6054_v38  ;;  %v6027_v28 = vpop.xlane.xlu0 %6026 }
0x148b   :  { %v6056_v62 = vmul.f32 %v6027_v28, %v13956_v40  ;;  %v8071_v28 = vmov 8.0  }
0x148c   :  { %v6021_v36 = vmul.f32 %v13133_v57, %v13133_v57  ;;  %8004 = vrsqrt.f32 %v6070_v19  ;;  %vm6092_vm13 = vweird.f32 %v6070_v19 }
0x148d   :  { %v8003_v23 = vpop.eup %8002  ;;  %v13140_v15 = vadd.f32 1e-05, %v6056_v62 }
0x148e   :  { %6052 = vadd.xlane.f32.xlu2 %v6021_v36  ;;  %v6097_v4 = vmul.f32 %v8003_v23, %v6071_v27  ;;  %vm6103_vm9 = vweird.f32 %v8003_v23 }
0x148f   :  { %v6031_v9 = vpop.xlane.xlu1 %6030  ;;  %8006 = vrsqrt.f32 %v13140_v15  ;;  %v6029_v58 = vpop.xlane.xlu2 %6028  ;;  %vm6104_vm11 = vmor %vm6102_vm10, %vm6103_vm9  ;;  %vm6112_vm0 = vweird.f32 %v13140_v15 }
0x1490   :  { %v6098_v11 = vmul.f32 %v8003_v23, %v6097_v4  ;;  %v6058_v25 = vmul.f32 %v6031_v9, %v13956_v40  ;;  %v6057_v26 = vmul.f32 %v6029_v58, %v13956_v40 }
0x1492   :  { %v8005_v17 = vpop.eup %8004  ;;  %v6099_v35 = vmul.f32 0.5, %v6098_v11  ;;  %v13145_v53 = vadd.f32 1e-05, %v6058_v25  ;;  %v6033_v63 = vpop.xlane.xlu0 %6032  ;;  %v13149_v21 = vadd.f32 1e-05, %v6057_v26 }
0x1493   :  { %v6087_v8 = vmul.f32 %v8005_v17, %v6070_v19  ;;  %v6059_v61 = vmul.f32 %v6033_v63, %v13956_v40  ;;  %vm6093_vm12 = vweird.f32 %v8005_v17 }
0x1494   :  { %v6100_v30 = vsub.f32 1.5, %v6099_v35  ;;  %8008 = vrsqrt.f32 %v13145_v53  ;;  %vm6094_vm14 = vmor %vm6092_vm13, %vm6093_vm12  ;;  %vm6132_vm3 = vweird.f32 %v13145_v53  ;;  %vm6122_vm6 = vweird.f32 %v13149_v21 }
0x1495   :  { %v6088_v37 = vmul.f32 %v8005_v17, %v6087_v8  ;;  %v13147_v47 = vpop.eup %8006  ;;  %8010 = vrsqrt.f32 %v13149_v21  ;;  %v13157_v3 = vadd.f32 1e-05, %v6059_v61 }
0x1496   :  { %v6101_v42 = vmul.f32 %v8003_v23, %v6100_v30  ;;  %v6107_v22 = vmul.f32 %v13147_v47, %v13140_v15  ;;  %vm6113_vm15 = vweird.f32 %v13147_v47 }
0x1497   :  { %v6089_v55 = vmul.f32 0.5, %v6088_v37  ;;  %v6035_v46 = vpop.xlane.xlu2 %6034  ;;  %v6039_v33 = vpop.xlane.xlu1 %6038  ;;  %8012 = vrsqrt.f32 %v13157_v3  ;;  %vm6114_vm1 = vmor %vm6112_vm0, %vm6113_vm15  ;;  %vm6142_vm9 = vweird.f32 %v13157_v3 }
0x1498   :  { %v6105_v31 = vsel %vm6104_vm11, %v8003_v23, %v6101_v42  ;;  %v6108_v49 = vmul.f32 %v13147_v47, %v6107_v22  ;;  %v6062_v34 = vmul.f32 %v6039_v33, %v13956_v40  ;;  %v6060_v14 = vmul.f32 %v6035_v46, %v13956_v40 }
0x1499   :  { %v6090_v13 = vsub.f32 1.5, %v6089_v55  ;;  %v6247_v44 = vmul.f32 %v6105_v31, %v13035_v39  ;;  %8014 = vrcp.f32 %v8071_v28 }
0x149a   :  { %v13159_v32 = vpop.eup %8008  ;;  %v6109_v59 = vmul.f32 0.5, %v6108_v49  ;;  %v13182_v27 = vadd.f32 1e-05, %v6062_v34  ;;  %v13195_v8 = vadd.f32 1e-05, %v6060_v14 }
0x149b   :  { %v6091_v41 = vmul.f32 %v8005_v17, %v6090_v13  ;;  %v6127_v60 = vmul.f32 %v13159_v32, %v13145_v53  ;;  %v13171_v18 = vpop.eup %8010  ;;  %v6266_v39 = vmul.f32 %v13164_v48, %v6247_v44  ;;  %vm6133_vm2 = vweird.f32 %v13159_v32 }
0x149c   :  { %v6110_v56 = vsub.f32 1.5, %v6109_v59  ;;  %v6117_v24 = vmul.f32 %v13171_v18, %v13149_v21  ;;  %8016 = vrsqrt.f32 %v13182_v27  ;;  %vm6134_vm4 = vmor %vm6132_vm3, %vm6133_vm2  ;;  %vm6123_vm5 = vweird.f32 %v13171_v18 }
0x149d   :  { %v6095_v12 = vsel %vm6094_vm14, %v8005_v17, %v6091_v41  ;;  %v6128_v5 = vmul.f32 %v13159_v32, %v6127_v60  ;;  %v13185_v19 = vpop.eup %8012  ;;  %v6285_v23 = vadd.f32 %v13176_v52, %v6266_v39  ;;  %8018 = vrsqrt.f32 %v13195_v8  ;;  %vm13245_vm7 = vmor %vm6122_vm6, %vm6123_vm5 }
0x149e   :  { %v6246_v62 = vmul.f32 %v6095_v12, %v13042_v20  ;;  %v6111_v11 = vmul.f32 %v13147_v47, %v6110_v56  ;;  %v6118_v35 = vmul.f32 %v13171_v18, %v6117_v24  ;;  %v6137_v20 = vmul.f32 %v13185_v19, %v13157_v3 }
0x149f   :  { %v6041_v36 = vpop.xlane.xlu2 %6040  ;;  %v6129_v9 = vmul.f32 0.5, %v6128_v5  ;;  %v6306_v25 = vrot.slane %v6285_v23, 4  ;;  %v13206_v63 = vpop.eup %8014  ;;  %vm6143_vm8 = vweird.f32 %v13185_v19  ;;  %vm6172_vm13 = vweird.f32 %v13182_v27 }
0x14a0   :  { %v6063_v4 = vmul.f32 %v6041_v36, %v13956_v40  ;;  %v6265_v58 = vmul.f32 %v13164_v48, %v6246_v62  ;;  %v6115_v30 = vsel %vm6114_vm1, %v13147_v47, %v6111_v11  ;;  %v6119_v55 = vmul.f32 0.5, %v6118_v35  ;;  %vm6144_vm11 = vmor %vm6142_vm9, %vm6143_vm8 }
0x14a1   :  { %v6130_v42 = vsub.f32 1.5, %v6129_v9  ;;  %v6138_v22 = vmul.f32 %v13185_v19, %v6137_v20  ;;  %v6307_v31 = vadd.f32 %v6306_v25, %v6285_v23  ;;  %v6248_v47 = vmul.f32 %v6115_v30, %v13051_v0 }
0x14a2   :  { %v13201_v26 = vadd.f32 1e-05, %v6063_v4  ;;  %v13211_v46 = vpop.eup %8016  ;;  %v6284_v13 = vadd.f32 %v13176_v52, %v6265_v58  ;;  %v6397_v49 = vmul.f32 8.0, %v13206_v63  ;;  %v6120_v41 = vsub.f32 1.5, %v6119_v55 }
0x14a3   :  { %v6131_v44 = vmul.f32 %v13159_v32, %v6130_v42  ;;  %v6139_v59 = vmul.f32 0.5, %v6138_v22  ;;  %v6167_v60 = vmul.f32 %v13211_v46, %v13182_v27  ;;  %v13225_v0 = vpop.eup %8018  ;;  %v6308_v34 = vrot.slane %v6307_v31, 2 }
0x14a4   :  { %8020 = vrsqrt.f32 %v13201_v26  ;;  %v6300_v39 = vrot.slane %v6284_v13, 4  ;;  %v6267_v12 = vmul.f32 %v13164_v48, %v6248_v47  ;;  %v6398_v56 = vsub.f32 1.0, %v6397_v49 }
0x14a5   :  { %v6135_v5 = vsel %vm6134_vm4, %v13159_v32, %v6131_v44  ;;  %v6121_v24 = vmul.f32 %v13171_v18, %v6120_v41  ;;  %v6168_v28 = vmul.f32 %v13211_v46, %v6167_v60  ;;  %v6147_v23 = vmul.f32 %v13225_v0, %v13195_v8 }
0x14a6   :  { %v6309_v62 = vadd.f32 %v6308_v34, %v6307_v31  ;;  %v6301_v53 = vadd.f32 %v6300_v39, %v6284_v13  ;;  %v6286_v4 = vadd.f32 %v13176_v52, %v6267_v12  ;;  %v6399_v32 = vmul.f32 %v13206_v63, %v6398_v56 }
0x14a7   :  { %v6125_v20 = vsel %vm13245_vm7, %v13171_v18, %v6121_v24  ;;  %v6169_v58 = vmul.f32 0.5, %v6168_v28  ;;  %vm6401_vm10 = vweird.f32 %v13206_v63  ;;  %vm6173_vm12 = vweird.f32 %v13211_v46 }
0x14a8   :  { %v6310_v55 = vrot.slane %v6309_v62, 1  ;;  %v6312_v22 = vrot.slane %v6286_v4, 4  ;;  %v6400_v18 = vadd.f32 %v13206_v63, %v6399_v32  ;;  %v6249_v47 = vmul.f32 %v6125_v20, %v13063_v7  ;;  %vm13293_vm14 = vmor %vm6172_vm13, %vm6173_vm12 }
0x14a9   :  { %vm6152_vm15 = vweird.f32 %v13195_v8  ;;  %vm6182_vm2 = vweird.f32 %v13201_v26  ;;  %vm6153_vm4 = vweird.f32 %v13225_v0 }
0x14aa   :  { %v13229_v36 = vpop.eup %8020  ;;  %v6311_v3 = vadd.f32 %v6310_v55, %v6309_v62  ;;  %v6313_v12 = vadd.f32 %v6312_v22, %v6286_v4  ;;  %v13277_v7 = vsel %vm6401_vm10, %v13206_v63, %v6400_v18  ;;  %v6268_v24 = vmul.f32 %v13164_v48, %v6249_v47 }
0x14ab   :  { %v6177_v35 = vmul.f32 %v13229_v36, %v13201_v26  ;;  %vm6183_vm0 = vweird.f32 %v13229_v36 }
0x14ac   :  { %v13285_v4 = vmul.f32 %v13277_v7, %v6311_v3  ;;  %v6314_v32 = vrot.slane %v6313_v12, 2  ;;  %v6287_v20 = vadd.f32 %v13176_v52, %v6268_v24  ;;  %vm13326_vm5 = vmor %vm6182_vm2, %vm6183_vm0 }
0x14ad   :  { %v6178_v13 = vmul.f32 %v13229_v36, %v6177_v35 }
0x14d0   :  { %v6043_v38 = vpop.xlane.xlu1 %6042 }
0x14d1   :  { %v6064_v17 = vmul.f32 %v6043_v38, %v13956_v40  ;;  %v6140_v38 = vsub.f32 1.5, %v6139_v59  ;;  %v6170_v59 = vsub.f32 1.5, %v6169_v58 }
0x14d3   :  { %v13204_v37 = vadd.f32 1e-05, %v6064_v17  ;;  %v6250_v17 = vmul.f32 %v6135_v5, %v13060_v2  ;;  %v6141_v25 = vmul.f32 %v13185_v19, %v6140_v38  ;;  %v6148_v2 = vmul.f32 %v13225_v0, %v6147_v23 }
0x14d4   :  { %v6179_v5 = vmul.f32 0.5, %v6178_v13  ;;  %v6171_v28 = vmul.f32 %v13211_v46, %v6170_v59  ;;  %v6318_v13 = vrot.slane %v6287_v20, 4 }
0x14d5   :  { %8022 = vrsqrt.f32 %v13204_v37  ;;  %v6269_v31 = vmul.f32 %v13164_v48, %v6250_v17  ;;  %v6145_v41 = vsel %vm6144_vm11, %v13185_v19, %v6141_v25  ;;  %v6149_v60 = vmul.f32 0.5, %v6148_v2  ;;  %vm13360_vm11 = vmor %vm6152_vm15, %vm6153_vm4 }
0x14d6   :  { %v6251_v38 = vmul.f32 %v6145_v41, %v13073_v51  ;;  %v6180_v35 = vsub.f32 1.5, %v6179_v5  ;;  %v6175_v27 = vsel %vm13293_vm14, %v13211_v46, %v6171_v28  ;;  %vm6192_vm6 = vweird.f32 %v13204_v37 }
0x14d7   :  { %v6288_v56 = vadd.f32 %v13176_v52, %v6269_v31  ;;  %v6150_v23 = vsub.f32 1.5, %v6149_v60 }
0x14d8   :  { %v6045_v15 = vpop.xlane.xlu0 %6044  ;;  %v6181_v31 = vmul.f32 %v13229_v36, %v6180_v35 }
0x14d9   :  { %v6065_v61 = vmul.f32 %v6045_v15, %v13956_v40  ;;  %v6302_v15 = vrot.slane %v6301_v53, 2  ;;  %v6324_v9 = vrot.slane %v6288_v56, 4 }
0x14da   :  { %v6185_v26 = vsel %vm13326_vm5, %v13229_v36, %v6181_v31 }
0x14db   :  { %v13218_v33 = vadd.f32 1e-05, %v6065_v61  ;;  %v13234_v14 = vpop.eup %8022  ;;  %v6303_v39 = vadd.f32 %v6302_v15, %v6301_v53  ;;  %v6420_v15 = vpack.c.bf16 %v13285_v4, %v13285_v4  ;;  %v13311_v18 = vadd.f32 %v6324_v9, %v6288_v56 }
0x14dc   :  { %v6187_v21 = vmul.f32 %v13234_v14, %v13204_v37  ;;  %vm6193_vm1 = vweird.f32 %v13234_v14  ;;  %v6255_v4 = vmul.f32 %v6185_v26, %v13091_v29 }
0x14dd   :  { %8024 = vrsqrt.f32 %v13218_v33  ;;  %v6304_v63 = vrot.slane %v6303_v39, 1  ;;  %vm13335_vm7 = vmor %vm6192_vm6, %vm6193_vm1  ;;  %vm6202_vm8 = vweird.f32 %v13218_v33 }
0x14de   :  { %v6188_v49 = vmul.f32 %v13234_v14, %v6187_v21  ;;  %v6270_v21 = vmul.f32 %v13164_v48, %v6251_v38 }
0x14df   :  { %v6305_v22 = vadd.f32 %v6304_v63, %v6303_v39 }
0x14e0   :  { %v6189_v19 = vmul.f32 0.5, %v6188_v49  ;;  %v13317_v47 = vadd.f32 %v13176_v52, %v6270_v21  ;;  %v13386_v21 = vunpack.c.l.b16 %v6420_v15 }
0x14e1   :  { %v6403_v5 = vmul.f32 %v13277_v7, %v6305_v22 }
0x14e2   :  { %v6190_v58 = vsub.f32 1.5, %v6189_v19  ;;  %v6330_v25 = vrot.slane %v13317_v47, 4 }
0x14e3   :  { %v13241_v11 = vpop.eup %8024 }
0x14e4   :  { %v6197_v30 = vmul.f32 %v13241_v11, %v13218_v33  ;;  %v6047_v42 = vpop.xlane.xlu2 %6046  ;;  %v6191_v49 = vmul.f32 %v13234_v14, %v6190_v58  ;;  %vm6203_vm3 = vweird.f32 %v13241_v11  ;;  %v7361_v33 = vld [vmem:[%s13516_s16 + $0x38] sm:$0xff] }
0x14e5   :  { %v6066_v61 = vmul.f32 %v6047_v42, %v13956_v40  ;;  %vm13347_vm10 = vmor %vm6202_vm8, %vm6203_vm3  ;;  %6558 = vmatpush.bf16.msra.mxu0 %v7361_v33 }
0x14e6   :  { %v6198_v34 = vmul.f32 %v13241_v11, %v6197_v30  ;;  %v13304_v30 = vmul.f32 %v13225_v0, %v6150_v23  ;;  %v6195_v37 = vsel %vm13335_vm7, %v13234_v14, %v6191_v49 }
0x14e7   :  { %v13271_v44 = vadd.f32 1e-05, %v6066_v61  ;;  %v6315_v61 = vadd.f32 %v6314_v32, %v6313_v12 }
0x14e8   :  { %v6199_v62 = vmul.f32 0.5, %v6198_v34  ;;  %v6254_v34 = vmul.f32 %v6175_v27, %v13078_v54 }
0x14e9   :  { %8026 = vrsqrt.f32 %v13271_v44  ;;  %v6316_v24 = vrot.slane %v6315_v61, 1  ;;  %vm6212_vm12 = vweird.f32 %v13271_v44 }
0x14ea   :  { %v6200_v42 = vsub.f32 1.5, %v6199_v62  ;;  %v6273_v29 = vmul.f32 %v13164_v48, %v6254_v34 }
0x14ec   :  { %v6049_v53 = vpop.xlane.xlu1 %6048  ;;  %v6201_v41 = vmul.f32 %v13241_v11, %v6200_v42 }
0x14ed   :  { %v6067_v17 = vmul.f32 %v6049_v53, %v13956_v40  ;;  %v6326_v53 = vrot.slane %v13311_v18, 2 }
0x14ee   :  { %v6205_v14 = vsel %vm13347_vm10, %v13241_v11, %v6201_v41  ;;  %v6155_v11 = vsel %vm13360_vm11, %v13225_v0, %v13304_v30  ;;  %v6419_v0 = vpack.c.bf16 %v6403_v5, %v6403_v5  ;;  %vm6487_vm10 = vcmask 1041409  }
0x14ef   :  { %v13289_v51 = vpop.eup %8026  ;;  %v13298_v2 = vadd.f32 1e-05, %v6067_v17  ;;  %v6319_v17 = vadd.f32 %v6318_v13, %v6287_v20  ;;  %v6257_v9 = vmul.f32 %v6205_v14, %v13103_v10  ;;  %v6317_v20 = vadd.f32 %v6316_v24, %v6315_v61 }
0x14f0   :  { %v6207_v55 = vmul.f32 %v13289_v51, %v13271_v44  ;;  %vm6213_vm9 = vweird.f32 %v13289_v51  ;;  %v6256_v44 = vmul.f32 %v6195_v37, %v13097_v16  ;;  %v6252_v16 = vmul.f32 %v6155_v11, %v13081_v45 }
0x14f1   :  { %8028 = vrsqrt.f32 %v13298_v2  ;;  %vm6214_vm13 = vmor %vm6212_vm12, %vm6213_vm9  ;;  %v6320_v15 = vrot.slane %v6319_v17, 2  ;;  %v6276_v22 = vmul.f32 %v13164_v48, %v6257_v9  ;;  %vm6222_vm15 = vweird.f32 %v13298_v2  ;;  %v7359_v9 = vld [vmem:[%s13516_s16 + $0x28] sm:$0xff] }
0x14f2   :  { %v6208_v46 = vmul.f32 %v13289_v51, %v6207_v55  ;;  %v6275_v30 = vmul.f32 %v13164_v48, %v6256_v44  ;;  %v13395_v55 = vadd.f32 %v6326_v53, %v13311_v18  ;;  %v13403_v13 = vadd.f32 %v6330_v25, %v13317_v47  ;;  %v7360_v53 = vld [vmem:[%s13516_s16 + $0x30] sm:$0xff] }
0x14f3   :  { %v6271_v49 = vmul.f32 %v13164_v48, %v6252_v16  ;;  %v6295_v26 = vadd.f32 %v13176_v52, %v6276_v22  ;;  %v6321_v44 = vadd.f32 %v6320_v15, %v6319_v17  ;;  %6559 = vmatpush.bf16.msra.mxu0 %v7360_v53  ;;  %v7356_v53 = vld [vmem:[%s13516_s16 + $0x10] sm:$0xff]  ;;  %vm6489_vm11 = vcmask 1042434  }
0x14f4   :  { %v6209_v59 = vmul.f32 0.5, %v6208_v46  ;;  %v6037_v60 = vpop.xlane.xlu1 %6036  ;;  %v6328_v14 = vrot.slane %v13395_v55, 1  ;;  %v6332_v16 = vrot.slane %v13403_v13, 2  ;;  %vm6491_vm12 = vcmask 1043459  }
0x14f5   :  { %v6061_v39 = vmul.f32 %v6037_v60, %v13956_v40  ;;  %v6294_v60 = vadd.f32 %v13176_v52, %v6275_v30  ;;  %v6290_v37 = vadd.f32 %v13176_v52, %v6271_v49 }
0x14f6   :  { %v6210_v54 = vsub.f32 1.5, %v6209_v59  ;;  %v13408_v59 = vunpack.c.l.b16 %v6419_v0 }
0x14f7   :  { %v8029_v56 = vpop.eup %8028  ;;  %v13354_v38 = vadd.f32 1e-05, %v6061_v39  ;;  %v6360_v33 = vrot.slane %v6294_v60, 4  ;;  %6560 = vmatpush.bf16.msra.mxu0 %v7359_v9 }
0x14f8   :  { %v6211_v28 = vmul.f32 %v13289_v51, %v6210_v54  ;;  %v6217_v23 = vmul.f32 %v8029_v56, %v13298_v2  ;;  %vm6223_vm14 = vweird.f32 %v8029_v56  ;;  %v13416_v54 = vmul.f32 %v13277_v7, %v6317_v20 }
0x14f9   :  { %v6051_v62 = vpop.xlane.xlu0 %6050  ;;  %8030 = vrsqrt.f32 %v13354_v38  ;;  %vm6224_vm0 = vmor %vm6222_vm15, %vm6223_vm14  ;;  %vm6162_vm2 = vweird.f32 %v13354_v38  ;;  %v6361_v25 = vadd.f32 %v6360_v33, %v6294_v60  ;;  %v6322_v60 = vrot.slane %v6321_v44, 1 }
0x14fa   :  { %v6068_v8 = vmul.f32 %v6051_v62, %v13956_v40  ;;  %v6215_v63 = vsel %vm6214_vm13, %v13289_v51, %v6211_v28  ;;  %v6218_v32 = vmul.f32 %v8029_v56, %v6217_v23  ;;  %v6274_v51 = vmul.f32 %v13164_v48, %v6255_v4 }
0x14fb   :  { %v6258_v58 = vmul.f32 %v6215_v63, %v13109_v43  ;;  %v6292_v43 = vadd.f32 %v13176_v52, %v6273_v29  ;;  %v6366_v23 = vrot.slane %v6295_v26, 4  ;;  %v6336_v63 = vrot.slane %v6290_v37, 4 }
0x14fc   :  { %v13384_v35 = vadd.f32 1e-05, %v6068_v8  ;;  %v6219_v27 = vmul.f32 0.5, %v6218_v32  ;;  %v6293_v18 = vadd.f32 %v13176_v52, %v6274_v51  ;;  %v6421_v15 = vpack.c.bf16 %v13416_v54, %v13416_v54 }
0x14fd   :  { %v6277_v45 = vmul.f32 %v13164_v48, %v6258_v58  ;;  %v6348_v39 = vrot.slane %v6292_v43, 4  ;;  %v6367_v51 = vadd.f32 %v6366_v23, %v6295_v26  ;;  %v6323_v33 = vadd.f32 %v6322_v60, %v6321_v44 }
0x14fe   :  { %8032 = vrsqrt.f32 %v13384_v35  ;;  %v6220_v10 = vsub.f32 1.5, %v6219_v27  ;;  %vm6232_vm5 = vweird.f32 %v13384_v35  ;;  %vm6493_vm13 = vcmask 1044484  }
0x14ff   :  { %v8031_v42 = vpop.eup %8030  ;;  %v6296_v5 = vadd.f32 %v13176_v52, %v6277_v45  ;;  %v6349_v28 = vadd.f32 %v6348_v39, %v6292_v43  ;;  %v7358_v45 = vld [vmem:[%s13516_s16 + $0x20] sm:$0xff]  ;;  %v6368_v49 = vrot.slane %v6367_v51, 2  ;;  %vm6495_vm14 = vcmask 1045509  }
0x1500   :  { %v6221_v31 = vmul.f32 %v8029_v56, %v6220_v10  ;;  %v6157_v61 = vmul.f32 %v8031_v42, %v13354_v38  ;;  %vm6163_vm1 = vweird.f32 %v8031_v42  ;;  %6561 = vmatpush.bf16.msra.mxu0 %v7358_v45  ;;  %vm6497_vm15 = vcmask 1046534  }
0x1501   :  { %v6053_v46 = vpop.xlane.xlu2 %6052  ;;  %v6372_v4 = vrot.slane %v6296_v5, 4  ;;  %vm6164_vm3 = vmor %vm6162_vm2, %vm6163_vm1  ;;  %v6350_v38 = vrot.slane %v6349_v28, 2 }
0x1502   :  { %v6069_v41 = vmul.f32 %v6053_v46, %v13956_v40  ;;  %v6225_v34 = vsel %vm6224_vm0, %v8029_v56, %v6221_v31  ;;  %v6158_v3 = vmul.f32 %v8031_v42, %v6157_v61  ;;  %v6354_v56 = vrot.slane %v6293_v18, 4 }
0x1503   :  { %v6259_v47 = vmul.f32 %v6225_v34, %v13115_v6  ;;  %v6373_v20 = vadd.f32 %v6372_v4, %v6296_v5  ;;  %v6362_v31 = vrot.slane %v6361_v25, 2  ;;  %v6351_v34 = vadd.f32 %v6350_v38, %v6349_v28 }
0x1504   :  { %v8033_v2 = vpop.eup %8032  ;;  %v13413_v12 = vadd.f32 1e-05, %v6069_v41  ;;  %v6159_v40 = vmul.f32 0.5, %v6158_v3  ;;  %v6355_v32 = vadd.f32 %v6354_v56, %v6293_v18  ;;  %vm6499_vm0 = vcmask 1047559  }
0x1505   :  { %v6227_v24 = vmul.f32 %v8033_v2, %v13384_v35  ;;  %v6278_v36 = vmul.f32 %v13164_v48, %v6259_v47  ;;  %vm6233_vm4 = vweird.f32 %v8033_v2  ;;  %v6329_v35 = vadd.f32 %v6328_v14, %v13395_v55 }
0x1506   :  { %8034 = vrsqrt.f32 %v13413_v12  ;;  %v6160_v19 = vsub.f32 1.5, %v6159_v40  ;;  %v6356_v43 = vrot.slane %v6355_v32, 2  ;;  %vm6234_vm6 = vmor %vm6232_vm5, %vm6233_vm4  ;;  %v6374_v3 = vrot.slane %v6373_v20, 2 }
0x1507   :  { %v6228_v6 = vmul.f32 %v8033_v2, %v6227_v24  ;;  %v6297_v62 = vadd.f32 %v13176_v52, %v6278_v36  ;;  %v6363_v40 = vadd.f32 %v6362_v31, %v6361_v25  ;;  %vm6242_vm8 = vweird.f32 %v13413_v12 }
0x1508   :  { %v6161_v8 = vmul.f32 %v8031_v42, %v6160_v19  ;;  %v6357_v26 = vadd.f32 %v6356_v43, %v6355_v32  ;;  %v6375_v19 = vadd.f32 %v6374_v3, %v6373_v20 }
0x1509   :  { %v6229_v11 = vmul.f32 0.5, %v6228_v6  ;;  %v6378_v29 = vrot.slane %v6297_v62, 4 }
0x150a   :  { %v6165_v58 = vsel %vm6164_vm3, %v8031_v42, %v6161_v8  ;;  %v6358_v14 = vrot.slane %v6357_v26, 1  ;;  %v6364_v8 = vrot.slane %v6363_v40, 1  ;;  %v6376_v25 = vrot.slane %v6375_v19, 1 }
0x150b   :  { %v6230_v27 = vsub.f32 1.5, %v6229_v11  ;;  %v6253_v17 = vmul.f32 %v6165_v58, %v13121_v1  ;;  %v6379_v42 = vadd.f32 %v6378_v29, %v6297_v62  ;;  %v6337_v1 = vadd.f32 %v6336_v63, %v6290_v37 }
0x150c   :  { %v8035_v0 = vpop.eup %8034  ;;  %v6369_v37 = vadd.f32 %v6368_v49, %v6367_v51  ;;  %v6359_v58 = vadd.f32 %v6358_v14, %v6357_v26  ;;  %v7355_v51 = vld [vmem:[%s13516_s16 + $0x8] sm:$0xff]  ;;  %v6377_v45 = vadd.f32 %v6376_v25, %v6375_v19  ;;  %v7354_v49 = vld [vmem:[%s13516_s16] sm:$0xff] }
0x150d   :  { %v6231_v30 = vmul.f32 %v8033_v2, %v6230_v27  ;;  %v6237_v10 = vmul.f32 %v8035_v0, %v13413_v12  ;;  %v6272_v22 = vmul.f32 %v13164_v48, %v6253_v17  ;;  %v6380_v47 = vrot.slane %v6379_v42, 2 }
0x150e   :  { %v6338_v55 = vrot.slane %v6337_v1, 2  ;;  %vm6243_vm7 = vweird.f32 %v8035_v0  ;;  %v6370_v63 = vrot.slane %v6369_v37, 1  ;;  %v6473_v12 = vunpack.c.l.b16 %v6421_v15 }
0x150f   :  { %v6235_v61 = vsel %vm6234_vm6, %v8033_v2, %v6231_v30  ;;  %v6238_v46 = vmul.f32 %v8035_v0, %v6237_v10  ;;  %v6291_v18 = vadd.f32 %v13176_v52, %v6272_v22  ;;  %v7357_v2 = vld [vmem:[%s13516_s16 + $0x18] sm:$0xff]  ;;  %v6381_v28 = vadd.f32 %v6380_v47, %v6379_v42  ;;  %vm6244_vm9 = vmor %vm6242_vm8, %vm6243_vm7 }
0x1510   :  { %v6260_v41 = vmul.f32 %v6235_v61, %v13127_v50  ;;  %v6333_v50 = vadd.f32 %v6332_v16, %v13403_v13  ;;  %6562 = vmatpush.bf16.msra.mxu0 %v7357_v2  ;;  %v6352_v13 = vrot.slane %v6351_v34, 1  ;;  %v6339_v4 = vadd.f32 %v6338_v55, %v6337_v1 }
0x1511   :  { %v6239_v39 = vmul.f32 0.5, %v6238_v46  ;;  %v6342_v54 = vrot.slane %v6291_v18, 4  ;;  %v6382_v27 = vrot.slane %v6381_v28, 1  ;;  %v6365_v30 = vadd.f32 %v6364_v8, %v6363_v40 }
0x1512   :  { %v6279_v5 = vmul.f32 %v13164_v48, %v6260_v41  ;;  %v6334_v9 = vrot.slane %v6333_v50, 1  ;;  %v6353_v17 = vadd.f32 %v6352_v13, %v6351_v34  ;;  %v6340_v20 = vrot.slane %v6339_v4, 1 }
0x1513   :  { %v6240_v24 = vsub.f32 1.5, %v6239_v39  ;;  %v6343_v56 = vadd.f32 %v6342_v54, %v6291_v18  ;;  %v6407_v42 = vmul.f32 %v13277_v7, %v6329_v35  ;;  %v6412_v1 = vmul.f32 %v13277_v7, %v6359_v58 }
0x1514   :  { %v6298_v36 = vadd.f32 %v13176_v52, %v6279_v5  ;;  %6563 = vmatpush.bf16.msra.mxu0 %v7356_v53  ;;  %v6335_v22 = vadd.f32 %v6334_v9, %v6333_v50  ;;  %v6383_v31 = vadd.f32 %v6382_v27, %v6381_v28  ;;  %v6341_v35 = vadd.f32 %v6340_v20, %v6339_v4 }
0x1515   :  { %v6241_v6 = vmul.f32 %v8035_v0, %v6240_v24  ;;  %v6344_v23 = vrot.slane %v6343_v56, 2  ;;  %v6413_v41 = vmul.f32 %v13277_v7, %v6365_v30  ;;  %v6423_v3 = vpack.c.bf16 %v6407_v42, %v6407_v42 }
0x1516   :  { %v6384_v62 = vrot.slane %v6298_v36, 4  ;;  %v6415_v39 = vmul.f32 %v13277_v7, %v6377_v45  ;;  %v6408_v26 = vmul.f32 %v13277_v7, %v6335_v22  ;;  %v6428_v47 = vpack.c.bf16 %v6412_v1, %v6412_v1 }
0x1517   :  { %v6245_v11 = vsel %vm6244_vm9, %v8035_v0, %v6241_v6  ;;  %v6345_v44 = vadd.f32 %v6344_v23, %v6343_v56  ;;  %v6406_v0 = vmul.f32 %v13277_v7, %v6323_v33  ;;  %v6416_v54 = vmul.f32 %v13277_v7, %v6383_v31 }
0x1518   :  { %v6385_v32 = vadd.f32 %v6384_v62, %v6298_v36  ;;  %v6261_v29 = vmul.f32 %v6245_v11, %v13133_v57  ;;  %v6371_v57 = vadd.f32 %v6370_v63, %v6369_v37  ;;  %6564 = vmatpush.bf16.msra.mxu0 %v7355_v51  ;;  %v6429_v55 = vpack.c.bf16 %v6413_v41, %v6413_v41 }
0x1519   :  { %v6346_v10 = vrot.slane %v6345_v44, 1  ;;  %v6422_v18 = vpack.c.bf16 %v6406_v0, %v6406_v0  ;;  %v6409_v40 = vmul.f32 %v13277_v7, %v6341_v35  ;;  %v6475_v33 = vunpack.c.l.b16 %v6423_v3 }
0x151a   :  { %v6386_v16 = vrot.slane %v6385_v32, 2  ;;  %v6280_v38 = vmul.f32 %v13164_v48, %v6261_v29  ;;  %v6488_v48 = vsel %vm6487_vm10, %v13386_v21, %v13408_v59  ;;  %v6414_v60 = vmul.f32 %v13277_v7, %v6371_v57 }
0x151b   :  { %v6347_v34 = vadd.f32 %v6346_v10, %v6345_v44  ;;  %v6474_v2 = vunpack.c.l.b16 %v6422_v18  ;;  %v6431_v19 = vpack.c.bf16 %v6415_v39, %v6415_v39  ;;  %v6490_v6 = vsel %vm6489_vm11, %v6473_v12, %v6488_v48  ;;  %v7391_v48 = vld [vmem:[%s13515_s17] ss:$0 sm:$0xff] }
0x151c   :  { %v6387_v15 = vadd.f32 %v6386_v16, %v6385_v32  ;;  %v6299_v43 = vadd.f32 %v13176_v52, %v6280_v38  ;;  %v6411_v52 = vmul.f32 %v13277_v7, %v6353_v17  ;;  %6565 = vmatpush.bf16.msra.mxu0 %v7354_v49  ;;  %v6430_v37 = vpack.c.bf16 %v6414_v60, %v6414_v60 }
0x151d   :  { %v6410_v36 = vmul.f32 %v13277_v7, %v6347_v34  ;;  %v6424_v14 = vpack.c.bf16 %v6408_v26, %v6408_v26  ;;  %v6480_v28 = vunpack.c.l.b16 %v6428_v47  ;;  %v6432_v23 = vpack.c.bf16 %v6416_v54, %v6416_v54 }
0x151e   :  { %v6388_v61 = vrot.slane %v6387_v15, 1  ;;  %v6390_v46 = vrot.slane %v6299_v43, 4  ;;  %v6427_v50 = vpack.c.bf16 %v6411_v52, %v6411_v52  ;;  %v6481_v53 = vunpack.c.l.b16 %v6429_v55 }
0x151f   :  { %v6425_v13 = vpack.c.bf16 %v6409_v40, %v6409_v40  ;;  %v6492_v8 = vsel %vm6491_vm12, %v6474_v2, %v6490_v6  ;;  %v6482_v63 = vunpack.c.l.b16 %v6430_v37  ;;  %v6426_v32 = vpack.c.bf16 %v6410_v36, %v6410_v36 }
0x1520   :  { %v6389_v21 = vadd.f32 %v6388_v61, %v6387_v15  ;;  %v6391_v59 = vadd.f32 %v6390_v46, %v6299_v43  ;;  %v6479_v11 = vunpack.c.l.b16 %v6427_v50  ;;  %v6483_v29 = vunpack.c.l.b16 %v6431_v19 }
0x1521   :  { %v6476_v25 = vunpack.c.l.b16 %v6424_v14  ;;  %v6484_v12 = vunpack.c.l.b16 %v6432_v23  ;;  %v6477_v27 = vunpack.c.l.b16 %v6425_v13  ;;  %v6494_v38 = vsel %vm6493_vm13, %v6475_v33, %v6492_v8 }
0x1522   :  { %v6392_v5 = vrot.slane %v6391_v59, 2  ;;  %v6417_v24 = vmul.f32 %v13277_v7, %v6389_v21  ;;  %v6501_v58 = vsel %vm6487_vm10, %v6480_v28, %v6479_v11  ;;  %v6478_v17 = vunpack.c.l.b16 %v6426_v32 }
0x1523   :  { %v6502_v51 = vsel %vm6489_vm11, %v6481_v53, %v6501_v58 }
0x1524   :  { %v6393_v56 = vadd.f32 %v6392_v5, %v6391_v59  ;;  %v6433_v4 = vpack.c.bf16 %v6417_v24, %v6417_v24  ;;  %v6503_v20 = vsel %vm6491_vm12, %v6482_v63, %v6502_v51 }
0x1525   :  { %v6504_v30 = vsel %vm6493_vm13, %v6483_v29, %v6503_v20 }
0x1526   :  { %v6394_v62 = vrot.slane %v6393_v56, 1  ;;  %v6485_v16 = vunpack.c.l.b16 %v6433_v4  ;;  %v6505_v10 = vsel %vm6495_vm14, %v6484_v12, %v6504_v30 }
0x1528   :  { %v6395_v44 = vadd.f32 %v6394_v62, %v6393_v56  ;;  %v6506_v43 = vsel %vm6497_vm15, %v6485_v16, %v6505_v10 }
0x152a   :  { %v6418_v9 = vmul.f32 %v13277_v7, %v6395_v44  ;;  %v6496_v7 = vsel %vm6495_vm14, %v6476_v25, %v6494_v38 }
0x152b   :  { %v6498_v15 = vsel %vm6497_vm15, %v6477_v27, %v6496_v7 }
0x152c   :  { %v6434_v0 = vpack.c.bf16 %v6418_v9, %v6418_v9  ;;  %v6500_v42 = vsel %vm6499_vm0, %v6478_v17, %v6498_v15 }
0x152e   :  { %v6486_v57 = vunpack.c.l.b16 %v6434_v0 }
0x1530   :  { %v6507_v22 = vsel %vm6499_vm0, %v6486_v57, %v6506_v43 }
0x1531   :  { %v6508_v45 = vpack.c.b16 %v6507_v22, %v6500_v42 }
0x1533   :  { %6566 = vmatmul.bf16.vlgmr.msra.gmra.mxu0 %v6508_v45 }
0x15b0   :  { %v6567_v1 = vpop.f32.mrf.mxu0 }
0x15b1   :  { %v6568_v31 = vadd.f32 %v7391_v48, %v6567_v1 }
0x15b3   :  { %6572 = vst [vmem:[%s13517_s18] sm:$0xff] %v6568_v31 }
0x15b8   :  { %v6569_v61 = vpop.f32.mrf.mxu0 }
0x15b9   :  { %v6570_v46 = vadd.f32 %v7391_v48, %v6569_v61 }
0x15bb   :  { %6573 = vst [vmem:[%s13517_s18 + $0x8] sm:$0xff] %v6570_v46 }

</bundles_post_ra>
